<compile_context>
chip_gen: v6e
topology: v6e:2x2x1
jax: 0.10.0
libtpu: 0.0.40
codegen_flags: <defaults>
</compile_context>

<pallas_src>
import functools

import jax
import jax.numpy as jnp
from jax import lax
from jax.experimental import pallas as pl
from jax.experimental.pallas import tpu as pltpu

EPS = 1e-5  # nn.BatchNorm2d default eps

# tap order t = ky*3 + kx  (matches w.reshape(9*C, Cout) row order); center tap t = 4
_TAPS = tuple((ky - 1, kx - 1) for ky in range(3) for kx in range(3))


def _block_kernel(x_ref,                      # (N*Cin, H*W)  f32, NCHW bits reinterpreted
                  wA_ref,                     # (9*Cin, 3*Cout)  [conv1 | conv2_x | pw_x@center]
                  g1_ref, be1_ref,            # (1, Cout) BN1 affine
                  wB_ref,                     # (9*Cout, 2*Cout) [conv2_h1 | pw_h1@center]
                  g2_ref, be2_ref,            # (1, Cout) BN2 affine
                  wph2_ref,                   # (Cout, Cout) pointwise h2 weight
                  bp_ref,                     # (1, Cout) pointwise bias
                  o_ref,                      # (N, Cout, H*W)  lane-dense output
                  px_ref,                     # scratch (N, H, W, 9*Cin)  x im2col
                  ph_ref,                     # scratch (N, H, W, 9*Cout) h1 im2col
                  *, cin, h, w):
    n_img = o_ref.shape[0]
    cout = g1_ref.shape[-1]
    hw = h * w
    nhw = n_img * hw
    inv = 1.0 / nhw

    # ---- fold NCHW -> pixel-major with one 2D transpose: xT[p, n*Cin+c] = x[n,c,p] ----
    xT = jnp.transpose(x_ref[...])                               # (HW, N*Cin)

    # ---- in-VMEM im2col of x: zero once, then 9 shifted window copies per image ----
    px_ref[...] = jnp.zeros_like(px_ref)
    for n in range(n_img):
        xn = xT[:, n * cin:(n + 1) * cin].reshape(h, w, cin)     # (H, W, Cin), free split
        for t, (dy, dx) in enumerate(_TAPS):
            yl, yh = max(0, -dy), h - max(0, dy)
            xl, xh = max(0, -dx), w - max(0, dx)
            px_ref[n, yl:yh, xl:xh, t * cin:(t + 1) * cin] = \
                xn[yl + dy:yh + dy, xl + dx:xh + dx, :]

    # ---- fused matmul A: conv1 | conv2-x-part | pointwise-x (K = 9*Cin) ----
    patches_x = px_ref[...].reshape(nhw, 9 * cin)                # leading-dim merge: free
    accA = jnp.dot(patches_x, wA_ref[...], preferred_element_type=jnp.float32)
    acc1 = accA[:, :cout]
    acc2 = accA[:, cout:2 * cout]
    out_x = accA[:, 2 * cout:]

    # ---- BN1 (training-mode batch stats, centered two-pass variance) + ReLU ----
    # conv bias b1 omitted: it cancels exactly under the batch-mean subtraction.
    m1 = jnp.sum(acc1, axis=0, keepdims=True) * inv
    d1 = acc1 - m1
    v1 = jnp.sum(d1 * d1, axis=0, keepdims=True) * inv
    h1 = jnp.maximum(d1 * (g1_ref[...] * lax.rsqrt(v1 + EPS)) + be1_ref[...], 0.0)

    # ---- in-VMEM im2col of h1 (9 shifted window copies, batched over N) ----
    ph_ref[...] = jnp.zeros_like(ph_ref)
    h1_4d = h1.reshape(n_img, h, w, cout)                        # leading-dim split: free
    for t, (dy, dx) in enumerate(_TAPS):
        yl, yh = max(0, -dy), h - max(0, dy)
        xl, xh = max(0, -dx), w - max(0, dx)
        ph_ref[:, yl:yh, xl:xh, t * cout:(t + 1) * cout] = \
            h1_4d[:, yl + dy:yh + dy, xl + dx:xh + dx, :]

    # ---- fused matmul B: conv2-h1-part | pointwise-h1 (K = 9*Cout) ----
    patches_h = ph_ref[...].reshape(nhw, 9 * cout)
    accB = jnp.dot(patches_h, wB_ref[...], preferred_element_type=jnp.float32)
    acc2 = acc2 + accB[:, :cout]
    out_h1 = accB[:, cout:]

    # ---- BN2 + ReLU (b2 cancels as above) ----
    m2 = jnp.sum(acc2, axis=0, keepdims=True) * inv
    d2 = acc2 - m2
    v2 = jnp.sum(d2 * d2, axis=0, keepdims=True) * inv
    h2 = jnp.maximum(d2 * (g2_ref[...] * lax.rsqrt(v2 + EPS)) + be2_ref[...], 0.0)

    # ---- pointwise over cat2 = [x, x, h1, h2]: x & h1 parts already folded above ----
    out = (out_x + out_h1
           + jnp.dot(h2, wph2_ref[...], preferred_element_type=jnp.float32)
           + bp_ref[...])                                        # (NHW, Cout)

    # ---- lane-dense, NCHW-ready output: (NHW, Cout) -> (N, Cout, HW) ----
    outT = jnp.transpose(out)                                    # (Cout, NHW) on the XLU
    for n in range(n_img):
        o_ref[n, :, :] = outT[:, n * hw:(n + 1) * hw]            # 256-lane unmasked stores


@jax.jit
def block_forward(x_nchw, params):
    """Pallas forward. x_nchw: (N, Cin, H, W) float32 -> (N, Cout, H, W)."""
    n, cin, h, w = x_nchw.shape
    cout = params["g1"].shape[-1]

    # Only free row-major reshapes on the activation path (no HBM transpose/pad/im2col).
    x2d = x_nchw.astype(jnp.float32).reshape(n * cin, h * w)

    # ---- weight prep (tiny, KB-sized, XLA glue) ----
    w1f = params["w1"].reshape(9 * cin, cout)                    # conv1, HWIO flattened
    wx2 = params["w2"][:, :, :cin, :].reshape(9 * cin, cout)     # conv2, x channels
    wh2 = params["w2"][:, :, cin:, :].reshape(9 * cout, cout)    # conv2, h1 channels
    wp = params["wp"]                                            # (2*(Cin+Cout), Cout)
    wpx = wp[:cin] + wp[cin:2 * cin]                             # x appears twice in cat2
    wph1 = wp[2 * cin:2 * cin + cout]
    wph2 = wp[2 * cin + cout:]
    # pointwise-x embedded at the center tap of the x-patch matrix
    wpx_embed = jnp.zeros((9 * cin, cout), jnp.float32).at[4 * cin:5 * cin].set(wpx)
    wA = jnp.concatenate([w1f, wx2, wpx_embed], axis=1)          # (9*Cin, 3*Cout)
    # pointwise-h1 embedded at the center tap of the h1-patch matrix
    wph1_embed = jnp.zeros((9 * cout, cout), jnp.float32).at[4 * cout:5 * cout].set(wph1)
    wB = jnp.concatenate([wh2, wph1_embed], axis=1)              # (9*Cout, 2*Cout)

    args = (x2d, wA, params["g1"], params["be1"], wB, params["g2"], params["be2"],
            wph2, params["bp"])
    vmem = pl.BlockSpec(memory_space=pltpu.MemorySpace.VMEM)

    out3 = pl.pallas_call(
        functools.partial(_block_kernel, cin=cin, h=h, w=w),
        out_shape=jax.ShapeDtypeStruct((n, cout, h * w), jnp.float32),
        in_specs=[vmem] * len(args),
        out_specs=vmem,
        scratch_shapes=[pltpu.VMEM((n, h, w, 9 * cin), jnp.float32),
                        pltpu.VMEM((n, h, w, 9 * cout), jnp.float32)],
        compiler_params=pltpu.CompilerParams(vmem_limit_bytes=32 * 1024 * 1024),
    )(*args)

    return out3.reshape(n, cout, h, w)                           # free minor-dim split


def block_reference(x_nchw, params):
    """Pure-JAX reference of the PyTorch forward (training-mode BN)."""
    x = jnp.transpose(x_nchw, (0, 2, 3, 1)).astype(jnp.float32)
    dn = ("NHWC", "HWIO", "NHWC")

    def bn_relu(y, g, be):
        m = jnp.mean(y, axis=(0, 1, 2), keepdims=True)
        v = jnp.mean((y - m) ** 2, axis=(0, 1, 2), keepdims=True)
        return jnp.maximum((y - m) * lax.rsqrt(v + EPS)
                           * g.reshape(1, 1, 1, -1) + be.reshape(1, 1, 1, -1), 0.0)

    c1 = lax.conv_general_dilated(x, params["w1"], (1, 1), "SAME",
                                  dimension_numbers=dn) + params["b1"].reshape(1, 1, 1, -1)
    c1 = bn_relu(c1, params["g1"], params["be1"])
    cat1 = jnp.concatenate([x, c1], axis=-1)
    c2 = lax.conv_general_dilated(cat1, params["w2"], (1, 1), "SAME",
                                  dimension_numbers=dn) + params["b2"].reshape(1, 1, 1, -1)
    c2 = bn_relu(c2, params["g2"], params["be2"])
    cat2 = jnp.concatenate([x, cat1, c2], axis=-1)
    out = jnp.einsum("nhwc,co->nhwo", cat2, params["wp"]) + params["bp"].reshape(1, 1, 1, -1)
    return jnp.transpose(out, (0, 3, 1, 2))


def init_params(key, cin, cout):
    c1 = cin + cout
    ks = jax.random.split(key, 11)
    return {
        # conv1: HWIO weight, bias (bias is a train-mode-BN no-op; kept for module fidelity)
        "w1": 0.1 * jax.random.normal(ks[0], (3, 3, cin, cout), jnp.float32),
        "b1": 0.1 * jax.random.normal(ks[1], (1, cout), jnp.float32),
        # bn1 affine (gamma, beta)
        "g1": 1.0 + 0.1 * jax.random.normal(ks[2], (1, cout), jnp.float32),
        "be1": 0.1 * jax.random.normal(ks[3], (1, cout), jnp.float32),
        # conv2
        "w2": 0.1 * jax.random.normal(ks[4], (3, 3, c1, cout), jnp.float32),
        "b2": 0.1 * jax.random.normal(ks[5], (1, cout), jnp.float32),
        # bn2 affine
        "g2": 1.0 + 0.1 * jax.random.normal(ks[6], (1, cout), jnp.float32),
        "be2": 0.1 * jax.random.normal(ks[7], (1, cout), jnp.float32),
        # pointwise 1x1 conv: (2*(cin+cout), cout) weight, bias
        "wp": 0.1 * jax.random.normal(ks[8], (2 * c1, cout), jnp.float32),
        "bp": 0.1 * jax.random.normal(ks[9], (1, cout), jnp.float32),
    }


if __name__ == "__main__":
    key = jax.random.PRNGKey(0)
    kx, kp = jax.random.split(key)

    in_channels, out_channels = 4, 8
    x = jax.random.normal(kx, (2, in_channels, 16, 16), jnp.float32)  # NCHW
    params = init_params(kp, in_channels, out_channels)

    out = jax.block_until_ready(block_forward(x, params))
    ref = jax.block_until_ready(block_reference(x, params))

    assert out.shape == (2, out_channels, 16, 16), out.shape
    assert jnp.allclose(out, ref, atol=2e-3, rtol=2e-3), (
        float(jnp.max(jnp.abs(out - ref))))

    print("KERNEL_OK")
</pallas_src>

<mosaic_0001>
module attributes {stable_mosaic.version = 11 : i64} {
  func.func @_block_kernel(%arg0: memref<8x256xf32, #tpu.memory_space<vmem>>, %arg1: memref<36x24xf32, #tpu.memory_space<vmem>>, %arg2: memref<1x8xf32, #tpu.memory_space<vmem>>, %arg3: memref<1x8xf32, #tpu.memory_space<vmem>>, %arg4: memref<72x16xf32, #tpu.memory_space<vmem>>, %arg5: memref<1x8xf32, #tpu.memory_space<vmem>>, %arg6: memref<1x8xf32, #tpu.memory_space<vmem>>, %arg7: memref<8x8xf32, #tpu.memory_space<vmem>>, %arg8: memref<1x8xf32, #tpu.memory_space<vmem>>, %arg9: memref<2x8x256xf32, #tpu.memory_space<vmem>>, %arg10: memref<2x16x16x36xf32, #tpu.memory_space<vmem>>, %arg11: memref<2x16x16x72xf32, #tpu.memory_space<vmem>>) attributes {dimension_semantics = [], scalar_prefetch = 0 : i64, scratch_operands = 2 : i64, tpu.core_type = #tpu.core_type<tc>} {
    %c0 = arith.constant 0 : index
    %c0_0 = arith.constant 0 : index
    %0 = vector.load %arg0[%c0, %c0_0] : memref<8x256xf32, #tpu.memory_space<vmem>>, vector<8x256xf32>
    %1 = tpu.transpose %0, [1, 0] : vector<8x256xf32> -> vector<256x8xf32>
    %cst = arith.constant 0.000000e+00 : f32
    %2 = vector.broadcast %cst : f32 to vector<2x16x16x36xf32>
    %c0_1 = arith.constant 0 : index
    %c0_2 = arith.constant 0 : index
    %c0_3 = arith.constant 0 : index
    %c0_4 = arith.constant 0 : index
    %3 = vector.load %arg10[%c0_1, %c0_2, %c0_3, %c0_4] : memref<2x16x16x36xf32, #tpu.memory_space<vmem>>, vector<2x16x16x36xf32>
    tpu.vector_store %arg10[%c0_1, %c0_2, %c0_3, %c0_4], %2 {strides = array<i32>} : memref<2x16x16x36xf32, #tpu.memory_space<vmem>>, vector<2x16x16x36xf32>,
    %4 = vector.extract_strided_slice %1 {offsets = [0, 0], sizes = [256, 4], strides = [1, 1]} : vector<256x8xf32> to vector<256x4xf32>
    %5 = vector.shape_cast %4 : vector<256x4xf32> to vector<16x16x4xf32>
    %6 = vector.extract_strided_slice %5 {offsets = [0, 0, 0], sizes = [15, 15, 4], strides = [1, 1, 1]} : vector<16x16x4xf32> to vector<15x15x4xf32>
    %c0_5 = arith.constant 0 : index
    %c1 = arith.constant 1 : index
    %c1_6 = arith.constant 1 : index
    %c0_7 = arith.constant 0 : index
    %7 = vector.load %arg10[%c0_5, %c1, %c1_6, %c0_7] : memref<2x16x16x36xf32, #tpu.memory_space<vmem>>, vector<1x15x15x4xf32>
    %8 = vector.shape_cast %7 : vector<1x15x15x4xf32> to vector<15x15x4xf32>
    %9 = vector.shape_cast %6 : vector<15x15x4xf32> to vector<1x15x15x4xf32>
    tpu.vector_store %arg10[%c0_5, %c1, %c1_6, %c0_7], %9 {strides = array<i32>} : memref<2x16x16x36xf32, #tpu.memory_space<vmem>>, vector<1x15x15x4xf32>,
    %10 = vector.extract_strided_slice %5 {offsets = [0, 0, 0], sizes = [15, 16, 4], strides = [1, 1, 1]} : vector<16x16x4xf32> to vector<15x16x4xf32>
    %c0_8 = arith.constant 0 : index
    %c1_9 = arith.constant 1 : index
    %c0_10 = arith.constant 0 : index
    %c4 = arith.constant 4 : index
    %11 = vector.load %arg10[%c0_8, %c1_9, %c0_10, %c4] : memref<2x16x16x36xf32, #tpu.memory_space<vmem>>, vector<1x15x16x4xf32>
    %12 = vector.shape_cast %11 : vector<1x15x16x4xf32> to vector<15x16x4xf32>
    %13 = vector.shape_cast %10 : vector<15x16x4xf32> to vector<1x15x16x4xf32>
    tpu.vector_store %arg10[%c0_8, %c1_9, %c0_10, %c4], %13 {strides = array<i32>} : memref<2x16x16x36xf32, #tpu.memory_space<vmem>>, vector<1x15x16x4xf32>,
    %14 = vector.extract_strided_slice %5 {offsets = [0, 1, 0], sizes = [15, 15, 4], strides = [1, 1, 1]} : vector<16x16x4xf32> to vector<15x15x4xf32>
    %c0_11 = arith.constant 0 : index
    %c1_12 = arith.constant 1 : index
    %c0_13 = arith.constant 0 : index
    %c8 = arith.constant 8 : index
    %15 = vector.load %arg10[%c0_11, %c1_12, %c0_13, %c8] : memref<2x16x16x36xf32, #tpu.memory_space<vmem>>, vector<1x15x15x4xf32>
    %16 = vector.shape_cast %15 : vector<1x15x15x4xf32> to vector<15x15x4xf32>
    %17 = vector.shape_cast %14 : vector<15x15x4xf32> to vector<1x15x15x4xf32>
    tpu.vector_store %arg10[%c0_11, %c1_12, %c0_13, %c8], %17 {strides = array<i32>} : memref<2x16x16x36xf32, #tpu.memory_space<vmem>>, vector<1x15x15x4xf32>,
    %18 = vector.extract_strided_slice %5 {offsets = [0, 0, 0], sizes = [16, 15, 4], strides = [1, 1, 1]} : vector<16x16x4xf32> to vector<16x15x4xf32>
    %c0_14 = arith.constant 0 : index
    %c0_15 = arith.constant 0 : index
    %c1_16 = arith.constant 1 : index
    %c12 = arith.constant 12 : index
    %19 = vector.load %arg10[%c0_14, %c0_15, %c1_16, %c12] : memref<2x16x16x36xf32, #tpu.memory_space<vmem>>, vector<1x16x15x4xf32>
    %20 = vector.shape_cast %19 : vector<1x16x15x4xf32> to vector<16x15x4xf32>
    %21 = vector.shape_cast %18 : vector<16x15x4xf32> to vector<1x16x15x4xf32>
    tpu.vector_store %arg10[%c0_14, %c0_15, %c1_16, %c12], %21 {strides = array<i32>} : memref<2x16x16x36xf32, #tpu.memory_space<vmem>>, vector<1x16x15x4xf32>,
    %c0_17 = arith.constant 0 : index
    %c0_18 = arith.constant 0 : index
    %c0_19 = arith.constant 0 : index
    %c16 = arith.constant 16 : index
    %22 = vector.load %arg10[%c0_17, %c0_18, %c0_19, %c16] : memref<2x16x16x36xf32, #tpu.memory_space<vmem>>, vector<1x16x16x4xf32>
    %23 = vector.shape_cast %22 : vector<1x16x16x4xf32> to vector<16x16x4xf32>
    %24 = vector.shape_cast %5 : vector<16x16x4xf32> to vector<1x16x16x4xf32>
    tpu.vector_store %arg10[%c0_17, %c0_18, %c0_19, %c16], %24 {strides = array<i32>} : memref<2x16x16x36xf32, #tpu.memory_space<vmem>>, vector<1x16x16x4xf32>,
    %25 = vector.extract_strided_slice %5 {offsets = [0, 1, 0], sizes = [16, 15, 4], strides = [1, 1, 1]} : vector<16x16x4xf32> to vector<16x15x4xf32>
    %c0_20 = arith.constant 0 : index
    %c0_21 = arith.constant 0 : index
    %c0_22 = arith.constant 0 : index
    %c20 = arith.constant 20 : index
    %26 = vector.load %arg10[%c0_20, %c0_21, %c0_22, %c20] : memref<2x16x16x36xf32, #tpu.memory_space<vmem>>, vector<1x16x15x4xf32>
    %27 = vector.shape_cast %26 : vector<1x16x15x4xf32> to vector<16x15x4xf32>
    %28 = vector.shape_cast %25 : vector<16x15x4xf32> to vector<1x16x15x4xf32>
    tpu.vector_store %arg10[%c0_20, %c0_21, %c0_22, %c20], %28 {strides = array<i32>} : memref<2x16x16x36xf32, #tpu.memory_space<vmem>>, vector<1x16x15x4xf32>,
    %29 = vector.extract_strided_slice %5 {offsets = [1, 0, 0], sizes = [15, 15, 4], strides = [1, 1, 1]} : vector<16x16x4xf32> to vector<15x15x4xf32>
    %c0_23 = arith.constant 0 : index
    %c0_24 = arith.constant 0 : index
    %c1_25 = arith.constant 1 : index
    %c24 = arith.constant 24 : index
    %30 = vector.load %arg10[%c0_23, %c0_24, %c1_25, %c24] : memref<2x16x16x36xf32, #tpu.memory_space<vmem>>, vector<1x15x15x4xf32>
    %31 = vector.shape_cast %30 : vector<1x15x15x4xf32> to vector<15x15x4xf32>
    %32 = vector.shape_cast %29 : vector<15x15x4xf32> to vector<1x15x15x4xf32>
    tpu.vector_store %arg10[%c0_23, %c0_24, %c1_25, %c24], %32 {strides = array<i32>} : memref<2x16x16x36xf32, #tpu.memory_space<vmem>>, vector<1x15x15x4xf32>,
    %33 = vector.extract_strided_slice %5 {offsets = [1, 0, 0], sizes = [15, 16, 4], strides = [1, 1, 1]} : vector<16x16x4xf32> to vector<15x16x4xf32>
    %c0_26 = arith.constant 0 : index
    %c0_27 = arith.constant 0 : index
    %c0_28 = arith.constant 0 : index
    %c28 = arith.constant 28 : index
    %34 = vector.load %arg10[%c0_26, %c0_27, %c0_28, %c28] : memref<2x16x16x36xf32, #tpu.memory_space<vmem>>, vector<1x15x16x4xf32>
    %35 = vector.shape_cast %34 : vector<1x15x16x4xf32> to vector<15x16x4xf32>
    %36 = vector.shape_cast %33 : vector<15x16x4xf32> to vector<1x15x16x4xf32>
    tpu.vector_store %arg10[%c0_26, %c0_27, %c0_28, %c28], %36 {strides = array<i32>} : memref<2x16x16x36xf32, #tpu.memory_space<vmem>>, vector<1x15x16x4xf32>,
    %37 = vector.extract_strided_slice %5 {offsets = [1, 1, 0], sizes = [15, 15, 4], strides = [1, 1, 1]} : vector<16x16x4xf32> to vector<15x15x4xf32>
    %c0_29 = arith.constant 0 : index
    %c0_30 = arith.constant 0 : index
    %c0_31 = arith.constant 0 : index
    %c32 = arith.constant 32 : index
    %38 = vector.load %arg10[%c0_29, %c0_30, %c0_31, %c32] : memref<2x16x16x36xf32, #tpu.memory_space<vmem>>, vector<1x15x15x4xf32>
    %39 = vector.shape_cast %38 : vector<1x15x15x4xf32> to vector<15x15x4xf32>
    %40 = vector.shape_cast %37 : vector<15x15x4xf32> to vector<1x15x15x4xf32>
    tpu.vector_store %arg10[%c0_29, %c0_30, %c0_31, %c32], %40 {strides = array<i32>} : memref<2x16x16x36xf32, #tpu.memory_space<vmem>>, vector<1x15x15x4xf32>,
    %41 = vector.extract_strided_slice %1 {offsets = [0, 4], sizes = [256, 4], strides = [1, 1]} : vector<256x8xf32> to vector<256x4xf32>
    %42 = vector.shape_cast %41 : vector<256x4xf32> to vector<16x16x4xf32>
    %43 = vector.extract_strided_slice %42 {offsets = [0, 0, 0], sizes = [15, 15, 4], strides = [1, 1, 1]} : vector<16x16x4xf32> to vector<15x15x4xf32>
    %c1_32 = arith.constant 1 : index
    %c1_33 = arith.constant 1 : index
    %c1_34 = arith.constant 1 : index
    %c0_35 = arith.constant 0 : index
    %44 = vector.load %arg10[%c1_32, %c1_33, %c1_34, %c0_35] : memref<2x16x16x36xf32, #tpu.memory_space<vmem>>, vector<1x15x15x4xf32>
    %45 = vector.shape_cast %44 : vector<1x15x15x4xf32> to vector<15x15x4xf32>
    %46 = vector.shape_cast %43 : vector<15x15x4xf32> to vector<1x15x15x4xf32>
    tpu.vector_store %arg10[%c1_32, %c1_33, %c1_34, %c0_35], %46 {strides = array<i32>} : memref<2x16x16x36xf32, #tpu.memory_space<vmem>>, vector<1x15x15x4xf32>,
    %47 = vector.extract_strided_slice %42 {offsets = [0, 0, 0], sizes = [15, 16, 4], strides = [1, 1, 1]} : vector<16x16x4xf32> to vector<15x16x4xf32>
    %c1_36 = arith.constant 1 : index
    %c1_37 = arith.constant 1 : index
    %c0_38 = arith.constant 0 : index
    %c4_39 = arith.constant 4 : index
    %48 = vector.load %arg10[%c1_36, %c1_37, %c0_38, %c4_39] : memref<2x16x16x36xf32, #tpu.memory_space<vmem>>, vector<1x15x16x4xf32>
    %49 = vector.shape_cast %48 : vector<1x15x16x4xf32> to vector<15x16x4xf32>
    %50 = vector.shape_cast %47 : vector<15x16x4xf32> to vector<1x15x16x4xf32>
    tpu.vector_store %arg10[%c1_36, %c1_37, %c0_38, %c4_39], %50 {strides = array<i32>} : memref<2x16x16x36xf32, #tpu.memory_space<vmem>>, vector<1x15x16x4xf32>,
    %51 = vector.extract_strided_slice %42 {offsets = [0, 1, 0], sizes = [15, 15, 4], strides = [1, 1, 1]} : vector<16x16x4xf32> to vector<15x15x4xf32>
    %c1_40 = arith.constant 1 : index
    %c1_41 = arith.constant 1 : index
    %c0_42 = arith.constant 0 : index
    %c8_43 = arith.constant 8 : index
    %52 = vector.load %arg10[%c1_40, %c1_41, %c0_42, %c8_43] : memref<2x16x16x36xf32, #tpu.memory_space<vmem>>, vector<1x15x15x4xf32>
    %53 = vector.shape_cast %52 : vector<1x15x15x4xf32> to vector<15x15x4xf32>
    %54 = vector.shape_cast %51 : vector<15x15x4xf32> to vector<1x15x15x4xf32>
    tpu.vector_store %arg10[%c1_40, %c1_41, %c0_42, %c8_43], %54 {strides = array<i32>} : memref<2x16x16x36xf32, #tpu.memory_space<vmem>>, vector<1x15x15x4xf32>,
    %55 = vector.extract_strided_slice %42 {offsets = [0, 0, 0], sizes = [16, 15, 4], strides = [1, 1, 1]} : vector<16x16x4xf32> to vector<16x15x4xf32>
    %c1_44 = arith.constant 1 : index
    %c0_45 = arith.constant 0 : index
    %c1_46 = arith.constant 1 : index
    %c12_47 = arith.constant 12 : index
    %56 = vector.load %arg10[%c1_44, %c0_45, %c1_46, %c12_47] : memref<2x16x16x36xf32, #tpu.memory_space<vmem>>, vector<1x16x15x4xf32>
    %57 = vector.shape_cast %56 : vector<1x16x15x4xf32> to vector<16x15x4xf32>
    %58 = vector.shape_cast %55 : vector<16x15x4xf32> to vector<1x16x15x4xf32>
    tpu.vector_store %arg10[%c1_44, %c0_45, %c1_46, %c12_47], %58 {strides = array<i32>} : memref<2x16x16x36xf32, #tpu.memory_space<vmem>>, vector<1x16x15x4xf32>,
    %c1_48 = arith.constant 1 : index
    %c0_49 = arith.constant 0 : index
    %c0_50 = arith.constant 0 : index
    %c16_51 = arith.constant 16 : index
    %59 = vector.load %arg10[%c1_48, %c0_49, %c0_50, %c16_51] : memref<2x16x16x36xf32, #tpu.memory_space<vmem>>, vector<1x16x16x4xf32>
    %60 = vector.shape_cast %59 : vector<1x16x16x4xf32> to vector<16x16x4xf32>
    %61 = vector.shape_cast %42 : vector<16x16x4xf32> to vector<1x16x16x4xf32>
    tpu.vector_store %arg10[%c1_48, %c0_49, %c0_50, %c16_51], %61 {strides = array<i32>} : memref<2x16x16x36xf32, #tpu.memory_space<vmem>>, vector<1x16x16x4xf32>,
    %62 = vector.extract_strided_slice %42 {offsets = [0, 1, 0], sizes = [16, 15, 4], strides = [1, 1, 1]} : vector<16x16x4xf32> to vector<16x15x4xf32>
    %c1_52 = arith.constant 1 : index
    %c0_53 = arith.constant 0 : index
    %c0_54 = arith.constant 0 : index
    %c20_55 = arith.constant 20 : index
    %63 = vector.load %arg10[%c1_52, %c0_53, %c0_54, %c20_55] : memref<2x16x16x36xf32, #tpu.memory_space<vmem>>, vector<1x16x15x4xf32>
    %64 = vector.shape_cast %63 : vector<1x16x15x4xf32> to vector<16x15x4xf32>
    %65 = vector.shape_cast %62 : vector<16x15x4xf32> to vector<1x16x15x4xf32>
    tpu.vector_store %arg10[%c1_52, %c0_53, %c0_54, %c20_55], %65 {strides = array<i32>} : memref<2x16x16x36xf32, #tpu.memory_space<vmem>>, vector<1x16x15x4xf32>,
    %66 = vector.extract_strided_slice %42 {offsets = [1, 0, 0], sizes = [15, 15, 4], strides = [1, 1, 1]} : vector<16x16x4xf32> to vector<15x15x4xf32>
    %c1_56 = arith.constant 1 : index
    %c0_57 = arith.constant 0 : index
    %c1_58 = arith.constant 1 : index
    %c24_59 = arith.constant 24 : index
    %67 = vector.load %arg10[%c1_56, %c0_57, %c1_58, %c24_59] : memref<2x16x16x36xf32, #tpu.memory_space<vmem>>, vector<1x15x15x4xf32>
    %68 = vector.shape_cast %67 : vector<1x15x15x4xf32> to vector<15x15x4xf32>
    %69 = vector.shape_cast %66 : vector<15x15x4xf32> to vector<1x15x15x4xf32>
    tpu.vector_store %arg10[%c1_56, %c0_57, %c1_58, %c24_59], %69 {strides = array<i32>} : memref<2x16x16x36xf32, #tpu.memory_space<vmem>>, vector<1x15x15x4xf32>,
    %70 = vector.extract_strided_slice %42 {offsets = [1, 0, 0], sizes = [15, 16, 4], strides = [1, 1, 1]} : vector<16x16x4xf32> to vector<15x16x4xf32>
    %c1_60 = arith.constant 1 : index
    %c0_61 = arith.constant 0 : index
    %c0_62 = arith.constant 0 : index
    %c28_63 = arith.constant 28 : index
    %71 = vector.load %arg10[%c1_60, %c0_61, %c0_62, %c28_63] : memref<2x16x16x36xf32, #tpu.memory_space<vmem>>, vector<1x15x16x4xf32>
    %72 = vector.shape_cast %71 : vector<1x15x16x4xf32> to vector<15x16x4xf32>
    %73 = vector.shape_cast %70 : vector<15x16x4xf32> to vector<1x15x16x4xf32>
    tpu.vector_store %arg10[%c1_60, %c0_61, %c0_62, %c28_63], %73 {strides = array<i32>} : memref<2x16x16x36xf32, #tpu.memory_space<vmem>>, vector<1x15x16x4xf32>,
    %74 = vector.extract_strided_slice %42 {offsets = [1, 1, 0], sizes = [15, 15, 4], strides = [1, 1, 1]} : vector<16x16x4xf32> to vector<15x15x4xf32>
    %c1_64 = arith.constant 1 : index
    %c0_65 = arith.constant 0 : index
    %c0_66 = arith.constant 0 : index
    %c32_67 = arith.constant 32 : index
    %75 = vector.load %arg10[%c1_64, %c0_65, %c0_66, %c32_67] : memref<2x16x16x36xf32, #tpu.memory_space<vmem>>, vector<1x15x15x4xf32>
    %76 = vector.shape_cast %75 : vector<1x15x15x4xf32> to vector<15x15x4xf32>
    %77 = vector.shape_cast %74 : vector<15x15x4xf32> to vector<1x15x15x4xf32>
    tpu.vector_store %arg10[%c1_64, %c0_65, %c0_66, %c32_67], %77 {strides = array<i32>} : memref<2x16x16x36xf32, #tpu.memory_space<vmem>>, vector<1x15x15x4xf32>,
    %c0_68 = arith.constant 0 : index
    %c0_69 = arith.constant 0 : index
    %c0_70 = arith.constant 0 : index
    %c0_71 = arith.constant 0 : index
    %78 = vector.load %arg10[%c0_68, %c0_69, %c0_70, %c0_71] : memref<2x16x16x36xf32, #tpu.memory_space<vmem>>, vector<2x16x16x36xf32>
    %79 = vector.shape_cast %78 : vector<2x16x16x36xf32> to vector<512x36xf32>
    %c0_72 = arith.constant 0 : index
    %c0_73 = arith.constant 0 : index
    %80 = vector.load %arg1[%c0_72, %c0_73] : memref<36x24xf32, #tpu.memory_space<vmem>>, vector<36x24xf32>
    %cst_74 = arith.constant dense<0.000000e+00> : vector<512x24xf32>
    %81 = tpu.matmul %79, %80, %cst_74 {dimension_numbers = #tpu.dot_dimension_numbers<[1], [0], [0], [1], [0, 0, 1, 1], [], []>} : vector<512x36xf32>, vector<36x24xf32>, vector<512x24xf32> -> vector<512x24xf32>
    %82 = vector.extract_strided_slice %81 {offsets = [0, 0], sizes = [512, 8], strides = [1, 1]} : vector<512x24xf32> to vector<512x8xf32>
    %83 = vector.extract_strided_slice %81 {offsets = [0, 8], sizes = [512, 8], strides = [1, 1]} : vector<512x24xf32> to vector<512x8xf32>
    %84 = vector.extract_strided_slice %81 {offsets = [0, 16], sizes = [512, 8], strides = [1, 1]} : vector<512x24xf32> to vector<512x8xf32>
    %cst_75 = arith.constant dense<0.000000e+00> : vector<8xf32>
    %85 = vector.multi_reduction <add>, %82, %cst_75 [0] : vector<512x8xf32> to vector<8xf32>
    %86 = vector.shape_cast %85 : vector<8xf32> to vector<1x8xf32>
    %cst_76 = arith.constant 0.001953125 : f32
    %87 = vector.broadcast %cst_76 : f32 to vector<1x8xf32>
    %88 = arith.mulf %86, %87 : vector<1x8xf32>
    %89 = vector.broadcast %88 : vector<1x8xf32> to vector<512x8xf32>
    %90 = arith.subf %82, %89 : vector<512x8xf32>
    %91 = arith.mulf %90, %90 : vector<512x8xf32>
    %cst_77 = arith.constant dense<0.000000e+00> : vector<8xf32>
    %92 = vector.multi_reduction <add>, %91, %cst_77 [0] : vector<512x8xf32> to vector<8xf32>
    %93 = vector.shape_cast %92 : vector<8xf32> to vector<1x8xf32>
    %cst_78 = arith.constant 0.001953125 : f32
    %94 = vector.broadcast %cst_78 : f32 to vector<1x8xf32>
    %95 = arith.mulf %93, %94 : vector<1x8xf32>
    %c0_79 = arith.constant 0 : index
    %c0_80 = arith.constant 0 : index
    %96 = vector.load %arg2[%c0_79, %c0_80] : memref<1x8xf32, #tpu.memory_space<vmem>>, vector<1x8xf32>
    %cst_81 = arith.constant 9.99999974E-6 : f32
    %97 = vector.broadcast %cst_81 : f32 to vector<1x8xf32>
    %98 = arith.addf %95, %97 : vector<1x8xf32>
    %99 = math.rsqrt %98 : vector<1x8xf32>
    %100 = arith.mulf %96, %99 : vector<1x8xf32>
    %101 = vector.broadcast %100 : vector<1x8xf32> to vector<512x8xf32>
    %102 = arith.mulf %90, %101 : vector<512x8xf32>
    %c0_82 = arith.constant 0 : index
    %c0_83 = arith.constant 0 : index
    %103 = vector.load %arg3[%c0_82, %c0_83] : memref<1x8xf32, #tpu.memory_space<vmem>>, vector<1x8xf32>
    %104 = vector.broadcast %103 : vector<1x8xf32> to vector<512x8xf32>
    %105 = arith.addf %102, %104 : vector<512x8xf32>
    %cst_84 = arith.constant 0.000000e+00 : f32
    %106 = vector.broadcast %cst_84 : f32 to vector<512x8xf32>
    %107 = arith.maximumf %105, %106 : vector<512x8xf32>
    %cst_85 = arith.constant 0.000000e+00 : f32
    %108 = vector.broadcast %cst_85 : f32 to vector<2x16x16x72xf32>
    %c0_86 = arith.constant 0 : index
    %c0_87 = arith.constant 0 : index
    %c0_88 = arith.constant 0 : index
    %c0_89 = arith.constant 0 : index
    %109 = vector.load %arg11[%c0_86, %c0_87, %c0_88, %c0_89] : memref<2x16x16x72xf32, #tpu.memory_space<vmem>>, vector<2x16x16x72xf32>
    tpu.vector_store %arg11[%c0_86, %c0_87, %c0_88, %c0_89], %108 {strides = array<i32>} : memref<2x16x16x72xf32, #tpu.memory_space<vmem>>, vector<2x16x16x72xf32>,
    %110 = vector.shape_cast %107 : vector<512x8xf32> to vector<2x16x16x8xf32>
    %111 = vector.extract_strided_slice %110 {offsets = [0, 0, 0, 0], sizes = [2, 15, 15, 8], strides = [1, 1, 1, 1]} : vector<2x16x16x8xf32> to vector<2x15x15x8xf32>
    %c0_90 = arith.constant 0 : index
    %c1_91 = arith.constant 1 : index
    %c1_92 = arith.constant 1 : index
    %c0_93 = arith.constant 0 : index
    %112 = vector.load %arg11[%c0_90, %c1_91, %c1_92, %c0_93] : memref<2x16x16x72xf32, #tpu.memory_space<vmem>>, vector<2x15x15x8xf32>
    tpu.vector_store %arg11[%c0_90, %c1_91, %c1_92, %c0_93], %111 {strides = array<i32>} : memref<2x16x16x72xf32, #tpu.memory_space<vmem>>, vector<2x15x15x8xf32>,
    %113 = vector.extract_strided_slice %110 {offsets = [0, 0, 0, 0], sizes = [2, 15, 16, 8], strides = [1, 1, 1, 1]} : vector<2x16x16x8xf32> to vector<2x15x16x8xf32>
    %c0_94 = arith.constant 0 : index
    %c1_95 = arith.constant 1 : index
    %c0_96 = arith.constant 0 : index
    %c8_97 = arith.constant 8 : index
    %114 = vector.load %arg11[%c0_94, %c1_95, %c0_96, %c8_97] : memref<2x16x16x72xf32, #tpu.memory_space<vmem>>, vector<2x15x16x8xf32>
    tpu.vector_store %arg11[%c0_94, %c1_95, %c0_96, %c8_97], %113 {strides = array<i32>} : memref<2x16x16x72xf32, #tpu.memory_space<vmem>>, vector<2x15x16x8xf32>,
    %115 = vector.extract_strided_slice %110 {offsets = [0, 0, 1, 0], sizes = [2, 15, 15, 8], strides = [1, 1, 1, 1]} : vector<2x16x16x8xf32> to vector<2x15x15x8xf32>
    %c0_98 = arith.constant 0 : index
    %c1_99 = arith.constant 1 : index
    %c0_100 = arith.constant 0 : index
    %c16_101 = arith.constant 16 : index
    %116 = vector.load %arg11[%c0_98, %c1_99, %c0_100, %c16_101] : memref<2x16x16x72xf32, #tpu.memory_space<vmem>>, vector<2x15x15x8xf32>
    tpu.vector_store %arg11[%c0_98, %c1_99, %c0_100, %c16_101], %115 {strides = array<i32>} : memref<2x16x16x72xf32, #tpu.memory_space<vmem>>, vector<2x15x15x8xf32>,
    %117 = vector.extract_strided_slice %110 {offsets = [0, 0, 0, 0], sizes = [2, 16, 15, 8], strides = [1, 1, 1, 1]} : vector<2x16x16x8xf32> to vector<2x16x15x8xf32>
    %c0_102 = arith.constant 0 : index
    %c0_103 = arith.constant 0 : index
    %c1_104 = arith.constant 1 : index
    %c24_105 = arith.constant 24 : index
    %118 = vector.load %arg11[%c0_102, %c0_103, %c1_104, %c24_105] : memref<2x16x16x72xf32, #tpu.memory_space<vmem>>, vector<2x16x15x8xf32>
    tpu.vector_store %arg11[%c0_102, %c0_103, %c1_104, %c24_105], %117 {strides = array<i32>} : memref<2x16x16x72xf32, #tpu.memory_space<vmem>>, vector<2x16x15x8xf32>,
    %c0_106 = arith.constant 0 : index
    %c0_107 = arith.constant 0 : index
    %c0_108 = arith.constant 0 : index
    %c32_109 = arith.constant 32 : index
    %119 = vector.load %arg11[%c0_106, %c0_107, %c0_108, %c32_109] : memref<2x16x16x72xf32, #tpu.memory_space<vmem>>, vector<2x16x16x8xf32>
    tpu.vector_store %arg11[%c0_106, %c0_107, %c0_108, %c32_109], %110 {strides = array<i32>} : memref<2x16x16x72xf32, #tpu.memory_space<vmem>>, vector<2x16x16x8xf32>,
    %120 = vector.extract_strided_slice %110 {offsets = [0, 0, 1, 0], sizes = [2, 16, 15, 8], strides = [1, 1, 1, 1]} : vector<2x16x16x8xf32> to vector<2x16x15x8xf32>
    %c0_110 = arith.constant 0 : index
    %c0_111 = arith.constant 0 : index
    %c0_112 = arith.constant 0 : index
    %c40 = arith.constant 40 : index
    %121 = vector.load %arg11[%c0_110, %c0_111, %c0_112, %c40] : memref<2x16x16x72xf32, #tpu.memory_space<vmem>>, vector<2x16x15x8xf32>
    tpu.vector_store %arg11[%c0_110, %c0_111, %c0_112, %c40], %120 {strides = array<i32>} : memref<2x16x16x72xf32, #tpu.memory_space<vmem>>, vector<2x16x15x8xf32>,
    %122 = vector.extract_strided_slice %110 {offsets = [0, 1, 0, 0], sizes = [2, 15, 15, 8], strides = [1, 1, 1, 1]} : vector<2x16x16x8xf32> to vector<2x15x15x8xf32>
    %c0_113 = arith.constant 0 : index
    %c0_114 = arith.constant 0 : index
    %c1_115 = arith.constant 1 : index
    %c48 = arith.constant 48 : index
    %123 = vector.load %arg11[%c0_113, %c0_114, %c1_115, %c48] : memref<2x16x16x72xf32, #tpu.memory_space<vmem>>, vector<2x15x15x8xf32>
    tpu.vector_store %arg11[%c0_113, %c0_114, %c1_115, %c48], %122 {strides = array<i32>} : memref<2x16x16x72xf32, #tpu.memory_space<vmem>>, vector<2x15x15x8xf32>,
    %124 = vector.extract_strided_slice %110 {offsets = [0, 1, 0, 0], sizes = [2, 15, 16, 8], strides = [1, 1, 1, 1]} : vector<2x16x16x8xf32> to vector<2x15x16x8xf32>
    %c0_116 = arith.constant 0 : index
    %c0_117 = arith.constant 0 : index
    %c0_118 = arith.constant 0 : index
    %c56 = arith.constant 56 : index
    %125 = vector.load %arg11[%c0_116, %c0_117, %c0_118, %c56] : memref<2x16x16x72xf32, #tpu.memory_space<vmem>>, vector<2x15x16x8xf32>
    tpu.vector_store %arg11[%c0_116, %c0_117, %c0_118, %c56], %124 {strides = array<i32>} : memref<2x16x16x72xf32, #tpu.memory_space<vmem>>, vector<2x15x16x8xf32>,
    %126 = vector.extract_strided_slice %110 {offsets = [0, 1, 1, 0], sizes = [2, 15, 15, 8], strides = [1, 1, 1, 1]} : vector<2x16x16x8xf32> to vector<2x15x15x8xf32>
    %c0_119 = arith.constant 0 : index
    %c0_120 = arith.constant 0 : index
    %c0_121 = arith.constant 0 : index
    %c64 = arith.constant 64 : index
    %127 = vector.load %arg11[%c0_119, %c0_120, %c0_121, %c64] : memref<2x16x16x72xf32, #tpu.memory_space<vmem>>, vector<2x15x15x8xf32>
    tpu.vector_store %arg11[%c0_119, %c0_120, %c0_121, %c64], %126 {strides = array<i32>} : memref<2x16x16x72xf32, #tpu.memory_space<vmem>>, vector<2x15x15x8xf32>,
    %c0_122 = arith.constant 0 : index
    %c0_123 = arith.constant 0 : index
    %c0_124 = arith.constant 0 : index
    %c0_125 = arith.constant 0 : index
    %128 = vector.load %arg11[%c0_122, %c0_123, %c0_124, %c0_125] : memref<2x16x16x72xf32, #tpu.memory_space<vmem>>, vector<2x16x16x72xf32>
    %129 = vector.shape_cast %128 : vector<2x16x16x72xf32> to vector<512x72xf32>
    %c0_126 = arith.constant 0 : index
    %c0_127 = arith.constant 0 : index
    %130 = vector.load %arg4[%c0_126, %c0_127] : memref<72x16xf32, #tpu.memory_space<vmem>>, vector<72x16xf32>
    %cst_128 = arith.constant dense<0.000000e+00> : vector<512x16xf32>
    %131 = tpu.matmul %129, %130, %cst_128 {dimension_numbers = #tpu.dot_dimension_numbers<[1], [0], [0], [1], [0, 0, 1, 1], [], []>} : vector<512x72xf32>, vector<72x16xf32>, vector<512x16xf32> -> vector<512x16xf32>
    %132 = vector.extract_strided_slice %131 {offsets = [0, 0], sizes = [512, 8], strides = [1, 1]} : vector<512x16xf32> to vector<512x8xf32>
    %133 = arith.addf %83, %132 : vector<512x8xf32>
    %134 = vector.extract_strided_slice %131 {offsets = [0, 8], sizes = [512, 8], strides = [1, 1]} : vector<512x16xf32> to vector<512x8xf32>
    %cst_129 = arith.constant dense<0.000000e+00> : vector<8xf32>
    %135 = vector.multi_reduction <add>, %133, %cst_129 [0] : vector<512x8xf32> to vector<8xf32>
    %136 = vector.shape_cast %135 : vector<8xf32> to vector<1x8xf32>
    %cst_130 = arith.constant 0.001953125 : f32
    %137 = vector.broadcast %cst_130 : f32 to vector<1x8xf32>
    %138 = arith.mulf %136, %137 : vector<1x8xf32>
    %139 = vector.broadcast %138 : vector<1x8xf32> to vector<512x8xf32>
    %140 = arith.subf %133, %139 : vector<512x8xf32>
    %141 = arith.mulf %140, %140 : vector<512x8xf32>
    %cst_131 = arith.constant dense<0.000000e+00> : vector<8xf32>
    %142 = vector.multi_reduction <add>, %141, %cst_131 [0] : vector<512x8xf32> to vector<8xf32>
    %143 = vector.shape_cast %142 : vector<8xf32> to vector<1x8xf32>
    %cst_132 = arith.constant 0.001953125 : f32
    %144 = vector.broadcast %cst_132 : f32 to vector<1x8xf32>
    %145 = arith.mulf %143, %144 : vector<1x8xf32>
    %c0_133 = arith.constant 0 : index
    %c0_134 = arith.constant 0 : index
    %146 = vector.load %arg5[%c0_133, %c0_134] : memref<1x8xf32, #tpu.memory_space<vmem>>, vector<1x8xf32>
    %cst_135 = arith.constant 9.99999974E-6 : f32
    %147 = vector.broadcast %cst_135 : f32 to vector<1x8xf32>
    %148 = arith.addf %145, %147 : vector<1x8xf32>
    %149 = math.rsqrt %148 : vector<1x8xf32>
    %150 = arith.mulf %146, %149 : vector<1x8xf32>
    %151 = vector.broadcast %150 : vector<1x8xf32> to vector<512x8xf32>
    %152 = arith.mulf %140, %151 : vector<512x8xf32>
    %c0_136 = arith.constant 0 : index
    %c0_137 = arith.constant 0 : index
    %153 = vector.load %arg6[%c0_136, %c0_137] : memref<1x8xf32, #tpu.memory_space<vmem>>, vector<1x8xf32>
    %154 = vector.broadcast %153 : vector<1x8xf32> to vector<512x8xf32>
    %155 = arith.addf %152, %154 : vector<512x8xf32>
    %cst_138 = arith.constant 0.000000e+00 : f32
    %156 = vector.broadcast %cst_138 : f32 to vector<512x8xf32>
    %157 = arith.maximumf %155, %156 : vector<512x8xf32>
    %158 = arith.addf %84, %134 : vector<512x8xf32>
    %c0_139 = arith.constant 0 : index
    %c0_140 = arith.constant 0 : index
    %159 = vector.load %arg7[%c0_139, %c0_140] : memref<8x8xf32, #tpu.memory_space<vmem>>, vector<8x8xf32>
    %cst_141 = arith.constant dense<0.000000e+00> : vector<512x8xf32>
    %160 = tpu.matmul %157, %159, %cst_141 {dimension_numbers = #tpu.dot_dimension_numbers<[1], [0], [0], [1], [0, 0, 1, 1], [], []>} : vector<512x8xf32>, vector<8x8xf32>, vector<512x8xf32> -> vector<512x8xf32>
    %161 = arith.addf %158, %160 : vector<512x8xf32>
    %c0_142 = arith.constant 0 : index
    %c0_143 = arith.constant 0 : index
    %162 = vector.load %arg8[%c0_142, %c0_143] : memref<1x8xf32, #tpu.memory_space<vmem>>, vector<1x8xf32>
    %163 = vector.broadcast %162 : vector<1x8xf32> to vector<512x8xf32>
    %164 = arith.addf %161, %163 : vector<512x8xf32>
    %165 = tpu.transpose %164, [1, 0] : vector<512x8xf32> -> vector<8x512xf32>
    %166 = vector.extract_strided_slice %165 {offsets = [0, 0], sizes = [8, 256], strides = [1, 1]} : vector<8x512xf32> to vector<8x256xf32>
    %c0_144 = arith.constant 0 : index
    %c0_145 = arith.constant 0 : index
    %c0_146 = arith.constant 0 : index
    %167 = vector.load %arg9[%c0_144, %c0_145, %c0_146] : memref<2x8x256xf32, #tpu.memory_space<vmem>>, vector<1x8x256xf32>
    %168 = vector.shape_cast %167 : vector<1x8x256xf32> to vector<8x256xf32>
    %169 = vector.shape_cast %166 : vector<8x256xf32> to vector<1x8x256xf32>
    tpu.vector_store %arg9[%c0_144, %c0_145, %c0_146], %169 {strides = array<i32>} : memref<2x8x256xf32, #tpu.memory_space<vmem>>, vector<1x8x256xf32>,
    %170 = vector.extract_strided_slice %165 {offsets = [0, 256], sizes = [8, 256], strides = [1, 1]} : vector<8x512xf32> to vector<8x256xf32>
    %c1_147 = arith.constant 1 : index
    %c0_148 = arith.constant 0 : index
    %c0_149 = arith.constant 0 : index
    %171 = vector.load %arg9[%c1_147, %c0_148, %c0_149] : memref<2x8x256xf32, #tpu.memory_space<vmem>>, vector<1x8x256xf32>
    %172 = vector.shape_cast %171 : vector<1x8x256xf32> to vector<8x256xf32>
    %173 = vector.shape_cast %170 : vector<8x256xf32> to vector<1x8x256xf32>
    tpu.vector_store %arg9[%c1_147, %c0_148, %c0_149], %173 {strides = array<i32>} : memref<2x8x256xf32, #tpu.memory_space<vmem>>, vector<1x8x256xf32>,
    return
  }
}

</mosaic_0001>

<bundles_post_ra>
// kernel: block_forward.1
= control target key start
LH: loop header
LB: loop body
LE: loop exit
PB: predicated region body
PF: predicated region fallthrough
CT: control target
= control target key end

     0   :  { %vm98_vm0 = vcmask 293888   ;;  %v15933_v1 = vmov 0.0   ;;  %vm164_vm1 = vcmask 31744   ;;  %s8871_s13 = smov 4   ;;  %vm166_vm2 = vcmask 30720   ;;  %s8873_s14 = smov 12   ;;  %s15923_s0 = inlined_call_operand.vmem [shape: f32[8,256], index: 0, kind: input, shape index: {}]   ;;  %s15924_s1 = inlined_call_operand.vmem [shape: f32[36,24], index: 1, kind: input, shape index: {}]   ;;  %s15925_s2 = inlined_call_operand.vmem [shape: f32[1,8], index: 2, kind: input, shape index: {}]   ;;  %s15926_s3 = inlined_call_operand.vmem [shape: f32[1,8], index: 3, kind: input, shape index: {}]   ;;  %s15927_s4 = inlined_call_operand.vmem [shape: f32[72,16], index: 4, kind: input, shape index: {}]   ;;  %s15928_s6 = inlined_call_operand.vmem [shape: f32[1,8], index: 6, kind: input, shape index: {}]   ;;  %s15929_s5 = inlined_call_operand.vmem [shape: f32[1,8], index: 5, kind: input, shape index: {}]   ;;  %s15930_s7 = inlined_call_operand.vmem [shape: f32[8,8], index: 7, kind: input, shape index: {}]   ;;  %s15931_s8 = inlined_call_operand.vmem [shape: f32[1,8], index: 8, kind: input, shape index: {}]   ;;  %s15932_s9 = inlined_call_operand.vmem [shape: f32[2,8,256], index: 9, kind: output, shape index: {}]  }
   0x1   :  { %v8940_v0 = vld [vmem:[%s15923_s0] sm:$0xff]  ;;  %101 = vst.msk [vmem:[#allocation2 + $0x10] sm:$0xff] %vm98_vm0, %v15933_v1  ;;  %102 = vst.msk [vmem:[#allocation2 + $0x18] sm:$0xff] %vm98_vm0, %v15933_v1  ;;  %v33_v2 = vld [vmem:[%s15923_s0 + $0x8] sm:$0xff]  ;;  %s8872_s0 = smov 8   ;;  %vm316_vm3 = vcmask 64544  }
   0x2   :  { %99 = vst.msk [vmem:[#allocation2] sm:$0xff] %vm98_vm0, %v15933_v1  ;;  %100 = vst.msk [vmem:[#allocation2 + $0x8] sm:$0xff] %vm98_vm0, %v15933_v1  ;;  %34 = vxpose.xlu0.b32.start.end [1/1] (short) %v8940_v0, 128  ;;  %s8874_s15 = smov 16   ;;  %vm437_vm4 = vcmask 97345   ;;  %vm567_vm5 = vcmask 130144   ;;  %vm439_vm6 = vcmask 97344  }
   0x3   :  { %103 = vst.msk [vmem:[#allocation2 + $0x20] sm:$0xff] %vm98_vm0, %v15933_v1  ;;  %104 = vst.msk [vmem:[#allocation2 + $0x28] sm:$0xff] %vm98_vm0, %v15933_v1  ;;  %vm569_vm7 = vcmask 129120   ;;  %vm697_vm8 = vcmask 162944   ;;  %s8875_s16 = smov 20   ;;  %s8876_s17 = smov 24  }
   0x4   :  { %105 = vst.msk [vmem:[#allocation2 + $0x30] sm:$0xff] %vm98_vm0, %v15933_v1  ;;  %106 = vst.msk [vmem:[#allocation2 + $0x38] sm:$0xff] %vm98_vm0, %v15933_v1  ;;  %s8877_s18 = smov 28   ;;  %s8878_s19 = smov 32   ;;  %vm828_vm9 = vcmask 195744   ;;  %vm952_vm10 = vcmask 227520  }
   0x5   :  { %107 = vst.msk [vmem:[#allocation2 + $0x40] sm:$0xff] %vm98_vm0, %v15933_v1  ;;  %108 = vst.msk [vmem:[#allocation2 + $0x48] sm:$0xff] %vm98_vm0, %v15933_v1  ;;  %vm826_vm11 = vcmask 195745   ;;  %vm1860_vm12 = vcmask 1043456   ;;  %vm950_vm13 = vcmask 228544   ;;  %vm1072_vm14 = vcmask 261344  }
   0x6   :  { %109 = vst.msk [vmem:[#allocation2 + $0x50] sm:$0xff] %vm98_vm0, %v15933_v1  ;;  %110 = vst.msk [vmem:[#allocation2 + $0x58] sm:$0xff] %vm98_vm0, %v15933_v1  ;;  %vm1193_vm15 = vcmask 294145   ;;  %s8880_s20 = smov 40   ;;  %s8881_s25 = smov 48  }
   0x7   :  { %111 = vst.msk [vmem:[#allocation2 + $0x60] sm:$0xff] %vm98_vm0, %v15933_v1  ;;  %112 = vst.msk [vmem:[#allocation2 + $0x68] sm:$0xff] %vm98_vm0, %v15933_v1 }
   0x8   :  { %113 = vst.msk [vmem:[#allocation2 + $0x70] sm:$0xff] %vm98_vm0, %v15933_v1  ;;  %114 = vst.msk [vmem:[#allocation2 + $0x78] sm:$0xff] %vm98_vm0, %v15933_v1 }
   0x9   :  { %115 = vst.msk [vmem:[#allocation2 + $0x80] sm:$0xff] %vm98_vm0, %v15933_v1  ;;  %116 = vst.msk [vmem:[#allocation2 + $0x88] sm:$0xff] %vm98_vm0, %v15933_v1 }
   0xa   :  { %117 = vst.msk [vmem:[#allocation2 + $0x90] sm:$0xff] %vm98_vm0, %v15933_v1  ;;  %118 = vst.msk [vmem:[#allocation2 + $0x98] sm:$0xff] %vm98_vm0, %v15933_v1 }
   0xb   :  { %119 = vst.msk [vmem:[#allocation2 + $0xa0] sm:$0xff] %vm98_vm0, %v15933_v1  ;;  %120 = vst.msk [vmem:[#allocation2 + $0xa8] sm:$0xff] %vm98_vm0, %v15933_v1 }
   0xc   :  { %121 = vst.msk [vmem:[#allocation2 + $0xb0] sm:$0xff] %vm98_vm0, %v15933_v1  ;;  %122 = vst.msk [vmem:[#allocation2 + $0xb8] sm:$0xff] %vm98_vm0, %v15933_v1 }
   0xd   :  { %123 = vst.msk [vmem:[#allocation2 + $0xc0] sm:$0xff] %vm98_vm0, %v15933_v1  ;;  %124 = vst.msk [vmem:[#allocation2 + $0xc8] sm:$0xff] %vm98_vm0, %v15933_v1 }
   0xe   :  { %125 = vst.msk [vmem:[#allocation2 + $0xd0] sm:$0xff] %vm98_vm0, %v15933_v1  ;;  %126 = vst.msk [vmem:[#allocation2 + $0xd8] sm:$0xff] %vm98_vm0, %v15933_v1 }
   0xf   :  { %127 = vst.msk [vmem:[#allocation2 + $0xe0] sm:$0xff] %vm98_vm0, %v15933_v1  ;;  %128 = vst.msk [vmem:[#allocation2 + $0xe8] sm:$0xff] %vm98_vm0, %v15933_v1 }
  0x10   :  { %129 = vst.msk [vmem:[#allocation2 + $0xf0] sm:$0xff] %vm98_vm0, %v15933_v1  ;;  %130 = vst.msk [vmem:[#allocation2 + $0xf8] sm:$0xff] %vm98_vm0, %v15933_v1 }
  0x11   :  { %131 = vst.msk [vmem:[#allocation2 + $0x100] sm:$0xff] %vm98_vm0, %v15933_v1  ;;  %132 = vst.msk [vmem:[#allocation2 + $0x108] sm:$0xff] %vm98_vm0, %v15933_v1 }
  0x12   :  { %133 = vst.msk [vmem:[#allocation2 + $0x110] sm:$0xff] %vm98_vm0, %v15933_v1  ;;  %134 = vst.msk [vmem:[#allocation2 + $0x118] sm:$0xff] %vm98_vm0, %v15933_v1 }
  0x13   :  { %135 = vst.msk [vmem:[#allocation2 + $0x120] sm:$0xff] %vm98_vm0, %v15933_v1  ;;  %136 = vst.msk [vmem:[#allocation2 + $0x128] sm:$0xff] %vm98_vm0, %v15933_v1 }
  0x14   :  { %137 = vst.msk [vmem:[#allocation2 + $0x130] sm:$0xff] %vm98_vm0, %v15933_v1  ;;  %138 = vst.msk [vmem:[#allocation2 + $0x138] sm:$0xff] %vm98_vm0, %v15933_v1 }
  0x15   :  { %139 = vst.msk [vmem:[#allocation2 + $0x140] sm:$0xff] %vm98_vm0, %v15933_v1  ;;  %140 = vst.msk [vmem:[#allocation2 + $0x148] sm:$0xff] %vm98_vm0, %v15933_v1 }
  0x16   :  { %141 = vst.msk [vmem:[#allocation2 + $0x150] sm:$0xff] %vm98_vm0, %v15933_v1  ;;  %142 = vst.msk [vmem:[#allocation2 + $0x158] sm:$0xff] %vm98_vm0, %v15933_v1 }
  0x17   :  { %143 = vst.msk [vmem:[#allocation2 + $0x160] sm:$0xff] %vm98_vm0, %v15933_v1  ;;  %144 = vst.msk [vmem:[#allocation2 + $0x168] sm:$0xff] %vm98_vm0, %v15933_v1 }
  0x18   :  { %145 = vst.msk [vmem:[#allocation2 + $0x170] sm:$0xff] %vm98_vm0, %v15933_v1  ;;  %146 = vst.msk [vmem:[#allocation2 + $0x178] sm:$0xff] %vm98_vm0, %v15933_v1 }
  0x19   :  { %147 = vst.msk [vmem:[#allocation2 + $0x180] sm:$0xff] %vm98_vm0, %v15933_v1  ;;  %148 = vst.msk [vmem:[#allocation2 + $0x188] sm:$0xff] %vm98_vm0, %v15933_v1 }
  0x1a   :  { %149 = vst.msk [vmem:[#allocation2 + $0x190] sm:$0xff] %vm98_vm0, %v15933_v1  ;;  %150 = vst.msk [vmem:[#allocation2 + $0x198] sm:$0xff] %vm98_vm0, %v15933_v1 }
  0x1b   :  { %151 = vst.msk [vmem:[#allocation2 + $0x1a0] sm:$0xff] %vm98_vm0, %v15933_v1  ;;  %152 = vst.msk [vmem:[#allocation2 + $0x1a8] sm:$0xff] %vm98_vm0, %v15933_v1 }
  0x1c   :  { %153 = vst.msk [vmem:[#allocation2 + $0x1b0] sm:$0xff] %vm98_vm0, %v15933_v1  ;;  %154 = vst.msk [vmem:[#allocation2 + $0x1b8] sm:$0xff] %vm98_vm0, %v15933_v1 }
  0x1d   :  { %155 = vst.msk [vmem:[#allocation2 + $0x1c0] sm:$0xff] %vm98_vm0, %v15933_v1  ;;  %156 = vst.msk [vmem:[#allocation2 + $0x1c8] sm:$0xff] %vm98_vm0, %v15933_v1 }
  0x1e   :  { %157 = vst.msk [vmem:[#allocation2 + $0x1d0] sm:$0xff] %vm98_vm0, %v15933_v1  ;;  %158 = vst.msk [vmem:[#allocation2 + $0x1d8] sm:$0xff] %vm98_vm0, %v15933_v1 }
  0x1f   :  { %159 = vst.msk [vmem:[#allocation2 + $0x1e0] sm:$0xff] %vm98_vm0, %v15933_v1  ;;  %160 = vst.msk [vmem:[#allocation2 + $0x1e8] sm:$0xff] %vm98_vm0, %v15933_v1 }
  0x20   :  { %161 = vst.msk [vmem:[#allocation2 + $0x1f0] sm:$0xff] %vm98_vm0, %v15933_v1  ;;  %162 = vst.msk [vmem:[#allocation2 + $0x1f8] sm:$0xff] %vm98_vm0, %v15933_v1 }
  0x3f   :  { %66 = vxpose.xlu0.b32.start.end [1/1] (short) %v33_v2, 128 }
  0x7e   :  { %v9074_v3 = vpop.trf.xlu0 }
  0x7f   :  { %226 = vrot.lane.b32.xlu1 %v9074_v3, %s8871_s13  ;;  %165 = vst.msk [vmem:[#allocation2 + $0x11] sm:$0xff] %vm164_vm1, %v9074_v3 }
  0x82   :  { %v9080_v4 = vpop.trf.xlu0 }
  0x83   :  { %167 = vst.msk [vmem:[#allocation2 + $0x19] sm:$0x7f] %vm166_vm2, %v9080_v4 }
  0x86   :  { %v9084_v5 = vpop.trf.xlu0 }
  0x87   :  { %168 = vst.msk [vmem:[#allocation2 + $0x21] sm:$0xff] %vm164_vm1, %v9084_v5 }
  0x8a   :  { %v9088_v6 = vpop.trf.xlu0 }
  0x8b   :  { %169 = vst.msk [vmem:[#allocation2 + $0x29] sm:$0x7f] %vm166_vm2, %v9088_v6 }
  0x8e   :  { %v9092_v7 = vpop.trf.xlu0 }
  0x8f   :  { %170 = vst.msk [vmem:[#allocation2 + $0x31] sm:$0xff] %vm164_vm1, %v9092_v7 }
  0x92   :  { %v9096_v8 = vpop.trf.xlu0 }
  0x93   :  { %171 = vst.msk [vmem:[#allocation2 + $0x39] sm:$0x7f] %vm166_vm2, %v9096_v8 }
  0x96   :  { %v9100_v9 = vpop.trf.xlu0 }
  0x97   :  { %172 = vst.msk [vmem:[#allocation2 + $0x41] sm:$0xff] %vm164_vm1, %v9100_v9 }
  0x9a   :  { %v9104_v10 = vpop.trf.xlu0 }
  0x9b   :  { %16322 = vst [vmem:[#allocation4_spill] sm:$0xff] %v9104_v10  ;;  %173 = vst.msk [vmem:[#allocation2 + $0x49] sm:$0x7f] %vm166_vm2, %v9104_v10 }
  0x9e   :  { %v9108_v11 = vpop.trf.xlu0 }
  0x9f   :  { %174 = vst.msk [vmem:[#allocation2 + $0x51] sm:$0xff] %vm164_vm1, %v9108_v11 }
  0xa2   :  { %v9112_v12 = vpop.trf.xlu0 }
  0xa3   :  { %16323 = vst [vmem:[#allocation5_spill] sm:$0xff] %v9112_v12  ;;  %175 = vst.msk [vmem:[#allocation2 + $0x59] sm:$0x7f] %vm166_vm2, %v9112_v12 }
  0xa6   :  { %v9116_v13 = vpop.trf.xlu0 }
  0xa7   :  { %176 = vst.msk [vmem:[#allocation2 + $0x61] sm:$0xff] %vm164_vm1, %v9116_v13 }
  0xaa   :  { %v9120_v14 = vpop.trf.xlu0 }
  0xab   :  { %16324 = vst [vmem:[#allocation6_spill] sm:$0xff] %v9120_v14  ;;  %177 = vst.msk [vmem:[#allocation2 + $0x69] sm:$0x7f] %vm166_vm2, %v9120_v14 }
  0xae   :  { %v9124_v15 = vpop.trf.xlu0 }
  0xaf   :  { %178 = vst.msk [vmem:[#allocation2 + $0x71] sm:$0xff] %vm164_vm1, %v9124_v15 }
  0xb2   :  { %v9128_v16 = vpop.trf.xlu0 }
  0xb3   :  { %16325 = vst [vmem:[#allocation7_spill] sm:$0xff] %v9128_v16  ;;  %179 = vst.msk [vmem:[#allocation2 + $0x79] sm:$0x7f] %vm166_vm2, %v9128_v16 }
  0xb6   :  { %v9132_v17 = vpop.trf.xlu0 }
  0xb7   :  { %180 = vst.msk [vmem:[#allocation2 + $0x81] sm:$0xff] %vm164_vm1, %v9132_v17 }
  0xba   :  { %v9136_v18 = vpop.trf.xlu0 }
  0xbb   :  { %16326 = vst [vmem:[#allocation8_spill] sm:$0xff] %v9136_v18  ;;  %181 = vst.msk [vmem:[#allocation2 + $0x89] sm:$0x7f] %vm166_vm2, %v9136_v18 }
  0xbe   :  { %v9140_v19 = vpop.trf.xlu0 }
  0xbf   :  { %258 = vrot.lane.b32.xlu1 %v9140_v19, %s8871_s13  ;;  %182 = vst.msk [vmem:[#allocation2 + $0x91] sm:$0xff] %vm164_vm1, %v9140_v19 }
  0xc2   :  { %v9146_v20 = vpop.trf.xlu0 }
  0xc3   :  { %16327 = vst [vmem:[#allocation9_spill] sm:$0xff] %v9146_v20  ;;  %228 = vrot.lane.b32.xlu1 %v9080_v4, %s8871_s13  ;;  %260 = vrot.lane.b32.xlu0 %v9146_v20, %s8871_s13  ;;  %183 = vst.msk [vmem:[#allocation2 + $0x99] sm:$0x7f] %vm166_vm2, %v9146_v20 }
  0xc6   :  { %v9154_v21 = vpop.trf.xlu0 }
  0xc7   :  { %347 = vrot.lane.b32.xlu1 %v9074_v3, %s8872_s0  ;;  %373 = vrot.lane.b32.xlu0 %v9128_v16, %s8872_s0  ;;  %184 = vst.msk [vmem:[#allocation2 + $0xa1] sm:$0xff] %vm164_vm1, %v9154_v21 }
  0xca   :  { %v9162_v22 = vpop.trf.xlu0 }
  0xcb   :  { %16328 = vst [vmem:[#allocation10_spill] sm:$0xff] %v9162_v22  ;;  %349 = vrot.lane.b32.xlu1 %v9080_v4, %s8872_s0  ;;  %377 = vrot.lane.b32.xlu0 %v9136_v18, %s8872_s0  ;;  %185 = vst.msk [vmem:[#allocation2 + $0xa9] sm:$0x7f] %vm166_vm2, %v9162_v22 }
  0xce   :  { %v9170_v23 = vpop.trf.xlu0 }
  0xcf   :  { %230 = vrot.lane.b32.xlu1 %v9084_v5, %s8871_s13  ;;  %381 = vrot.lane.b32.xlu0 %v9146_v20, %s8872_s0  ;;  %186 = vst.msk [vmem:[#allocation2 + $0xb1] sm:$0xff] %vm164_vm1, %v9170_v23 }
  0xd2   :  { %v9178_v24 = vpop.trf.xlu0 }
  0xd3   :  { %16329 = vst [vmem:[#allocation11_spill] sm:$0xff] %v9178_v24  ;;  %262 = vrot.lane.b32.xlu1 %v9154_v21, %s8871_s13  ;;  %385 = vrot.lane.b32.xlu0 %v9162_v22, %s8872_s0  ;;  %187 = vst.msk [vmem:[#allocation2 + $0xb9] sm:$0x7f] %vm166_vm2, %v9178_v24 }
  0xd6   :  { %v9186_v25 = vpop.trf.xlu0 }
  0xd7   :  { %16330 = vst [vmem:[#allocation12_spill] sm:$0xff] %v9186_v25  ;;  %351 = vrot.lane.b32.xlu1 %v9084_v5, %s8872_s0  ;;  %389 = vrot.lane.b32.xlu0 %v9178_v24, %s8872_s0  ;;  %188 = vst.msk [vmem:[#allocation2 + $0xc1] sm:$0xff] %vm164_vm1, %v9186_v25 }
  0xda   :  { %v9194_v26 = vpop.trf.xlu0 }
  0xdb   :  { %16331 = vst [vmem:[#allocation13_spill] sm:$0xff] %v9194_v26  ;;  %232 = vrot.lane.b32.xlu1 %v9088_v6, %s8871_s13  ;;  %393 = vrot.lane.b32.xlu0 %v9194_v26, %s8872_s0  ;;  %189 = vst.msk [vmem:[#allocation2 + $0xc9] sm:$0x7f] %vm166_vm2, %v9194_v26 }
  0xde   :  { %v9202_v27 = vpop.trf.xlu0 }
  0xdf   :  { %264 = vrot.lane.b32.xlu1 %v9162_v22, %s8871_s13  ;;  %190 = vst.msk [vmem:[#allocation2 + $0xd1] sm:$0xff] %vm164_vm1, %v9202_v27 }
  0xe2   :  { %v9208_v28 = vpop.trf.xlu0 }
  0xe3   :  { %16332 = vst [vmem:[#allocation14_spill] sm:$0xff] %v9208_v28  ;;  %234 = vrot.lane.b32.xlu1 %v9092_v7, %s8871_s13  ;;  %397 = vrot.lane.b32.xlu0 %v9208_v28, %s8872_s0  ;;  %191 = vst.msk [vmem:[#allocation2 + $0xd9] sm:$0x7f] %vm166_vm2, %v9208_v28 }
  0xe6   :  { %v9216_v29 = vpop.trf.xlu0 }
  0xe7   :  { %16333 = vst [vmem:[#allocation15_spill] sm:$0xff] %v9216_v29  ;;  %266 = vrot.lane.b32.xlu1 %v9170_v23, %s8871_s13  ;;  %192 = vst.msk [vmem:[#allocation2 + $0xe1] sm:$0xff] %vm164_vm1, %v9216_v29 }
  0xea   :  { %v9222_v30 = vpop.trf.xlu0 }
  0xeb   :  { %16334 = vst [vmem:[#allocation16_spill] sm:$0xff] %v9222_v30  ;;  %236 = vrot.lane.b32.xlu1 %v9096_v8, %s8871_s13  ;;  %401 = vrot.lane.b32.xlu0 %v9222_v30, %s8872_s0  ;;  %193 = vst.msk [vmem:[#allocation2 + $0xe9] sm:$0x7f] %vm166_vm2, %v9222_v30 }
  0xee   :  { %v9230_v31 = vpop.trf.xlu0 }
  0xef   :  { %16335 = vst [vmem:[#allocation17_spill] sm:$0xff] %v9230_v31  ;;  %268 = vrot.lane.b32.xlu1 %v9178_v24, %s8871_s13  ;;  %194 = vst.msk [vmem:[#allocation2 + $0xf1] sm:$0xff] %vm164_vm1, %v9230_v31 }
  0xf1   :  { %v9236_v32 = vpop.permute.xlu1 %226 }
  0xf2   :  { %317 = vst.msk [vmem:[#allocation2 + $0x10] sm:$0xff] %vm316_vm3, %v9236_v32  ;;  %v9240_v33 = vpop.trf.xlu0 }
  0xf3   :  { %16336 = vst [vmem:[#allocation18_spill] sm:$0xff] %v9240_v33  ;;  %238 = vrot.lane.b32.xlu1 %v9100_v9, %s8871_s13  ;;  %405 = vrot.lane.b32.xlu0 %v9240_v33, %s8872_s0  ;;  %195 = vst.msk [vmem:[#allocation2 + $0xf9] sm:$0x7f] %vm166_vm2, %v9240_v33 }
  0xf6   :  { %v9300_v34 = vpop.trf.xlu0 }
  0xf7   :  { %270 = vrot.lane.b32.xlu1 %v9186_v25, %s8871_s13  ;;  %473 = vrot.lane.b32.xlu0 %v9080_v4, %s8873_s14 }
  0xfa   :  { %v9310_v35 = vpop.trf.xlu0 }
  0xfb   :  { %240 = vrot.lane.b32.xlu1 %v9104_v10, %s8871_s13  ;;  %477 = vrot.lane.b32.xlu0 %v9088_v6, %s8873_s14 }
  0xff   :  { %272 = vrot.lane.b32.xlu1 %v9194_v26, %s8871_s13  ;;  %481 = vrot.lane.b32.xlu0 %v9096_v8, %s8873_s14 }
 0x103   :  { %242 = vrot.lane.b32.xlu1 %v9108_v11, %s8871_s13  ;;  %485 = vrot.lane.b32.xlu0 %v9104_v10, %s8873_s14 }
 0x107   :  { %274 = vrot.lane.b32.xlu1 %v9202_v27, %s8871_s13  ;;  %489 = vrot.lane.b32.xlu0 %v9112_v12, %s8873_s14 }
 0x10b   :  { %244 = vrot.lane.b32.xlu1 %v9112_v12, %s8871_s13  ;;  %493 = vrot.lane.b32.xlu0 %v9120_v14, %s8873_s14 }
 0x10f   :  { %276 = vrot.lane.b32.xlu1 %v9208_v28, %s8871_s13  ;;  %497 = vrot.lane.b32.xlu0 %v9128_v16, %s8873_s14 }
 0x113   :  { %246 = vrot.lane.b32.xlu1 %v9116_v13, %s8871_s13  ;;  %501 = vrot.lane.b32.xlu0 %v9136_v18, %s8873_s14 }
 0x117   :  { %278 = vrot.lane.b32.xlu1 %v9216_v29, %s8871_s13  ;;  %505 = vrot.lane.b32.xlu0 %v9146_v20, %s8873_s14 }
 0x11b   :  { %248 = vrot.lane.b32.xlu1 %v9120_v14, %s8871_s13  ;;  %509 = vrot.lane.b32.xlu0 %v9162_v22, %s8873_s14 }
 0x11f   :  { %280 = vrot.lane.b32.xlu1 %v9222_v30, %s8871_s13  ;;  %513 = vrot.lane.b32.xlu0 %v9178_v24, %s8873_s14 }
 0x123   :  { %250 = vrot.lane.b32.xlu1 %v9124_v15, %s8871_s13  ;;  %517 = vrot.lane.b32.xlu0 %v9194_v26, %s8873_s14 }
 0x127   :  { %282 = vrot.lane.b32.xlu1 %v9230_v31, %s8871_s13  ;;  %521 = vrot.lane.b32.xlu0 %v9208_v28, %s8873_s14 }
 0x12b   :  { %252 = vrot.lane.b32.xlu1 %v9128_v16, %s8871_s13  ;;  %525 = vrot.lane.b32.xlu0 %v9222_v30, %s8873_s14 }
 0x12f   :  { %529 = vrot.lane.b32.xlu0 %v9240_v33, %s8873_s14  ;;  %284 = vrot.lane.b32.xlu1 %v9240_v33, %s8871_s13 }
 0x131   :  { %v9312_v36 = vpop.permute.xlu1 %258 }
 0x132   :  { %16337 = vst [vmem:[#allocation19_spill] sm:$0xff] %v9312_v36  ;;  %333 = vst.msk [vmem:[#allocation2 + $0x90] sm:$0xff] %vm316_vm3, %v9312_v36 }
 0x133   :  { %254 = vrot.lane.b32.xlu1 %v9132_v17, %s8871_s13  ;;  %533 = vrot.lane.b32.xlu0 %v9310_v35, %s8873_s14 }
 0x135   :  { %v9320_v37 = vpop.permute.xlu1 %228  ;;  %v9322_v38 = vpop.permute.xlu0 %260 }
 0x136   :  { %16338 = vst [vmem:[#allocation20_spill] sm:$0xff] %v9322_v38  ;;  %318 = vst.msk [vmem:[#allocation2 + $0x18] sm:$0xff] %vm316_vm3, %v9320_v37 }
 0x137   :  { %334 = vst.msk [vmem:[#allocation2 + $0x98] sm:$0xff] %vm316_vm3, %v9322_v38  ;;  %256 = vrot.lane.b32.xlu1 %v9136_v18, %s8871_s13  ;;  %603 = vrot.lane.b32.xlu0 %v9080_v4, %s8874_s15 }
 0x139   :  { %v348_v39 = vpop.permute.xlu1 %347  ;;  %v9332_v40 = vpop.permute.xlu0 %373 }
 0x13a   :  { %16339 = vst [vmem:[#allocation21_spill] sm:$0xff] %v9332_v40  ;;  %438 = vst.msk [vmem:[#allocation2 + $0xf] sm:$0xfe] %vm437_vm4, %v348_v39 }
 0x13b   :  { %1413 = vst.msk [vmem:[#allocation2 + $0x101] sm:$0xff] %vm567_vm5, %v348_v39  ;;  %353 = vrot.lane.b32.xlu1 %v9088_v6, %s8872_s0  ;;  %607 = vrot.lane.b32.xlu0 %v9088_v6, %s8874_s15 }
 0x13d   :  { %v350_v41 = vpop.permute.xlu1 %349  ;;  %v9340_v42 = vpop.permute.xlu0 %377 }
 0x13e   :  { %16340 = vst [vmem:[#allocation22_spill] sm:$0xff] %v9340_v42  ;;  %440 = vst.msk [vmem:[#allocation2 + $0x17] sm:$0xff] %vm439_vm6, %v350_v41 }
 0x13f   :  { %1414 = vst.msk [vmem:[#allocation2 + $0x109] sm:$0x7f] %vm569_vm7, %v350_v41  ;;  %355 = vrot.lane.b32.xlu1 %v9092_v7, %s8872_s0  ;;  %611 = vrot.lane.b32.xlu0 %v9096_v8, %s8874_s15 }
 0x141   :  { %v9348_v43 = vpop.permute.xlu1 %230  ;;  %v9350_v44 = vpop.permute.xlu0 %381 }
 0x142   :  { %16341 = vst [vmem:[#allocation23_spill] sm:$0xff] %v9350_v44  ;;  %319 = vst.msk [vmem:[#allocation2 + $0x20] sm:$0xff] %vm316_vm3, %v9348_v43 }
 0x143   :  { %456 = vst.msk [vmem:[#allocation2 + $0x97] sm:$0xff] %vm439_vm6, %v9350_v44  ;;  %357 = vrot.lane.b32.xlu1 %v9096_v8, %s8872_s0  ;;  %615 = vrot.lane.b32.xlu0 %v9104_v10, %s8874_s15 }
 0x145   :  { %v9360_v45 = vpop.permute.xlu1 %262  ;;  %v9368_v46 = vpop.permute.xlu0 %385 }
 0x146   :  { %16342 = vst [vmem:[#allocation24_spill] sm:$0xff] %v9360_v45  ;;  %335 = vst.msk [vmem:[#allocation2 + $0xa0] sm:$0xff] %vm316_vm3, %v9360_v45 }
 0x147   :  { %359 = vrot.lane.b32.xlu1 %v9100_v9, %s8872_s0  ;;  %619 = vrot.lane.b32.xlu0 %v9112_v12, %s8874_s15  ;;  %16343 = vst [vmem:[#allocation25_spill] sm:$0xff] %v9368_v46 }
 0x149   :  { %v9370_v47 = vpop.permute.xlu1 %351  ;;  %v9380_v49 = vpop.permute.xlu0 %389 }
 0x14a   :  { %441 = vst.msk [vmem:[#allocation2 + $0x1f] sm:$0xfe] %vm437_vm4, %v9370_v47  ;;  %16345 = vst [vmem:[#allocation27_spill] sm:$0xff] %v9380_v49 }
 0x14b   :  { %361 = vrot.lane.b32.xlu1 %v9104_v10, %s8872_s0  ;;  %623 = vrot.lane.b32.xlu0 %v9120_v14, %s8874_s15 }
 0x14d   :  { %v9378_v48 = vpop.permute.xlu1 %232  ;;  %v9398_v51 = vpop.permute.xlu0 %393 }
 0x14e   :  { %16344 = vst [vmem:[#allocation26_spill] sm:$0xff] %v9378_v48  ;;  %320 = vst.msk [vmem:[#allocation2 + $0x28] sm:$0xff] %vm316_vm3, %v9378_v48 }
 0x14f   :  { %363 = vrot.lane.b32.xlu1 %v9108_v11, %s8872_s0  ;;  %627 = vrot.lane.b32.xlu0 %v9128_v16, %s8874_s15  ;;  %16347 = vst [vmem:[#allocation29_spill] sm:$0xff] %v9398_v51 }
 0x151   :  { %v9388_v50 = vpop.permute.xlu1 %264 }
 0x152   :  { %16346 = vst [vmem:[#allocation28_spill] sm:$0xff] %v9388_v50  ;;  %336 = vst.msk [vmem:[#allocation2 + $0xa8] sm:$0xff] %vm316_vm3, %v9388_v50 }
 0x153   :  { %458 = vst.msk [vmem:[#allocation2 + $0xa7] sm:$0xff] %vm439_vm6, %v9368_v46  ;;  %365 = vrot.lane.b32.xlu1 %v9112_v12, %s8872_s0  ;;  %631 = vrot.lane.b32.xlu0 %v9136_v18, %s8874_s15 }
 0x155   :  { %v9400_v52 = vpop.permute.xlu1 %234  ;;  %v9410_v54 = vpop.permute.xlu0 %397 }
 0x156   :  { %16348 = vst [vmem:[#allocation30_spill] sm:$0xff] %v9400_v52  ;;  %321 = vst.msk [vmem:[#allocation2 + $0x30] sm:$0xff] %vm316_vm3, %v9400_v52 }
 0x157   :  { %367 = vrot.lane.b32.xlu1 %v9116_v13, %s8872_s0  ;;  %635 = vrot.lane.b32.xlu0 %v9146_v20, %s8874_s15  ;;  %16350 = vst [vmem:[#allocation32_spill] sm:$0xff] %v9410_v54 }
 0x159   :  { %v9408_v53 = vpop.permute.xlu1 %266 }
 0x15a   :  { %16349 = vst [vmem:[#allocation31_spill] sm:$0xff] %v9408_v53  ;;  %337 = vst.msk [vmem:[#allocation2 + $0xb0] sm:$0xff] %vm316_vm3, %v9408_v53 }
 0x15b   :  { %369 = vrot.lane.b32.xlu1 %v9120_v14, %s8872_s0  ;;  %639 = vrot.lane.b32.xlu0 %v9162_v22, %s8874_s15 }
 0x15d   :  { %v9418_v55 = vpop.permute.xlu1 %236  ;;  %v9426_v56 = vpop.permute.xlu0 %401 }
 0x15e   :  { %16351 = vst [vmem:[#allocation33_spill] sm:$0xff] %v9418_v55  ;;  %322 = vst.msk [vmem:[#allocation2 + $0x38] sm:$0xff] %vm316_vm3, %v9418_v55 }
 0x15f   :  { %371 = vrot.lane.b32.xlu1 %v9124_v15, %s8872_s0  ;;  %643 = vrot.lane.b32.xlu0 %v9178_v24, %s8874_s15  ;;  %16352 = vst [vmem:[#allocation34_spill] sm:$0xff] %v9426_v56 }
 0x161   :  { %v9428_v57 = vpop.permute.xlu1 %268 }
 0x162   :  { %16353 = vst [vmem:[#allocation35_spill] sm:$0xff] %v9428_v57  ;;  %338 = vst.msk [vmem:[#allocation2 + $0xb8] sm:$0xff] %vm316_vm3, %v9428_v57 }
 0x163   :  { %460 = vst.msk [vmem:[#allocation2 + $0xb7] sm:$0xff] %vm439_vm6, %v9380_v49  ;;  %375 = vrot.lane.b32.xlu1 %v9132_v17, %s8872_s0  ;;  %647 = vrot.lane.b32.xlu0 %v9194_v26, %s8874_s15 }
 0x165   :  { %v9438_v58 = vpop.permute.xlu1 %238  ;;  %v9440_v59 = vpop.permute.xlu0 %405 }
 0x166   :  { %16354 = vst [vmem:[#allocation36_spill] sm:$0xff] %v9438_v58  ;;  %16355 = vst [vmem:[#allocation37_spill] sm:$0xff] %v9440_v59 }
 0x167   :  { %323 = vst.msk [vmem:[#allocation2 + $0x40] sm:$0xff] %vm316_vm3, %v9438_v58  ;;  %379 = vrot.lane.b32.xlu1 %v9140_v19, %s8872_s0  ;;  %651 = vrot.lane.b32.xlu0 %v9208_v28, %s8874_s15 }
 0x169   :  { %v9448_v60 = vpop.permute.xlu1 %270  ;;  %v474_v61 = vpop.permute.xlu0 %473 }
 0x16a   :  { %16356 = vst [vmem:[#allocation38_spill] sm:$0xff] %v9448_v60  ;;  %339 = vst.msk [vmem:[#allocation2 + $0xc0] sm:$0xff] %vm316_vm3, %v9448_v60 }
 0x16b   :  { %570 = vst.msk [vmem:[#allocation2 + $0x9] sm:$0x7f] %vm569_vm7, %v474_v61  ;;  %383 = vrot.lane.b32.xlu1 %v9154_v21, %s8872_s0  ;;  %655 = vrot.lane.b32.xlu0 %v9222_v30, %s8874_s15 }
 0x16c   :  { %1446 = vst.msk [vmem:[#allocation2 + $0x108] sm:$0xff] %vm697_vm8, %v474_v61 }
 0x16d   :  { %v9458_v62 = vpop.permute.xlu1 %240  ;;  %v9460_v63 = vpop.permute.xlu0 %477 }
 0x16e   :  { %16357 = vst [vmem:[#allocation39_spill] sm:$0xff] %v9458_v62  ;;  %324 = vst.msk [vmem:[#allocation2 + $0x48] sm:$0xff] %vm316_vm3, %v9458_v62 }
 0x16f   :  { %572 = vst.msk [vmem:[#allocation2 + $0x19] sm:$0x7f] %vm569_vm7, %v9460_v63  ;;  %387 = vrot.lane.b32.xlu1 %v9170_v23, %s8872_s0  ;;  %659 = vrot.lane.b32.xlu0 %v9240_v33, %s8874_s15 }
 0x171   :  { %v9470_v0 = vpop.permute.xlu1 %272  ;;  %v9472_v2 = vpop.permute.xlu0 %481 }
 0x172   :  { %16358 = vst [vmem:[#allocation40_spill] sm:$0xff] %v9470_v0  ;;  %16359 = vst [vmem:[#allocation41_spill] sm:$0xff] %v9472_v2 }
 0x173   :  { %340 = vst.msk [vmem:[#allocation2 + $0xc8] sm:$0xff] %vm316_vm3, %v9470_v0  ;;  %391 = vrot.lane.b32.xlu1 %v9186_v25, %s8872_s0  ;;  %663 = vrot.lane.b32.xlu0 %v9310_v35, %s8874_s15 }
 0x174   :  { %462 = vst.msk [vmem:[#allocation2 + $0xc7] sm:$0xff] %vm439_vm6, %v9398_v51 }
 0x175   :  { %v9482_v39 = vpop.permute.xlu1 %242  ;;  %v9484_v41 = vpop.permute.xlu0 %485 }
 0x176   :  { %16360 = vst [vmem:[#allocation42_spill] sm:$0xff] %v9482_v39  ;;  %16361 = vst [vmem:[#allocation43_spill] sm:$0xff] %v9484_v41 }
 0x177   :  { %325 = vst.msk [vmem:[#allocation2 + $0x50] sm:$0xff] %vm316_vm3, %v9482_v39  ;;  %395 = vrot.lane.b32.xlu1 %v9202_v27, %s8872_s0  ;;  %732 = vrot.lane.b32.xlu0 %v9080_v4, %s8875_s16 }
 0x179   :  { %v9492_v61 = vpop.permute.xlu1 %274  ;;  %v9494_v1 = vpop.permute.xlu0 %489 }
 0x17a   :  { %16362 = vst [vmem:[#allocation44_spill] sm:$0xff] %v9492_v61  ;;  %16363 = vst [vmem:[#allocation45_spill] sm:$0xff] %v9494_v1 }
 0x17b   :  { %341 = vst.msk [vmem:[#allocation2 + $0xd0] sm:$0xff] %vm316_vm3, %v9492_v61  ;;  %399 = vrot.lane.b32.xlu1 %v9216_v29, %s8872_s0  ;;  %736 = vrot.lane.b32.xlu0 %v9088_v6, %s8875_s16 }
 0x17d   :  { %v9502_v0 = vpop.permute.xlu1 %244  ;;  %v9504_v60 = vpop.permute.xlu0 %493 }
 0x17e   :  { %16364 = vst [vmem:[#allocation46_spill] sm:$0xff] %v9502_v0  ;;  %16365 = vst [vmem:[#allocation47_spill] sm:$0xff] %v9504_v60 }
 0x17f   :  { %326 = vst.msk [vmem:[#allocation2 + $0x58] sm:$0xff] %vm316_vm3, %v9502_v0  ;;  %403 = vrot.lane.b32.xlu1 %v9230_v31, %s8872_s0  ;;  %740 = vrot.lane.b32.xlu0 %v9096_v8, %s8875_s16 }
 0x181   :  { %v9512_v61 = vpop.permute.xlu1 %276  ;;  %v9514_v51 = vpop.permute.xlu0 %497 }
 0x182   :  { %16366 = vst [vmem:[#allocation48_spill] sm:$0xff] %v9512_v61  ;;  %16367 = vst [vmem:[#allocation49_spill] sm:$0xff] %v9514_v51 }
 0x183   :  { %342 = vst.msk [vmem:[#allocation2 + $0xd8] sm:$0xff] %vm316_vm3, %v9512_v61  ;;  %471 = vrot.lane.b32.xlu1 %v9074_v3, %s8873_s14  ;;  %744 = vrot.lane.b32.xlu0 %v9104_v10, %s8875_s16 }
 0x184   :  { %464 = vst.msk [vmem:[#allocation2 + $0xd7] sm:$0xff] %vm439_vm6, %v9410_v54 }
 0x185   :  { %v9524_v57 = vpop.permute.xlu1 %246  ;;  %v9526_v53 = vpop.permute.xlu0 %501 }
 0x186   :  { %16368 = vst [vmem:[#allocation50_spill] sm:$0xff] %v9524_v57  ;;  %16369 = vst [vmem:[#allocation51_spill] sm:$0xff] %v9526_v53 }
 0x187   :  { %327 = vst.msk [vmem:[#allocation2 + $0x60] sm:$0xff] %vm316_vm3, %v9524_v57  ;;  %475 = vrot.lane.b32.xlu1 %v9084_v5, %s8873_s14  ;;  %748 = vrot.lane.b32.xlu0 %v9112_v12, %s8875_s16 }
 0x189   :  { %v9534_v61 = vpop.permute.xlu1 %278  ;;  %v9536_v54 = vpop.permute.xlu0 %505 }
 0x18a   :  { %16370 = vst [vmem:[#allocation52_spill] sm:$0xff] %v9534_v61  ;;  %16371 = vst [vmem:[#allocation53_spill] sm:$0xff] %v9536_v54 }
 0x18b   :  { %343 = vst.msk [vmem:[#allocation2 + $0xe0] sm:$0xff] %vm316_vm3, %v9534_v61  ;;  %479 = vrot.lane.b32.xlu1 %v9092_v7, %s8873_s14  ;;  %752 = vrot.lane.b32.xlu0 %v9120_v14, %s8875_s16 }
 0x18d   :  { %v9544_v49 = vpop.permute.xlu1 %248  ;;  %v9546_v50 = vpop.permute.xlu0 %509 }
 0x18e   :  { %16372 = vst [vmem:[#allocation54_spill] sm:$0xff] %v9544_v49  ;;  %16373 = vst [vmem:[#allocation55_spill] sm:$0xff] %v9546_v50 }
 0x18f   :  { %328 = vst.msk [vmem:[#allocation2 + $0x68] sm:$0xff] %vm316_vm3, %v9544_v49  ;;  %483 = vrot.lane.b32.xlu1 %v9100_v9, %s8873_s14  ;;  %756 = vrot.lane.b32.xlu0 %v9128_v16, %s8875_s16 }
 0x190   :  { %588 = vst.msk [vmem:[#allocation2 + $0x99] sm:$0x7f] %vm569_vm7, %v9546_v50 }
 0x191   :  { %v9556_v61 = vpop.permute.xlu1 %280  ;;  %v9558_v45 = vpop.permute.xlu0 %513 }
 0x192   :  { %16374 = vst [vmem:[#allocation56_spill] sm:$0xff] %v9556_v61  ;;  %16375 = vst [vmem:[#allocation57_spill] sm:$0xff] %v9558_v45 }
 0x193   :  { %344 = vst.msk [vmem:[#allocation2 + $0xe8] sm:$0xff] %vm316_vm3, %v9556_v61  ;;  %487 = vrot.lane.b32.xlu1 %v9108_v11, %s8873_s14  ;;  %760 = vrot.lane.b32.xlu0 %v9136_v18, %s8875_s16 }
 0x194   :  { %590 = vst.msk [vmem:[#allocation2 + $0xa9] sm:$0x7f] %vm569_vm7, %v9558_v45 }
 0x195   :  { %466 = vst.msk [vmem:[#allocation2 + $0xe7] sm:$0xff] %vm439_vm6, %v9426_v56  ;;  %v9570_v50 = vpop.permute.xlu1 %250  ;;  %v9572_v46 = vpop.permute.xlu0 %517 }
 0x196   :  { %16376 = vst [vmem:[#allocation58_spill] sm:$0xff] %v9570_v50  ;;  %16377 = vst [vmem:[#allocation59_spill] sm:$0xff] %v9572_v46 }
 0x197   :  { %329 = vst.msk [vmem:[#allocation2 + $0x70] sm:$0xff] %vm316_vm3, %v9570_v50  ;;  %491 = vrot.lane.b32.xlu1 %v9116_v13, %s8873_s14  ;;  %764 = vrot.lane.b32.xlu0 %v9146_v20, %s8875_s16 }
 0x198   :  { %592 = vst.msk [vmem:[#allocation2 + $0xb9] sm:$0x7f] %vm569_vm7, %v9572_v46 }
 0x199   :  { %v9582_v61 = vpop.permute.xlu1 %282  ;;  %v9584_v56 = vpop.permute.xlu0 %521 }
 0x19a   :  { %16378 = vst [vmem:[#allocation60_spill] sm:$0xff] %v9582_v61  ;;  %16379 = vst [vmem:[#allocation61_spill] sm:$0xff] %v9584_v56 }
 0x19b   :  { %345 = vst.msk [vmem:[#allocation2 + $0xf0] sm:$0xff] %vm316_vm3, %v9582_v61  ;;  %495 = vrot.lane.b32.xlu1 %v9124_v15, %s8873_s14  ;;  %768 = vrot.lane.b32.xlu0 %v9162_v22, %s8875_s16 }
 0x19c   :  { %594 = vst.msk [vmem:[#allocation2 + $0xc9] sm:$0x7f] %vm569_vm7, %v9584_v56 }
 0x19d   :  { %v9594_v46 = vpop.permute.xlu1 %252  ;;  %v9596_v45 = vpop.permute.xlu0 %525 }
 0x19e   :  { %16380 = vst [vmem:[#allocation62_spill] sm:$0xff] %v9594_v46  ;;  %16381 = vst [vmem:[#allocation63_spill] sm:$0xff] %v9596_v45 }
 0x19f   :  { %330 = vst.msk [vmem:[#allocation2 + $0x78] sm:$0xff] %vm316_vm3, %v9594_v46  ;;  %499 = vrot.lane.b32.xlu1 %v9132_v17, %s8873_s14  ;;  %772 = vrot.lane.b32.xlu0 %v9178_v24, %s8875_s16 }
 0x1a0   :  { %596 = vst.msk [vmem:[#allocation2 + $0xd9] sm:$0x7f] %vm569_vm7, %v9596_v45 }
 0x1a1   :  { %452 = vst.msk [vmem:[#allocation2 + $0x77] sm:$0xff] %vm439_vm6, %v9332_v40  ;;  %v9610_v61 = vpop.permute.xlu1 %284  ;;  %v9612_v56 = vpop.permute.xlu0 %529 }
 0x1a2   :  { %584 = vst.msk [vmem:[#allocation2 + $0x79] sm:$0x7f] %vm569_vm7, %v9526_v53  ;;  %16382 = vst [vmem:[#allocation64_spill] sm:$0xff] %v9610_v61 }
 0x1a3   :  { %16383 = vst [vmem:[#allocation65_spill] sm:$0xff] %v9612_v56  ;;  %346 = vst.msk [vmem:[#allocation2 + $0xf8] sm:$0xff] %vm316_vm3, %v9610_v61  ;;  %503 = vrot.lane.b32.xlu1 %v9140_v19, %s8873_s14  ;;  %776 = vrot.lane.b32.xlu0 %v9194_v26, %s8875_s16 }
 0x1a4   :  { %598 = vst.msk [vmem:[#allocation2 + $0xe9] sm:$0x7f] %vm569_vm7, %v9612_v56 }
 0x1a5   :  { %468 = vst.msk [vmem:[#allocation2 + $0xf7] sm:$0xff] %vm439_vm6, %v9440_v59  ;;  %v9624_v45 = vpop.permute.xlu1 %254  ;;  %v9626_v38 = vpop.permute.xlu0 %533 }
 0x1a6   :  { %16384 = vst [vmem:[#allocation66_spill] sm:$0xff] %v9624_v45  ;;  %16385 = vst [vmem:[#allocation67_spill] sm:$0xff] %v9626_v38 }
 0x1a7   :  { %331 = vst.msk [vmem:[#allocation2 + $0x80] sm:$0xff] %vm316_vm3, %v9624_v45  ;;  %507 = vrot.lane.b32.xlu1 %v9154_v21, %s8873_s14  ;;  %780 = vrot.lane.b32.xlu0 %v9208_v28, %s8875_s16 }
 0x1a8   :  { %600 = vst.msk [vmem:[#allocation2 + $0xf9] sm:$0x7f] %vm569_vm7, %v9626_v38 }
 0x1a9   :  { %v9636_v61 = vpop.permute.xlu1 %256  ;;  %v9638_v56 = vpop.permute.xlu0 %603 }
 0x1aa   :  { %16386 = vst [vmem:[#allocation68_spill] sm:$0xff] %v9636_v61  ;;  %332 = vst.msk [vmem:[#allocation2 + $0x88] sm:$0xff] %vm316_vm3, %v9636_v61 }
 0x1ab   :  { %454 = vst.msk [vmem:[#allocation2 + $0x87] sm:$0xff] %vm439_vm6, %v9340_v42  ;;  %511 = vrot.lane.b32.xlu1 %v9170_v23, %s8873_s14  ;;  %784 = vrot.lane.b32.xlu0 %v9222_v30, %s8875_s16 }
 0x1ac   :  { %586 = vst.msk [vmem:[#allocation2 + $0x89] sm:$0x7f] %vm569_vm7, %v9536_v54 }
 0x1ad   :  { %v9650_v38 = vpop.permute.xlu1 %353  ;;  %v9652_v59 = vpop.permute.xlu0 %607 }
 0x1ae   :  { %442 = vst.msk [vmem:[#allocation2 + $0x27] sm:$0xff] %vm439_vm6, %v9650_v38 }
 0x1af   :  { %574 = vst.msk [vmem:[#allocation2 + $0x29] sm:$0x7f] %vm569_vm7, %v9472_v2  ;;  %515 = vrot.lane.b32.xlu1 %v9186_v25, %s8873_s14  ;;  %788 = vrot.lane.b32.xlu0 %v9240_v33, %s8875_s16 }
 0x1b1   :  { %v9662_v36 = vpop.permute.xlu1 %355  ;;  %v9664_v44 = vpop.permute.xlu0 %611 }
 0x1b2   :  { %16387 = vst [vmem:[#allocation69_spill] sm:$0xff] %v9662_v36  ;;  %16388 = vst [vmem:[#allocation70_spill] sm:$0xff] %v9664_v44 }
 0x1b3   :  { %443 = vst.msk [vmem:[#allocation2 + $0x2f] sm:$0xfe] %vm437_vm4, %v9662_v36  ;;  %519 = vrot.lane.b32.xlu1 %v9202_v27, %s8873_s14  ;;  %792 = vrot.lane.b32.xlu0 %v9310_v35, %s8875_s16 }
 0x1b5   :  { %v9672_v54 = vpop.permute.xlu1 %357  ;;  %v9674_v61 = vpop.permute.xlu0 %615 }
 0x1b6   :  { %16389 = vst [vmem:[#allocation71_spill] sm:$0xff] %v9672_v54  ;;  %16390 = vst [vmem:[#allocation72_spill] sm:$0xff] %v9674_v61 }
 0x1b7   :  { %444 = vst.msk [vmem:[#allocation2 + $0x37] sm:$0xff] %vm439_vm6, %v9672_v54  ;;  %523 = vrot.lane.b32.xlu1 %v9216_v29, %s8873_s14  ;;  %862 = vrot.lane.b32.xlu0 %v9088_v6, %s8876_s17 }
 0x1b8   :  { %576 = vst.msk [vmem:[#allocation2 + $0x39] sm:$0x7f] %vm569_vm7, %v9484_v41 }
 0x1b9   :  { %v9684_v45 = vpop.permute.xlu1 %359  ;;  %v9686_v53 = vpop.permute.xlu0 %619 }
 0x1ba   :  { %16391 = vst [vmem:[#allocation73_spill] sm:$0xff] %v9684_v45  ;;  %16392 = vst [vmem:[#allocation74_spill] sm:$0xff] %v9686_v53 }
 0x1bb   :  { %445 = vst.msk [vmem:[#allocation2 + $0x3f] sm:$0xfe] %vm437_vm4, %v9684_v45  ;;  %527 = vrot.lane.b32.xlu1 %v9230_v31, %s8873_s14  ;;  %866 = vrot.lane.b32.xlu0 %v9096_v8, %s8876_s17 }
 0x1bd   :  { %v9694_v42 = vpop.permute.xlu1 %361  ;;  %v9696_v46 = vpop.permute.xlu0 %623 }
 0x1be   :  { %16393 = vst [vmem:[#allocation75_spill] sm:$0xff] %v9694_v42  ;;  %16394 = vst [vmem:[#allocation76_spill] sm:$0xff] %v9696_v46 }
 0x1bf   :  { %446 = vst.msk [vmem:[#allocation2 + $0x47] sm:$0xff] %vm439_vm6, %v9694_v42  ;;  %531 = vrot.lane.b32.xlu1 %v9300_v34, %s8873_s14  ;;  %870 = vrot.lane.b32.xlu0 %v9104_v10, %s8876_s17 }
 0x1c0   :  { %578 = vst.msk [vmem:[#allocation2 + $0x49] sm:$0x7f] %vm569_vm7, %v9494_v1 }
 0x1c1   :  { %v9706_v50 = vpop.permute.xlu1 %363  ;;  %v9708_v40 = vpop.permute.xlu0 %627 }
 0x1c2   :  { %16395 = vst [vmem:[#allocation77_spill] sm:$0xff] %v9706_v50  ;;  %16396 = vst [vmem:[#allocation78_spill] sm:$0xff] %v9708_v40 }
 0x1c3   :  { %447 = vst.msk [vmem:[#allocation2 + $0x4f] sm:$0xfe] %vm437_vm4, %v9706_v50  ;;  %601 = vrot.lane.b32.xlu1 %v9074_v3, %s8874_s15  ;;  %874 = vrot.lane.b32.xlu0 %v9112_v12, %s8876_s17 }
 0x1c5   :  { %v9716_v49 = vpop.permute.xlu1 %365  ;;  %v9718_v57 = vpop.permute.xlu0 %631 }
 0x1c6   :  { %16397 = vst [vmem:[#allocation79_spill] sm:$0xff] %v9716_v49  ;;  %16398 = vst [vmem:[#allocation80_spill] sm:$0xff] %v9718_v57 }
 0x1c7   :  { %448 = vst.msk [vmem:[#allocation2 + $0x57] sm:$0xff] %vm439_vm6, %v9716_v49  ;;  %605 = vrot.lane.b32.xlu1 %v9084_v5, %s8874_s15  ;;  %982 = vrot.lane.b32.xlu0 %v9084_v5, %s8877_s18 }
 0x1c8   :  { %580 = vst.msk [vmem:[#allocation2 + $0x59] sm:$0x7f] %vm569_vm7, %v9504_v60 }
 0x1c9   :  { %v9728_v0 = vpop.permute.xlu1 %367  ;;  %v9730_v39 = vpop.permute.xlu0 %635 }
 0x1ca   :  { %16399 = vst [vmem:[#allocation81_spill] sm:$0xff] %v9728_v0  ;;  %16400 = vst [vmem:[#allocation82_spill] sm:$0xff] %v9730_v39 }
 0x1cb   :  { %449 = vst.msk [vmem:[#allocation2 + $0x5f] sm:$0xfe] %vm437_vm4, %v9728_v0  ;;  %609 = vrot.lane.b32.xlu1 %v9092_v7, %s8874_s15  ;;  %1103 = vrot.lane.b32.xlu0 %v9084_v5, %s8878_s19 }
 0x1cd   :  { %v9738_v60 = vpop.permute.xlu1 %369  ;;  %v9740_v1 = vpop.permute.xlu0 %639 }
 0x1ce   :  { %16401 = vst [vmem:[#allocation83_spill] sm:$0xff] %v9738_v60  ;;  %16402 = vst [vmem:[#allocation84_spill] sm:$0xff] %v9740_v1 }
 0x1cf   :  { %450 = vst.msk [vmem:[#allocation2 + $0x67] sm:$0xff] %vm439_vm6, %v9738_v60  ;;  %613 = vrot.lane.b32.xlu1 %v9100_v9, %s8874_s15  ;;  %986 = vrot.lane.b32.xlu0 %v9092_v7, %s8877_s18 }
 0x1d0   :  { %582 = vst.msk [vmem:[#allocation2 + $0x69] sm:$0x7f] %vm569_vm7, %v9514_v51 }
 0x1d1   :  { %v9750_v0 = vpop.permute.xlu1 %371  ;;  %v9752_v49 = vpop.permute.xlu0 %643 }
 0x1d2   :  { %16403 = vst [vmem:[#allocation85_spill] sm:$0xff] %v9750_v0  ;;  %16404 = vst [vmem:[#allocation86_spill] sm:$0xff] %v9752_v49 }
 0x1d3   :  { %451 = vst.msk [vmem:[#allocation2 + $0x6f] sm:$0xfe] %vm437_vm4, %v9750_v0  ;;  %617 = vrot.lane.b32.xlu1 %v9108_v11, %s8874_s15  ;;  %1107 = vrot.lane.b32.xlu0 %v9092_v7, %s8878_s19 }
 0x1d5   :  { %v9760_v51 = vpop.permute.xlu1 %375  ;;  %v9762_v60 = vpop.permute.xlu0 %647 }
 0x1d6   :  { %16405 = vst [vmem:[#allocation87_spill] sm:$0xff] %v9760_v51  ;;  %16406 = vst [vmem:[#allocation88_spill] sm:$0xff] %v9762_v60 }
 0x1d7   :  { %453 = vst.msk [vmem:[#allocation2 + $0x7f] sm:$0xfe] %vm437_vm4, %v9760_v51  ;;  %621 = vrot.lane.b32.xlu1 %v9116_v13, %s8874_s15  ;;  %990 = vrot.lane.b32.xlu0 %v9100_v9, %s8877_s18 }
 0x1d9   :  { %v9770_v0 = vpop.permute.xlu1 %379  ;;  %v9772_v50 = vpop.permute.xlu0 %651 }
 0x1da   :  { %16407 = vst [vmem:[#allocation89_spill] sm:$0xff] %v9770_v0  ;;  %16408 = vst [vmem:[#allocation90_spill] sm:$0xff] %v9772_v50 }
 0x1db   :  { %455 = vst.msk [vmem:[#allocation2 + $0x8f] sm:$0xfe] %vm437_vm4, %v9770_v0  ;;  %625 = vrot.lane.b32.xlu1 %v9124_v15, %s8874_s15  ;;  %1111 = vrot.lane.b32.xlu0 %v9100_v9, %s8878_s19 }
 0x1dd   :  { %v9780_v51 = vpop.permute.xlu1 %383  ;;  %v9782_v62 = vpop.permute.xlu0 %655 }
 0x1de   :  { %16409 = vst [vmem:[#allocation91_spill] sm:$0xff] %v9780_v51  ;;  %16410 = vst [vmem:[#allocation92_spill] sm:$0xff] %v9782_v62 }
 0x1df   :  { %457 = vst.msk [vmem:[#allocation2 + $0x9f] sm:$0xfe] %vm437_vm4, %v9780_v51  ;;  %629 = vrot.lane.b32.xlu1 %v9132_v17, %s8874_s15  ;;  %994 = vrot.lane.b32.xlu0 %v9108_v11, %s8877_s18 }
 0x1e1   :  { %v9790_v0 = vpop.permute.xlu1 %387  ;;  %v9792_v58 = vpop.permute.xlu0 %659 }
 0x1e2   :  { %16411 = vst [vmem:[#allocation93_spill] sm:$0xff] %v9790_v0  ;;  %16412 = vst [vmem:[#allocation94_spill] sm:$0xff] %v9792_v58 }
 0x1e3   :  { %459 = vst.msk [vmem:[#allocation2 + $0xaf] sm:$0xfe] %vm437_vm4, %v9790_v0  ;;  %633 = vrot.lane.b32.xlu1 %v9140_v19, %s8874_s15  ;;  %1115 = vrot.lane.b32.xlu0 %v9108_v11, %s8878_s19 }
 0x1e5   :  { %v9800_v51 = vpop.permute.xlu1 %391  ;;  %v9802_v41 = vpop.permute.xlu0 %663 }
 0x1e6   :  { %16413 = vst [vmem:[#allocation95_spill] sm:$0xff] %v9800_v51  ;;  %16414 = vst [vmem:[#allocation96_spill] sm:$0xff] %v9802_v41 }
 0x1e7   :  { %461 = vst.msk [vmem:[#allocation2 + $0xbf] sm:$0xfe] %vm437_vm4, %v9800_v51  ;;  %637 = vrot.lane.b32.xlu1 %v9154_v21, %s8874_s15  ;;  %878 = vrot.lane.b32.xlu0 %v9120_v14, %s8876_s17 }
 0x1e9   :  { %v9810_v0 = vpop.permute.xlu1 %395  ;;  %v9812_v42 = vpop.permute.xlu0 %732 }
 0x1ea   :  { %16415 = vst [vmem:[#allocation97_spill] sm:$0xff] %v9810_v0  ;;  %463 = vst.msk [vmem:[#allocation2 + $0xcf] sm:$0xfe] %vm437_vm4, %v9810_v0 }
 0x1eb   :  { %641 = vrot.lane.b32.xlu1 %v9170_v23, %s8874_s15  ;;  %1000 = vrot.lane.b32.xlu0 %v9120_v14, %s8877_s18 }
 0x1ed   :  { %v9820_v51 = vpop.permute.xlu1 %399  ;;  %v9822_v45 = vpop.permute.xlu0 %736 }
 0x1ee   :  { %16416 = vst [vmem:[#allocation98_spill] sm:$0xff] %v9820_v51  ;;  %465 = vst.msk [vmem:[#allocation2 + $0xdf] sm:$0xfe] %vm437_vm4, %v9820_v51 }
 0x1ef   :  { %645 = vrot.lane.b32.xlu1 %v9186_v25, %s8874_s15  ;;  %1121 = vrot.lane.b32.xlu0 %v9120_v14, %s8878_s19 }
 0x1f1   :  { %v9830_v0 = vpop.permute.xlu1 %403  ;;  %v9832_v55 = vpop.permute.xlu0 %740 }
 0x1f2   :  { %16417 = vst [vmem:[#allocation99_spill] sm:$0xff] %v9830_v0  ;;  %467 = vst.msk [vmem:[#allocation2 + $0xef] sm:$0xfe] %vm437_vm4, %v9830_v0 }
 0x1f3   :  { %649 = vrot.lane.b32.xlu1 %v9202_v27, %s8874_s15  ;;  %882 = vrot.lane.b32.xlu0 %v9128_v16, %s8876_s17 }
 0x1f5   :  { %v472_v51 = vpop.permute.xlu1 %471  ;;  %v9840_v52 = vpop.permute.xlu0 %744 }
 0x1f6   :  { %16418 = vst [vmem:[#allocation100_spill] sm:$0xff] %v9840_v52  ;;  %568 = vst.msk [vmem:[#allocation2 + $0x1] sm:$0xff] %vm567_vm5, %v472_v51 }
 0x1f7   :  { %1445 = vst.msk [vmem:[#allocation2 + $0x100] sm:$0xff] %vm697_vm8, %v472_v51  ;;  %699 = vst.msk [vmem:[#allocation2 + $0x8] sm:$0xff] %vm697_vm8, %v9638_v56  ;;  %653 = vrot.lane.b32.xlu1 %v9216_v29, %s8874_s15  ;;  %1004 = vrot.lane.b32.xlu0 %v9128_v16, %s8877_s18 }
 0x1f8   :  { %1478 = vst.msk [vmem:[#allocation2 + $0x107] sm:$0xff] %vm828_vm9, %v9638_v56 }
 0x1f9   :  { %1510 = vst.msk [vmem:[#allocation2 + $0x109] sm:$0x7f] %vm952_vm10, %v9822_v45  ;;  %v9854_v0 = vpop.permute.xlu1 %475  ;;  %v9856_v2 = vpop.permute.xlu0 %748 }
 0x1fa   :  { %16419 = vst [vmem:[#allocation101_spill] sm:$0xff] %v9856_v2  ;;  %571 = vst.msk [vmem:[#allocation2 + $0x11] sm:$0xff] %vm567_vm5, %v9854_v0 }
 0x1fb   :  { %701 = vst.msk [vmem:[#allocation2 + $0x18] sm:$0xff] %vm697_vm8, %v9652_v59  ;;  %657 = vrot.lane.b32.xlu1 %v9230_v31, %s8874_s15  ;;  %1125 = vrot.lane.b32.xlu0 %v9128_v16, %s8878_s19 }
 0x1fd   :  { %v9866_v51 = vpop.permute.xlu1 %479  ;;  %v9868_v56 = vpop.permute.xlu0 %752 }
 0x1fe   :  { %16420 = vst [vmem:[#allocation102_spill] sm:$0xff] %v9866_v51  ;;  %16421 = vst [vmem:[#allocation103_spill] sm:$0xff] %v9868_v56 }
 0x1ff   :  { %573 = vst.msk [vmem:[#allocation2 + $0x21] sm:$0xff] %vm567_vm5, %v9866_v51  ;;  %661 = vrot.lane.b32.xlu1 %v9300_v34, %s8874_s15  ;;  %886 = vrot.lane.b32.xlu0 %v9136_v18, %s8876_s17 }
 0x200   :  { %703 = vst.msk [vmem:[#allocation2 + $0x28] sm:$0xff] %vm697_vm8, %v9664_v44 }
 0x201   :  { %v9878_v54 = vpop.permute.xlu1 %483  ;;  %v9880_v36 = vpop.permute.xlu0 %756 }
 0x202   :  { %16422 = vst [vmem:[#allocation104_spill] sm:$0xff] %v9878_v54  ;;  %16423 = vst [vmem:[#allocation105_spill] sm:$0xff] %v9880_v36 }
 0x203   :  { %575 = vst.msk [vmem:[#allocation2 + $0x31] sm:$0xff] %vm567_vm5, %v9878_v54  ;;  %730 = vrot.lane.b32.xlu1 %v9074_v3, %s8875_s16  ;;  %1008 = vrot.lane.b32.xlu0 %v9136_v18, %s8877_s18 }
 0x204   :  { %705 = vst.msk [vmem:[#allocation2 + $0x38] sm:$0xff] %vm697_vm8, %v9674_v61 }
 0x205   :  { %v9890_v44 = vpop.permute.xlu1 %487  ;;  %v9892_v51 = vpop.permute.xlu0 %760 }
 0x206   :  { %16424 = vst [vmem:[#allocation106_spill] sm:$0xff] %v9890_v44  ;;  %16425 = vst [vmem:[#allocation107_spill] sm:$0xff] %v9892_v51 }
 0x207   :  { %577 = vst.msk [vmem:[#allocation2 + $0x41] sm:$0xff] %vm567_vm5, %v9890_v44  ;;  %734 = vrot.lane.b32.xlu1 %v9084_v5, %s8875_s16  ;;  %1129 = vrot.lane.b32.xlu0 %v9136_v18, %s8878_s19 }
 0x208   :  { %707 = vst.msk [vmem:[#allocation2 + $0x48] sm:$0xff] %vm697_vm8, %v9686_v53 }
 0x209   :  { %v9902_v61 = vpop.permute.xlu1 %491  ;;  %v9904_v54 = vpop.permute.xlu0 %764 }
 0x20a   :  { %16426 = vst [vmem:[#allocation108_spill] sm:$0xff] %v9902_v61  ;;  %16427 = vst [vmem:[#allocation109_spill] sm:$0xff] %v9904_v54 }
 0x20b   :  { %579 = vst.msk [vmem:[#allocation2 + $0x51] sm:$0xff] %vm567_vm5, %v9902_v61  ;;  %738 = vrot.lane.b32.xlu1 %v9092_v7, %s8875_s16  ;;  %890 = vrot.lane.b32.xlu0 %v9146_v20, %s8876_s17 }
 0x20c   :  { %709 = vst.msk [vmem:[#allocation2 + $0x58] sm:$0xff] %vm697_vm8, %v9696_v46 }
 0x20d   :  { %v9914_v53 = vpop.permute.xlu1 %495  ;;  %v9916_v44 = vpop.permute.xlu0 %768 }
 0x20e   :  { %16428 = vst [vmem:[#allocation110_spill] sm:$0xff] %v9914_v53  ;;  %16429 = vst [vmem:[#allocation111_spill] sm:$0xff] %v9916_v44 }
 0x20f   :  { %581 = vst.msk [vmem:[#allocation2 + $0x61] sm:$0xff] %vm567_vm5, %v9914_v53  ;;  %742 = vrot.lane.b32.xlu1 %v9100_v9, %s8875_s16  ;;  %1012 = vrot.lane.b32.xlu0 %v9146_v20, %s8877_s18 }
 0x210   :  { %711 = vst.msk [vmem:[#allocation2 + $0x68] sm:$0xff] %vm697_vm8, %v9708_v40 }
 0x211   :  { %v9926_v46 = vpop.permute.xlu1 %499  ;;  %v9928_v61 = vpop.permute.xlu0 %772 }
 0x212   :  { %16430 = vst [vmem:[#allocation112_spill] sm:$0xff] %v9926_v46  ;;  %16431 = vst [vmem:[#allocation113_spill] sm:$0xff] %v9928_v61 }
 0x213   :  { %583 = vst.msk [vmem:[#allocation2 + $0x71] sm:$0xff] %vm567_vm5, %v9926_v46  ;;  %746 = vrot.lane.b32.xlu1 %v9108_v11, %s8875_s16  ;;  %1133 = vrot.lane.b32.xlu0 %v9146_v20, %s8878_s19 }
 0x214   :  { %713 = vst.msk [vmem:[#allocation2 + $0x78] sm:$0xff] %vm697_vm8, %v9718_v57 }
 0x215   :  { %v9938_v40 = vpop.permute.xlu1 %503  ;;  %v9940_v53 = vpop.permute.xlu0 %776 }
 0x216   :  { %16432 = vst [vmem:[#allocation114_spill] sm:$0xff] %v9938_v40  ;;  %16433 = vst [vmem:[#allocation115_spill] sm:$0xff] %v9940_v53 }
 0x217   :  { %585 = vst.msk [vmem:[#allocation2 + $0x81] sm:$0xff] %vm567_vm5, %v9938_v40  ;;  %750 = vrot.lane.b32.xlu1 %v9116_v13, %s8875_s16  ;;  %894 = vrot.lane.b32.xlu0 %v9162_v22, %s8876_s17 }
 0x218   :  { %715 = vst.msk [vmem:[#allocation2 + $0x88] sm:$0xff] %vm697_vm8, %v9730_v39 }
 0x219   :  { %v9950_v57 = vpop.permute.xlu1 %507  ;;  %v9952_v46 = vpop.permute.xlu0 %780 }
 0x21a   :  { %16434 = vst [vmem:[#allocation116_spill] sm:$0xff] %v9950_v57  ;;  %16435 = vst [vmem:[#allocation117_spill] sm:$0xff] %v9952_v46 }
 0x21b   :  { %587 = vst.msk [vmem:[#allocation2 + $0x91] sm:$0xff] %vm567_vm5, %v9950_v57  ;;  %754 = vrot.lane.b32.xlu1 %v9124_v15, %s8875_s16  ;;  %1016 = vrot.lane.b32.xlu0 %v9162_v22, %s8877_s18 }
 0x21c   :  { %717 = vst.msk [vmem:[#allocation2 + $0x98] sm:$0xff] %vm697_vm8, %v9740_v1 }
 0x21d   :  { %v9962_v39 = vpop.permute.xlu1 %511  ;;  %v9964_v40 = vpop.permute.xlu0 %784 }
 0x21e   :  { %16436 = vst [vmem:[#allocation118_spill] sm:$0xff] %v9962_v39  ;;  %16437 = vst [vmem:[#allocation119_spill] sm:$0xff] %v9964_v40 }
 0x21f   :  { %589 = vst.msk [vmem:[#allocation2 + $0xa1] sm:$0xff] %vm567_vm5, %v9962_v39  ;;  %758 = vrot.lane.b32.xlu1 %v9132_v17, %s8875_s16  ;;  %1137 = vrot.lane.b32.xlu0 %v9162_v22, %s8878_s19 }
 0x220   :  { %719 = vst.msk [vmem:[#allocation2 + $0xa8] sm:$0xff] %vm697_vm8, %v9752_v49 }
 0x221   :  { %v9974_v1 = vpop.permute.xlu1 %515  ;;  %v9976_v57 = vpop.permute.xlu0 %788 }
 0x222   :  { %16438 = vst [vmem:[#allocation120_spill] sm:$0xff] %v9974_v1  ;;  %16439 = vst [vmem:[#allocation121_spill] sm:$0xff] %v9976_v57 }
 0x223   :  { %591 = vst.msk [vmem:[#allocation2 + $0xb1] sm:$0xff] %vm567_vm5, %v9974_v1  ;;  %762 = vrot.lane.b32.xlu1 %v9140_v19, %s8875_s16  ;;  %898 = vrot.lane.b32.xlu0 %v9178_v24, %s8876_s17 }
 0x224   :  { %721 = vst.msk [vmem:[#allocation2 + $0xb8] sm:$0xff] %vm697_vm8, %v9762_v60 }
 0x225   :  { %v9986_v49 = vpop.permute.xlu1 %519  ;;  %v9988_v39 = vpop.permute.xlu0 %792 }
 0x226   :  { %16440 = vst [vmem:[#allocation122_spill] sm:$0xff] %v9986_v49  ;;  %16441 = vst [vmem:[#allocation123_spill] sm:$0xff] %v9988_v39 }
 0x227   :  { %593 = vst.msk [vmem:[#allocation2 + $0xc1] sm:$0xff] %vm567_vm5, %v9986_v49  ;;  %766 = vrot.lane.b32.xlu1 %v9154_v21, %s8875_s16  ;;  %1020 = vrot.lane.b32.xlu0 %v9178_v24, %s8877_s18 }
 0x228   :  { %723 = vst.msk [vmem:[#allocation2 + $0xc8] sm:$0xff] %vm697_vm8, %v9772_v50 }
 0x229   :  { %v9998_v60 = vpop.permute.xlu1 %523  ;;  %v10000_v1 = vpop.permute.xlu0 %862 }
 0x22a   :  { %16442 = vst [vmem:[#allocation124_spill] sm:$0xff] %v9998_v60  ;;  %595 = vst.msk [vmem:[#allocation2 + $0xd1] sm:$0xff] %vm567_vm5, %v9998_v60 }
 0x22b   :  { %725 = vst.msk [vmem:[#allocation2 + $0xd8] sm:$0xff] %vm697_vm8, %v9782_v62  ;;  %770 = vrot.lane.b32.xlu1 %v9170_v23, %s8875_s16  ;;  %1141 = vrot.lane.b32.xlu0 %v9178_v24, %s8878_s19 }
 0x22d   :  { %v10010_v50 = vpop.permute.xlu1 %527  ;;  %v10012_v49 = vpop.permute.xlu0 %866 }
 0x22e   :  { %16443 = vst [vmem:[#allocation125_spill] sm:$0xff] %v10010_v50  ;;  %16444 = vst [vmem:[#allocation126_spill] sm:$0xff] %v10012_v49 }
 0x22f   :  { %597 = vst.msk [vmem:[#allocation2 + $0xe1] sm:$0xff] %vm567_vm5, %v10010_v50  ;;  %774 = vrot.lane.b32.xlu1 %v9186_v25, %s8875_s16  ;;  %902 = vrot.lane.b32.xlu0 %v9194_v26, %s8876_s17 }
 0x230   :  { %727 = vst.msk [vmem:[#allocation2 + $0xe8] sm:$0xff] %vm697_vm8, %v9792_v58 }
 0x231   :  { %v10022_v62 = vpop.permute.xlu1 %531  ;;  %v10024_v60 = vpop.permute.xlu0 %870 }
 0x232   :  { %16445 = vst [vmem:[#allocation127_spill] sm:$0xff] %v10022_v62  ;;  %16446 = vst [vmem:[#allocation128_spill] sm:$0xff] %v10024_v60 }
 0x233   :  { %599 = vst.msk [vmem:[#allocation2 + $0xf1] sm:$0xff] %vm567_vm5, %v10022_v62  ;;  %778 = vrot.lane.b32.xlu1 %v9202_v27, %s8875_s16  ;;  %1024 = vrot.lane.b32.xlu0 %v9194_v26, %s8877_s18 }
 0x234   :  { %729 = vst.msk [vmem:[#allocation2 + $0xf8] sm:$0xff] %vm697_vm8, %v9802_v41 }
 0x235   :  { %v602_v58 = vpop.permute.xlu1 %601  ;;  %v10034_v50 = vpop.permute.xlu0 %874 }
 0x236   :  { %16447 = vst [vmem:[#allocation129_spill] sm:$0xff] %v10034_v50  ;;  %698 = vst.msk [vmem:[#allocation2] sm:$0xff] %vm697_vm8, %v602_v58 }
 0x237   :  { %1477 = vst.msk [vmem:[#allocation2 + $0xff] sm:$0xfe] %vm826_vm11, %v602_v58  ;;  %782 = vrot.lane.b32.xlu1 %v9216_v29, %s8875_s16  ;;  %1145 = vrot.lane.b32.xlu0 %v9194_v26, %s8878_s19 }
 0x238   :  { %829 = vst.msk [vmem:[#allocation2 + $0x7] sm:$0xff] %vm828_vm9, %v9812_v42 }
 0x239   :  { %953 = vst.msk [vmem:[#allocation2 + $0x9] sm:$0x7f] %vm952_vm10, %v10000_v1  ;;  %v10046_v41 = vpop.permute.xlu1 %605  ;;  %v10048_v62 = vpop.permute.xlu0 %982 }
 0x23a   :  { %700 = vst.msk [vmem:[#allocation2 + $0x10] sm:$0xff] %vm697_vm8, %v10046_v41 }
 0x23b   :  { %786 = vrot.lane.b32.xlu1 %v9230_v31, %s8875_s16  ;;  %906 = vrot.lane.b32.xlu0 %v9208_v28, %s8876_s17  ;;  %831 = vst.msk [vmem:[#allocation2 + $0x17] sm:$0xff] %vm828_vm9, %v9822_v45 }
 0x23c   :  { %955 = vst.msk [vmem:[#allocation2 + $0x19] sm:$0x7f] %vm952_vm10, %v10012_v49 }
 0x23d   :  { %v10060_v42 = vpop.permute.xlu1 %609  ;;  %v10062_v58 = vpop.permute.xlu0 %1103 }
 0x23e   :  { %16448 = vst [vmem:[#allocation130_spill] sm:$0xff] %v10060_v42  ;;  %702 = vst.msk [vmem:[#allocation2 + $0x20] sm:$0xff] %vm697_vm8, %v10060_v42 }
 0x23f   :  { %790 = vrot.lane.b32.xlu1 %v9300_v34, %s8875_s16  ;;  %1028 = vrot.lane.b32.xlu0 %v9208_v28, %s8877_s18  ;;  %833 = vst.msk [vmem:[#allocation2 + $0x27] sm:$0xff] %vm828_vm9, %v9832_v55 }
 0x240   :  { %957 = vst.msk [vmem:[#allocation2 + $0x29] sm:$0x7f] %vm952_vm10, %v10024_v60 }
 0x241   :  { %v10074_v45 = vpop.permute.xlu1 %613  ;;  %v10076_v49 = vpop.permute.xlu0 %986 }
 0x242   :  { %16449 = vst [vmem:[#allocation131_spill] sm:$0xff] %v10074_v45  ;;  %704 = vst.msk [vmem:[#allocation2 + $0x30] sm:$0xff] %vm697_vm8, %v10074_v45 }
 0x243   :  { %860 = vrot.lane.b32.xlu1 %v9084_v5, %s8876_s17  ;;  %1149 = vrot.lane.b32.xlu0 %v9208_v28, %s8878_s19  ;;  %835 = vst.msk [vmem:[#allocation2 + $0x37] sm:$0xff] %vm828_vm9, %v9840_v52 }
 0x244   :  { %959 = vst.msk [vmem:[#allocation2 + $0x39] sm:$0x7f] %vm952_vm10, %v10034_v50  ;;  %v1667_v50 = vld [vmem:[%s15924_s1 + $0x20] sm:$0xf] }
 0x245   :  { %v10088_v60 = vpop.permute.xlu1 %617  ;;  %v10090_v42 = vpop.permute.xlu0 %1107  ;;  %8839 = vmatprep.subr.msk.mxu1 %vm1860_vm12, %v1667_v50  ;;  %8521 = vmatprep.subr.msk.mxu0 %vm1860_vm12, %v1667_v50 }
 0x246   :  { %16450 = vst [vmem:[#allocation132_spill] sm:$0xff] %v10088_v60  ;;  %706 = vst.msk [vmem:[#allocation2 + $0x40] sm:$0xff] %vm697_vm8, %v10088_v60  ;;  %8844 = vmatpush3.msk.msra.mxu1 %vm1860_vm12, %v1667_v50  ;;  %v1666_v60 = vld [vmem:[%s15924_s1 + $0x18] sm:$0xff]  ;;  %8522 = vmatpush3.msk.msra.mxu0 %vm1860_vm12, %v1667_v50  ;;  %v1664_v50 = vld [vmem:[%s15924_s1 + $0x8] sm:$0xff]  ;;  %vm1195_vm12 = vcmask 294144  }
 0x247   :  { %864 = vrot.lane.b32.xlu1 %v9092_v7, %s8876_s17  ;;  %910 = vrot.lane.b32.xlu0 %v9222_v30, %s8876_s17  ;;  %837 = vst.msk [vmem:[#allocation2 + $0x47] sm:$0xff] %vm828_vm9, %v9856_v2  ;;  %v1665_v2 = vld [vmem:[%s15924_s1 + $0x10] sm:$0xff] }
 0x248   :  { %8840 = vmatprep.subr.mxu1 %v1666_v60  ;;  %8523 = vmatprep.subr.mxu0 %v1666_v60 }
 0x249   :  { %v10103_v45 = vpop.permute.xlu1 %621  ;;  %v10105_v52 = vpop.permute.xlu0 %990  ;;  %8845 = vmatpush3.msra.mxu1 %v1666_v60  ;;  %8524 = vmatpush3.msra.mxu0 %v1666_v60 }
 0x24a   :  { %16451 = vst [vmem:[#allocation133_spill] sm:$0xff] %v10103_v45  ;;  %708 = vst.msk [vmem:[#allocation2 + $0x50] sm:$0xff] %vm697_vm8, %v10103_v45  ;;  %8841 = vmatprep.subr.mxu1 %v1665_v2  ;;  %8525 = vmatprep.subr.mxu0 %v1665_v2 }
 0x24b   :  { %868 = vrot.lane.b32.xlu1 %v9100_v9, %s8876_s17  ;;  %1032 = vrot.lane.b32.xlu0 %v9222_v30, %s8877_s18  ;;  %839 = vst.msk [vmem:[#allocation2 + $0x57] sm:$0xff] %vm828_vm9, %v9868_v56  ;;  %v1663_v56 = vld [vmem:[%s15924_s1] sm:$0xff]  ;;  %s8879_s1 = smov 124  }
 0x24c   :  { %8846 = vmatpush3.msra.mxu1 %v1665_v2  ;;  %8526 = vmatpush3.msra.mxu0 %v1665_v2 }
 0x24d   :  { %v10121_v45 = vpop.permute.xlu1 %625  ;;  %v10123_v48 = vpop.permute.xlu0 %1111  ;;  %8842 = vmatprep.subr.mxu1 %v1664_v50  ;;  %8527 = vmatprep.subr.mxu0 %v1664_v50 }
 0x24e   :  { %16452 = vst [vmem:[#allocation134_spill] sm:$0xff] %v10121_v45  ;;  %710 = vst.msk [vmem:[#allocation2 + $0x60] sm:$0xff] %vm697_vm8, %v10121_v45  ;;  %8847 = vmatpush3.msra.mxu1 %v1664_v50  ;;  %8528 = vmatpush3.msra.mxu0 %v1664_v50 }
 0x24f   :  { %872 = vrot.lane.b32.xlu1 %v9108_v11, %s8876_s17  ;;  %1153 = vrot.lane.b32.xlu0 %v9222_v30, %s8878_s19  ;;  %841 = vst.msk [vmem:[#allocation2 + $0x67] sm:$0xff] %vm828_vm9, %v9880_v36 }
 0x250   :  { %8843 = vmatprep.subr.mxu1 %v1663_v56  ;;  %8529 = vmatprep.subr.mxu0 %v1663_v56 }
 0x251   :  { %v10136_v60 = vpop.permute.xlu1 %629  ;;  %v10138_v45 = vpop.permute.xlu0 %994  ;;  %8848 = vmatpush3.msra.mxu1 %v1663_v56  ;;  %8530 = vmatpush3.msra.mxu0 %v1663_v56 }
 0x252   :  { %16453 = vst [vmem:[#allocation135_spill] sm:$0xff] %v10136_v60  ;;  %16454 = vst [vmem:[#allocation136_spill] sm:$0xff] %v10138_v45 }
 0x253   :  { %712 = vst.msk [vmem:[#allocation2 + $0x70] sm:$0xff] %vm697_vm8, %v10136_v60  ;;  %876 = vrot.lane.b32.xlu1 %v9116_v13, %s8876_s17  ;;  %914 = vrot.lane.b32.xlu0 %v9240_v33, %s8876_s17 }
 0x254   :  { %843 = vst.msk [vmem:[#allocation2 + $0x77] sm:$0xff] %vm828_vm9, %v9892_v51 }
 0x255   :  { %v10151_v2 = vpop.permute.xlu1 %633  ;;  %v10153_v36 = vpop.permute.xlu0 %1115 }
 0x256   :  { %16455 = vst [vmem:[#allocation137_spill] sm:$0xff] %v10151_v2  ;;  %714 = vst.msk [vmem:[#allocation2 + $0x80] sm:$0xff] %vm697_vm8, %v10151_v2 }
 0x257   :  { %984 = vrot.lane.b32.xlu1 %v9088_v6, %s8877_s18  ;;  %1036 = vrot.lane.b32.xlu0 %v9240_v33, %s8877_s18  ;;  %845 = vst.msk [vmem:[#allocation2 + $0x87] sm:$0xff] %vm828_vm9, %v9904_v54 }
 0x259   :  { %v10163_v50 = vpop.permute.xlu1 %637  ;;  %v10165_v60 = vpop.permute.xlu0 %878 }
 0x25a   :  { %16456 = vst [vmem:[#allocation138_spill] sm:$0xff] %v10163_v50  ;;  %16457 = vst [vmem:[#allocation139_spill] sm:$0xff] %v10165_v60 }
 0x25b   :  { %716 = vst.msk [vmem:[#allocation2 + $0x90] sm:$0xff] %vm697_vm8, %v10163_v50  ;;  %1105 = vrot.lane.b32.xlu1 %v9088_v6, %s8878_s19  ;;  %1157 = vrot.lane.b32.xlu0 %v9240_v33, %s8878_s19 }
 0x25c   :  { %961 = vst.msk [vmem:[#allocation2 + $0x49] sm:$0x7f] %vm952_vm10, %v10165_v60 }
 0x25d   :  { %847 = vst.msk [vmem:[#allocation2 + $0x97] sm:$0xff] %vm828_vm9, %v9916_v44  ;;  %v10177_v56 = vpop.permute.xlu1 %641  ;;  %v10179_v2 = vpop.permute.xlu0 %1000 }
 0x25e   :  { %16458 = vst [vmem:[#allocation140_spill] sm:$0xff] %v10177_v56  ;;  %16459 = vst [vmem:[#allocation141_spill] sm:$0xff] %v10179_v2 }
 0x25f   :  { %718 = vst.msk [vmem:[#allocation2 + $0xa0] sm:$0xff] %vm697_vm8, %v10177_v56  ;;  %988 = vrot.lane.b32.xlu1 %v9096_v8, %s8877_s18  ;;  %918 = vrot.lane.b32.xlu0 %v9310_v35, %s8876_s17 }
 0x260   :  { %849 = vst.msk [vmem:[#allocation2 + $0xa7] sm:$0xff] %vm828_vm9, %v9928_v61 }
 0x261   :  { %v10189_v50 = vpop.permute.xlu1 %645  ;;  %v10191_v44 = vpop.permute.xlu0 %1121 }
 0x262   :  { %16460 = vst [vmem:[#allocation142_spill] sm:$0xff] %v10189_v50  ;;  %720 = vst.msk [vmem:[#allocation2 + $0xb0] sm:$0xff] %vm697_vm8, %v10189_v50 }
 0x263   :  { %851 = vst.msk [vmem:[#allocation2 + $0xb7] sm:$0xff] %vm828_vm9, %v9940_v53  ;;  %1109 = vrot.lane.b32.xlu1 %v9096_v8, %s8878_s19  ;;  %1040 = vrot.lane.b32.xlu0 %v9310_v35, %s8877_s18 }
 0x265   :  { %v10201_v56 = vpop.permute.xlu1 %649  ;;  %v10203_v61 = vpop.permute.xlu0 %882 }
 0x266   :  { %16461 = vst [vmem:[#allocation143_spill] sm:$0xff] %v10201_v56  ;;  %16462 = vst [vmem:[#allocation144_spill] sm:$0xff] %v10203_v61 }
 0x267   :  { %722 = vst.msk [vmem:[#allocation2 + $0xc0] sm:$0xff] %vm697_vm8, %v10201_v56  ;;  %992 = vrot.lane.b32.xlu1 %v9104_v10, %s8877_s18  ;;  %1161 = vrot.lane.b32.xlu0 %v9310_v35, %s8878_s19 }
 0x268   :  { %963 = vst.msk [vmem:[#allocation2 + $0x59] sm:$0x7f] %vm952_vm10, %v10203_v61 }
 0x269   :  { %853 = vst.msk [vmem:[#allocation2 + $0xc7] sm:$0xff] %vm828_vm9, %v9952_v46  ;;  %v10215_v50 = vpop.permute.xlu1 %653  ;;  %v10217_v53 = vpop.permute.xlu0 %1004 }
 0x26a   :  { %16463 = vst [vmem:[#allocation145_spill] sm:$0xff] %v10215_v50  ;;  %724 = vst.msk [vmem:[#allocation2 + $0xd0] sm:$0xff] %vm697_vm8, %v10215_v50 }
 0x26b   :  { %855 = vst.msk [vmem:[#allocation2 + $0xd7] sm:$0xff] %vm828_vm9, %v9964_v40  ;;  %1113 = vrot.lane.b32.xlu1 %v9104_v10, %s8878_s19  ;;  %1227 = vrot.lane.b32.xlu0 %v9080_v4, %s8879_s1 }
 0x26d   :  { %v10227_v56 = vpop.permute.xlu1 %657  ;;  %v10229_v46 = vpop.permute.xlu0 %1125 }
 0x26e   :  { %16464 = vst [vmem:[#allocation146_spill] sm:$0xff] %v10227_v56  ;;  %726 = vst.msk [vmem:[#allocation2 + $0xe0] sm:$0xff] %vm697_vm8, %v10227_v56 }
 0x26f   :  { %857 = vst.msk [vmem:[#allocation2 + $0xe7] sm:$0xff] %vm828_vm9, %v9976_v57  ;;  %996 = vrot.lane.b32.xlu1 %v9112_v12, %s8877_s18  ;;  %1231 = vrot.lane.b32.xlu0 %v9088_v6, %s8879_s1 }
 0x271   :  { %v10239_v50 = vpop.permute.xlu1 %661  ;;  %v10241_v40 = vpop.permute.xlu0 %886 }
 0x272   :  { %16465 = vst [vmem:[#allocation147_spill] sm:$0xff] %v10239_v50  ;;  %16466 = vst [vmem:[#allocation148_spill] sm:$0xff] %v10241_v40 }
 0x273   :  { %728 = vst.msk [vmem:[#allocation2 + $0xf0] sm:$0xff] %vm697_vm8, %v10239_v50  ;;  %1117 = vrot.lane.b32.xlu1 %v9112_v12, %s8878_s19  ;;  %1235 = vrot.lane.b32.xlu0 %v9096_v8, %s8879_s1 }
 0x274   :  { %965 = vst.msk [vmem:[#allocation2 + $0x69] sm:$0x7f] %vm952_vm10, %v10241_v40 }
 0x275   :  { %859 = vst.msk [vmem:[#allocation2 + $0xf7] sm:$0xff] %vm828_vm9, %v9988_v39  ;;  %v731_v56 = vpop.permute.xlu1 %730  ;;  %v10253_v57 = vpop.permute.xlu0 %1008 }
 0x276   :  { %16467 = vst [vmem:[#allocation149_spill] sm:$0xff] %v10253_v57  ;;  %827 = vst.msk [vmem:[#allocation2 - $0x1] sm:$0xfe] %vm826_vm11, %v731_v56 }
 0x277   :  { %998 = vrot.lane.b32.xlu1 %v9116_v13, %s8877_s18  ;;  %1239 = vrot.lane.b32.xlu0 %v9104_v10, %s8879_s1 }
 0x279   :  { %v735_v50 = vpop.permute.xlu1 %734  ;;  %v10260_v39 = vpop.permute.xlu0 %1129 }
 0x27a   :  { %830 = vst.msk [vmem:[#allocation2 + $0xf] sm:$0xfe] %vm826_vm11, %v735_v50 }
 0x27b   :  { %1509 = vst.msk [vmem:[#allocation2 + $0x101] sm:$0xff] %vm950_vm13, %v735_v50  ;;  %1119 = vrot.lane.b32.xlu1 %v9116_v13, %s8878_s19  ;;  %1243 = vrot.lane.b32.xlu0 %v9112_v12, %s8879_s1 }
 0x27c   :  { %1540 = vst.msk [vmem:[#allocation2 + $0x108] sm:$0xff] %vm1072_vm14, %v10000_v1 }
 0x27d   :  { %v10270_v56 = vpop.permute.xlu1 %738  ;;  %v10272_v54 = vpop.permute.xlu0 %890 }
 0x27e   :  { %16468 = vst [vmem:[#allocation150_spill] sm:$0xff] %v10272_v54  ;;  %832 = vst.msk [vmem:[#allocation2 + $0x1f] sm:$0xfe] %vm826_vm11, %v10270_v56 }
 0x27f   :  { %967 = vst.msk [vmem:[#allocation2 + $0x79] sm:$0x7f] %vm952_vm10, %v10272_v54  ;;  %880 = vrot.lane.b32.xlu1 %v9124_v15, %s8876_s17  ;;  %1247 = vrot.lane.b32.xlu0 %v9120_v14, %s8879_s1 }
 0x281   :  { %v10282_v50 = vpop.permute.xlu1 %742  ;;  %v10284_v40 = vpop.permute.xlu0 %1012 }
 0x282   :  { %16469 = vst [vmem:[#allocation151_spill] sm:$0xff] %v10284_v40  ;;  %834 = vst.msk [vmem:[#allocation2 + $0x2f] sm:$0xfe] %vm826_vm11, %v10282_v50 }
 0x283   :  { %1002 = vrot.lane.b32.xlu1 %v9124_v15, %s8877_s18  ;;  %1251 = vrot.lane.b32.xlu0 %v9128_v16, %s8879_s1 }
 0x285   :  { %v10292_v1 = vpop.permute.xlu1 %746  ;;  %v10294_v54 = vpop.permute.xlu0 %1133 }
 0x286   :  { %16470 = vst [vmem:[#allocation152_spill] sm:$0xff] %v10292_v1  ;;  %836 = vst.msk [vmem:[#allocation2 + $0x3f] sm:$0xfe] %vm826_vm11, %v10292_v1 }
 0x287   :  { %1123 = vrot.lane.b32.xlu1 %v9124_v15, %s8878_s19  ;;  %1255 = vrot.lane.b32.xlu0 %v9136_v18, %s8879_s1 }
 0x289   :  { %v10302_v51 = vpop.permute.xlu1 %750  ;;  %v10304_v61 = vpop.permute.xlu0 %894 }
 0x28a   :  { %16471 = vst [vmem:[#allocation153_spill] sm:$0xff] %v10302_v51  ;;  %16472 = vst [vmem:[#allocation154_spill] sm:$0xff] %v10304_v61 }
 0x28b   :  { %838 = vst.msk [vmem:[#allocation2 + $0x4f] sm:$0xfe] %vm826_vm11, %v10302_v51  ;;  %884 = vrot.lane.b32.xlu1 %v9132_v17, %s8876_s17  ;;  %1259 = vrot.lane.b32.xlu0 %v9146_v20, %s8879_s1 }
 0x28c   :  { %969 = vst.msk [vmem:[#allocation2 + $0x89] sm:$0x7f] %vm952_vm10, %v10304_v61 }
 0x28d   :  { %v10314_v16 = vpop.permute.xlu1 %754  ;;  %v10316_v14 = vpop.permute.xlu0 %1016 }
 0x28e   :  { %16473 = vst [vmem:[#allocation155_spill] sm:$0xff] %v10314_v16  ;;  %840 = vst.msk [vmem:[#allocation2 + $0x5f] sm:$0xfe] %vm826_vm11, %v10314_v16 }
 0x28f   :  { %1006 = vrot.lane.b32.xlu1 %v9132_v17, %s8877_s18  ;;  %1263 = vrot.lane.b32.xlu0 %v9162_v22, %s8879_s1 }
 0x291   :  { %v10324_v61 = vpop.permute.xlu1 %758  ;;  %v10326_v18 = vpop.permute.xlu0 %1137 }
 0x292   :  { %16474 = vst [vmem:[#allocation156_spill] sm:$0xff] %v10324_v61  ;;  %842 = vst.msk [vmem:[#allocation2 + $0x6f] sm:$0xfe] %vm826_vm11, %v10324_v61 }
 0x293   :  { %1127 = vrot.lane.b32.xlu1 %v9132_v17, %s8878_s19  ;;  %1267 = vrot.lane.b32.xlu0 %v9178_v24, %s8879_s1 }
 0x295   :  { %v10334_v20 = vpop.permute.xlu1 %762  ;;  %v10336_v16 = vpop.permute.xlu0 %898 }
 0x296   :  { %16475 = vst [vmem:[#allocation157_spill] sm:$0xff] %v10334_v20  ;;  %16476 = vst [vmem:[#allocation158_spill] sm:$0xff] %v10336_v16 }
 0x297   :  { %844 = vst.msk [vmem:[#allocation2 + $0x7f] sm:$0xfe] %vm826_vm11, %v10334_v20  ;;  %888 = vrot.lane.b32.xlu1 %v9140_v19, %s8876_s17  ;;  %1271 = vrot.lane.b32.xlu0 %v9194_v26, %s8879_s1 }
 0x298   :  { %971 = vst.msk [vmem:[#allocation2 + $0x99] sm:$0x7f] %vm952_vm10, %v10336_v16 }
 0x299   :  { %v10346_v22 = vpop.permute.xlu1 %766  ;;  %v10348_v61 = vpop.permute.xlu0 %1020 }
 0x29a   :  { %16477 = vst [vmem:[#allocation159_spill] sm:$0xff] %v10346_v22  ;;  %846 = vst.msk [vmem:[#allocation2 + $0x8f] sm:$0xfe] %vm826_vm11, %v10346_v22 }
 0x29b   :  { %1010 = vrot.lane.b32.xlu1 %v9140_v19, %s8877_s18  ;;  %1275 = vrot.lane.b32.xlu0 %v9208_v28, %s8879_s1 }
 0x29d   :  { %v10356_v24 = vpop.permute.xlu1 %770  ;;  %v10358_v16 = vpop.permute.xlu0 %1141 }
 0x29e   :  { %16478 = vst [vmem:[#allocation160_spill] sm:$0xff] %v10356_v24  ;;  %848 = vst.msk [vmem:[#allocation2 + $0x9f] sm:$0xfe] %vm826_vm11, %v10356_v24 }
 0x29f   :  { %1131 = vrot.lane.b32.xlu1 %v9140_v19, %s8878_s19  ;;  %1279 = vrot.lane.b32.xlu0 %v9222_v30, %s8879_s1 }
 0x2a1   :  { %v10366_v26 = vpop.permute.xlu1 %774  ;;  %v10368_v22 = vpop.permute.xlu0 %902 }
 0x2a2   :  { %16479 = vst [vmem:[#allocation161_spill] sm:$0xff] %v10366_v26  ;;  %16480 = vst [vmem:[#allocation162_spill] sm:$0xff] %v10368_v22 }
 0x2a3   :  { %850 = vst.msk [vmem:[#allocation2 + $0xaf] sm:$0xfe] %vm826_vm11, %v10366_v26  ;;  %892 = vrot.lane.b32.xlu1 %v9154_v21, %s8876_s17  ;;  %1283 = vrot.lane.b32.xlu0 %v9240_v33, %s8879_s1 }
 0x2a4   :  { %973 = vst.msk [vmem:[#allocation2 + $0xa9] sm:$0x7f] %vm952_vm10, %v10368_v22 }
 0x2a5   :  { %v10378_v28 = vpop.permute.xlu1 %778  ;;  %v10380_v24 = vpop.permute.xlu0 %1024 }
 0x2a6   :  { %16481 = vst [vmem:[#allocation163_spill] sm:$0xff] %v10378_v28  ;;  %852 = vst.msk [vmem:[#allocation2 + $0xbf] sm:$0xfe] %vm826_vm11, %v10378_v28 }
 0x2a7   :  { %1014 = vrot.lane.b32.xlu1 %v9154_v21, %s8877_s18  ;;  %1408 = vrot.lane.b32.xlu0 %v9310_v35, %s8872_s0 }
 0x2a9   :  { %v10388_v30 = vpop.permute.xlu1 %782  ;;  %v10390_v22 = vpop.permute.xlu0 %1145 }
 0x2aa   :  { %16482 = vst [vmem:[#allocation164_spill] sm:$0xff] %v10388_v30  ;;  %854 = vst.msk [vmem:[#allocation2 + $0xcf] sm:$0xfe] %vm826_vm11, %v10388_v30 }
 0x2ab   :  { %1135 = vrot.lane.b32.xlu1 %v9154_v21, %s8878_s19 }
 0x2ad   :  { %v10396_v33 = vpop.permute.xlu1 %786  ;;  %v10398_v26 = vpop.permute.xlu0 %906 }
 0x2ae   :  { %16483 = vst [vmem:[#allocation165_spill] sm:$0xff] %v10396_v33  ;;  %16484 = vst [vmem:[#allocation166_spill] sm:$0xff] %v10398_v26 }
 0x2af   :  { %856 = vst.msk [vmem:[#allocation2 + $0xdf] sm:$0xfe] %vm826_vm11, %v10396_v33  ;;  %896 = vrot.lane.b32.xlu1 %v9170_v23, %s8876_s17 }
 0x2b0   :  { %975 = vst.msk [vmem:[#allocation2 + $0xb9] sm:$0x7f] %vm952_vm10, %v10398_v26 }
 0x2b1   :  { %v10406_v35 = vpop.permute.xlu1 %790  ;;  %v10408_v28 = vpop.permute.xlu0 %1028 }
 0x2b2   :  { %16485 = vst [vmem:[#allocation167_spill] sm:$0xff] %v10406_v35  ;;  %858 = vst.msk [vmem:[#allocation2 + $0xef] sm:$0xfe] %vm826_vm11, %v10406_v35 }
 0x2b3   :  { %1018 = vrot.lane.b32.xlu1 %v9170_v23, %s8877_s18 }
 0x2b5   :  { %v861_v30 = vpop.permute.xlu1 %860  ;;  %v10414_v20 = vpop.permute.xlu0 %1149 }
 0x2b6   :  { %951 = vst.msk [vmem:[#allocation2 + $0x1] sm:$0xff] %vm950_vm13, %v861_v30 }
 0x2b7   :  { %1539 = vst.msk [vmem:[#allocation2 + $0x100] sm:$0xff] %vm1072_vm14, %v861_v30  ;;  %1073 = vst.msk [vmem:[#allocation2] sm:$0xff] %vm1072_vm14, %v10048_v62  ;;  %1139 = vrot.lane.b32.xlu1 %v9170_v23, %s8878_s19 }
 0x2b8   :  { %1569 = vst.msk [vmem:[#allocation2 + $0xff] sm:$0xfe] %vm1193_vm15, %v10048_v62  ;;  %1194 = vst.msk [vmem:[#allocation2 - $0x1] sm:$0xfe] %vm1193_vm15, %v10062_v58 }
 0x2b9   :  { %v10426_v35 = vpop.permute.xlu1 %864  ;;  %v10428_v33 = vpop.permute.xlu0 %910 }
 0x2ba   :  { %16486 = vst [vmem:[#allocation168_spill] sm:$0xff] %v10428_v33  ;;  %954 = vst.msk [vmem:[#allocation2 + $0x11] sm:$0xff] %vm950_vm13, %v10426_v35 }
 0x2bb   :  { %977 = vst.msk [vmem:[#allocation2 + $0xc9] sm:$0x7f] %vm952_vm10, %v10428_v33  ;;  %900 = vrot.lane.b32.xlu1 %v9186_v25, %s8876_s17 }
 0x2bc   :  { %1075 = vst.msk [vmem:[#allocation2 + $0x10] sm:$0xff] %vm1072_vm14, %v10076_v49 }
 0x2bd   :  { %1197 = vst.msk [vmem:[#allocation2 + $0xf] sm:$0xfe] %vm1193_vm15, %v10090_v42  ;;  %v10440_v30 = vpop.permute.xlu1 %868  ;;  %v10442_v62 = vpop.permute.xlu0 %1032 }
 0x2be   :  { %16487 = vst [vmem:[#allocation169_spill] sm:$0xff] %v10442_v62  ;;  %956 = vst.msk [vmem:[#allocation2 + $0x21] sm:$0xff] %vm950_vm13, %v10440_v30 }
 0x2bf   :  { %1077 = vst.msk [vmem:[#allocation2 + $0x20] sm:$0xff] %vm1072_vm14, %v10105_v52  ;;  %1022 = vrot.lane.b32.xlu1 %v9186_v25, %s8877_s18 }
 0x2c0   :  { %1199 = vst.msk [vmem:[#allocation2 + $0x1f] sm:$0xfe] %vm1193_vm15, %v10123_v48 }
 0x2c1   :  { %v10452_v58 = vpop.permute.xlu1 %872  ;;  %v10454_v33 = vpop.permute.xlu0 %1153 }
 0x2c2   :  { %16488 = vst [vmem:[#allocation170_spill] sm:$0xff] %v10452_v58  ;;  %958 = vst.msk [vmem:[#allocation2 + $0x31] sm:$0xff] %vm950_vm13, %v10452_v58 }
 0x2c3   :  { %1079 = vst.msk [vmem:[#allocation2 + $0x30] sm:$0xff] %vm1072_vm14, %v10138_v45  ;;  %1143 = vrot.lane.b32.xlu1 %v9186_v25, %s8878_s19 }
 0x2c4   :  { %1201 = vst.msk [vmem:[#allocation2 + $0x2f] sm:$0xfe] %vm1193_vm15, %v10153_v36 }
 0x2c5   :  { %v10464_v42 = vpop.permute.xlu1 %876  ;;  %v10466_v26 = vpop.permute.xlu0 %914 }
 0x2c6   :  { %16489 = vst [vmem:[#allocation171_spill] sm:$0xff] %v10464_v42  ;;  %16490 = vst [vmem:[#allocation172_spill] sm:$0xff] %v10466_v26 }
 0x2c7   :  { %960 = vst.msk [vmem:[#allocation2 + $0x41] sm:$0xff] %vm950_vm13, %v10464_v42  ;;  %904 = vrot.lane.b32.xlu1 %v9202_v27, %s8876_s17 }
 0x2c8   :  { %979 = vst.msk [vmem:[#allocation2 + $0xd9] sm:$0x7f] %vm952_vm10, %v10466_v26 }
 0x2c9   :  { %1082 = vst.msk [vmem:[#allocation2 + $0x48] sm:$0xff] %vm1072_vm14, %v10179_v2  ;;  %v985_v48 = vpop.permute.xlu1 %984  ;;  %v10476_v60 = vpop.permute.xlu0 %1036 }
 0x2ca   :  { %16491 = vst [vmem:[#allocation173_spill] sm:$0xff] %v10476_v60  ;;  %1074 = vst.msk [vmem:[#allocation2 + $0x8] sm:$0xff] %vm1072_vm14, %v985_v48 }
 0x2cb   :  { %1570 = vst.msk [vmem:[#allocation2 + $0x107] sm:$0xff] %vm1195_vm12, %v985_v48  ;;  %1026 = vrot.lane.b32.xlu1 %v9202_v27, %s8877_s18 }
 0x2cd   :  { %v1106_v36 = vpop.permute.xlu1 %1105  ;;  %v10482_v42 = vpop.permute.xlu0 %1157 }
 0x2ce   :  { %1196 = vst.msk [vmem:[#allocation2 + $0x7] sm:$0xff] %vm1195_vm12, %v1106_v36 }
 0x2cf   :  { %1147 = vrot.lane.b32.xlu1 %v9202_v27, %s8878_s19 }
 0x2d1   :  { %v10487_v26 = vpop.permute.xlu1 %988  ;;  %v10489_v2 = vpop.permute.xlu0 %918 }
 0x2d2   :  { %16492 = vst [vmem:[#allocation174_spill] sm:$0xff] %v10489_v2  ;;  %v1631_v51 = vld [vmem:[#allocation2 + $0x100] sm:$0xff]  ;;  %v1632_v12 = vld [vmem:[#allocation2 + $0x108] sm:$0xff]  ;;  %1076 = vst.msk [vmem:[#allocation2 + $0x18] sm:$0xff] %vm1072_vm14, %v10487_v26 }
 0x2d3   :  { %981 = vst.msk [vmem:[#allocation2 + $0xe9] sm:$0x7f] %vm952_vm10, %v10489_v2  ;;  %8579 = vmatprep.mubr.msk.f32.mxu1 %vm98_vm0, %v1631_v51  ;;  %908 = vrot.lane.b32.xlu1 %v9216_v29, %s8876_s17 }
 0x2d4   :  { %8580 = vmatmul.mubr.msk.f32.vlgmr.msra.gmra.mxu1 %vm98_vm0, %v1632_v12 }
 0x2d5   :  { %v1110_v48 = vpop.permute.xlu1 %1109  ;;  %v10499_v36 = vpop.permute.xlu0 %1040  ;;  %v1599_v45 = vld [vmem:[#allocation2] sm:$0xff]  ;;  %v1600_v58 = vld [vmem:[#allocation2 + $0x8] sm:$0xff] }
 0x2d6   :  { %1198 = vst.msk [vmem:[#allocation2 + $0x17] sm:$0xff] %vm1195_vm12, %v1110_v48  ;;  %8531 = vmatprep.mubr.msk.f32.mxu0 %vm98_vm0, %v1599_v45 }
 0x2d7   :  { %1030 = vrot.lane.b32.xlu1 %v9216_v29, %s8877_s18  ;;  %8532 = vmatmul.mubr.msk.f32.vlgmr.msra.gmra.mxu0 %vm98_vm0, %v1600_v58 }
 0x2d9   :  { %v10506_v51 = vpop.permute.xlu1 %992  ;;  %v10508_v2 = vpop.permute.xlu0 %1161 }
 0x2da   :  { %16493 = vst [vmem:[#allocation175_spill] sm:$0xff] %v10506_v51  ;;  %1078 = vst.msk [vmem:[#allocation2 + $0x28] sm:$0xff] %vm1072_vm14, %v10506_v51 }
 0x2db   :  { %1151 = vrot.lane.b32.xlu1 %v9216_v29, %s8878_s19 }
 0x2dd   :  { %v1114_v12 = vpop.permute.xlu1 %1113  ;;  %v1228_v1 = vpop.permute.xlu0 %1227  ;;  %v1601_v48 = vld [vmem:[#allocation2 + $0x10] sm:$0xff]  ;;  %v1602_v10 = vld [vmem:[#allocation2 + $0x18] sm:$0xff] }
 0x2de   :  { %1200 = vst.msk [vmem:[#allocation2 + $0x27] sm:$0xff] %vm1195_vm12, %v1114_v12  ;;  %8534 = vmatprep.mubr.msk.f32.mxu0 %vm98_vm0, %v1601_v48 }
 0x2df   :  { %1317 = vst.msk [vmem:[#allocation2 + $0x119] sm:$0x7f] %vm166_vm2, %v1228_v1  ;;  %912 = vrot.lane.b32.xlu1 %v9230_v31, %s8876_s17  ;;  %8535 = vmatmul.mubr.msk.f32.gmra.mxu0 %vm98_vm0, %v1602_v10 }
 0x2e1   :  { %v10520_v45 = vpop.permute.xlu1 %996  ;;  %v1232_v58 = vpop.permute.xlu0 %1231 }
 0x2e2   :  { %16494 = vst [vmem:[#allocation176_spill] sm:$0xff] %v10520_v45  ;;  %1080 = vst.msk [vmem:[#allocation2 + $0x38] sm:$0xff] %vm1072_vm14, %v10520_v45 }
 0x2e3   :  { %1319 = vst.msk [vmem:[#allocation2 + $0x129] sm:$0x7f] %vm166_vm2, %v1232_v58  ;;  %1034 = vrot.lane.b32.xlu1 %v9230_v31, %s8877_s18 }
 0x2e5   :  { %v1118_v12 = vpop.permute.xlu1 %1117  ;;  %v1236_v1 = vpop.permute.xlu0 %1235  ;;  %v1603_v51 = vld [vmem:[#allocation2 + $0x20] sm:$0xff]  ;;  %v1604_v48 = vld [vmem:[#allocation2 + $0x28] sm:$0xff] }
 0x2e6   :  { %1202 = vst.msk [vmem:[#allocation2 + $0x37] sm:$0xff] %vm1195_vm12, %v1118_v12  ;;  %8537 = vmatprep.mubr.msk.f32.mxu0 %vm98_vm0, %v1603_v51 }
 0x2e7   :  { %1321 = vst.msk [vmem:[#allocation2 + $0x139] sm:$0x7f] %vm166_vm2, %v1236_v1  ;;  %1155 = vrot.lane.b32.xlu1 %v9230_v31, %s8878_s19  ;;  %8538 = vmatmul.mubr.msk.f32.gmra.mxu0 %vm98_vm0, %v1604_v48 }
 0x2e9   :  { %v10533_v10 = vpop.permute.xlu1 %998  ;;  %v1240_v58 = vpop.permute.xlu0 %1239 }
 0x2ea   :  { %1081 = vst.msk [vmem:[#allocation2 + $0x40] sm:$0xff] %vm1072_vm14, %v10533_v10 }
 0x2eb   :  { %1323 = vst.msk [vmem:[#allocation2 + $0x149] sm:$0x7f] %vm166_vm2, %v1240_v58  ;;  %916 = vrot.lane.b32.xlu1 %v9300_v34, %s8876_s17 }
 0x2ec   :  { %1204 = vst.msk [vmem:[#allocation2 + $0x47] sm:$0xff] %vm1195_vm12, %v10191_v44 }
 0x2ed   :  { %v1120_v51 = vpop.permute.xlu1 %1119  ;;  %v1244_v12 = vpop.permute.xlu0 %1243  ;;  %v1605_v1 = vld [vmem:[#allocation2 + $0x30] sm:$0xff]  ;;  %v1606_v45 = vld [vmem:[#allocation2 + $0x38] sm:$0xff] }
 0x2ee   :  { %1203 = vst.msk [vmem:[#allocation2 + $0x3f] sm:$0xfe] %vm1193_vm15, %v1120_v51  ;;  %8540 = vmatprep.mubr.msk.f32.mxu0 %vm98_vm0, %v1605_v1 }
 0x2ef   :  { %1325 = vst.msk [vmem:[#allocation2 + $0x159] sm:$0x7f] %vm166_vm2, %v1244_v12  ;;  %1038 = vrot.lane.b32.xlu1 %v9300_v34, %s8877_s18  ;;  %8541 = vmatmul.mubr.msk.f32.gmra.mxu0 %vm98_vm0, %v1606_v45 }
 0x2f1   :  { %v10548_v48 = vpop.permute.xlu1 %880  ;;  %v1248_v44 = vpop.permute.xlu0 %1247 }
 0x2f2   :  { %962 = vst.msk [vmem:[#allocation2 + $0x51] sm:$0xff] %vm950_vm13, %v10548_v48 }
 0x2f3   :  { %1327 = vst.msk [vmem:[#allocation2 + $0x169] sm:$0x7f] %vm166_vm2, %v1248_v44  ;;  %1159 = vrot.lane.b32.xlu1 %v9300_v34, %s8878_s19  ;;  %v1608_v45 = vld [vmem:[#allocation2 + $0x48] sm:$0xff] }
 0x2f4   :  { %1084 = vst.msk [vmem:[#allocation2 + $0x58] sm:$0xff] %vm1072_vm14, %v10217_v53 }
 0x2f5   :  { %v10557_v58 = vpop.permute.xlu1 %1002  ;;  %v1252_v51 = vpop.permute.xlu0 %1251  ;;  %v1607_v12 = vld [vmem:[#allocation2 + $0x40] sm:$0xff] }
 0x2f6   :  { %1083 = vst.msk [vmem:[#allocation2 + $0x50] sm:$0xff] %vm1072_vm14, %v10557_v58  ;;  %8543 = vmatprep.mubr.msk.f32.mxu0 %vm98_vm0, %v1607_v12 }
 0x2f7   :  { %1329 = vst.msk [vmem:[#allocation2 + $0x179] sm:$0x7f] %vm166_vm2, %v1252_v51  ;;  %1225 = vrot.lane.b32.xlu1 %v9074_v3, %s8879_s1  ;;  %8544 = vmatmul.mubr.msk.f32.gmra.mxu0 %vm98_vm0, %v1608_v45 }
 0x2f8   :  { %1206 = vst.msk [vmem:[#allocation2 + $0x57] sm:$0xff] %vm1195_vm12, %v10229_v46 }
 0x2f9   :  { %v1124_v1 = vpop.permute.xlu1 %1123  ;;  %v1256_v44 = vpop.permute.xlu0 %1255 }
 0x2fa   :  { %1205 = vst.msk [vmem:[#allocation2 + $0x4f] sm:$0xfe] %vm1193_vm15, %v1124_v1 }
 0x2fb   :  { %1331 = vst.msk [vmem:[#allocation2 + $0x189] sm:$0x7f] %vm166_vm2, %v1256_v44  ;;  %1229 = vrot.lane.b32.xlu1 %v9084_v5, %s8879_s1 }
 0x2fd   :  { %v10572_v51 = vpop.permute.xlu1 %884  ;;  %v1260_v12 = vpop.permute.xlu0 %1259 }
 0x2fe   :  { %964 = vst.msk [vmem:[#allocation2 + $0x61] sm:$0xff] %vm950_vm13, %v10572_v51 }
 0x2ff   :  { %1333 = vst.msk [vmem:[#allocation2 + $0x199] sm:$0x7f] %vm166_vm2, %v1260_v12  ;;  %1233 = vrot.lane.b32.xlu1 %v9092_v7, %s8879_s1  ;;  %v1610_v44 = vld [vmem:[#allocation2 + $0x58] sm:$0xff] }
 0x300   :  { %1086 = vst.msk [vmem:[#allocation2 + $0x68] sm:$0xff] %vm1072_vm14, %v10253_v57 }
 0x301   :  { %v10581_v46 = vpop.permute.xlu1 %1006  ;;  %v1264_v45 = vpop.permute.xlu0 %1263  ;;  %v1609_v1 = vld [vmem:[#allocation2 + $0x50] sm:$0xff] }
 0x302   :  { %1085 = vst.msk [vmem:[#allocation2 + $0x60] sm:$0xff] %vm1072_vm14, %v10581_v46  ;;  %8546 = vmatprep.mubr.msk.f32.mxu0 %vm98_vm0, %v1609_v1 }
 0x303   :  { %1335 = vst.msk [vmem:[#allocation2 + $0x1a9] sm:$0x7f] %vm166_vm2, %v1264_v45  ;;  %1237 = vrot.lane.b32.xlu1 %v9100_v9, %s8879_s1  ;;  %8547 = vmatmul.mubr.msk.f32.gmra.mxu0 %vm98_vm0, %v1610_v44 }
 0x304   :  { %1208 = vst.msk [vmem:[#allocation2 + $0x67] sm:$0xff] %vm1195_vm12, %v10260_v39 }
 0x305   :  { %v1128_v12 = vpop.permute.xlu1 %1127  ;;  %v1268_v57 = vpop.permute.xlu0 %1267 }
 0x306   :  { %1207 = vst.msk [vmem:[#allocation2 + $0x5f] sm:$0xfe] %vm1193_vm15, %v1128_v12 }
 0x307   :  { %1337 = vst.msk [vmem:[#allocation2 + $0x1b9] sm:$0x7f] %vm166_vm2, %v1268_v57  ;;  %1241 = vrot.lane.b32.xlu1 %v9108_v11, %s8879_s1 }
 0x309   :  { %v10596_v45 = vpop.permute.xlu1 %888  ;;  %v1272_v1 = vpop.permute.xlu0 %1271 }
 0x30a   :  { %966 = vst.msk [vmem:[#allocation2 + $0x71] sm:$0xff] %vm950_vm13, %v10596_v45 }
 0x30b   :  { %1339 = vst.msk [vmem:[#allocation2 + $0x1c9] sm:$0x7f] %vm166_vm2, %v1272_v1  ;;  %1245 = vrot.lane.b32.xlu1 %v9116_v13, %s8879_s1  ;;  %v1612_v12 = vld [vmem:[#allocation2 + $0x68] sm:$0xff] }
 0x30c   :  { %1088 = vst.msk [vmem:[#allocation2 + $0x78] sm:$0xff] %vm1072_vm14, %v10284_v40 }
 0x30d   :  { %v10605_v39 = vpop.permute.xlu1 %1010  ;;  %v1276_v57 = vpop.permute.xlu0 %1275  ;;  %v1611_v44 = vld [vmem:[#allocation2 + $0x60] sm:$0xff] }
 0x30e   :  { %1087 = vst.msk [vmem:[#allocation2 + $0x70] sm:$0xff] %vm1072_vm14, %v10605_v39  ;;  %8549 = vmatprep.mubr.msk.f32.mxu0 %vm98_vm0, %v1611_v44 }
 0x30f   :  { %1341 = vst.msk [vmem:[#allocation2 + $0x1d9] sm:$0x7f] %vm166_vm2, %v1276_v57  ;;  %1249 = vrot.lane.b32.xlu1 %v9124_v15, %s8879_s1  ;;  %8550 = vmatmul.mubr.msk.f32.gmra.mxu0 %vm98_vm0, %v1612_v12 }
 0x310   :  { %1210 = vst.msk [vmem:[#allocation2 + $0x77] sm:$0xff] %vm1195_vm12, %v10294_v54 }
 0x311   :  { %v1132_v1 = vpop.permute.xlu1 %1131  ;;  %v1280_v40 = vpop.permute.xlu0 %1279 }
 0x312   :  { %1209 = vst.msk [vmem:[#allocation2 + $0x6f] sm:$0xfe] %vm1193_vm15, %v1132_v1 }
 0x313   :  { %1343 = vst.msk [vmem:[#allocation2 + $0x1e9] sm:$0x7f] %vm166_vm2, %v1280_v40  ;;  %1253 = vrot.lane.b32.xlu1 %v9132_v17, %s8879_s1 }
 0x315   :  { %v10620_v57 = vpop.permute.xlu1 %892  ;;  %v1284_v44 = vpop.permute.xlu0 %1283 }
 0x316   :  { %968 = vst.msk [vmem:[#allocation2 + $0x81] sm:$0xff] %vm950_vm13, %v10620_v57 }
 0x317   :  { %1345 = vst.msk [vmem:[#allocation2 + $0x1f9] sm:$0x7f] %vm166_vm2, %v1284_v44  ;;  %1257 = vrot.lane.b32.xlu1 %v9140_v19, %s8879_s1  ;;  %v1614_v12 = vld [vmem:[#allocation2 + $0x78] sm:$0xff]  ;;  %vm2922_vm2 = vcmask 63488  }
 0x318   :  { %1090 = vst.msk [vmem:[#allocation2 + $0x88] sm:$0xff] %vm1072_vm14, %v10316_v14 }
 0x319   :  { %v10629_v54 = vpop.permute.xlu1 %1014  ;;  %v1613_v40 = vld [vmem:[#allocation2 + $0x70] sm:$0xff] }
 0x31a   :  { %1089 = vst.msk [vmem:[#allocation2 + $0x80] sm:$0xff] %vm1072_vm14, %v10629_v54  ;;  %8552 = vmatprep.mubr.msk.f32.mxu0 %vm98_vm0, %v1613_v40 }
 0x31b   :  { %1212 = vst.msk [vmem:[#allocation2 + $0x87] sm:$0xff] %vm1195_vm12, %v10326_v18  ;;  %1261 = vrot.lane.b32.xlu1 %v9154_v21, %s8879_s1  ;;  %8553 = vmatmul.mubr.msk.f32.gmra.mxu0 %vm98_vm0, %v1614_v12 }
 0x31d   :  { %v1136_v1 = vpop.permute.xlu1 %1135 }
 0x31e   :  { %1211 = vst.msk [vmem:[#allocation2 + $0x7f] sm:$0xfe] %vm1193_vm15, %v1136_v1 }
 0x31f   :  { %1265 = vrot.lane.b32.xlu1 %v9170_v23, %s8879_s1 }
 0x321   :  { %v10642_v44 = vpop.permute.xlu1 %896 }
 0x322   :  { %970 = vst.msk [vmem:[#allocation2 + $0x91] sm:$0xff] %vm950_vm13, %v10642_v44  ;;  %v1616_v12 = vld [vmem:[#allocation2 + $0x88] sm:$0xff] }
 0x323   :  { %1092 = vst.msk [vmem:[#allocation2 + $0x98] sm:$0xff] %vm1072_vm14, %v10348_v61  ;;  %1269 = vrot.lane.b32.xlu1 %v9186_v25, %s8879_s1 }
 0x325   :  { %v10650_v18 = vpop.permute.xlu1 %1018  ;;  %v1615_v40 = vld [vmem:[#allocation2 + $0x80] sm:$0xff] }
 0x326   :  { %1091 = vst.msk [vmem:[#allocation2 + $0x90] sm:$0xff] %vm1072_vm14, %v10650_v18  ;;  %8555 = vmatprep.mubr.msk.f32.mxu0 %vm98_vm0, %v1615_v40 }
 0x327   :  { %1214 = vst.msk [vmem:[#allocation2 + $0x97] sm:$0xff] %vm1195_vm12, %v10358_v16  ;;  %1273 = vrot.lane.b32.xlu1 %v9202_v27, %s8879_s1  ;;  %8556 = vmatmul.mubr.msk.f32.gmra.mxu0 %vm98_vm0, %v1616_v12 }
 0x329   :  { %v1140_v1 = vpop.permute.xlu1 %1139 }
 0x32a   :  { %1213 = vst.msk [vmem:[#allocation2 + $0x8f] sm:$0xfe] %vm1193_vm15, %v1140_v1 }
 0x32b   :  { %1277 = vrot.lane.b32.xlu1 %v9216_v29, %s8879_s1 }
 0x32d   :  { %v10663_v25 = vpop.permute.xlu1 %900 }
 0x32e   :  { %972 = vst.msk [vmem:[#allocation2 + $0xa1] sm:$0xff] %vm950_vm13, %v10663_v25  ;;  %v1618_v12 = vld [vmem:[#allocation2 + $0x98] sm:$0xff] }
 0x32f   :  { %1094 = vst.msk [vmem:[#allocation2 + $0xa8] sm:$0xff] %vm1072_vm14, %v10380_v24  ;;  %1281 = vrot.lane.b32.xlu1 %v9230_v31, %s8879_s1  ;;  %s8882_s1 = smov 56  }
 0x331   :  { %v10671_v16 = vpop.permute.xlu1 %1022  ;;  %v1617_v40 = vld [vmem:[#allocation2 + $0x90] sm:$0xff] }
 0x332   :  { %1093 = vst.msk [vmem:[#allocation2 + $0xa0] sm:$0xff] %vm1072_vm14, %v10671_v16  ;;  %8558 = vmatprep.mubr.msk.f32.mxu0 %vm98_vm0, %v1617_v40 }
 0x333   :  { %1216 = vst.msk [vmem:[#allocation2 + $0xa7] sm:$0xff] %vm1195_vm12, %v10390_v22  ;;  %1406 = vrot.lane.b32.xlu1 %v9300_v34, %s8872_s0  ;;  %8559 = vmatmul.mubr.msk.f32.gmra.mxu0 %vm98_vm0, %v1618_v12 }
 0x335   :  { %v1144_v1 = vpop.permute.xlu1 %1143 }
 0x336   :  { %1215 = vst.msk [vmem:[#allocation2 + $0x9f] sm:$0xfe] %vm1193_vm15, %v1144_v1 }
 0x339   :  { %v10682_v31 = vpop.permute.xlu1 %904 }
 0x33a   :  { %974 = vst.msk [vmem:[#allocation2 + $0xb1] sm:$0xff] %vm950_vm13, %v10682_v31  ;;  %v1620_v22 = vld [vmem:[#allocation2 + $0xa8] sm:$0xff] }
 0x33b   :  { %1096 = vst.msk [vmem:[#allocation2 + $0xb8] sm:$0xff] %vm1072_vm14, %v10408_v28 }
 0x33d   :  { %v10688_v40 = vpop.permute.xlu1 %1026  ;;  %v1619_v29 = vld [vmem:[#allocation2 + $0xa0] sm:$0xff] }
 0x33e   :  { %1095 = vst.msk [vmem:[#allocation2 + $0xb0] sm:$0xff] %vm1072_vm14, %v10688_v40  ;;  %8561 = vmatprep.mubr.msk.f32.mxu0 %vm98_vm0, %v1619_v29 }
 0x33f   :  { %1218 = vst.msk [vmem:[#allocation2 + $0xb7] sm:$0xff] %vm1195_vm12, %v10414_v20  ;;  %8562 = vmatmul.mubr.msk.f32.gmra.mxu0 %vm98_vm0, %v1620_v22 }
 0x341   :  { %v1148_v34 = vpop.permute.xlu1 %1147 }
 0x342   :  { %1217 = vst.msk [vmem:[#allocation2 + $0xaf] sm:$0xfe] %vm1193_vm15, %v1148_v34 }
 0x345   :  { %v10697_v12 = vpop.permute.xlu1 %908 }
 0x346   :  { %976 = vst.msk [vmem:[#allocation2 + $0xc1] sm:$0xff] %vm950_vm13, %v10697_v12  ;;  %v1622_v20 = vld [vmem:[#allocation2 + $0xb8] sm:$0xff] }
 0x347   :  { %1098 = vst.msk [vmem:[#allocation2 + $0xc8] sm:$0xff] %vm1072_vm14, %v10442_v62 }
 0x349   :  { %v10703_v1 = vpop.permute.xlu1 %1030  ;;  %v1621_v29 = vld [vmem:[#allocation2 + $0xb0] sm:$0xff] }
 0x34a   :  { %1097 = vst.msk [vmem:[#allocation2 + $0xc0] sm:$0xff] %vm1072_vm14, %v10703_v1  ;;  %8564 = vmatprep.mubr.msk.f32.mxu0 %vm98_vm0, %v1621_v29 }
 0x34b   :  { %1220 = vst.msk [vmem:[#allocation2 + $0xc7] sm:$0xff] %vm1195_vm12, %v10454_v33  ;;  %8565 = vmatmul.mubr.msk.f32.gmra.mxu0 %vm98_vm0, %v1622_v20 }
 0x34d   :  { %v1152_v22 = vpop.permute.xlu1 %1151 }
 0x34e   :  { %1219 = vst.msk [vmem:[#allocation2 + $0xbf] sm:$0xfe] %vm1193_vm15, %v1152_v22 }
 0x351   :  { %v10712_v34 = vpop.permute.xlu1 %912 }
 0x352   :  { %978 = vst.msk [vmem:[#allocation2 + $0xd1] sm:$0xff] %vm950_vm13, %v10712_v34  ;;  %v1624_v33 = vld [vmem:[#allocation2 + $0xc8] sm:$0xff] }
 0x353   :  { %1100 = vst.msk [vmem:[#allocation2 + $0xd8] sm:$0xff] %vm1072_vm14, %v10476_v60 }
 0x355   :  { %v10718_v62 = vpop.permute.xlu1 %1034  ;;  %v1623_v29 = vld [vmem:[#allocation2 + $0xc0] sm:$0xff] }
 0x356   :  { %1099 = vst.msk [vmem:[#allocation2 + $0xd0] sm:$0xff] %vm1072_vm14, %v10718_v62  ;;  %8567 = vmatprep.mubr.msk.f32.mxu0 %vm98_vm0, %v1623_v29 }
 0x357   :  { %1222 = vst.msk [vmem:[#allocation2 + $0xd7] sm:$0xff] %vm1195_vm12, %v10482_v42  ;;  %8568 = vmatmul.mubr.msk.f32.gmra.mxu0 %vm98_vm0, %v1624_v33 }
 0x359   :  { %v1156_v20 = vpop.permute.xlu1 %1155 }
 0x35a   :  { %1221 = vst.msk [vmem:[#allocation2 + $0xcf] sm:$0xfe] %vm1193_vm15, %v1156_v20 }
 0x35d   :  { %v10727_v22 = vpop.permute.xlu1 %916 }
 0x35e   :  { %980 = vst.msk [vmem:[#allocation2 + $0xe1] sm:$0xff] %vm950_vm13, %v10727_v22  ;;  %v1626_v42 = vld [vmem:[#allocation2 + $0xd8] sm:$0xff] }
 0x35f   :  { %1102 = vst.msk [vmem:[#allocation2 + $0xe8] sm:$0xff] %vm1072_vm14, %v10499_v36 }
 0x361   :  { %v10733_v60 = vpop.permute.xlu1 %1038  ;;  %v1625_v29 = vld [vmem:[#allocation2 + $0xd0] sm:$0xff] }
 0x362   :  { %1101 = vst.msk [vmem:[#allocation2 + $0xe0] sm:$0xff] %vm1072_vm14, %v10733_v60  ;;  %8570 = vmatprep.mubr.msk.f32.mxu0 %vm98_vm0, %v1625_v29 }
 0x363   :  { %1224 = vst.msk [vmem:[#allocation2 + $0xe7] sm:$0xff] %vm1195_vm12, %v10508_v2  ;;  %8571 = vmatmul.mubr.msk.f32.gmra.mxu0 %vm98_vm0, %v1626_v42  ;;  %v16512_v42 = vld [vmem:[#allocation131_spill] sm:$0xff] }
 0x365   :  { %v1160_v33 = vpop.permute.xlu1 %1159 }
 0x366   :  { %1223 = vst.msk [vmem:[#allocation2 + $0xdf] sm:$0xfe] %vm1193_vm15, %v1160_v33  ;;  %v16513_v33 = vld [vmem:[#allocation72_spill] sm:$0xff] }
 0x369   :  { %v1226_v20 = vpop.permute.xlu1 %1225 }
 0x36a   :  { %1316 = vst.msk [vmem:[#allocation2 + $0x111] sm:$0xff] %vm164_vm1, %v1226_v20  ;;  %v16515_v20 = vld [vmem:[#allocation152_spill] sm:$0xff] }
 0x36b   :  { %1346 = vst.msk [vmem:[#allocation2 + $0x110] sm:$0xff] %vm316_vm3, %v9074_v3  ;;  %1347 = vst.msk [vmem:[#allocation2 + $0x118] sm:$0xff] %vm316_vm3, %v9080_v4  ;;  %v1628_v3 = vld [vmem:[#allocation2 + $0xe8] sm:$0xff]  ;;  %v1629_v4 = vld [vmem:[#allocation2 + $0xf0] sm:$0xff] }
 0x36c   :  { %1376 = vst.msk [vmem:[#allocation2 + $0x10f] sm:$0xfe] %vm437_vm4, %v9236_v32  ;;  %v16495_v32 = vld [vmem:[#allocation26_spill] sm:$0xff] }
 0x36d   :  { %1377 = vst.msk [vmem:[#allocation2 + $0x117] sm:$0xff] %vm439_vm6, %v9320_v37  ;;  %v1230_v2 = vpop.permute.xlu1 %1229  ;;  %v1627_v29 = vld [vmem:[#allocation2 + $0xe0] sm:$0xff]  ;;  %v16498_v37 = vld [vmem:[#allocation71_spill] sm:$0xff] }
 0x36e   :  { %1415 = vst.msk [vmem:[#allocation2 + $0x111] sm:$0xff] %vm567_vm5, %v9370_v47  ;;  %8573 = vmatprep.mubr.msk.f32.mxu0 %vm98_vm0, %v1627_v29  ;;  %v16500_v47 = vld [vmem:[#allocation41_spill] sm:$0xff]  ;;  %v16517_v29 = vld [vmem:[#allocation36_spill] sm:$0xff] }
 0x36f   :  { %1416 = vst.msk [vmem:[#allocation2 + $0x119] sm:$0x7f] %vm569_vm7, %v9650_v38  ;;  %8574 = vmatmul.mubr.msk.f32.gmra.mxu0 %vm98_vm0, %v1628_v3  ;;  %v16518_v3 = vld [vmem:[#allocation39_spill] sm:$0xff] }
 0x370   :  { %1447 = vst.msk [vmem:[#allocation2 + $0x110] sm:$0xff] %vm697_vm8, %v9854_v0  ;;  %1448 = vst.msk [vmem:[#allocation2 + $0x118] sm:$0xff] %vm697_vm8, %v9460_v63  ;;  %8576 = vmatprep.mubr.msk.f32.mxu0 %vm98_vm0, %v1629_v4  ;;  %v16502_v63 = vld [vmem:[#allocation70_spill] sm:$0xff]  ;;  %v16505_v0 = vld [vmem:[#allocation33_spill] sm:$0xff] }
 0x371   :  { %1318 = vst.msk [vmem:[#allocation2 + $0x121] sm:$0xff] %vm164_vm1, %v1230_v2  ;;  %v1234_v38 = vpop.permute.xlu1 %1233  ;;  %v16516_v2 = vld [vmem:[#allocation101_spill] sm:$0xff]  ;;  %v16519_v4 = vld [vmem:[#allocation170_spill] sm:$0xff] }
 0x372   :  { %1479 = vst.msk [vmem:[#allocation2 + $0x10f] sm:$0xfe] %vm826_vm11, %v10046_v41  ;;  %v16508_v41 = vld [vmem:[#allocation75_spill] sm:$0xff] }
 0x373   :  { %1480 = vst.msk [vmem:[#allocation2 + $0x117] sm:$0xff] %vm828_vm9, %v9652_v59  ;;  %v16501_v59 = vld [vmem:[#allocation130_spill] sm:$0xff] }
 0x374   :  { %1348 = vst.msk [vmem:[#allocation2 + $0x120] sm:$0xff] %vm316_vm3, %v9084_v5  ;;  %1349 = vst.msk [vmem:[#allocation2 + $0x128] sm:$0xff] %vm316_vm3, %v9088_v6  ;;  %v16496_v5 = vld [vmem:[#allocation126_spill] sm:$0xff]  ;;  %v16497_v6 = vld [vmem:[#allocation69_spill] sm:$0xff] }
 0x375   :  { %1511 = vst.msk [vmem:[#allocation2 + $0x111] sm:$0xff] %vm950_vm13, %v10270_v56  ;;  %v1238_v56 = vpop.permute.xlu1 %1237 }
 0x376   :  { %1512 = vst.msk [vmem:[#allocation2 + $0x119] sm:$0x7f] %vm952_vm10, %v9832_v55  ;;  %v1630_v55 = vld [vmem:[#allocation2 + $0xf8] sm:$0xff] }
 0x377   :  { %1378 = vst.msk [vmem:[#allocation2 + $0x11f] sm:$0xfe] %vm437_vm4, %v9348_v43  ;;  %v16499_v43 = vld [vmem:[#allocation102_spill] sm:$0xff]  ;;  %8577 = vmatmul.mubr.msk.f32.gmra.mxu0 %vm98_vm0, %v1630_v55 }
 0x378   :  { %1379 = vst.msk [vmem:[#allocation2 + $0x127] sm:$0xff] %vm439_vm6, %v16495_v32  ;;  %v16520_v32 = vld [vmem:[#allocation129_spill] sm:$0xff]  ;;  %v16525_v55 = vld [vmem:[#allocation106_spill] sm:$0xff] }
 0x379   :  { %1541 = vst.msk [vmem:[#allocation2 + $0x110] sm:$0xff] %vm1072_vm14, %v10426_v35  ;;  %1542 = vst.msk [vmem:[#allocation2 + $0x118] sm:$0xff] %vm1072_vm14, %v16496_v5  ;;  %v16510_v35 = vld [vmem:[#allocation104_spill] sm:$0xff]  ;;  %v16522_v5 = vld [vmem:[#allocation79_spill] sm:$0xff] }
 0x37a   :  { %1417 = vst.msk [vmem:[#allocation2 + $0x121] sm:$0xff] %vm567_vm5, %v16497_v6  ;;  %v1242_v6 = vpop.permute.xlu1 %1241 }
 0x37b   :  { %1418 = vst.msk [vmem:[#allocation2 + $0x129] sm:$0x7f] %vm569_vm7, %v16498_v37 }
 0x37c   :  { %1571 = vst.msk [vmem:[#allocation2 + $0x10f] sm:$0xfe] %vm1193_vm15, %v10076_v49  ;;  %v16504_v49 = vld [vmem:[#allocation30_spill] sm:$0xff] }
 0x37d   :  { %1572 = vst.msk [vmem:[#allocation2 + $0x117] sm:$0xff] %vm1195_vm12, %v10487_v26  ;;  %v16503_v26 = vld [vmem:[#allocation100_spill] sm:$0xff] }
 0x37e   :  { %1449 = vst.msk [vmem:[#allocation2 + $0x120] sm:$0xff] %vm697_vm8, %v16499_v43  ;;  %1450 = vst.msk [vmem:[#allocation2 + $0x128] sm:$0xff] %vm697_vm8, %v16500_v47  ;;  %v16523_v43 = vld [vmem:[#allocation136_spill] sm:$0xff] }
 0x37f   :  { %1320 = vst.msk [vmem:[#allocation2 + $0x131] sm:$0xff] %vm164_vm1, %v1234_v38  ;;  %1322 = vst.msk [vmem:[#allocation2 + $0x141] sm:$0xff] %vm164_vm1, %v1238_v56  ;;  %v16524_v47 = vld [vmem:[#allocation176_spill] sm:$0xff]  ;;  %v16534_v56 = vld [vmem:[#allocation171_spill] sm:$0xff] }
 0x380   :  { %1481 = vst.msk [vmem:[#allocation2 + $0x11f] sm:$0xfe] %vm826_vm11, %v16501_v59  ;;  %v16526_v59 = vld [vmem:[#allocation45_spill] sm:$0xff] }
 0x381   :  { %1482 = vst.msk [vmem:[#allocation2 + $0x127] sm:$0xff] %vm828_vm9, %v16502_v63  ;;  %v16527_v63 = vld [vmem:[#allocation132_spill] sm:$0xff] }
 0x382   :  { %1350 = vst.msk [vmem:[#allocation2 + $0x130] sm:$0xff] %vm316_vm3, %v9092_v7  ;;  %1351 = vst.msk [vmem:[#allocation2 + $0x138] sm:$0xff] %vm316_vm3, %v9096_v8  ;;  %v16506_v7 = vld [vmem:[#allocation128_spill] sm:$0xff]  ;;  %v16507_v8 = vld [vmem:[#allocation73_spill] sm:$0xff] }
 0x383   :  { %1513 = vst.msk [vmem:[#allocation2 + $0x121] sm:$0xff] %vm950_vm13, %v10282_v50  ;;  %v16509_v50 = vld [vmem:[#allocation175_spill] sm:$0xff] }
 0x384   :  { %1514 = vst.msk [vmem:[#allocation2 + $0x129] sm:$0x7f] %vm952_vm10, %v16503_v26  ;;  %v1633_v37 = vld [vmem:[#allocation2 + $0x110] sm:$0xff]  ;;  %v1634_v38 = vld [vmem:[#allocation2 + $0x118] sm:$0xff] }
 0x385   :  { %1380 = vst.msk [vmem:[#allocation2 + $0x12f] sm:$0xfe] %vm437_vm4, %v16504_v49  ;;  %8582 = vmatprep.mubr.msk.f32.mxu1 %vm98_vm0, %v1633_v37  ;;  %v16528_v26 = vld [vmem:[#allocation74_spill] sm:$0xff]  ;;  %v16529_v49 = vld [vmem:[#allocation5_spill] sm:$0xff] }
 0x386   :  { %1381 = vst.msk [vmem:[#allocation2 + $0x137] sm:$0xff] %vm439_vm6, %v16505_v0  ;;  %8583 = vmatmul.mubr.msk.f32.gmra.mxu1 %vm98_vm0, %v1634_v38  ;;  %v16530_v0 = vld [vmem:[#allocation153_spill] sm:$0xff] }
 0x387   :  { %1543 = vst.msk [vmem:[#allocation2 + $0x120] sm:$0xff] %vm1072_vm14, %v10440_v30  ;;  %1544 = vst.msk [vmem:[#allocation2 + $0x128] sm:$0xff] %vm1072_vm14, %v16506_v7  ;;  %v16511_v30 = vld [vmem:[#allocation43_spill] sm:$0xff]  ;;  %v16550_v37 = vld [vmem:[#allocation21_spill] sm:$0xff] }
 0x388   :  { %1419 = vst.msk [vmem:[#allocation2 + $0x131] sm:$0xff] %vm567_vm5, %v16507_v8  ;;  %v16531_v7 = vld [vmem:[#allocation103_spill] sm:$0xff]  ;;  %v16532_v8 = vld [vmem:[#allocation42_spill] sm:$0xff] }
 0x389   :  { %1420 = vst.msk [vmem:[#allocation2 + $0x139] sm:$0x7f] %vm569_vm7, %v16508_v41  ;;  %v16533_v41 = vld [vmem:[#allocation46_spill] sm:$0xff] }
 0x38a   :  { %1573 = vst.msk [vmem:[#allocation2 + $0x11f] sm:$0xfe] %vm1193_vm15, %v10105_v52  ;;  %v16514_v52 = vld [vmem:[#allocation4_spill] sm:$0xff] }
 0x38b   :  { %1574 = vst.msk [vmem:[#allocation2 + $0x127] sm:$0xff] %vm1195_vm12, %v16509_v50  ;;  %v16536_v50 = vld [vmem:[#allocation81_spill] sm:$0xff] }
 0x38c   :  { %1451 = vst.msk [vmem:[#allocation2 + $0x130] sm:$0xff] %vm697_vm8, %v16510_v35  ;;  %1452 = vst.msk [vmem:[#allocation2 + $0x138] sm:$0xff] %vm697_vm8, %v16511_v30  ;;  %v16537_v35 = vld [vmem:[#allocation83_spill] sm:$0xff]  ;;  %v1246_v30 = vpop.permute.xlu1 %1245 }
 0x38d   :  { %1483 = vst.msk [vmem:[#allocation2 + $0x12f] sm:$0xfe] %vm826_vm11, %v16512_v42 }
 0x38e   :  { %1484 = vst.msk [vmem:[#allocation2 + $0x137] sm:$0xff] %vm828_vm9, %v16513_v33 }
 0x38f   :  { %1352 = vst.msk [vmem:[#allocation2 + $0x140] sm:$0xff] %vm316_vm3, %v9100_v9  ;;  %1353 = vst.msk [vmem:[#allocation2 + $0x148] sm:$0xff] %vm316_vm3, %v16514_v52  ;;  %v16521_v9 = vld [vmem:[#allocation77_spill] sm:$0xff] }
 0x390   :  { %1515 = vst.msk [vmem:[#allocation2 + $0x131] sm:$0xff] %vm950_vm13, %v16515_v20  ;;  %v16538_v52 = vld [vmem:[#allocation141_spill] sm:$0xff]  ;;  %v16539_v20 = vld [vmem:[#allocation108_spill] sm:$0xff]  ;;  %v1250_v38 = vpop.permute.xlu1 %1249 }
 0x391   :  { %1516 = vst.msk [vmem:[#allocation2 + $0x139] sm:$0x7f] %vm952_vm10, %v16516_v2  ;;  %v16540_v2 = vld [vmem:[#allocation47_spill] sm:$0xff] }
 0x392   :  { %1382 = vst.msk [vmem:[#allocation2 + $0x13f] sm:$0xfe] %vm437_vm4, %v16517_v29  ;;  %v1635_v42 = vld [vmem:[#allocation2 + $0x120] sm:$0xff]  ;;  %v1636_v33 = vld [vmem:[#allocation2 + $0x128] sm:$0xff] }
 0x393   :  { %1383 = vst.msk [vmem:[#allocation2 + $0x147] sm:$0xff] %vm439_vm6, %v16518_v3  ;;  %8585 = vmatprep.mubr.msk.f32.mxu1 %vm98_vm0, %v1635_v42  ;;  %v16541_v29 = vld [vmem:[#allocation133_spill] sm:$0xff]  ;;  %v16542_v3 = vld [vmem:[#allocation76_spill] sm:$0xff] }
 0x394   :  { %1545 = vst.msk [vmem:[#allocation2 + $0x130] sm:$0xff] %vm1072_vm14, %v16519_v4  ;;  %1546 = vst.msk [vmem:[#allocation2 + $0x138] sm:$0xff] %vm1072_vm14, %v16520_v32  ;;  %8586 = vmatmul.mubr.msk.f32.gmra.mxu1 %vm98_vm0, %v1636_v33  ;;  %v16544_v4 = vld [vmem:[#allocation155_spill] sm:$0xff]  ;;  %v16545_v32 = vld [vmem:[#allocation105_spill] sm:$0xff] }
 0x395   :  { %1421 = vst.msk [vmem:[#allocation2 + $0x141] sm:$0xff] %vm567_vm5, %v16521_v9  ;;  %v16546_v9 = vld [vmem:[#allocation50_spill] sm:$0xff]  ;;  %v16567_v42 = vld [vmem:[#allocation80_spill] sm:$0xff]  ;;  %v16569_v33 = vld [vmem:[#allocation157_spill] sm:$0xff] }
 0x396   :  { %1422 = vst.msk [vmem:[#allocation2 + $0x149] sm:$0x7f] %vm569_vm7, %v16522_v5  ;;  %v16547_v5 = vld [vmem:[#allocation54_spill] sm:$0xff] }
 0x397   :  { %1575 = vst.msk [vmem:[#allocation2 + $0x12f] sm:$0xfe] %vm1193_vm15, %v16523_v43 }
 0x398   :  { %1576 = vst.msk [vmem:[#allocation2 + $0x137] sm:$0xff] %vm1195_vm12, %v16524_v47 }
 0x399   :  { %1453 = vst.msk [vmem:[#allocation2 + $0x140] sm:$0xff] %vm697_vm8, %v16525_v55  ;;  %1454 = vst.msk [vmem:[#allocation2 + $0x148] sm:$0xff] %vm697_vm8, %v16526_v59  ;;  %v16551_v55 = vld [vmem:[#allocation110_spill] sm:$0xff] }
 0x39a   :  { %1324 = vst.msk [vmem:[#allocation2 + $0x151] sm:$0xff] %vm164_vm1, %v1242_v6  ;;  %1326 = vst.msk [vmem:[#allocation2 + $0x161] sm:$0xff] %vm164_vm1, %v1246_v30  ;;  %v16549_v6 = vld [vmem:[#allocation85_spill] sm:$0xff]  ;;  %v16553_v59 = vld [vmem:[#allocation134_spill] sm:$0xff] }
 0x39b   :  { %1485 = vst.msk [vmem:[#allocation2 + $0x13f] sm:$0xfe] %vm826_vm11, %v16527_v63  ;;  %v16554_v63 = vld [vmem:[#allocation78_spill] sm:$0xff]  ;;  %v16566_v30 = vld [vmem:[#allocation135_spill] sm:$0xff] }
 0x39c   :  { %1486 = vst.msk [vmem:[#allocation2 + $0x147] sm:$0xff] %vm828_vm9, %v16528_v26  ;;  %v16557_v26 = vld [vmem:[#allocation107_spill] sm:$0xff] }
 0x39d   :  { %1354 = vst.msk [vmem:[#allocation2 + $0x150] sm:$0xff] %vm316_vm3, %v9108_v11  ;;  %1355 = vst.msk [vmem:[#allocation2 + $0x158] sm:$0xff] %vm316_vm3, %v16529_v49  ;;  %v16535_v11 = vld [vmem:[#allocation139_spill] sm:$0xff]  ;;  %v16558_v49 = vld [vmem:[#allocation58_spill] sm:$0xff] }
 0x39e   :  { %1517 = vst.msk [vmem:[#allocation2 + $0x141] sm:$0xff] %vm950_vm13, %v16530_v0  ;;  %v16559_v0 = vld [vmem:[#allocation62_spill] sm:$0xff] }
 0x39f   :  { %1518 = vst.msk [vmem:[#allocation2 + $0x149] sm:$0x7f] %vm952_vm10, %v16531_v7  ;;  %v1637_v43 = vld [vmem:[#allocation2 + $0x130] sm:$0xff]  ;;  %v1638_v47 = vld [vmem:[#allocation2 + $0x138] sm:$0xff] }
 0x3a0   :  { %1384 = vst.msk [vmem:[#allocation2 + $0x14f] sm:$0xfe] %vm437_vm4, %v16532_v8  ;;  %8588 = vmatprep.mubr.msk.f32.mxu1 %vm98_vm0, %v1637_v43  ;;  %v16561_v7 = vld [vmem:[#allocation87_spill] sm:$0xff]  ;;  %v16562_v8 = vld [vmem:[#allocation22_spill] sm:$0xff] }
 0x3a1   :  { %1385 = vst.msk [vmem:[#allocation2 + $0x157] sm:$0xff] %vm439_vm6, %v16533_v41  ;;  %8589 = vmatmul.mubr.msk.f32.gmra.mxu1 %vm98_vm0, %v1638_v47  ;;  %v1254_v41 = vpop.permute.xlu1 %1253  ;;  %v16584_v43 = vld [vmem:[#allocation19_spill] sm:$0xff]  ;;  %v16585_v47 = vld [vmem:[#allocation20_spill] sm:$0xff] }
 0x3a2   :  { %1547 = vst.msk [vmem:[#allocation2 + $0x140] sm:$0xff] %vm1072_vm14, %v16534_v56  ;;  %1548 = vst.msk [vmem:[#allocation2 + $0x148] sm:$0xff] %vm1072_vm14, %v16535_v11 }
 0x3a3   :  { %1423 = vst.msk [vmem:[#allocation2 + $0x151] sm:$0xff] %vm567_vm5, %v16536_v50  ;;  %v16563_v50 = vld [vmem:[#allocation149_spill] sm:$0xff] }
 0x3a4   :  { %1424 = vst.msk [vmem:[#allocation2 + $0x159] sm:$0x7f] %vm569_vm7, %v16537_v35  ;;  %v16564_v35 = vld [vmem:[#allocation112_spill] sm:$0xff] }
 0x3a5   :  { %1577 = vst.msk [vmem:[#allocation2 + $0x13f] sm:$0xfe] %vm1193_vm15, %v10533_v10  ;;  %v16543_v10 = vld [vmem:[#allocation6_spill] sm:$0xff] }
 0x3a6   :  { %1578 = vst.msk [vmem:[#allocation2 + $0x147] sm:$0xff] %vm1195_vm12, %v16538_v52  ;;  %v16570_v52 = vld [vmem:[#allocation109_spill] sm:$0xff] }
 0x3a7   :  { %1455 = vst.msk [vmem:[#allocation2 + $0x150] sm:$0xff] %vm697_vm8, %v16539_v20  ;;  %1456 = vst.msk [vmem:[#allocation2 + $0x158] sm:$0xff] %vm697_vm8, %v16540_v2  ;;  %v16571_v20 = vld [vmem:[#allocation66_spill] sm:$0xff]  ;;  %v16572_v2 = vld [vmem:[#allocation68_spill] sm:$0xff] }
 0x3a8   :  { %1487 = vst.msk [vmem:[#allocation2 + $0x14f] sm:$0xfe] %vm826_vm11, %v16541_v29  ;;  %v16574_v29 = vld [vmem:[#allocation89_spill] sm:$0xff] }
 0x3a9   :  { %1488 = vst.msk [vmem:[#allocation2 + $0x157] sm:$0xff] %vm828_vm9, %v16542_v3  ;;  %v16575_v3 = vld [vmem:[#allocation23_spill] sm:$0xff] }
 0x3aa   :  { %1356 = vst.msk [vmem:[#allocation2 + $0x160] sm:$0xff] %vm316_vm3, %v9116_v13  ;;  %1357 = vst.msk [vmem:[#allocation2 + $0x168] sm:$0xff] %vm316_vm3, %v16543_v10  ;;  %v16548_v13 = vld [vmem:[#allocation144_spill] sm:$0xff]  ;;  %v1258_v10 = vpop.permute.xlu1 %1257 }
 0x3ab   :  { %1519 = vst.msk [vmem:[#allocation2 + $0x151] sm:$0xff] %vm950_vm13, %v16544_v4 }
 0x3ac   :  { %1520 = vst.msk [vmem:[#allocation2 + $0x159] sm:$0x7f] %vm952_vm10, %v16545_v32 }
 0x3ad   :  { %1386 = vst.msk [vmem:[#allocation2 + $0x15f] sm:$0xfe] %vm437_vm4, %v16546_v9  ;;  %v1639_v56 = vld [vmem:[#allocation2 + $0x140] sm:$0xff]  ;;  %v1640_v11 = vld [vmem:[#allocation2 + $0x148] sm:$0xff]  ;;  %v16576_v9 = vld [vmem:[#allocation151_spill] sm:$0xff] }
 0x3ae   :  { %1387 = vst.msk [vmem:[#allocation2 + $0x167] sm:$0xff] %vm439_vm6, %v16547_v5  ;;  %8591 = vmatprep.mubr.msk.f32.mxu1 %vm98_vm0, %v1639_v56  ;;  %v16577_v5 = vld [vmem:[#allocation114_spill] sm:$0xff] }
 0x3af   :  { %1549 = vst.msk [vmem:[#allocation2 + $0x150] sm:$0xff] %vm1072_vm14, %v10548_v48  ;;  %1550 = vst.msk [vmem:[#allocation2 + $0x158] sm:$0xff] %vm1072_vm14, %v16548_v13  ;;  %v16552_v48 = vld [vmem:[#allocation49_spill] sm:$0xff]  ;;  %8592 = vmatmul.mubr.msk.f32.gmra.mxu1 %vm98_vm0, %v1640_v11 }
 0x3b0   :  { %1425 = vst.msk [vmem:[#allocation2 + $0x161] sm:$0xff] %vm567_vm5, %v16549_v6  ;;  %v16579_v13 = vld [vmem:[#allocation137_spill] sm:$0xff]  ;;  %v16580_v6 = vld [vmem:[#allocation82_spill] sm:$0xff] }
 0x3b1   :  { %1426 = vst.msk [vmem:[#allocation2 + $0x169] sm:$0x7f] %vm569_vm7, %v16550_v37  ;;  %v16582_v37 = vld [vmem:[#allocation159_spill] sm:$0xff] }
 0x3b2   :  { %1579 = vst.msk [vmem:[#allocation2 + $0x14f] sm:$0xfe] %vm1193_vm15, %v10557_v58  ;;  %v16556_v58 = vld [vmem:[#allocation156_spill] sm:$0xff] }
 0x3b3   :  { %1580 = vst.msk [vmem:[#allocation2 + $0x157] sm:$0xff] %vm1195_vm12, %v10217_v53  ;;  %v16555_v53 = vld [vmem:[#allocation7_spill] sm:$0xff] }
 0x3b4   :  { %1457 = vst.msk [vmem:[#allocation2 + $0x160] sm:$0xff] %vm697_vm8, %v16551_v55  ;;  %1458 = vst.msk [vmem:[#allocation2 + $0x168] sm:$0xff] %vm697_vm8, %v16552_v48  ;;  %v16587_v55 = vld [vmem:[#allocation91_spill] sm:$0xff]  ;;  %v16588_v48 = vld [vmem:[#allocation25_spill] sm:$0xff] }
 0x3b5   :  { %1328 = vst.msk [vmem:[#allocation2 + $0x171] sm:$0xff] %vm164_vm1, %v1250_v38  ;;  %1330 = vst.msk [vmem:[#allocation2 + $0x181] sm:$0xff] %vm164_vm1, %v1254_v41  ;;  %v16583_v38 = vld [vmem:[#allocation111_spill] sm:$0xff] }
 0x3b6   :  { %1489 = vst.msk [vmem:[#allocation2 + $0x15f] sm:$0xfe] %vm826_vm11, %v16553_v59  ;;  %v1262_v59 = vpop.permute.xlu1 %1261  ;;  %v16600_v41 = vld [vmem:[#allocation27_spill] sm:$0xff] }
 0x3b7   :  { %1490 = vst.msk [vmem:[#allocation2 + $0x167] sm:$0xff] %vm828_vm9, %v16554_v63 }
 0x3b8   :  { %1358 = vst.msk [vmem:[#allocation2 + $0x170] sm:$0xff] %vm316_vm3, %v9124_v15  ;;  %1359 = vst.msk [vmem:[#allocation2 + $0x178] sm:$0xff] %vm316_vm3, %v16555_v53  ;;  %v16560_v15 = vld [vmem:[#allocation148_spill] sm:$0xff] }
 0x3b9   :  { %1521 = vst.msk [vmem:[#allocation2 + $0x161] sm:$0xff] %vm950_vm13, %v16556_v58  ;;  %v16589_v58 = vld [vmem:[#allocation116_spill] sm:$0xff] }
 0x3ba   :  { %1522 = vst.msk [vmem:[#allocation2 + $0x169] sm:$0x7f] %vm952_vm10, %v16557_v26  ;;  %v1641_v4 = vld [vmem:[#allocation2 + $0x150] sm:$0xff]  ;;  %v1642_v32 = vld [vmem:[#allocation2 + $0x158] sm:$0xff]  ;;  %v1266_v56 = vpop.permute.xlu1 %1265 }
 0x3bb   :  { %1388 = vst.msk [vmem:[#allocation2 + $0x16f] sm:$0xfe] %vm437_vm4, %v16558_v49  ;;  %8594 = vmatprep.mubr.msk.f32.mxu1 %vm98_vm0, %v1641_v4  ;;  %v16591_v26 = vld [vmem:[#allocation138_spill] sm:$0xff]  ;;  %v16592_v49 = vld [vmem:[#allocation84_spill] sm:$0xff] }
 0x3bc   :  { %1389 = vst.msk [vmem:[#allocation2 + $0x177] sm:$0xff] %vm439_vm6, %v16559_v0  ;;  %8595 = vmatmul.mubr.msk.f32.gmra.mxu1 %vm98_vm0, %v1642_v32  ;;  %v16595_v0 = vld [vmem:[#allocation113_spill] sm:$0xff]  ;;  %v16616_v4 = vld [vmem:[#allocation88_spill] sm:$0xff]  ;;  %v16619_v32 = vld [vmem:[#allocation163_spill] sm:$0xff] }
 0x3bd   :  { %1551 = vst.msk [vmem:[#allocation2 + $0x160] sm:$0xff] %vm1072_vm14, %v10572_v51  ;;  %1552 = vst.msk [vmem:[#allocation2 + $0x168] sm:$0xff] %vm1072_vm14, %v16560_v15  ;;  %v16565_v51 = vld [vmem:[#allocation51_spill] sm:$0xff]  ;;  %v16596_v15 = vld [vmem:[#allocation24_spill] sm:$0xff] }
 0x3be   :  { %1427 = vst.msk [vmem:[#allocation2 + $0x171] sm:$0xff] %vm567_vm5, %v16561_v7  ;;  %v16597_v7 = vld [vmem:[#allocation28_spill] sm:$0xff] }
 0x3bf   :  { %1428 = vst.msk [vmem:[#allocation2 + $0x179] sm:$0x7f] %vm569_vm7, %v16562_v8  ;;  %v16599_v8 = vld [vmem:[#allocation93_spill] sm:$0xff] }
 0x3c0   :  { %1581 = vst.msk [vmem:[#allocation2 + $0x15f] sm:$0xfe] %vm1193_vm15, %v10581_v46  ;;  %v16568_v46 = vld [vmem:[#allocation8_spill] sm:$0xff] }
 0x3c1   :  { %1582 = vst.msk [vmem:[#allocation2 + $0x167] sm:$0xff] %vm1195_vm12, %v16563_v50 }
 0x3c2   :  { %1459 = vst.msk [vmem:[#allocation2 + $0x170] sm:$0xff] %vm697_vm8, %v16564_v35  ;;  %1460 = vst.msk [vmem:[#allocation2 + $0x178] sm:$0xff] %vm697_vm8, %v16565_v51  ;;  %v16601_v35 = vld [vmem:[#allocation118_spill] sm:$0xff]  ;;  %v16603_v51 = vld [vmem:[#allocation140_spill] sm:$0xff] }
 0x3c3   :  { %1491 = vst.msk [vmem:[#allocation2 + $0x16f] sm:$0xfe] %vm826_vm11, %v16566_v30  ;;  %v16604_v30 = vld [vmem:[#allocation86_spill] sm:$0xff] }
 0x3c4   :  { %1492 = vst.msk [vmem:[#allocation2 + $0x177] sm:$0xff] %vm828_vm9, %v16567_v42  ;;  %v16607_v42 = vld [vmem:[#allocation115_spill] sm:$0xff] }
 0x3c5   :  { %1360 = vst.msk [vmem:[#allocation2 + $0x180] sm:$0xff] %vm316_vm3, %v9132_v17  ;;  %1361 = vst.msk [vmem:[#allocation2 + $0x188] sm:$0xff] %vm316_vm3, %v16568_v46  ;;  %v16573_v17 = vld [vmem:[#allocation150_spill] sm:$0xff]  ;;  %v16608_v46 = vld [vmem:[#allocation31_spill] sm:$0xff] }
 0x3c6   :  { %1523 = vst.msk [vmem:[#allocation2 + $0x171] sm:$0xff] %vm950_vm13, %v16569_v33  ;;  %v16609_v33 = vld [vmem:[#allocation35_spill] sm:$0xff] }
 0x3c7   :  { %1524 = vst.msk [vmem:[#allocation2 + $0x179] sm:$0x7f] %vm952_vm10, %v16570_v52  ;;  %v16611_v52 = vld [vmem:[#allocation95_spill] sm:$0xff] }
 0x3c8   :  { %1390 = vst.msk [vmem:[#allocation2 + $0x17f] sm:$0xfe] %vm437_vm4, %v16571_v20  ;;  %v1643_v63 = vld [vmem:[#allocation2 + $0x160] sm:$0xff]  ;;  %v1644_v53 = vld [vmem:[#allocation2 + $0x168] sm:$0xff] }
 0x3c9   :  { %1391 = vst.msk [vmem:[#allocation2 + $0x187] sm:$0xff] %vm439_vm6, %v16572_v2  ;;  %8597 = vmatprep.mubr.msk.f32.mxu1 %vm98_vm0, %v1643_v63  ;;  %v16612_v20 = vld [vmem:[#allocation29_spill] sm:$0xff]  ;;  %v1270_v2 = vpop.permute.xlu1 %1269  ;;  %v16634_v63 = vld [vmem:[#allocation48_spill] sm:$0xff] }
 0x3ca   :  { %1553 = vst.msk [vmem:[#allocation2 + $0x170] sm:$0xff] %vm1072_vm14, %v10596_v45  ;;  %1554 = vst.msk [vmem:[#allocation2 + $0x178] sm:$0xff] %vm1072_vm14, %v16573_v17  ;;  %v16578_v45 = vld [vmem:[#allocation53_spill] sm:$0xff]  ;;  %8598 = vmatmul.mubr.msk.f32.gmra.mxu1 %vm98_vm0, %v1644_v53  ;;  %v16636_v53 = vld [vmem:[#allocation98_spill] sm:$0xff] }
 0x3cb   :  { %1429 = vst.msk [vmem:[#allocation2 + $0x181] sm:$0xff] %vm567_vm5, %v16574_v29 }
 0x3cc   :  { %1430 = vst.msk [vmem:[#allocation2 + $0x189] sm:$0x7f] %vm569_vm7, %v16575_v3  ;;  %v16613_v3 = vld [vmem:[#allocation120_spill] sm:$0xff] }
 0x3cd   :  { %1583 = vst.msk [vmem:[#allocation2 + $0x16f] sm:$0xfe] %vm1193_vm15, %v10605_v39  ;;  %v16581_v39 = vld [vmem:[#allocation9_spill] sm:$0xff] }
 0x3ce   :  { %1584 = vst.msk [vmem:[#allocation2 + $0x177] sm:$0xff] %vm1195_vm12, %v16576_v9  ;;  %v16620_v9 = vld [vmem:[#allocation117_spill] sm:$0xff] }
 0x3cf   :  { %1461 = vst.msk [vmem:[#allocation2 + $0x180] sm:$0xff] %vm697_vm8, %v16577_v5  ;;  %1462 = vst.msk [vmem:[#allocation2 + $0x188] sm:$0xff] %vm697_vm8, %v16578_v45  ;;  %v16621_v5 = vld [vmem:[#allocation38_spill] sm:$0xff]  ;;  %v16622_v45 = vld [vmem:[#allocation40_spill] sm:$0xff] }
 0x3d0   :  { %1332 = vst.msk [vmem:[#allocation2 + $0x191] sm:$0xff] %vm164_vm1, %v1258_v10  ;;  %1334 = vst.msk [vmem:[#allocation2 + $0x1a1] sm:$0xff] %vm164_vm1, %v1262_v59  ;;  %v16615_v10 = vld [vmem:[#allocation142_spill] sm:$0xff]  ;;  %v16633_v59 = vld [vmem:[#allocation44_spill] sm:$0xff] }
 0x3d1   :  { %1493 = vst.msk [vmem:[#allocation2 + $0x17f] sm:$0xfe] %vm826_vm11, %v16579_v13  ;;  %v16623_v13 = vld [vmem:[#allocation166_spill] sm:$0xff] }
 0x3d2   :  { %1494 = vst.msk [vmem:[#allocation2 + $0x187] sm:$0xff] %vm828_vm9, %v16580_v6  ;;  %v16624_v6 = vld [vmem:[#allocation97_spill] sm:$0xff] }
 0x3d3   :  { %1362 = vst.msk [vmem:[#allocation2 + $0x190] sm:$0xff] %vm316_vm3, %v9140_v19  ;;  %1363 = vst.msk [vmem:[#allocation2 + $0x198] sm:$0xff] %vm316_vm3, %v16581_v39  ;;  %v16586_v19 = vld [vmem:[#allocation154_spill] sm:$0xff]  ;;  %v16625_v39 = vld [vmem:[#allocation32_spill] sm:$0xff] }
 0x3d4   :  { %1525 = vst.msk [vmem:[#allocation2 + $0x181] sm:$0xff] %vm950_vm13, %v16582_v37  ;;  %v1274_v37 = vpop.permute.xlu1 %1273 }
 0x3d5   :  { %1526 = vst.msk [vmem:[#allocation2 + $0x189] sm:$0x7f] %vm952_vm10, %v16583_v38  ;;  %v1645_v11 = vld [vmem:[#allocation2 + $0x170] sm:$0xff]  ;;  %v1646_v50 = vld [vmem:[#allocation2 + $0x178] sm:$0xff] }
 0x3d6   :  { %1392 = vst.msk [vmem:[#allocation2 + $0x18f] sm:$0xfe] %vm437_vm4, %v16584_v43  ;;  %8600 = vmatprep.mubr.msk.f32.mxu1 %vm98_vm0, %v1645_v11  ;;  %v16649_v11 = vld [vmem:[#allocation172_spill] sm:$0xff] }
 0x3d7   :  { %1393 = vst.msk [vmem:[#allocation2 + $0x197] sm:$0xff] %vm439_vm6, %v16585_v47  ;;  %8601 = vmatmul.mubr.msk.f32.gmra.mxu1 %vm98_vm0, %v1646_v50  ;;  %v16626_v47 = vld [vmem:[#allocation122_spill] sm:$0xff]  ;;  %v16650_v50 = vld [vmem:[#allocation99_spill] sm:$0xff] }
 0x3d8   :  { %1555 = vst.msk [vmem:[#allocation2 + $0x180] sm:$0xff] %vm1072_vm14, %v10620_v57  ;;  %1556 = vst.msk [vmem:[#allocation2 + $0x188] sm:$0xff] %vm1072_vm14, %v16586_v19  ;;  %v16590_v57 = vld [vmem:[#allocation55_spill] sm:$0xff] }
 0x3d9   :  { %1431 = vst.msk [vmem:[#allocation2 + $0x191] sm:$0xff] %vm567_vm5, %v16587_v55  ;;  %v16628_v19 = vld [vmem:[#allocation143_spill] sm:$0xff]  ;;  %v16629_v55 = vld [vmem:[#allocation90_spill] sm:$0xff] }
 0x3da   :  { %1432 = vst.msk [vmem:[#allocation2 + $0x199] sm:$0x7f] %vm569_vm7, %v16588_v48  ;;  %v16632_v48 = vld [vmem:[#allocation119_spill] sm:$0xff] }
 0x3db   :  { %1585 = vst.msk [vmem:[#allocation2 + $0x17f] sm:$0xfe] %vm1193_vm15, %v10629_v54  ;;  %v16594_v54 = vld [vmem:[#allocation160_spill] sm:$0xff] }
 0x3dc   :  { %1586 = vst.msk [vmem:[#allocation2 + $0x187] sm:$0xff] %vm1195_vm12, %v10316_v14  ;;  %v16593_v14 = vld [vmem:[#allocation10_spill] sm:$0xff] }
 0x3dd   :  { %1463 = vst.msk [vmem:[#allocation2 + $0x190] sm:$0xff] %vm697_vm8, %v16589_v58  ;;  %1464 = vst.msk [vmem:[#allocation2 + $0x198] sm:$0xff] %vm697_vm8, %v16590_v57  ;;  %v16637_v58 = vld [vmem:[#allocation34_spill] sm:$0xff]  ;;  %v1278_v57 = vpop.permute.xlu1 %1277 }
 0x3de   :  { %1495 = vst.msk [vmem:[#allocation2 + $0x18f] sm:$0xfe] %vm826_vm11, %v16591_v26 }
 0x3df   :  { %1496 = vst.msk [vmem:[#allocation2 + $0x197] sm:$0xff] %vm828_vm9, %v16592_v49 }
 0x3e0   :  { %1364 = vst.msk [vmem:[#allocation2 + $0x1a0] sm:$0xff] %vm316_vm3, %v9154_v21  ;;  %1365 = vst.msk [vmem:[#allocation2 + $0x1a8] sm:$0xff] %vm316_vm3, %v16593_v14  ;;  %v16598_v21 = vld [vmem:[#allocation158_spill] sm:$0xff]  ;;  %v16638_v14 = vld [vmem:[#allocation169_spill] sm:$0xff] }
 0x3e1   :  { %1527 = vst.msk [vmem:[#allocation2 + $0x191] sm:$0xff] %vm950_vm13, %v16594_v54  ;;  %v16639_v54 = vld [vmem:[#allocation124_spill] sm:$0xff] }
 0x3e2   :  { %1528 = vst.msk [vmem:[#allocation2 + $0x199] sm:$0x7f] %vm952_vm10, %v16595_v0  ;;  %v16641_v0 = vld [vmem:[#allocation145_spill] sm:$0xff] }
 0x3e3   :  { %1394 = vst.msk [vmem:[#allocation2 + $0x19f] sm:$0xfe] %vm437_vm4, %v16596_v15  ;;  %v1647_v17 = vld [vmem:[#allocation2 + $0x180] sm:$0xff]  ;;  %v1648_v29 = vld [vmem:[#allocation2 + $0x188] sm:$0xff] }
 0x3e4   :  { %1395 = vst.msk [vmem:[#allocation2 + $0x1a7] sm:$0xff] %vm439_vm6, %v16597_v7  ;;  %8603 = vmatprep.mubr.msk.f32.mxu1 %vm98_vm0, %v1647_v17  ;;  %v16642_v15 = vld [vmem:[#allocation92_spill] sm:$0xff] }
 0x3e5   :  { %1557 = vst.msk [vmem:[#allocation2 + $0x190] sm:$0xff] %vm1072_vm14, %v10642_v44  ;;  %1558 = vst.msk [vmem:[#allocation2 + $0x198] sm:$0xff] %vm1072_vm14, %v16598_v21  ;;  %v16602_v44 = vld [vmem:[#allocation57_spill] sm:$0xff]  ;;  %8604 = vmatmul.mubr.msk.f32.gmra.mxu1 %vm98_vm0, %v1648_v29  ;;  %v16644_v7 = vld [vmem:[#allocation16_spill] sm:$0xff] }
 0x3e6   :  { %1433 = vst.msk [vmem:[#allocation2 + $0x1a1] sm:$0xff] %vm567_vm5, %v16599_v8  ;;  %v16645_v21 = vld [vmem:[#allocation165_spill] sm:$0xff]  ;;  %v16662_v17 = vld [vmem:[#allocation64_spill] sm:$0xff]  ;;  %v16663_v29 = vld [vmem:[#allocation174_spill] sm:$0xff] }
 0x3e7   :  { %1434 = vst.msk [vmem:[#allocation2 + $0x1a9] sm:$0x7f] %vm569_vm7, %v16600_v41  ;;  %v16646_v8 = vld [vmem:[#allocation121_spill] sm:$0xff]  ;;  %v16647_v41 = vld [vmem:[#allocation52_spill] sm:$0xff] }
 0x3e8   :  { %1587 = vst.msk [vmem:[#allocation2 + $0x18f] sm:$0xfe] %vm1193_vm15, %v10650_v18  ;;  %v16606_v18 = vld [vmem:[#allocation161_spill] sm:$0xff] }
 0x3e9   :  { %1588 = vst.msk [vmem:[#allocation2 + $0x197] sm:$0xff] %vm1195_vm12, %v10348_v61  ;;  %v16605_v61 = vld [vmem:[#allocation11_spill] sm:$0xff] }
 0x3ea   :  { %1465 = vst.msk [vmem:[#allocation2 + $0x1a0] sm:$0xff] %vm697_vm8, %v16601_v35  ;;  %1466 = vst.msk [vmem:[#allocation2 + $0x1a8] sm:$0xff] %vm697_vm8, %v16602_v44  ;;  %v16651_v35 = vld [vmem:[#allocation37_spill] sm:$0xff]  ;;  %v1282_v44 = vpop.permute.xlu1 %1281 }
 0x3eb   :  { %1336 = vst.msk [vmem:[#allocation2 + $0x1b1] sm:$0xff] %vm164_vm1, %v1266_v56  ;;  %1338 = vst.msk [vmem:[#allocation2 + $0x1c1] sm:$0xff] %vm164_vm1, %v1270_v2  ;;  %v16648_v56 = vld [vmem:[#allocation56_spill] sm:$0xff] }
 0x3ec   :  { %1497 = vst.msk [vmem:[#allocation2 + $0x19f] sm:$0xfe] %vm826_vm11, %v16603_v51  ;;  %v16661_v2 = vld [vmem:[#allocation60_spill] sm:$0xff] }
 0x3ed   :  { %1498 = vst.msk [vmem:[#allocation2 + $0x1a7] sm:$0xff] %vm828_vm9, %v16604_v30 }
 0x3ee   :  { %1366 = vst.msk [vmem:[#allocation2 + $0x1b0] sm:$0xff] %vm316_vm3, %v9170_v23  ;;  %1367 = vst.msk [vmem:[#allocation2 + $0x1b8] sm:$0xff] %vm316_vm3, %v16605_v61  ;;  %v16610_v23 = vld [vmem:[#allocation162_spill] sm:$0xff]  ;;  %v16652_v61 = vld [vmem:[#allocation173_spill] sm:$0xff] }
 0x3ef   :  { %1529 = vst.msk [vmem:[#allocation2 + $0x1a1] sm:$0xff] %vm950_vm13, %v16606_v18  ;;  %v16653_v18 = vld [vmem:[#allocation125_spill] sm:$0xff] }
 0x3f0   :  { %1530 = vst.msk [vmem:[#allocation2 + $0x1a9] sm:$0x7f] %vm952_vm10, %v16607_v42  ;;  %v1649_v38 = vld [vmem:[#allocation2 + $0x190] sm:$0xff]  ;;  %v1650_v43 = vld [vmem:[#allocation2 + $0x198] sm:$0xff] }
 0x3f1   :  { %1396 = vst.msk [vmem:[#allocation2 + $0x1af] sm:$0xfe] %vm437_vm4, %v16608_v46  ;;  %8606 = vmatprep.mubr.msk.f32.mxu1 %vm98_vm0, %v1649_v38  ;;  %v16655_v42 = vld [vmem:[#allocation146_spill] sm:$0xff] }
 0x3f2   :  { %1397 = vst.msk [vmem:[#allocation2 + $0x1b7] sm:$0xff] %vm439_vm6, %v16609_v33  ;;  %8607 = vmatmul.mubr.msk.f32.gmra.mxu1 %vm98_vm0, %v1650_v43  ;;  %v16656_v46 = vld [vmem:[#allocation94_spill] sm:$0xff] }
 0x3f3   :  { %1559 = vst.msk [vmem:[#allocation2 + $0x1a0] sm:$0xff] %vm1072_vm14, %v10663_v25  ;;  %1560 = vst.msk [vmem:[#allocation2 + $0x1a8] sm:$0xff] %vm1072_vm14, %v16610_v23  ;;  %v16614_v25 = vld [vmem:[#allocation59_spill] sm:$0xff]  ;;  %v16658_v33 = vld [vmem:[#allocation18_spill] sm:$0xff]  ;;  %v1409_v23 = vpop.permute.xlu0 %1408 }
 0x3f4   :  { %1435 = vst.msk [vmem:[#allocation2 + $0x1b1] sm:$0xff] %vm567_vm5, %v16611_v52  ;;  %v16659_v52 = vld [vmem:[#allocation167_spill] sm:$0xff] }
 0x3f5   :  { %1436 = vst.msk [vmem:[#allocation2 + $0x1b9] sm:$0x7f] %vm569_vm7, %v16612_v20  ;;  %v16660_v20 = vld [vmem:[#allocation123_spill] sm:$0xff] }
 0x3f6   :  { %1589 = vst.msk [vmem:[#allocation2 + $0x19f] sm:$0xfe] %vm1193_vm15, %v10671_v16  ;;  %v16617_v16 = vld [vmem:[#allocation12_spill] sm:$0xff] }
 0x3f7   :  { %1590 = vst.msk [vmem:[#allocation2 + $0x1a7] sm:$0xff] %vm1195_vm12, %v10380_v24  ;;  %v16618_v24 = vld [vmem:[#allocation13_spill] sm:$0xff] }
 0x3f8   :  { %1467 = vst.msk [vmem:[#allocation2 + $0x1b0] sm:$0xff] %vm697_vm8, %v16613_v3  ;;  %1468 = vst.msk [vmem:[#allocation2 + $0x1b8] sm:$0xff] %vm697_vm8, %v16614_v25  ;;  %v1407_v3 = vpop.permute.xlu1 %1406 }
 0x3f9   :  { %1499 = vst.msk [vmem:[#allocation2 + $0x1af] sm:$0xfe] %vm826_vm11, %v16615_v10 }
 0x3fa   :  { %1500 = vst.msk [vmem:[#allocation2 + $0x1b7] sm:$0xff] %vm828_vm9, %v16616_v4  ;;  %v16664_v4 = vld [vmem:[#allocation127_spill] sm:$0xff] }
 0x3fb   :  { %1368 = vst.msk [vmem:[#allocation2 + $0x1c0] sm:$0xff] %vm316_vm3, %v16617_v16  ;;  %1369 = vst.msk [vmem:[#allocation2 + $0x1c8] sm:$0xff] %vm316_vm3, %v16618_v24  ;;  %v16666_v16 = vld [vmem:[#allocation147_spill] sm:$0xff]  ;;  %v16667_v24 = vld [vmem:[#allocation96_spill] sm:$0xff] }
 0x3fc   :  { %1531 = vst.msk [vmem:[#allocation2 + $0x1b1] sm:$0xff] %vm950_vm13, %v16619_v32 }
 0x3fd   :  { %1532 = vst.msk [vmem:[#allocation2 + $0x1b9] sm:$0x7f] %vm952_vm10, %v16620_v9 }
 0x3fe   :  { %1398 = vst.msk [vmem:[#allocation2 + $0x1bf] sm:$0xfe] %vm437_vm4, %v16621_v5  ;;  %v1651_v26 = vld [vmem:[#allocation2 + $0x1a0] sm:$0xff]  ;;  %v1652_v49 = vld [vmem:[#allocation2 + $0x1a8] sm:$0xff] }
 0x3ff   :  { %1399 = vst.msk [vmem:[#allocation2 + $0x1c7] sm:$0xff] %vm439_vm6, %v16622_v45  ;;  %8609 = vmatprep.mubr.msk.f32.mxu1 %vm98_vm0, %v1651_v26 }
 0x400   :  { %1561 = vst.msk [vmem:[#allocation2 + $0x1b0] sm:$0xff] %vm1072_vm14, %v10682_v31  ;;  %1562 = vst.msk [vmem:[#allocation2 + $0x1b8] sm:$0xff] %vm1072_vm14, %v16623_v13  ;;  %v16627_v31 = vld [vmem:[#allocation61_spill] sm:$0xff]  ;;  %8610 = vmatmul.mubr.msk.f32.gmra.mxu1 %vm98_vm0, %v1652_v49  ;;  %v11257_v13 = vpop.f32.mrf.mxu0 }
 0x401   :  { %1437 = vst.msk [vmem:[#allocation2 + $0x1c1] sm:$0xff] %vm567_vm5, %v16624_v6  ;;  %16668 = vst [vmem:[#allocation26_spill] sm:$0xff] %v11257_v13 }
 0x402   :  { %1438 = vst.msk [vmem:[#allocation2 + $0x1c9] sm:$0x7f] %vm569_vm7, %v16625_v39  ;;  %v11259_v6 = vpop.f32.mrf.mxu0 }
 0x403   :  { %1591 = vst.msk [vmem:[#allocation2 + $0x1af] sm:$0xfe] %vm1193_vm15, %v10688_v40  ;;  %v16631_v40 = vld [vmem:[#allocation164_spill] sm:$0xff]  ;;  %16669 = vst [vmem:[#allocation126_spill] sm:$0xff] %v11259_v6 }
 0x404   :  { %1592 = vst.msk [vmem:[#allocation2 + $0x1b7] sm:$0xff] %vm1195_vm12, %v10408_v28  ;;  %v16630_v28 = vld [vmem:[#allocation14_spill] sm:$0xff]  ;;  %v11261_v39 = vpop.f32.mrf.mxu0 }
 0x405   :  { %1469 = vst.msk [vmem:[#allocation2 + $0x1c0] sm:$0xff] %vm697_vm8, %v16626_v47  ;;  %1470 = vst.msk [vmem:[#allocation2 + $0x1c8] sm:$0xff] %vm697_vm8, %v16627_v31 }
 0x406   :  { %1340 = vst.msk [vmem:[#allocation2 + $0x1d1] sm:$0xff] %vm164_vm1, %v1274_v37  ;;  %1342 = vst.msk [vmem:[#allocation2 + $0x1e1] sm:$0xff] %vm164_vm1, %v1278_v57  ;;  %v11263_v37 = vpop.f32.mrf.mxu0 }
 0x407   :  { %1501 = vst.msk [vmem:[#allocation2 + $0x1bf] sm:$0xfe] %vm826_vm11, %v16628_v19  ;;  %16670 = vst [vmem:[#allocation69_spill] sm:$0xff] %v11261_v39 }
 0x408   :  { %1502 = vst.msk [vmem:[#allocation2 + $0x1c7] sm:$0xff] %vm828_vm9, %v16629_v55  ;;  %16671 = vst [vmem:[#allocation71_spill] sm:$0xff] %v11263_v37  ;;  %v11267_v43 = vpop.f32.mrf.mxu0 }
 0x409   :  { %1370 = vst.msk [vmem:[#allocation2 + $0x1d0] sm:$0xff] %vm316_vm3, %v9202_v27  ;;  %1371 = vst.msk [vmem:[#allocation2 + $0x1d8] sm:$0xff] %vm316_vm3, %v16630_v28  ;;  %v16635_v27 = vld [vmem:[#allocation168_spill] sm:$0xff] }
 0x40a   :  { %1533 = vst.msk [vmem:[#allocation2 + $0x1c1] sm:$0xff] %vm950_vm13, %v16631_v40  ;;  %16672 = vst [vmem:[#allocation102_spill] sm:$0xff] %v11267_v43  ;;  %v11273_v28 = vpop.f32.mrf.mxu0 }
 0x40b   :  { %1534 = vst.msk [vmem:[#allocation2 + $0x1c9] sm:$0x7f] %vm952_vm10, %v16632_v48  ;;  %v1653_v51 = vld [vmem:[#allocation2 + $0x1b0] sm:$0xff]  ;;  %v1654_v30 = vld [vmem:[#allocation2 + $0x1b8] sm:$0xff]  ;;  %16673 = vst [vmem:[#allocation41_spill] sm:$0xff] %v11273_v28 }
 0x40c   :  { %1400 = vst.msk [vmem:[#allocation2 + $0x1cf] sm:$0xfe] %vm437_vm4, %v16633_v59  ;;  %8612 = vmatprep.mubr.msk.f32.mxu1 %vm98_vm0, %v1653_v51  ;;  %v11275_v40 = vpop.f32.mrf.mxu0 }
 0x40d   :  { %1401 = vst.msk [vmem:[#allocation2 + $0x1d7] sm:$0xff] %vm439_vm6, %v16634_v63  ;;  %8613 = vmatmul.mubr.msk.f32.gmra.mxu1 %vm98_vm0, %v1654_v30  ;;  %16674 = vst [vmem:[#allocation130_spill] sm:$0xff] %v11275_v40 }
 0x40e   :  { %1563 = vst.msk [vmem:[#allocation2 + $0x1c0] sm:$0xff] %vm1072_vm14, %v10697_v12  ;;  %1564 = vst.msk [vmem:[#allocation2 + $0x1c8] sm:$0xff] %vm1072_vm14, %v16635_v27  ;;  %v16640_v12 = vld [vmem:[#allocation63_spill] sm:$0xff] }
 0x40f   :  { %1439 = vst.msk [vmem:[#allocation2 + $0x1d1] sm:$0xff] %vm567_vm5, %v16636_v53  ;;  %v11281_v53 = vpop.f32.mrf.mxu0 }
 0x410   :  { %1440 = vst.msk [vmem:[#allocation2 + $0x1d9] sm:$0x7f] %vm569_vm7, %v16637_v58  ;;  %16675 = vst [vmem:[#allocation70_spill] sm:$0xff] %v11281_v53 }
 0x411   :  { %1593 = vst.msk [vmem:[#allocation2 + $0x1bf] sm:$0xfe] %vm1193_vm15, %v10703_v1  ;;  %v16643_v1 = vld [vmem:[#allocation15_spill] sm:$0xff]  ;;  %v11283_v58 = vpop.f32.mrf.mxu0 }
 0x412   :  { %1594 = vst.msk [vmem:[#allocation2 + $0x1c7] sm:$0xff] %vm1195_vm12, %v16638_v14  ;;  %16676 = vst [vmem:[#allocation100_spill] sm:$0xff] %v11283_v58 }
 0x413   :  { %1471 = vst.msk [vmem:[#allocation2 + $0x1d0] sm:$0xff] %vm697_vm8, %v16639_v54  ;;  %1472 = vst.msk [vmem:[#allocation2 + $0x1d8] sm:$0xff] %vm697_vm8, %v16640_v12  ;;  %v11289_v54 = vpop.f32.mrf.mxu0 }
 0x414   :  { %1503 = vst.msk [vmem:[#allocation2 + $0x1cf] sm:$0xfe] %vm826_vm11, %v16641_v0  ;;  %16677 = vst [vmem:[#allocation30_spill] sm:$0xff] %v11289_v54 }
 0x415   :  { %1504 = vst.msk [vmem:[#allocation2 + $0x1d7] sm:$0xff] %vm828_vm9, %v16642_v15  ;;  %v11291_v12 = vpop.f32.mrf.mxu0 }
 0x416   :  { %1372 = vst.msk [vmem:[#allocation2 + $0x1e0] sm:$0xff] %vm316_vm3, %v16643_v1  ;;  %1373 = vst.msk [vmem:[#allocation2 + $0x1e8] sm:$0xff] %vm316_vm3, %v16644_v7 }
 0x417   :  { %1535 = vst.msk [vmem:[#allocation2 + $0x1d1] sm:$0xff] %vm950_vm13, %v16645_v21  ;;  %16678 = vst [vmem:[#allocation33_spill] sm:$0xff] %v11291_v12  ;;  %v11297_v21 = vpop.f32.mrf.mxu0 }
 0x418   :  { %1536 = vst.msk [vmem:[#allocation2 + $0x1d9] sm:$0x7f] %vm952_vm10, %v16646_v8  ;;  %16679 = vst [vmem:[#allocation128_spill] sm:$0xff] %v11297_v21 }
 0x419   :  { %1402 = vst.msk [vmem:[#allocation2 + $0x1df] sm:$0xfe] %vm437_vm4, %v16647_v41  ;;  %v1655_v25 = vld [vmem:[#allocation2 + $0x1c0] sm:$0xff]  ;;  %v1656_v10 = vld [vmem:[#allocation2 + $0x1c8] sm:$0xff]  ;;  %v11299_v8 = vpop.f32.mrf.mxu0 }
 0x41a   :  { %1403 = vst.msk [vmem:[#allocation2 + $0x1e7] sm:$0xff] %vm439_vm6, %v16648_v56  ;;  %8615 = vmatprep.mubr.msk.f32.mxu1 %vm98_vm0, %v1655_v25  ;;  %16680 = vst [vmem:[#allocation73_spill] sm:$0xff] %v11299_v8 }
 0x41b   :  { %1565 = vst.msk [vmem:[#allocation2 + $0x1d0] sm:$0xff] %vm1072_vm14, %v10712_v34  ;;  %1566 = vst.msk [vmem:[#allocation2 + $0x1d8] sm:$0xff] %vm1072_vm14, %v16649_v11  ;;  %v16654_v34 = vld [vmem:[#allocation65_spill] sm:$0xff]  ;;  %8616 = vmatmul.mubr.msk.f32.gmra.mxu1 %vm98_vm0, %v1656_v10 }
 0x41c   :  { %1441 = vst.msk [vmem:[#allocation2 + $0x1e1] sm:$0xff] %vm567_vm5, %v16650_v50 }
 0x41d   :  { %1442 = vst.msk [vmem:[#allocation2 + $0x1e9] sm:$0x7f] %vm569_vm7, %v16651_v35  ;;  %v11305_v35 = vpop.f32.mrf.mxu0 }
 0x41e   :  { %1595 = vst.msk [vmem:[#allocation2 + $0x1cf] sm:$0xfe] %vm1193_vm15, %v10718_v62  ;;  %v16657_v62 = vld [vmem:[#allocation17_spill] sm:$0xff]  ;;  %16681 = vst [vmem:[#allocation75_spill] sm:$0xff] %v11305_v35 }
 0x41f   :  { %1596 = vst.msk [vmem:[#allocation2 + $0x1d7] sm:$0xff] %vm1195_vm12, %v16652_v61 }
 0x420   :  { %1473 = vst.msk [vmem:[#allocation2 + $0x1e0] sm:$0xff] %vm697_vm8, %v16653_v18  ;;  %1474 = vst.msk [vmem:[#allocation2 + $0x1e8] sm:$0xff] %vm697_vm8, %v16654_v34 }
 0x421   :  { %1344 = vst.msk [vmem:[#allocation2 + $0x1f1] sm:$0xff] %vm164_vm1, %v1282_v44  ;;  %vm2249_vm1 = vcmask 64512   ;;  %v11307_v44 = vpop.f32.mrf.mxu0 }
 0x422   :  { %1505 = vst.msk [vmem:[#allocation2 + $0x1df] sm:$0xfe] %vm826_vm11, %v16655_v42  ;;  %v2250_v38 = vsel %vm2249_vm1, %v11259_v6, 0.0  ;;  %v2251_v47 = vsel %vm2249_vm1, %v11257_v13, 0.0  ;;  %v2253_v31 = vsel %vm2249_vm1, %v11263_v37, 0.0  ;;  %v2255_v48 = vsel %vm2249_vm1, %v11261_v39, 0.0 }
 0x423   :  { %1506 = vst.msk [vmem:[#allocation2 + $0x1e7] sm:$0xff] %vm828_vm9, %v16656_v46  ;;  %v2252_v19 = vadd.f32 %v2251_v47, %v2250_v38  ;;  %v2257_v59 = vsel %vm2249_vm1, %v11273_v28, 0.0  ;;  %v2259_v57 = vsel %vm2249_vm1, %v11267_v43, 0.0  ;;  %v2261_v26 = vsel %vm2249_vm1, %v11281_v53, 0.0  ;;  %16682 = vst [vmem:[#allocation175_spill] sm:$0xff] %v11307_v44  ;;  %v11313_v34 = vpop.f32.mrf.mxu0 }
 0x424   :  { %1374 = vst.msk [vmem:[#allocation2 + $0x1f0] sm:$0xff] %vm316_vm3, %v16657_v62  ;;  %1375 = vst.msk [vmem:[#allocation2 + $0x1f8] sm:$0xff] %vm316_vm3, %v16658_v33  ;;  %v2263_v0 = vsel %vm2249_vm1, %v11275_v40, 0.0  ;;  %v2265_v15 = vsel %vm2249_vm1, %v11289_v54, 0.0  ;;  %v2267_v41 = vsel %vm2249_vm1, %v11283_v58, 0.0  ;;  %v2269_v56 = vsel %vm2249_vm1, %v11297_v21, 0.0 }
 0x425   :  { %1537 = vst.msk [vmem:[#allocation2 + $0x1e1] sm:$0xff] %vm950_vm13, %v16659_v52  ;;  %v2254_v55 = vadd.f32 %v2253_v31, %v2252_v19  ;;  %v2271_v51 = vsel %vm2249_vm1, %v11291_v12, 0.0  ;;  %v2273_v30 = vsel %vm2249_vm1, %v11305_v35, 0.0  ;;  %16683 = vst [vmem:[#allocation104_spill] sm:$0xff] %v11313_v34  ;;  %v11315_v42 = vpop.f32.mrf.mxu0  ;;  %v2275_v46 = vsel %vm2249_vm1, %v11299_v8, 0.0 }
 0x426   :  { %1538 = vst.msk [vmem:[#allocation2 + $0x1e9] sm:$0x7f] %vm952_vm10, %v16660_v20  ;;  %16684 = vst [vmem:[#allocation43_spill] sm:$0xff] %v11315_v42  ;;  %v2277_v62 = vsel %vm2249_vm1, %v11313_v34, 0.0  ;;  %vm3222_vm3 = vcmask 130112   ;;  %vm4236_vm10 = vcmask 392513  }
 0x427   :  { %1404 = vst.msk [vmem:[#allocation2 + $0x1ef] sm:$0xfe] %vm437_vm4, %v16661_v2  ;;  %v2256_v63 = vadd.f32 %v2255_v48, %v2254_v55  ;;  %v11321_v52 = vpop.f32.mrf.mxu0  ;;  %v2279_v2 = vsel %vm2249_vm1, %v11307_v44, 0.0  ;;  %vm3465_vm4 = vcmask 195712   ;;  %vm4482_vm13 = vcmask 458112  }
 0x428   :  { %1405 = vst.msk [vmem:[#allocation2 + $0x1f7] sm:$0xff] %vm439_vm6, %v16662_v17  ;;  %16685 = vst [vmem:[#allocation131_spill] sm:$0xff] %v11321_v52  ;;  %v2281_v17 = vsel %vm2249_vm1, %v11321_v52, 0.0  ;;  %vm3723_vm6 = vcmask 260288  }
 0x429   :  { %1567 = vst.msk [vmem:[#allocation2 + $0x1e0] sm:$0xff] %vm1072_vm14, %v10727_v22  ;;  %1568 = vst.msk [vmem:[#allocation2 + $0x1e8] sm:$0xff] %vm1072_vm14, %v16663_v29  ;;  %v16665_v22 = vld [vmem:[#allocation67_spill] sm:$0xff]  ;;  %v2258_v27 = vadd.f32 %v2257_v59, %v2256_v63  ;;  %v11323_v20 = vpop.f32.mrf.mxu0  ;;  %vm4724_vm14 = vcmask 523712  }
 0x42a   :  { %1444 = vst.msk [vmem:[#allocation2 + $0x1f9] sm:$0x7f] %vm569_vm7, %v1409_v23  ;;  %16686 = vst [vmem:[#allocation72_spill] sm:$0xff] %v11323_v20  ;;  %vm3721_vm7 = vcmask 261312  }
 0x42b   :  { %1597 = vst.msk [vmem:[#allocation2 + $0x1df] sm:$0xfe] %vm1193_vm15, %v10733_v60  ;;  %v1657_v60 = vld [vmem:[#allocation2 + $0x1d0] sm:$0xff]  ;;  %v2260_v49 = vadd.f32 %v2259_v57, %v2258_v27  ;;  %v11329_v25 = vpop.f32.mrf.mxu0  ;;  %vm4967_vm15 = vcmask 589312  }
 0x42c   :  { %1598 = vst.msk [vmem:[#allocation2 + $0x1e7] sm:$0xff] %vm1195_vm12, %v10499_v36  ;;  %v1658_v36 = vld [vmem:[#allocation2 + $0x1d8] sm:$0xff]  ;;  %8618 = vmatprep.mubr.msk.f32.mxu1 %vm98_vm0, %v1657_v60  ;;  %16687 = vst [vmem:[#allocation4_spill] sm:$0xff] %v11329_v25  ;;  %vm4965_vm12 = vcmask 589313  }
 0x42d   :  { %1443 = vst.msk [vmem:[#allocation2 + $0x1f1] sm:$0xff] %vm567_vm5, %v1407_v3  ;;  %8619 = vmatmul.mubr.msk.f32.gmra.mxu1 %vm98_vm0, %v1658_v36  ;;  %v2262_v14 = vadd.f32 %v2261_v26, %v2260_v49  ;;  %v11331_v10 = vpop.f32.mrf.mxu0  ;;  %vm3463_vm5 = vcmask 195713  }
 0x42e   :  { %1475 = vst.msk [vmem:[#allocation2 + $0x1f0] sm:$0xff] %vm697_vm8, %v16664_v4  ;;  %1476 = vst.msk [vmem:[#allocation2 + $0x1f8] sm:$0xff] %vm697_vm8, %v16665_v22  ;;  %v2283_v4 = vsel %vm2249_vm1, %v11315_v42, 0.0  ;;  %v2285_v22 = vsel %vm2249_vm1, %v11329_v25, 0.0  ;;  %v2291_v31 = vsel %vm2249_vm1, %v11331_v10, 0.0  ;;  %vm3979_vm8 = vcmask 326912  }
 0x42f   :  { %1507 = vst.msk [vmem:[#allocation2 + $0x1ef] sm:$0xfe] %vm826_vm11, %v16666_v16  ;;  %v2264_v1 = vadd.f32 %v2263_v0, %v2262_v14  ;;  %16688 = vst [vmem:[#allocation152_spill] sm:$0xff] %v11331_v10  ;;  %v11337_v60 = vpop.f32.mrf.mxu0  ;;  %vm4484_vm11 = vcmask 457088  }
 0x430   :  { %1508 = vst.msk [vmem:[#allocation2 + $0x1f7] sm:$0xff] %vm828_vm9, %v16667_v24  ;;  %16689 = vst [vmem:[#allocation101_spill] sm:$0xff] %v11337_v60  ;;  %vm4238_vm9 = vcmask 392512  }
 0x431   :  { %v2266_v7 = vadd.f32 %v2265_v15, %v2264_v1  ;;  %v11339_v36 = vpop.f32.mrf.mxu0 }
 0x432   :  { %16690 = vst [vmem:[#allocation36_spill] sm:$0xff] %v11339_v36  ;;  %v2295_v27 = vsel %vm2249_vm1, %v11339_v36, 0.0 }
 0x433   :  { %v1659_v32 = vld [vmem:[#allocation2 + $0x1e0] sm:$0xff]  ;;  %v1660_v9 = vld [vmem:[#allocation2 + $0x1e8] sm:$0xff]  ;;  %v2268_v11 = vadd.f32 %v2267_v41, %v2266_v7  ;;  %v11345_v38 = vpop.f32.mrf.mxu0 }
 0x434   :  { %8621 = vmatprep.mubr.msk.f32.mxu1 %vm98_vm0, %v1659_v32  ;;  %v2287_v32 = vsel %vm2249_vm1, %v11323_v20, 0.0  ;;  %16691 = vst [vmem:[#allocation39_spill] sm:$0xff] %v11345_v38  ;;  %v2293_v19 = vsel %vm2249_vm1, %v11345_v38, 0.0 }
 0x435   :  { %8622 = vmatmul.mubr.msk.f32.gmra.mxu1 %vm98_vm0, %v1660_v9  ;;  %v2270_v50 = vadd.f32 %v2269_v56, %v2268_v11  ;;  %v2289_v9 = vsel %vm2249_vm1, %v11337_v60, 0.0  ;;  %v11347_v47 = vpop.f32.mrf.mxu0 }
 0x436   :  { %16692 = vst [vmem:[#allocation170_spill] sm:$0xff] %v11347_v47  ;;  %v2299_v0 = vsel %vm2249_vm1, %v11347_v47, 0.0 }
 0x437   :  { %v1661_v5 = vld [vmem:[#allocation2 + $0x1f0] sm:$0xff]  ;;  %v1662_v45 = vld [vmem:[#allocation2 + $0x1f8] sm:$0xff]  ;;  %v2272_v61 = vadd.f32 %v2271_v51, %v2270_v50  ;;  %v11353_v59 = vpop.f32.mrf.mxu0 }
 0x438   :  { %8624 = vmatprep.mubr.msk.f32.mxu1 %vm98_vm0, %v1661_v5  ;;  %16693 = vst [vmem:[#allocation129_spill] sm:$0xff] %v11353_v59  ;;  %v2297_v57 = vsel %vm2249_vm1, %v11353_v59, 0.0 }
 0x439   :  { %8625 = vmatmul.mubr.msk.f32.gmra.mxu1 %vm98_vm0, %v1662_v45  ;;  %v2274_v18 = vadd.f32 %v2273_v30, %v2272_v61  ;;  %v11355_v63 = vpop.f32.mrf.mxu0  ;;  %v11375_v30 = vpop.f32.mrf.mxu1  ;;  %vm2855_vm0 = vcmask 588800  }
 0x43a   :  { %16694 = vst [vmem:[#allocation77_spill] sm:$0xff] %v11355_v63  ;;  %v2303_v56 = vsel %vm2249_vm1, %v11355_v63, 0.0  ;;  %16698 = vst [vmem:[#allocation106_spill] sm:$0xff] %v11375_v30 }
 0x43b   :  { %v2276_v33 = vadd.f32 %v2275_v46, %v2274_v18  ;;  %v11361_v14 = vpop.f32.mrf.mxu0 }
 0x43c   :  { %16695 = vst [vmem:[#allocation79_spill] sm:$0xff] %v11361_v14  ;;  %v2301_v15 = vsel %vm2249_vm1, %v11361_v14, 0.0 }
 0x43d   :  { %v2278_v23 = vadd.f32 %v2277_v62, %v2276_v33  ;;  %v11367_v41 = vpop.f32.mrf.mxu0 }
 0x43e   :  { %16696 = vst [vmem:[#allocation136_spill] sm:$0xff] %v11367_v41  ;;  %v2307_v46 = vsel %vm2249_vm1, %v11367_v41, 0.0 }
 0x43f   :  { %v2280_v29 = vadd.f32 %v2279_v2, %v2278_v23  ;;  %v11371_v11 = vpop.f32.mrf.mxu0  ;;  %v11385_v2 = vpop.f32.mrf.mxu1 }
 0x440   :  { %16697 = vst [vmem:[#allocation176_spill] sm:$0xff] %v11371_v11  ;;  %v2305_v51 = vsel %vm2249_vm1, %v11371_v11, 0.0  ;;  %16701 = vst [vmem:[#allocation74_spill] sm:$0xff] %v11385_v2 }
 0x441   :  { %v2282_v3 = vadd.f32 %v2281_v17, %v2280_v29  ;;  %v11377_v18 = vpop.f32.mrf.mxu0 }
 0x442   :  { %16699 = vst [vmem:[#allocation45_spill] sm:$0xff] %v11377_v18  ;;  %v2311_v29 = vsel %vm2249_vm1, %v11377_v18, 0.0 }
 0x443   :  { %v2284_v16 = vadd.f32 %v2283_v4, %v2282_v3  ;;  %v11381_v62 = vpop.f32.mrf.mxu0  ;;  %v2313_v4 = vsel %vm2249_vm1, %v11385_v2, 0.0 }
 0x444   :  { %16700 = vst [vmem:[#allocation132_spill] sm:$0xff] %v11381_v62  ;;  %v2309_v23 = vsel %vm2249_vm1, %v11381_v62, 0.0 }
 0x445   :  { %v2286_v24 = vadd.f32 %v2285_v22, %v2284_v16 }
 0x446   :  { %v11391_v22 = vpop.f32.mrf.mxu1 }
 0x447   :  { %v2288_v5 = vadd.f32 %v2287_v32, %v2286_v24  ;;  %16702 = vst [vmem:[#allocation5_spill] sm:$0xff] %v11391_v22  ;;  %v2315_v24 = vsel %vm2249_vm1, %v11375_v30, 0.0 }
 0x448   :  { %v11395_v32 = vpop.f32.mrf.mxu1 }
 0x449   :  { %v2290_v45 = vadd.f32 %v2289_v9, %v2288_v5  ;;  %16703 = vst [vmem:[#allocation153_spill] sm:$0xff] %v11395_v32  ;;  %v2317_v5 = vsel %vm2249_vm1, %v11395_v32, 0.0 }
 0x44b   :  { %v2292_v55 = vadd.f32 %v2291_v31, %v2290_v45 }
 0x44d   :  { %v2294_v48 = vadd.f32 %v2293_v19, %v2292_v55  ;;  %v2319_v19 = vsel %vm2249_vm1, %v11391_v22, 0.0 }
 0x44f   :  { %v2296_v26 = vadd.f32 %v2295_v27, %v2294_v48 }
 0x451   :  { %v2298_v49 = vadd.f32 %v2297_v57, %v2296_v26 }
 0x453   :  { %v2300_v1 = vadd.f32 %v2299_v0, %v2298_v49 }
 0x454   :  { %v11399_v31 = vpop.f32.mrf.mxu1 }
 0x455   :  { %v2302_v7 = vadd.f32 %v2301_v15, %v2300_v1  ;;  %16704 = vst [vmem:[#allocation103_spill] sm:$0xff] %v11399_v31  ;;  %v2323_v49 = vsel %vm2249_vm1, %v11399_v31, 0.0 }
 0x456   :  { %v11403_v55 = vpop.f32.mrf.mxu1 }
 0x457   :  { %v2304_v50 = vadd.f32 %v2303_v56, %v2302_v7  ;;  %16705 = vst [vmem:[#allocation42_spill] sm:$0xff] %v11403_v55  ;;  %v2321_v27 = vsel %vm2249_vm1, %v11403_v55, 0.0 }
 0x459   :  { %v2306_v61 = vadd.f32 %v2305_v51, %v2304_v50 }
 0x45b   :  { %v2308_v33 = vadd.f32 %v2307_v46, %v2306_v61 }
 0x45d   :  { %v2310_v17 = vadd.f32 %v2309_v23, %v2308_v33 }
 0x45f   :  { %v2312_v3 = vadd.f32 %v2311_v29, %v2310_v17 }
 0x461   :  { %v2314_v16 = vadd.f32 %v2313_v4, %v2312_v3  ;;  %v11407_v26 = vpop.f32.mrf.mxu1 }
 0x462   :  { %16706 = vst [vmem:[#allocation46_spill] sm:$0xff] %v11407_v26  ;;  %v2327_v50 = vsel %vm2249_vm1, %v11407_v26, 0.0 }
 0x463   :  { %v2316_v9 = vadd.f32 %v2315_v24, %v2314_v16  ;;  %v11411_v0 = vpop.f32.mrf.mxu1 }
 0x464   :  { %16707 = vst [vmem:[#allocation171_spill] sm:$0xff] %v11411_v0  ;;  %v2325_v1 = vsel %vm2249_vm1, %v11411_v0, 0.0 }
 0x465   :  { %v2318_v45 = vadd.f32 %v2317_v5, %v2316_v9 }
 0x467   :  { %v2320_v48 = vadd.f32 %v2319_v19, %v2318_v45 }
 0x469   :  { %v2322_v57 = vadd.f32 %v2321_v27, %v2320_v48 }
 0x46b   :  { %v2324_v15 = vadd.f32 %v2323_v49, %v2322_v57 }
 0x46d   :  { %v2326_v7 = vadd.f32 %v2325_v1, %v2324_v15 }
 0x46f   :  { %v11415_v56 = vpop.f32.mrf.mxu1  ;;  %v2328_v61 = vadd.f32 %v2327_v50, %v2326_v7 }
 0x470   :  { %16708 = vst [vmem:[#allocation139_spill] sm:$0xff] %v11415_v56  ;;  %v2331_v17 = vsel %vm2249_vm1, %v11415_v56, 0.0 }
 0x471   :  { %v11419_v51 = vpop.f32.mrf.mxu1 }
 0x472   :  { %16709 = vst [vmem:[#allocation81_spill] sm:$0xff] %v11419_v51  ;;  %v2329_v46 = vsel %vm2249_vm1, %v11419_v51, 0.0 }
 0x473   :  { %v2330_v33 = vadd.f32 %v2329_v46, %v2328_v61 }
 0x475   :  { %v2332_v3 = vadd.f32 %v2331_v17, %v2330_v33 }
 0x47c   :  { %v11423_v23 = vpop.f32.mrf.mxu1 }
 0x47d   :  { %16710 = vst [vmem:[#allocation83_spill] sm:$0xff] %v11423_v23  ;;  %v2335_v9 = vsel %vm2249_vm1, %v11423_v23, 0.0 }
 0x47e   :  { %v11427_v29 = vpop.f32.mrf.mxu1 }
 0x47f   :  { %16711 = vst [vmem:[#allocation141_spill] sm:$0xff] %v11427_v29  ;;  %v2333_v4 = vsel %vm2249_vm1, %v11427_v29, 0.0 }
 0x480   :  { %v2334_v16 = vadd.f32 %v2333_v4, %v2332_v3 }
 0x482   :  { %v2336_v45 = vadd.f32 %v2335_v9, %v2334_v16 }
 0x48a   :  { %v11431_v24 = vpop.f32.mrf.mxu1 }
 0x48b   :  { %16712 = vst [vmem:[#allocation108_spill] sm:$0xff] %v11431_v24  ;;  %v2339_v57 = vsel %vm2249_vm1, %v11431_v24, 0.0 }
 0x48c   :  { %v11435_v5 = vpop.f32.mrf.mxu1 }
 0x48d   :  { %16713 = vst [vmem:[#allocation47_spill] sm:$0xff] %v11435_v5  ;;  %v2337_v19 = vsel %vm2249_vm1, %v11435_v5, 0.0 }
 0x48e   :  { %v2338_v48 = vadd.f32 %v2337_v19, %v2336_v45 }
 0x490   :  { %v2340_v15 = vadd.f32 %v2339_v57, %v2338_v48 }
 0x497   :  { %v11439_v27 = vpop.f32.mrf.mxu1 }
 0x498   :  { %16714 = vst [vmem:[#allocation133_spill] sm:$0xff] %v11439_v27  ;;  %v2343_v61 = vsel %vm2249_vm1, %v11439_v27, 0.0 }
 0x499   :  { %v11443_v49 = vpop.f32.mrf.mxu1 }
 0x49a   :  { %16715 = vst [vmem:[#allocation76_spill] sm:$0xff] %v11443_v49  ;;  %v2341_v1 = vsel %vm2249_vm1, %v11443_v49, 0.0 }
 0x49b   :  { %v2342_v7 = vadd.f32 %v2341_v1, %v2340_v15 }
 0x49d   :  { %v2344_v33 = vadd.f32 %v2343_v61, %v2342_v7 }
 0x4a5   :  { %v11447_v50 = vpop.f32.mrf.mxu1 }
 0x4a6   :  { %16716 = vst [vmem:[#allocation6_spill] sm:$0xff] %v11447_v50  ;;  %v2347_v16 = vsel %vm2249_vm1, %v11447_v50, 0.0 }
 0x4a7   :  { %v11451_v46 = vpop.f32.mrf.mxu1 }
 0x4a8   :  { %16717 = vst [vmem:[#allocation155_spill] sm:$0xff] %v11451_v46  ;;  %v2345_v17 = vsel %vm2249_vm1, %v11451_v46, 0.0 }
 0x4a9   :  { %v2346_v3 = vadd.f32 %v2345_v17, %v2344_v33 }
 0x4ab   :  { %v2348_v45 = vadd.f32 %v2347_v16, %v2346_v3 }
 0x4b2   :  { %v11455_v4 = vpop.f32.mrf.mxu1 }
 0x4b3   :  { %16718 = vst [vmem:[#allocation105_spill] sm:$0xff] %v11455_v4  ;;  %v2351_v15 = vsel %vm2249_vm1, %v11455_v4, 0.0 }
 0x4b4   :  { %v11459_v9 = vpop.f32.mrf.mxu1 }
 0x4b5   :  { %16719 = vst [vmem:[#allocation50_spill] sm:$0xff] %v11459_v9  ;;  %v2349_v19 = vsel %vm2249_vm1, %v11459_v9, 0.0 }
 0x4b6   :  { %v2350_v48 = vadd.f32 %v2349_v19, %v2348_v45 }
 0x4b8   :  { %v2352_v7 = vadd.f32 %v2351_v15, %v2350_v48 }
 0x4c0   :  { %v11463_v57 = vpop.f32.mrf.mxu1 }
 0x4c1   :  { %16720 = vst [vmem:[#allocation54_spill] sm:$0xff] %v11463_v57  ;;  %v2355_v3 = vsel %vm2249_vm1, %v11463_v57, 0.0 }
 0x4c2   :  { %v11467_v1 = vpop.f32.mrf.mxu1 }
 0x4c3   :  { %16721 = vst [vmem:[#allocation144_spill] sm:$0xff] %v11467_v1  ;;  %v2353_v61 = vsel %vm2249_vm1, %v11467_v1, 0.0 }
 0x4c4   :  { %v2354_v33 = vadd.f32 %v2353_v61, %v2352_v7 }
 0x4c6   :  { %v2356_v45 = vadd.f32 %v2355_v3, %v2354_v33 }
 0x4cd   :  { %v11471_v17 = vpop.f32.mrf.mxu1 }
 0x4ce   :  { %16722 = vst [vmem:[#allocation85_spill] sm:$0xff] %v11471_v17  ;;  %v2359_v48 = vsel %vm2249_vm1, %v11471_v17, 0.0 }
 0x4cf   :  { %v11475_v16 = vpop.f32.mrf.mxu1 }
 0x4d0   :  { %16723 = vst [vmem:[#allocation21_spill] sm:$0xff] %v11475_v16  ;;  %v2357_v19 = vsel %vm2249_vm1, %v11475_v16, 0.0 }
 0x4d1   :  { %v2358_v9 = vadd.f32 %v2357_v19, %v2356_v45 }
 0x4d3   :  { %v2360_v7 = vadd.f32 %v2359_v48, %v2358_v9 }
 0x4db   :  { %v11479_v4 = vpop.f32.mrf.mxu1 }
 0x4dc   :  { %16724 = vst [vmem:[#allocation110_spill] sm:$0xff] %v11479_v4  ;;  %v2363_v33 = vsel %vm2249_vm1, %v11479_v4, 0.0 }
 0x4dd   :  { %v11483_v15 = vpop.f32.mrf.mxu1 }
 0x4de   :  { %16725 = vst [vmem:[#allocation49_spill] sm:$0xff] %v11483_v15  ;;  %v2361_v61 = vsel %vm2249_vm1, %v11483_v15, 0.0 }
 0x4df   :  { %v2362_v1 = vadd.f32 %v2361_v61, %v2360_v7 }
 0x4e1   :  { %v2364_v45 = vadd.f32 %v2363_v33, %v2362_v1 }
 0x4ed   :  { %v11487_v57 = vpop.f32.mrf.mxu1 }
 0x4ee   :  { %16726 = vst [vmem:[#allocation134_spill] sm:$0xff] %v11487_v57  ;;  %v2367_v9 = vsel %vm2249_vm1, %v11487_v57, 0.0 }
 0x4ef   :  { %v11491_v3 = vpop.f32.mrf.mxu1 }
 0x4f0   :  { %16727 = vst [vmem:[#allocation78_spill] sm:$0xff] %v11491_v3  ;;  %v2365_v19 = vsel %vm2249_vm1, %v11491_v3, 0.0 }
 0x4f1   :  { %v2366_v16 = vadd.f32 %v2365_v19, %v2364_v45 }
 0x4f3   :  { %v2368_v7 = vadd.f32 %v2367_v9, %v2366_v16 }
 0x4f5   :  { %v11495_v17 = vpop.f32.mrf.mxu1 }
 0x4f6   :  { %16728 = vst [vmem:[#allocation7_spill] sm:$0xff] %v11495_v17  ;;  %v2371_v1 = vsel %vm2249_vm1, %v11495_v17, 0.0 }
 0x4f7   :  { %v11499_v48 = vpop.f32.mrf.mxu1 }
 0x4f8   :  { %16729 = vst [vmem:[#allocation156_spill] sm:$0xff] %v11499_v48  ;;  %v2369_v61 = vsel %vm2249_vm1, %v11499_v48, 0.0 }
 0x4f9   :  { %v11503_v15 = vpop.f32.mrf.mxu1  ;;  %v2370_v4 = vadd.f32 %v2369_v61, %v2368_v7 }
 0x4fa   :  { %16730 = vst [vmem:[#allocation107_spill] sm:$0xff] %v11503_v15  ;;  %v2375_v57 = vsel %vm2249_vm1, %v11503_v15, 0.0 }
 0x4fb   :  { %v11505_v50 = vpop.f32.mrf.mxu1  ;;  %v2372_v33 = vadd.f32 %v2371_v1, %v2370_v4 }
 0x4fc   :  { %16731 = vst [vmem:[#allocation58_spill] sm:$0xff] %v11505_v50  ;;  %v2373_v45 = vsel %vm2249_vm1, %v11505_v50, 0.0 }
 0x4fd   :  { %v2374_v19 = vadd.f32 %v2373_v45, %v2372_v33 }
 0x4ff   :  { %v2376_v16 = vadd.f32 %v2375_v57, %v2374_v19 }
 0x501   :  { %v2377_v9 = vrot.slane %v2376_v16, 4 }
 0x503   :  { %v2378_v3 = vadd.f32 %v2377_v9, %v2376_v16 }
 0x505   :  { %v2379_v48 = vrot.slane %v2378_v3, 2 }
 0x507   :  { %v2380_v46 = vadd.f32 %v2379_v48, %v2378_v3 }
 0x509   :  { %v2381_v27 = vrot.slane %v2380_v46, 1 }
 0x50b   :  { %v2382_v7 = vadd.f32 %v2381_v27, %v2380_v46 }
 0x50d   :  { %v11513_v61 = vmul.f32 0.001953125, %v2382_v7 }
 0x50f   :  { %v11517_v17 = vsub.f32 %v11259_v6, %v11513_v61  ;;  %v11521_v4 = vsub.f32 %v11257_v13, %v11513_v61  ;;  %v11525_v1 = vsub.f32 %v11263_v37, %v11513_v61  ;;  %v11529_v57 = vsub.f32 %v11261_v39, %v11513_v61 }
 0x510   :  { %v11537_v3 = vsub.f32 %v11273_v28, %v11513_v61  ;;  %v11543_v33 = vsub.f32 %v11267_v43, %v11513_v61  ;;  %v11551_v7 = vsub.f32 %v11281_v53, %v11513_v61  ;;  %v11558_v43 = vsub.f32 %v11275_v40, %v11513_v61 }
 0x511   :  { %v2448_v27 = vmul.f32 %v11517_v17, %v11517_v17  ;;  %v2449_v46 = vmul.f32 %v11521_v4, %v11521_v4  ;;  %v2450_v48 = vmul.f32 %v11525_v1, %v11525_v1  ;;  %v2451_v45 = vmul.f32 %v11529_v57, %v11529_v57 }
 0x512   :  { %v2452_v28 = vmul.f32 %v11537_v3, %v11537_v3  ;;  %v2454_v53 = vmul.f32 %v11551_v7, %v11551_v7  ;;  %v2455_v40 = vmul.f32 %v11558_v43, %v11558_v43 }
 0x513   :  { %v2512_v19 = vsel %vm2249_vm1, %v2448_v27, 0.0  ;;  %v2513_v16 = vsel %vm2249_vm1, %v2449_v46, 0.0  ;;  %v2515_v39 = vsel %vm2249_vm1, %v2450_v48, 0.0  ;;  %v2453_v27 = vmul.f32 %v11543_v33, %v11543_v33 }
 0x514   :  { %v2514_v9 = vadd.f32 %v2513_v16, %v2512_v19  ;;  %v2517_v46 = vsel %vm2249_vm1, %v2451_v45, 0.0  ;;  %v11565_v16 = vsub.f32 %v11289_v54, %v11513_v61  ;;  %v2519_v48 = vsel %vm2249_vm1, %v2452_v28, 0.0 }
 0x515   :  { %v2521_v45 = vsel %vm2249_vm1, %v2453_v27, 0.0  ;;  %v2523_v28 = vsel %vm2249_vm1, %v2454_v53, 0.0  ;;  %v2525_v27 = vsel %vm2249_vm1, %v2455_v40, 0.0 }
 0x516   :  { %v2516_v37 = vadd.f32 %v2515_v39, %v2514_v9  ;;  %v11572_v9 = vsub.f32 %v11283_v58, %v11513_v61  ;;  %v2456_v54 = vmul.f32 %v11565_v16, %v11565_v16 }
 0x518   :  { %v2518_v19 = vadd.f32 %v2517_v46, %v2516_v37  ;;  %v11579_v46 = vsub.f32 %v11297_v21, %v11513_v61  ;;  %v2457_v58 = vmul.f32 %v11572_v9, %v11572_v9  ;;  %v2527_v53 = vsel %vm2249_vm1, %v2456_v54, 0.0 }
 0x51a   :  { %v2520_v39 = vadd.f32 %v2519_v48, %v2518_v19  ;;  %v11586_v48 = vsub.f32 %v11291_v12, %v11513_v61  ;;  %v2458_v21 = vmul.f32 %v11579_v46, %v11579_v46  ;;  %v2529_v40 = vsel %vm2249_vm1, %v2457_v58, 0.0 }
 0x51c   :  { %v2522_v37 = vadd.f32 %v2521_v45, %v2520_v39  ;;  %v11593_v45 = vsub.f32 %v11305_v35, %v11513_v61  ;;  %v2459_v12 = vmul.f32 %v11586_v48, %v11586_v48  ;;  %v2531_v54 = vsel %vm2249_vm1, %v2458_v21, 0.0 }
 0x51e   :  { %v2524_v19 = vadd.f32 %v2523_v28, %v2522_v37  ;;  %v11600_v28 = vsub.f32 %v11299_v8, %v11513_v61  ;;  %v2460_v35 = vmul.f32 %v11593_v45, %v11593_v45  ;;  %v2533_v58 = vsel %vm2249_vm1, %v2459_v12, 0.0 }
 0x520   :  { %v2526_v39 = vadd.f32 %v2525_v27, %v2524_v19  ;;  %v11607_v27 = vsub.f32 %v11313_v34, %v11513_v61  ;;  %v2461_v8 = vmul.f32 %v11600_v28, %v11600_v28  ;;  %v2535_v21 = vsel %vm2249_vm1, %v2460_v35, 0.0 }
 0x522   :  { %v2528_v37 = vadd.f32 %v2527_v53, %v2526_v39  ;;  %v11614_v53 = vsub.f32 %v11307_v44, %v11513_v61  ;;  %v2462_v34 = vmul.f32 %v11607_v27, %v11607_v27  ;;  %v2537_v12 = vsel %vm2249_vm1, %v2461_v8, 0.0 }
 0x524   :  { %v2530_v19 = vadd.f32 %v2529_v40, %v2528_v37  ;;  %v11621_v40 = vsub.f32 %v11321_v52, %v11513_v61  ;;  %v2463_v44 = vmul.f32 %v11614_v53, %v11614_v53  ;;  %v2539_v35 = vsel %vm2249_vm1, %v2462_v34, 0.0 }
 0x526   :  { %v2532_v39 = vadd.f32 %v2531_v54, %v2530_v19  ;;  %v11628_v54 = vsub.f32 %v11315_v42, %v11513_v61  ;;  %v2464_v52 = vmul.f32 %v11621_v40, %v11621_v40  ;;  %v2541_v8 = vsel %vm2249_vm1, %v2463_v44, 0.0 }
 0x528   :  { %v2534_v37 = vadd.f32 %v2533_v58, %v2532_v39  ;;  %v11635_v58 = vsub.f32 %v11329_v25, %v11513_v61  ;;  %v2465_v42 = vmul.f32 %v11628_v54, %v11628_v54  ;;  %v2543_v34 = vsel %vm2249_vm1, %v2464_v52, 0.0 }
 0x52a   :  { %v2536_v19 = vadd.f32 %v2535_v21, %v2534_v37  ;;  %v11642_v21 = vsub.f32 %v11323_v20, %v11513_v61  ;;  %v2466_v25 = vmul.f32 %v11635_v58, %v11635_v58  ;;  %v2545_v44 = vsel %vm2249_vm1, %v2465_v42, 0.0 }
 0x52c   :  { %v2538_v39 = vadd.f32 %v2537_v12, %v2536_v19  ;;  %v11649_v12 = vsub.f32 %v11337_v60, %v11513_v61  ;;  %v2467_v20 = vmul.f32 %v11642_v21, %v11642_v21  ;;  %v2547_v52 = vsel %vm2249_vm1, %v2466_v25, 0.0 }
 0x52e   :  { %v2540_v37 = vadd.f32 %v2539_v35, %v2538_v39  ;;  %v11656_v35 = vsub.f32 %v11331_v10, %v11513_v61  ;;  %v2468_v60 = vmul.f32 %v11649_v12, %v11649_v12  ;;  %v2549_v42 = vsel %vm2249_vm1, %v2467_v20, 0.0 }
 0x530   :  { %v2542_v19 = vadd.f32 %v2541_v8, %v2540_v37  ;;  %v11663_v8 = vsub.f32 %v11345_v38, %v11513_v61  ;;  %v2469_v10 = vmul.f32 %v11656_v35, %v11656_v35  ;;  %v2551_v25 = vsel %vm2249_vm1, %v2468_v60, 0.0 }
 0x532   :  { %v2544_v39 = vadd.f32 %v2543_v34, %v2542_v19  ;;  %v11670_v34 = vsub.f32 %v11339_v36, %v11513_v61  ;;  %v2470_v38 = vmul.f32 %v11663_v8, %v11663_v8  ;;  %v2553_v20 = vsel %vm2249_vm1, %v2469_v10, 0.0 }
 0x534   :  { %v2546_v37 = vadd.f32 %v2545_v44, %v2544_v39  ;;  %v11677_v44 = vsub.f32 %v11353_v59, %v11513_v61  ;;  %v2471_v36 = vmul.f32 %v11670_v34, %v11670_v34  ;;  %v2555_v60 = vsel %vm2249_vm1, %v2470_v38, 0.0 }
 0x536   :  { %v2548_v19 = vadd.f32 %v2547_v52, %v2546_v37  ;;  %v11684_v52 = vsub.f32 %v11347_v47, %v11513_v61  ;;  %v2472_v59 = vmul.f32 %v11677_v44, %v11677_v44  ;;  %v2557_v10 = vsel %vm2249_vm1, %v2471_v36, 0.0 }
 0x538   :  { %v2550_v39 = vadd.f32 %v2549_v42, %v2548_v19  ;;  %v11691_v42 = vsub.f32 %v11361_v14, %v11513_v61  ;;  %v2473_v47 = vmul.f32 %v11684_v52, %v11684_v52  ;;  %v2559_v38 = vsel %vm2249_vm1, %v2472_v59, 0.0 }
 0x53a   :  { %v2552_v37 = vadd.f32 %v2551_v25, %v2550_v39  ;;  %v11698_v25 = vsub.f32 %v11355_v63, %v11513_v61  ;;  %v2474_v14 = vmul.f32 %v11691_v42, %v11691_v42  ;;  %v2561_v36 = vsel %vm2249_vm1, %v2473_v47, 0.0 }
 0x53c   :  { %v2554_v19 = vadd.f32 %v2553_v20, %v2552_v37  ;;  %v11705_v20 = vsub.f32 %v11371_v11, %v11513_v61  ;;  %v2475_v63 = vmul.f32 %v11698_v25, %v11698_v25  ;;  %v2563_v59 = vsel %vm2249_vm1, %v2474_v14, 0.0 }
 0x53e   :  { %v2556_v39 = vadd.f32 %v2555_v60, %v2554_v19  ;;  %v11712_v60 = vsub.f32 %v11367_v41, %v11513_v61  ;;  %v2476_v11 = vmul.f32 %v11705_v20, %v11705_v20  ;;  %v2565_v47 = vsel %vm2249_vm1, %v2475_v63, 0.0 }
 0x540   :  { %v2558_v37 = vadd.f32 %v2557_v10, %v2556_v39  ;;  %v11719_v10 = vsub.f32 %v11381_v62, %v11513_v61  ;;  %v2477_v41 = vmul.f32 %v11712_v60, %v11712_v60  ;;  %v2567_v14 = vsel %vm2249_vm1, %v2476_v11, 0.0 }
 0x542   :  { %v2560_v19 = vadd.f32 %v2559_v38, %v2558_v37  ;;  %v11726_v38 = vsub.f32 %v11377_v18, %v11513_v61  ;;  %v2478_v62 = vmul.f32 %v11719_v10, %v11719_v10  ;;  %v2569_v63 = vsel %vm2249_vm1, %v2477_v41, 0.0 }
 0x544   :  { %v2562_v39 = vadd.f32 %v2561_v36, %v2560_v19  ;;  %v11733_v36 = vsub.f32 %v11385_v2, %v11513_v61  ;;  %v2479_v18 = vmul.f32 %v11726_v38, %v11726_v38  ;;  %v2571_v11 = vsel %vm2249_vm1, %v2478_v62, 0.0 }
 0x546   :  { %v2564_v37 = vadd.f32 %v2563_v59, %v2562_v39  ;;  %v11740_v59 = vsub.f32 %v11375_v30, %v11513_v61  ;;  %v2480_v2 = vmul.f32 %v11733_v36, %v11733_v36  ;;  %v2573_v41 = vsel %vm2249_vm1, %v2479_v18, 0.0 }
 0x548   :  { %v2566_v19 = vadd.f32 %v2565_v47, %v2564_v37  ;;  %v11747_v47 = vsub.f32 %v11395_v32, %v11513_v61  ;;  %v2481_v30 = vmul.f32 %v11740_v59, %v11740_v59  ;;  %v2575_v62 = vsel %vm2249_vm1, %v2480_v2, 0.0 }
 0x54a   :  { %v2568_v39 = vadd.f32 %v2567_v14, %v2566_v19  ;;  %v11754_v14 = vsub.f32 %v11391_v22, %v11513_v61  ;;  %v2482_v32 = vmul.f32 %v11747_v47, %v11747_v47  ;;  %v2577_v18 = vsel %vm2249_vm1, %v2481_v30, 0.0 }
 0x54c   :  { %v2570_v37 = vadd.f32 %v2569_v63, %v2568_v39  ;;  %v11761_v63 = vsub.f32 %v11403_v55, %v11513_v61  ;;  %v2483_v22 = vmul.f32 %v11754_v14, %v11754_v14  ;;  %v2579_v2 = vsel %vm2249_vm1, %v2482_v32, 0.0 }
 0x54e   :  { %v2572_v19 = vadd.f32 %v2571_v11, %v2570_v37  ;;  %v11768_v11 = vsub.f32 %v11399_v31, %v11513_v61  ;;  %v2484_v55 = vmul.f32 %v11761_v63, %v11761_v63  ;;  %v2581_v30 = vsel %vm2249_vm1, %v2483_v22, 0.0 }
 0x550   :  { %v2574_v39 = vadd.f32 %v2573_v41, %v2572_v19  ;;  %v11775_v41 = vsub.f32 %v11411_v0, %v11513_v61  ;;  %v2485_v31 = vmul.f32 %v11768_v11, %v11768_v11  ;;  %v2583_v32 = vsel %vm2249_vm1, %v2484_v55, 0.0 }
 0x552   :  { %v2576_v37 = vadd.f32 %v2575_v62, %v2574_v39  ;;  %v11782_v62 = vsub.f32 %v11407_v26, %v11513_v61  ;;  %v2486_v0 = vmul.f32 %v11775_v41, %v11775_v41  ;;  %v2585_v22 = vsel %vm2249_vm1, %v2485_v31, 0.0 }
 0x554   :  { %v2578_v19 = vadd.f32 %v2577_v18, %v2576_v37  ;;  %v11789_v18 = vsub.f32 %v11419_v51, %v11513_v61  ;;  %v2487_v26 = vmul.f32 %v11782_v62, %v11782_v62  ;;  %v2587_v55 = vsel %vm2249_vm1, %v2486_v0, 0.0 }
 0x556   :  { %v2580_v39 = vadd.f32 %v2579_v2, %v2578_v19  ;;  %v11796_v2 = vsub.f32 %v11415_v56, %v11513_v61  ;;  %v2488_v51 = vmul.f32 %v11789_v18, %v11789_v18  ;;  %v2589_v31 = vsel %vm2249_vm1, %v2487_v26, 0.0 }
 0x558   :  { %v2582_v37 = vadd.f32 %v2581_v30, %v2580_v39  ;;  %v11803_v30 = vsub.f32 %v11427_v29, %v11513_v61  ;;  %v2489_v56 = vmul.f32 %v11796_v2, %v11796_v2  ;;  %v2591_v0 = vsel %vm2249_vm1, %v2488_v51, 0.0 }
 0x55a   :  { %v2584_v19 = vadd.f32 %v2583_v32, %v2582_v37  ;;  %v11810_v32 = vsub.f32 %v11423_v23, %v11513_v61  ;;  %v11821_v29 = vmul.f32 %v11803_v30, %v11803_v30  ;;  %v2593_v26 = vsel %vm2249_vm1, %v2489_v56, 0.0 }
 0x55b   :  { %v11965_v56 = vsub.f32 %v11443_v49, %v11513_v61 }
 0x55c   :  { %v2586_v39 = vadd.f32 %v2585_v22, %v2584_v19  ;;  %16732 = vst [vmem:[#allocation62_spill] sm:$0xff] %v11810_v32  ;;  %v11817_v22 = vsub.f32 %v11435_v5, %v11513_v61  ;;  %v11830_v23 = vmul.f32 %v11810_v32, %v11810_v32  ;;  %v16739_v5 = vld [vmem:[#allocation155_spill] sm:$0xff] }
 0x55d   :  { %16736 = vst [vmem:[#allocation22_spill] sm:$0xff] %v11965_v56  ;;  %v11982_v6 = vsub.f32 %v16739_v5, %v11513_v61 }
 0x55e   :  { %v2588_v37 = vadd.f32 %v2587_v55, %v2586_v39  ;;  %16733 = vst [vmem:[#allocation148_spill] sm:$0xff] %v11817_v22  ;;  %v11826_v55 = vsub.f32 %v11431_v24, %v11513_v61  ;;  %v2492_v51 = vmul.f32 %v11817_v22, %v11817_v22 }
 0x55f   :  { %16740 = vst [vmem:[#allocation112_spill] sm:$0xff] %v11982_v6 }
 0x560   :  { %v2590_v19 = vadd.f32 %v2589_v31, %v2588_v37  ;;  %16734 = vst [vmem:[#allocation87_spill] sm:$0xff] %v11826_v55  ;;  %v16735_v31 = vmov 0.0   ;;  %v2493_v24 = vmul.f32 %v11826_v55, %v11826_v55 }
 0x561   :  { %2858 = vst.msk [vmem:[#allocation3 + $0x10] sm:$0xff] %vm2855_vm0, %v16735_v31  ;;  %2859 = vst.msk [vmem:[#allocation3 + $0x18] sm:$0xff] %vm2855_vm0, %v16735_v31 }
 0x562   :  { %v2592_v39 = vadd.f32 %v2591_v0, %v2590_v19  ;;  %2856 = vst.msk [vmem:[#allocation3] sm:$0xff] %vm2855_vm0, %v16735_v31  ;;  %2857 = vst.msk [vmem:[#allocation3 + $0x8] sm:$0xff] %vm2855_vm0, %v16735_v31  ;;  %v2595_v19 = vsel %vm2249_vm1, %v11821_v29, 0.0  ;;  %v2494_v29 = vmul.f32 %v11965_v56, %v11965_v56  ;;  %v2496_v56 = vmul.f32 %v11982_v6, %v11982_v6 }
 0x563   :  { %2860 = vst.msk [vmem:[#allocation3 + $0x20] sm:$0xff] %vm2855_vm0, %v16735_v31  ;;  %2861 = vst.msk [vmem:[#allocation3 + $0x28] sm:$0xff] %vm2855_vm0, %v16735_v31 }
 0x564   :  { %v11833_v37 = vadd.f32 %v2593_v26, %v2592_v39  ;;  %2862 = vst.msk [vmem:[#allocation3 + $0x30] sm:$0xff] %vm2855_vm0, %v16735_v31  ;;  %2863 = vst.msk [vmem:[#allocation3 + $0x38] sm:$0xff] %vm2855_vm0, %v16735_v31  ;;  %v16737_v39 = vld [vmem:[#allocation133_spill] sm:$0xff] }
 0x565   :  { %2864 = vst.msk [vmem:[#allocation3 + $0x40] sm:$0xff] %vm2855_vm0, %v16735_v31  ;;  %2865 = vst.msk [vmem:[#allocation3 + $0x48] sm:$0xff] %vm2855_vm0, %v16735_v31  ;;  %v11974_v26 = vsub.f32 %v16737_v39, %v11513_v61  ;;  %v16741_v39 = vld [vmem:[#allocation6_spill] sm:$0xff] }
 0x566   :  { %2866 = vst.msk [vmem:[#allocation3 + $0x50] sm:$0xff] %vm2855_vm0, %v16735_v31  ;;  %2867 = vst.msk [vmem:[#allocation3 + $0x58] sm:$0xff] %vm2855_vm0, %v16735_v31  ;;  %v2596_v0 = vadd.f32 %v2595_v19, %v11833_v37  ;;  %v2599_v37 = vsel %vm2249_vm1, %v2492_v51, 0.0  ;;  %v11989_v13 = vsub.f32 %v16741_v39, %v11513_v61  ;;  %v2603_v51 = vsel %vm2249_vm1, %v2494_v29, 0.0 }
 0x567   :  { %2868 = vst.msk [vmem:[#allocation3 + $0x60] sm:$0xff] %vm2855_vm0, %v16735_v31  ;;  %2869 = vst.msk [vmem:[#allocation3 + $0x68] sm:$0xff] %vm2855_vm0, %v16735_v31  ;;  %v2495_v55 = vmul.f32 %v11974_v26, %v11974_v26  ;;  %v2607_v29 = vsel %vm2249_vm1, %v2496_v56, 0.0 }
 0x568   :  { %2870 = vst.msk [vmem:[#allocation3 + $0x70] sm:$0xff] %vm2855_vm0, %v16735_v31  ;;  %2871 = vst.msk [vmem:[#allocation3 + $0x78] sm:$0xff] %vm2855_vm0, %v16735_v31 }
 0x569   :  { %2872 = vst.msk [vmem:[#allocation3 + $0x80] sm:$0xff] %vm2855_vm0, %v16735_v31  ;;  %2873 = vst.msk [vmem:[#allocation3 + $0x88] sm:$0xff] %vm2855_vm0, %v16735_v31 }
 0x56a   :  { %2874 = vst.msk [vmem:[#allocation3 + $0x90] sm:$0xff] %vm2855_vm0, %v16735_v31  ;;  %2875 = vst.msk [vmem:[#allocation3 + $0x98] sm:$0xff] %vm2855_vm0, %v16735_v31 }
 0x56b   :  { %2876 = vst.msk [vmem:[#allocation3 + $0xa0] sm:$0xff] %vm2855_vm0, %v16735_v31  ;;  %2877 = vst.msk [vmem:[#allocation3 + $0xa8] sm:$0xff] %vm2855_vm0, %v16735_v31 }
 0x56c   :  { %2878 = vst.msk [vmem:[#allocation3 + $0xb0] sm:$0xff] %vm2855_vm0, %v16735_v31  ;;  %2879 = vst.msk [vmem:[#allocation3 + $0xb8] sm:$0xff] %vm2855_vm0, %v16735_v31 }
 0x56d   :  { %2880 = vst.msk [vmem:[#allocation3 + $0xc0] sm:$0xff] %vm2855_vm0, %v16735_v31  ;;  %2881 = vst.msk [vmem:[#allocation3 + $0xc8] sm:$0xff] %vm2855_vm0, %v16735_v31 }
 0x56e   :  { %2882 = vst.msk [vmem:[#allocation3 + $0xd0] sm:$0xff] %vm2855_vm0, %v16735_v31  ;;  %2883 = vst.msk [vmem:[#allocation3 + $0xd8] sm:$0xff] %vm2855_vm0, %v16735_v31 }
 0x56f   :  { %2884 = vst.msk [vmem:[#allocation3 + $0xe0] sm:$0xff] %vm2855_vm0, %v16735_v31  ;;  %2885 = vst.msk [vmem:[#allocation3 + $0xe8] sm:$0xff] %vm2855_vm0, %v16735_v31 }
 0x570   :  { %2886 = vst.msk [vmem:[#allocation3 + $0xf0] sm:$0xff] %vm2855_vm0, %v16735_v31  ;;  %2887 = vst.msk [vmem:[#allocation3 + $0xf8] sm:$0xff] %vm2855_vm0, %v16735_v31 }
 0x571   :  { %2888 = vst.msk [vmem:[#allocation3 + $0x100] sm:$0xff] %vm2855_vm0, %v16735_v31  ;;  %2889 = vst.msk [vmem:[#allocation3 + $0x108] sm:$0xff] %vm2855_vm0, %v16735_v31 }
 0x572   :  { %2890 = vst.msk [vmem:[#allocation3 + $0x110] sm:$0xff] %vm2855_vm0, %v16735_v31  ;;  %2891 = vst.msk [vmem:[#allocation3 + $0x118] sm:$0xff] %vm2855_vm0, %v16735_v31 }
 0x573   :  { %2892 = vst.msk [vmem:[#allocation3 + $0x120] sm:$0xff] %vm2855_vm0, %v16735_v31  ;;  %2893 = vst.msk [vmem:[#allocation3 + $0x128] sm:$0xff] %vm2855_vm0, %v16735_v31 }
 0x574   :  { %2894 = vst.msk [vmem:[#allocation3 + $0x130] sm:$0xff] %vm2855_vm0, %v16735_v31  ;;  %2895 = vst.msk [vmem:[#allocation3 + $0x138] sm:$0xff] %vm2855_vm0, %v16735_v31 }
 0x575   :  { %2896 = vst.msk [vmem:[#allocation3 + $0x140] sm:$0xff] %vm2855_vm0, %v16735_v31  ;;  %2897 = vst.msk [vmem:[#allocation3 + $0x148] sm:$0xff] %vm2855_vm0, %v16735_v31 }
 0x576   :  { %2898 = vst.msk [vmem:[#allocation3 + $0x150] sm:$0xff] %vm2855_vm0, %v16735_v31  ;;  %2899 = vst.msk [vmem:[#allocation3 + $0x158] sm:$0xff] %vm2855_vm0, %v16735_v31 }
 0x577   :  { %2900 = vst.msk [vmem:[#allocation3 + $0x160] sm:$0xff] %vm2855_vm0, %v16735_v31  ;;  %2901 = vst.msk [vmem:[#allocation3 + $0x168] sm:$0xff] %vm2855_vm0, %v16735_v31 }
 0x578   :  { %2902 = vst.msk [vmem:[#allocation3 + $0x170] sm:$0xff] %vm2855_vm0, %v16735_v31  ;;  %2903 = vst.msk [vmem:[#allocation3 + $0x178] sm:$0xff] %vm2855_vm0, %v16735_v31 }
 0x579   :  { %2904 = vst.msk [vmem:[#allocation3 + $0x180] sm:$0xff] %vm2855_vm0, %v16735_v31  ;;  %2905 = vst.msk [vmem:[#allocation3 + $0x188] sm:$0xff] %vm2855_vm0, %v16735_v31 }
 0x57a   :  { %2906 = vst.msk [vmem:[#allocation3 + $0x190] sm:$0xff] %vm2855_vm0, %v16735_v31  ;;  %2907 = vst.msk [vmem:[#allocation3 + $0x198] sm:$0xff] %vm2855_vm0, %v16735_v31 }
 0x57b   :  { %2908 = vst.msk [vmem:[#allocation3 + $0x1a0] sm:$0xff] %vm2855_vm0, %v16735_v31  ;;  %2909 = vst.msk [vmem:[#allocation3 + $0x1a8] sm:$0xff] %vm2855_vm0, %v16735_v31 }
 0x57c   :  { %2910 = vst.msk [vmem:[#allocation3 + $0x1b0] sm:$0xff] %vm2855_vm0, %v16735_v31  ;;  %2911 = vst.msk [vmem:[#allocation3 + $0x1b8] sm:$0xff] %vm2855_vm0, %v16735_v31 }
 0x57d   :  { %2912 = vst.msk [vmem:[#allocation3 + $0x1c0] sm:$0xff] %vm2855_vm0, %v16735_v31  ;;  %2913 = vst.msk [vmem:[#allocation3 + $0x1c8] sm:$0xff] %vm2855_vm0, %v16735_v31 }
 0x57e   :  { %2914 = vst.msk [vmem:[#allocation3 + $0x1d0] sm:$0xff] %vm2855_vm0, %v16735_v31  ;;  %2915 = vst.msk [vmem:[#allocation3 + $0x1d8] sm:$0xff] %vm2855_vm0, %v16735_v31 }
 0x57f   :  { %2916 = vst.msk [vmem:[#allocation3 + $0x1e0] sm:$0xff] %vm2855_vm0, %v16735_v31  ;;  %2917 = vst.msk [vmem:[#allocation3 + $0x1e8] sm:$0xff] %vm2855_vm0, %v16735_v31 }
 0x580   :  { %2918 = vst.msk [vmem:[#allocation3 + $0x1f0] sm:$0xff] %vm2855_vm0, %v16735_v31  ;;  %2919 = vst.msk [vmem:[#allocation3 + $0x1f8] sm:$0xff] %vm2855_vm0, %v16735_v31  ;;  %v2597_v31 = vsel %vm2249_vm1, %v11830_v23, 0.0  ;;  %v2601_v23 = vsel %vm2249_vm1, %v2493_v24, 0.0  ;;  %v2605_v24 = vsel %vm2249_vm1, %v2495_v55, 0.0 }
 0x581   :  { %16738 = vst [vmem:[#allocation149_spill] sm:$0xff] %v11974_v26  ;;  %v2598_v49 = vadd.f32 %v2597_v31, %v2596_v0  ;;  %16742 = vst [vmem:[#allocation51_spill] sm:$0xff] %v11989_v13  ;;  %v16743_v31 = vld [vmem:[#allocation50_spill] sm:$0xff]  ;;  %v2497_v26 = vmul.f32 %v11989_v13, %v11989_v13 }
 0x582   :  { %v11996_v5 = vsub.f32 %v16743_v31, %v11513_v61 }
 0x583   :  { %v2600_v19 = vadd.f32 %v2599_v37, %v2598_v49  ;;  %v16745_v37 = vld [vmem:[#allocation105_spill] sm:$0xff]  ;;  %v2609_v55 = vsel %vm2249_vm1, %v2497_v26, 0.0 }
 0x584   :  { %16744 = vst [vmem:[#allocation135_spill] sm:$0xff] %v11996_v5  ;;  %v12003_v39 = vsub.f32 %v16745_v37, %v11513_v61  ;;  %v2498_v6 = vmul.f32 %v11996_v5, %v11996_v5 }
 0x585   :  { %v2602_v0 = vadd.f32 %v2601_v23, %v2600_v19  ;;  %v16747_v23 = vld [vmem:[#allocation144_spill] sm:$0xff] }
 0x586   :  { %16746 = vst [vmem:[#allocation80_spill] sm:$0xff] %v12003_v39  ;;  %v12010_v31 = vsub.f32 %v16747_v23, %v11513_v61  ;;  %v2499_v13 = vmul.f32 %v12003_v39, %v12003_v39  ;;  %v2611_v56 = vsel %vm2249_vm1, %v2498_v6, 0.0 }
 0x587   :  { %v2604_v49 = vadd.f32 %v2603_v51, %v2602_v0  ;;  %v16749_v51 = vld [vmem:[#allocation54_spill] sm:$0xff] }
 0x588   :  { %16748 = vst [vmem:[#allocation8_spill] sm:$0xff] %v12010_v31  ;;  %v12017_v37 = vsub.f32 %v16749_v51, %v11513_v61  ;;  %v2500_v5 = vmul.f32 %v12010_v31, %v12010_v31  ;;  %v2613_v26 = vsel %vm2249_vm1, %v2499_v13, 0.0 }
 0x589   :  { %v2606_v19 = vadd.f32 %v2605_v24, %v2604_v49  ;;  %v16751_v24 = vld [vmem:[#allocation21_spill] sm:$0xff] }
 0x58a   :  { %16750 = vst [vmem:[#allocation157_spill] sm:$0xff] %v12017_v37  ;;  %v12024_v23 = vsub.f32 %v16751_v24, %v11513_v61  ;;  %v2501_v39 = vmul.f32 %v12017_v37, %v12017_v37  ;;  %v2615_v6 = vsel %vm2249_vm1, %v2500_v5, 0.0 }
 0x58b   :  { %v2608_v0 = vadd.f32 %v2607_v29, %v2606_v19  ;;  %v16753_v29 = vld [vmem:[#allocation85_spill] sm:$0xff] }
 0x58c   :  { %16752 = vst [vmem:[#allocation109_spill] sm:$0xff] %v12024_v23  ;;  %v12031_v51 = vsub.f32 %v16753_v29, %v11513_v61  ;;  %v2502_v31 = vmul.f32 %v12024_v23, %v12024_v23  ;;  %v2617_v13 = vsel %vm2249_vm1, %v2501_v39, 0.0 }
 0x58d   :  { %v2610_v49 = vadd.f32 %v2609_v55, %v2608_v0  ;;  %v16755_v55 = vld [vmem:[#allocation49_spill] sm:$0xff] }
 0x58e   :  { %16754 = vst [vmem:[#allocation66_spill] sm:$0xff] %v12031_v51  ;;  %v12038_v24 = vsub.f32 %v16755_v55, %v11513_v61  ;;  %v2503_v37 = vmul.f32 %v12031_v51, %v12031_v51  ;;  %v2619_v5 = vsel %vm2249_vm1, %v2502_v31, 0.0 }
 0x58f   :  { %v2612_v19 = vadd.f32 %v2611_v56, %v2610_v49  ;;  %v16757_v56 = vld [vmem:[#allocation110_spill] sm:$0xff] }
 0x590   :  { %16756 = vst [vmem:[#allocation68_spill] sm:$0xff] %v12038_v24  ;;  %v12045_v29 = vsub.f32 %v16757_v56, %v11513_v61  ;;  %v2504_v23 = vmul.f32 %v12038_v24, %v12038_v24  ;;  %v2621_v39 = vsel %vm2249_vm1, %v2503_v37, 0.0 }
 0x591   :  { %v2614_v0 = vadd.f32 %v2613_v26, %v2612_v19  ;;  %v16759_v26 = vld [vmem:[#allocation78_spill] sm:$0xff] }
 0x592   :  { %16758 = vst [vmem:[#allocation150_spill] sm:$0xff] %v12045_v29  ;;  %v12052_v55 = vsub.f32 %v16759_v26, %v11513_v61  ;;  %v2505_v51 = vmul.f32 %v12045_v29, %v12045_v29  ;;  %v2623_v31 = vsel %vm2249_vm1, %v2504_v23, 0.0 }
 0x593   :  { %v2616_v49 = vadd.f32 %v2615_v6, %v2614_v0  ;;  %v16761_v6 = vld [vmem:[#allocation134_spill] sm:$0xff] }
 0x594   :  { %16760 = vst [vmem:[#allocation89_spill] sm:$0xff] %v12052_v55  ;;  %v12059_v56 = vsub.f32 %v16761_v6, %v11513_v61  ;;  %v2506_v24 = vmul.f32 %v12052_v55, %v12052_v55  ;;  %v2625_v37 = vsel %vm2249_vm1, %v2505_v51, 0.0 }
 0x595   :  { %v2618_v19 = vadd.f32 %v2617_v13, %v2616_v49  ;;  %v16763_v13 = vld [vmem:[#allocation156_spill] sm:$0xff] }
 0x596   :  { %16762 = vst [vmem:[#allocation23_spill] sm:$0xff] %v12059_v56  ;;  %v12066_v26 = vsub.f32 %v16763_v13, %v11513_v61  ;;  %v2507_v29 = vmul.f32 %v12059_v56, %v12059_v56  ;;  %v2627_v55 = vsel %vm2249_vm1, %v2506_v24, 0.0 }
 0x597   :  { %v2620_v0 = vadd.f32 %v2619_v5, %v2618_v19  ;;  %v16765_v5 = vld [vmem:[#allocation7_spill] sm:$0xff] }
 0x598   :  { %16764 = vst [vmem:[#allocation151_spill] sm:$0xff] %v12066_v26  ;;  %v12073_v6 = vsub.f32 %v16765_v5, %v11513_v61  ;;  %v2508_v13 = vmul.f32 %v12066_v26, %v12066_v26  ;;  %v2629_v5 = vsel %vm2249_vm1, %v2507_v29, 0.0 }
 0x599   :  { %v2622_v49 = vadd.f32 %v2621_v39, %v2620_v0  ;;  %v2446_v39 = vsub.f32 %v11505_v50, %v11513_v61 }
 0x59a   :  { %16766 = vst [vmem:[#allocation114_spill] sm:$0xff] %v12073_v6 }
 0x59b   :  { %v2624_v19 = vadd.f32 %v2623_v31, %v2622_v49  ;;  %v12085_v49 = vsub.f32 %v11503_v15, %v11513_v61  ;;  %v2509_v31 = vmul.f32 %v12073_v6, %v12073_v6 }
 0x59d   :  { %v2626_v0 = vadd.f32 %v2625_v37, %v2624_v19  ;;  %16767 = vst [vmem:[#allocation53_spill] sm:$0xff] %v12085_v49  ;;  %v2510_v19 = vmul.f32 %v2446_v39, %v2446_v39  ;;  %v2631_v37 = vsel %vm2249_vm1, %v2508_v13, 0.0  ;;  %v2511_v26 = vmul.f32 %v12085_v49, %v12085_v49 }
 0x59e   :  { %v2633_v24 = vsel %vm2249_vm1, %v2509_v31, 0.0 }
 0x59f   :  { %v2628_v23 = vadd.f32 %v2627_v55, %v2626_v0  ;;  %v2635_v0 = vsel %vm2249_vm1, %v2510_v19, 0.0  ;;  %v2637_v15 = vsel %vm2249_vm1, %v2511_v26, 0.0 }
 0x5a1   :  { %v2630_v51 = vadd.f32 %v2629_v5, %v2628_v23 }
 0x5a3   :  { %v2632_v50 = vadd.f32 %v2631_v37, %v2630_v51  ;;  %v2651_v37 = vlaneseq }
 0x5a5   :  { %v2634_v55 = vadd.f32 %v2633_v24, %v2632_v50  ;;  %v12096_v49 = vshrl.u32 %v2651_v37, 7  ;;  %v2646_v50 = vld [vmem:[%s15925_s2] sm:$0x1]  ;;  %s8883_s2 = smov 64  }
 0x5a7   :  { %v2636_v61 = vadd.f32 %v2635_v0, %v2634_v55  ;;  %16768 = vst [vmem:[#allocation137_spill] sm:$0xff] %v12096_v49  ;;  %v16207_v31 = vsub.s32 0, %v12096_v49  ;;  %v16786_v49 = vld [vmem:[#allocation66_spill] sm:$0xff] }
 0x5a9   :  { %v2638_v56 = vadd.f32 %v2637_v15, %v2636_v61  ;;  %v16770_v61 = vld [vmem:[#allocation62_spill] sm:$0xff] }
 0x5ab   :  { %v2639_v6 = vrot.slane %v2638_v56, 4 }
 0x5ad   :  { %v2640_v22 = vadd.f32 %v2639_v6, %v2638_v56 }
 0x5af   :  { %v2641_v29 = vrot.slane %v2640_v22, 2 }
 0x5b1   :  { %v2642_v5 = vadd.f32 %v2641_v29, %v2640_v22  ;;  %v16771_v29 = vld [vmem:[#allocation148_spill] sm:$0xff] }
 0x5b3   :  { %v2643_v23 = vrot.slane %v2642_v5, 1 }
 0x5b5   :  { %v2644_v32 = vadd.f32 %v2643_v23, %v2642_v5  ;;  %v16772_v5 = vld [vmem:[#allocation87_spill] sm:$0xff]  ;;  %v16773_v23 = vld [vmem:[#allocation22_spill] sm:$0xff] }
 0x5b7   :  { %v2645_v13 = vmul.f32 0.001953125, %v2644_v32  ;;  %v12109_v32 = vld [vmem:[%s15926_s3] ss:$0 sm:$0xff] }
 0x5b9   :  { %v2647_v51 = vadd.f32 1e-05, %v2645_v13  ;;  %v16774_v13 = vld [vmem:[#allocation149_spill] sm:$0xff] }
 0x5bb   :  { %8866 = vrsqrt.f32 %v2647_v51  ;;  %v16775_v51 = vld [vmem:[#allocation112_spill] sm:$0xff] }
 0x5c8   :  { %v8867_v26 = vpop.eup %8866 }
 0x5c9   :  { %v2649_v15 = vmul.f32 %v8867_v26, %v2646_v50  ;;  %v16776_v50 = vld [vmem:[#allocation51_spill] sm:$0xff] }
 0x5cb   :  { %v12104_v56 = vrot.slane %v2649_v15, %v16207_v31  ;;  %v16777_v15 = vld [vmem:[#allocation135_spill] sm:$0xff]  ;;  %v16784_v31 = vld [vmem:[#allocation109_spill] sm:$0xff] }
 0x5cd   :  { %v2718_v22 = vmul.f32 %v12104_v56, %v2446_v39  ;;  %v12114_v6 = vmul.f32 %v12104_v56, %v11517_v17  ;;  %v12118_v19 = vmul.f32 %v12104_v56, %v11521_v4  ;;  %v12122_v24 = vmul.f32 %v12104_v56, %v11525_v1 }
 0x5ce   :  { %v12126_v55 = vmul.f32 %v12104_v56, %v11529_v57  ;;  %v12133_v39 = vmul.f32 %v12104_v56, %v11537_v3  ;;  %v12137_v17 = vmul.f32 %v12104_v56, %v11543_v33  ;;  %v12141_v4 = vmul.f32 %v12104_v56, %v11551_v7 }
 0x5cf   :  { %v12129_v0 = vadd.f32 %v12109_v32, %v2718_v22  ;;  %v12145_v1 = vmul.f32 %v12104_v56, %v11558_v43  ;;  %v12149_v57 = vmul.f32 %v12104_v56, %v11565_v16  ;;  %v12153_v3 = vmul.f32 %v12104_v56, %v11572_v9 }
 0x5d0   :  { %v12157_v33 = vmul.f32 %v12104_v56, %v11579_v46  ;;  %v12161_v7 = vmul.f32 %v12104_v56, %v11586_v48  ;;  %v12165_v43 = vmul.f32 %v12104_v56, %v11593_v45  ;;  %v12169_v16 = vmul.f32 %v12104_v56, %v11600_v28 }
 0x5d1   :  { %16769 = vst [vmem:[#allocation82_spill] sm:$0xff] %v12129_v0  ;;  %v12173_v9 = vmul.f32 %v12104_v56, %v11607_v27  ;;  %v12177_v46 = vmul.f32 %v12104_v56, %v11614_v53  ;;  %v12181_v48 = vmul.f32 %v12104_v56, %v11621_v40  ;;  %v12185_v45 = vmul.f32 %v12104_v56, %v11628_v54  ;;  %v16788_v0 = vld [vmem:[#allocation68_spill] sm:$0xff] }
 0x5d2   :  { %v12189_v28 = vmul.f32 %v12104_v56, %v11635_v58  ;;  %v12193_v27 = vmul.f32 %v12104_v56, %v11642_v21  ;;  %v12197_v53 = vmul.f32 %v12104_v56, %v11649_v12  ;;  %v12201_v40 = vmul.f32 %v12104_v56, %v11656_v35 }
 0x5d3   :  { %v12205_v54 = vmul.f32 %v12104_v56, %v11663_v8  ;;  %v12209_v58 = vmul.f32 %v12104_v56, %v11670_v34  ;;  %v12213_v21 = vmul.f32 %v12104_v56, %v11677_v44  ;;  %v12217_v12 = vmul.f32 %v12104_v56, %v11684_v52 }
 0x5d4   :  { %v12221_v35 = vmul.f32 %v12104_v56, %v11691_v42  ;;  %v12225_v8 = vmul.f32 %v12104_v56, %v11698_v25  ;;  %v12229_v34 = vmul.f32 %v12104_v56, %v11705_v20  ;;  %v12233_v44 = vmul.f32 %v12104_v56, %v11712_v60 }
 0x5d5   :  { %v12237_v52 = vmul.f32 %v12104_v56, %v11719_v10  ;;  %v12241_v42 = vmul.f32 %v12104_v56, %v11726_v38  ;;  %v12245_v25 = vmul.f32 %v12104_v56, %v11733_v36  ;;  %v12249_v20 = vmul.f32 %v12104_v56, %v11740_v59 }
 0x5d6   :  { %v12253_v60 = vmul.f32 %v12104_v56, %v11747_v47  ;;  %v12257_v10 = vmul.f32 %v12104_v56, %v11754_v14  ;;  %v12261_v38 = vmul.f32 %v12104_v56, %v11761_v63  ;;  %v12265_v36 = vmul.f32 %v12104_v56, %v11768_v11 }
 0x5d7   :  { %v12269_v59 = vmul.f32 %v12104_v56, %v11775_v41  ;;  %v12273_v47 = vmul.f32 %v12104_v56, %v11782_v62  ;;  %v12277_v14 = vmul.f32 %v12104_v56, %v11789_v18  ;;  %v12281_v63 = vmul.f32 %v12104_v56, %v11796_v2 }
 0x5d8   :  { %v12285_v11 = vmul.f32 %v12104_v56, %v11803_v30  ;;  %v12289_v41 = vmul.f32 %v12104_v56, %v16770_v61  ;;  %v12293_v62 = vmul.f32 %v12104_v56, %v16771_v29  ;;  %v12297_v18 = vmul.f32 %v12104_v56, %v16772_v5  ;;  %v16778_v61 = vld [vmem:[#allocation80_spill] sm:$0xff] }
 0x5d9   :  { %v12301_v2 = vmul.f32 %v12104_v56, %v16773_v23  ;;  %v12305_v30 = vmul.f32 %v12104_v56, %v16774_v13  ;;  %v12309_v37 = vmul.f32 %v12104_v56, %v16775_v51  ;;  %v12313_v26 = vmul.f32 %v12104_v56, %v16776_v50  ;;  %v16780_v5 = vld [vmem:[#allocation8_spill] sm:$0xff]  ;;  %v16782_v13 = vld [vmem:[#allocation157_spill] sm:$0xff] }
 0x5da   :  { %v12317_v22 = vmul.f32 %v12104_v56, %v16777_v15  ;;  %v12321_v29 = vmul.f32 %v12104_v56, %v16778_v61  ;;  %v12325_v23 = vmul.f32 %v12104_v56, %v16780_v5  ;;  %v12329_v51 = vmul.f32 %v12104_v56, %v16782_v13 }
 0x5db   :  { %v12333_v50 = vmul.f32 %v12104_v56, %v16784_v31  ;;  %v12337_v15 = vmul.f32 %v12104_v56, %v16786_v49  ;;  %v12341_v61 = vmul.f32 %v12104_v56, %v16788_v0 }
 0x5dc   :  { %16779 = vst [vmem:[#allocation9_spill] sm:$0xff] %v12321_v29  ;;  %16781 = vst [vmem:[#allocation159_spill] sm:$0xff] %v12325_v23  ;;  %v16790_v29 = vld [vmem:[#allocation150_spill] sm:$0xff]  ;;  %v16792_v23 = vld [vmem:[#allocation89_spill] sm:$0xff] }
 0x5dd   :  { %16783 = vst [vmem:[#allocation111_spill] sm:$0xff] %v12329_v51  ;;  %16785 = vst [vmem:[#allocation19_spill] sm:$0xff] %v12333_v50  ;;  %v12345_v5 = vmul.f32 %v12104_v56, %v16790_v29  ;;  %v12349_v13 = vmul.f32 %v12104_v56, %v16792_v23  ;;  %v16793_v51 = vld [vmem:[#allocation23_spill] sm:$0xff]  ;;  %v2728_v29 = vadd.f32 %v12109_v32, %v12118_v19 }
 0x5de   :  { %16787 = vst [vmem:[#allocation20_spill] sm:$0xff] %v12337_v15  ;;  %16789 = vst [vmem:[#allocation154_spill] sm:$0xff] %v12341_v61  ;;  %v12353_v31 = vmul.f32 %v12104_v56, %v16793_v51  ;;  %v16794_v50 = vld [vmem:[#allocation151_spill] sm:$0xff]  ;;  %v16796_v15 = vld [vmem:[#allocation114_spill] sm:$0xff]  ;;  %v12371_v23 = vadd.f32 %v12109_v32, %v12114_v6  ;;  %v2729_v51 = vadd.f32 %v12109_v32, %v12122_v24 }
 0x5df   :  { %16791 = vst [vmem:[#allocation91_spill] sm:$0xff] %v12345_v5  ;;  %v12357_v49 = vmul.f32 %v12104_v56, %v16794_v50  ;;  %v12361_v0 = vmul.f32 %v12104_v56, %v16796_v15  ;;  %v16797_v5 = vld [vmem:[#allocation53_spill] sm:$0xff]  ;;  %v2730_v50 = vadd.f32 %v12109_v32, %v12126_v55  ;;  %v2731_v15 = vadd.f32 %v12109_v32, %v12133_v39 }
 0x5e0   :  { %v12367_v61 = vmul.f32 %v12104_v56, %v16797_v5  ;;  %v2732_v19 = vadd.f32 %v12109_v32, %v12137_v17  ;;  %v2733_v56 = vadd.f32 %v12109_v32, %v12141_v4  ;;  %v2734_v6 = vadd.f32 %v12109_v32, %v12145_v1 }
 0x5e1   :  { %16795 = vst [vmem:[#allocation25_spill] sm:$0xff] %v12357_v49  ;;  %v12377_v49 = vmax.f32 %v2728_v29, 0.0  ;;  %v2735_v24 = vadd.f32 %v12109_v32, %v12149_v57  ;;  %v2736_v55 = vadd.f32 %v12109_v32, %v12153_v3  ;;  %v2737_v5 = vadd.f32 %v12109_v32, %v12157_v33 }
 0x5e2   :  { %v12397_v39 = vadd.f32 %v12109_v32, %v12161_v7  ;;  %v12401_v17 = vadd.f32 %v12109_v32, %v12165_v43  ;;  %v12405_v4 = vadd.f32 %v12109_v32, %v12169_v16  ;;  %v12409_v1 = vadd.f32 %v12109_v32, %v12173_v9 }
 0x5e3   :  { %16798 = vst [vmem:[#allocation116_spill] sm:$0xff] %v12377_v49  ;;  %3044 = vrot.lane.b32.xlu0 %v12377_v49, %s8872_s0  ;;  %2923 = vst.msk [vmem:[#allocation3 + $0x19] sm:$0x7f] %vm2922_vm2, %v12377_v49  ;;  %v12415_v57 = vadd.f32 %v12109_v32, %v12177_v46  ;;  %v12419_v3 = vadd.f32 %v12109_v32, %v12181_v48  ;;  %v12423_v33 = vadd.f32 %v12109_v32, %v12185_v45 }
 0x5e4   :  { %v12427_v7 = vadd.f32 %v12109_v32, %v12189_v28  ;;  %v12431_v43 = vadd.f32 %v12109_v32, %v12193_v27  ;;  %v12435_v16 = vadd.f32 %v12109_v32, %v12197_v53  ;;  %v12439_v9 = vadd.f32 %v12109_v32, %v12201_v40  ;;  %v16804_v29 = vld [vmem:[#allocation111_spill] sm:$0xff] }
 0x5e5   :  { %v12443_v46 = vadd.f32 %v12109_v32, %v12205_v54  ;;  %v12447_v48 = vadd.f32 %v12109_v32, %v12209_v58  ;;  %v12451_v45 = vadd.f32 %v12109_v32, %v12213_v21  ;;  %v12455_v28 = vadd.f32 %v12109_v32, %v12217_v12  ;;  %v16808_v49 = vld [vmem:[#allocation154_spill] sm:$0xff] }
 0x5e6   :  { %v12459_v27 = vadd.f32 %v12109_v32, %v12221_v35  ;;  %v12463_v53 = vadd.f32 %v12109_v32, %v12225_v8  ;;  %v12467_v40 = vadd.f32 %v12109_v32, %v12229_v34  ;;  %v12471_v54 = vadd.f32 %v12109_v32, %v12237_v52 }
 0x5e7   :  { %v12475_v58 = vadd.f32 %v12109_v32, %v12241_v42  ;;  %v12479_v21 = vadd.f32 %v12109_v32, %v12233_v44  ;;  %v12483_v12 = vadd.f32 %v12109_v32, %v12245_v25  ;;  %v12487_v35 = vadd.f32 %v12109_v32, %v12249_v20 }
 0x5e8   :  { %16799 = vst [vmem:[#allocation55_spill] sm:$0xff] %v12471_v54  ;;  %v12491_v8 = vadd.f32 %v12109_v32, %v12253_v60  ;;  %v12495_v34 = vadd.f32 %v12109_v32, %v12257_v10  ;;  %v12499_v44 = vadd.f32 %v12109_v32, %v12261_v38  ;;  %v12503_v52 = vadd.f32 %v12109_v32, %v12265_v36  ;;  %v16805_v54 = vld [vmem:[#allocation19_spill] sm:$0xff] }
 0x5e9   :  { %16800 = vst [vmem:[#allocation138_spill] sm:$0xff] %v12475_v58  ;;  %v12507_v42 = vadd.f32 %v12109_v32, %v12269_v59  ;;  %v12511_v25 = vadd.f32 %v12109_v32, %v12273_v47  ;;  %v12515_v20 = vadd.f32 %v12109_v32, %v12277_v14  ;;  %v12519_v60 = vadd.f32 %v12109_v32, %v12281_v63  ;;  %v16806_v58 = vld [vmem:[#allocation20_spill] sm:$0xff] }
 0x5ea   :  { %v12523_v10 = vadd.f32 %v12109_v32, %v12285_v11  ;;  %v12527_v38 = vadd.f32 %v12109_v32, %v12289_v41  ;;  %v12531_v36 = vadd.f32 %v12109_v32, %v12293_v62  ;;  %v12535_v59 = vadd.f32 %v12109_v32, %v12297_v18  ;;  %v16801_v62 = vld [vmem:[#allocation9_spill] sm:$0xff] }
 0x5eb   :  { %v12539_v47 = vadd.f32 %v12109_v32, %v12301_v2  ;;  %v12543_v14 = vadd.f32 %v12109_v32, %v12305_v30  ;;  %v12547_v63 = vadd.f32 %v12109_v32, %v12309_v37  ;;  %v12551_v11 = vadd.f32 %v12109_v32, %v12313_v26  ;;  %v16803_v2 = vld [vmem:[#allocation159_spill] sm:$0xff] }
 0x5ec   :  { %v12555_v41 = vadd.f32 %v12109_v32, %v12317_v22  ;;  %v12559_v18 = vadd.f32 %v12109_v32, %v16801_v62  ;;  %v12563_v30 = vadd.f32 %v12109_v32, %v16803_v2  ;;  %v12567_v37 = vadd.f32 %v12109_v32, %v16804_v29 }
 0x5ed   :  { %v12571_v26 = vadd.f32 %v12109_v32, %v16805_v54  ;;  %v12575_v22 = vadd.f32 %v12109_v32, %v16806_v58  ;;  %v12579_v62 = vadd.f32 %v12109_v32, %v16808_v49  ;;  %v12587_v29 = vadd.f32 %v12109_v32, %v12349_v13 }
 0x5ee   :  { %16802 = vst [vmem:[#allocation84_spill] sm:$0xff] %v12559_v18  ;;  %v16810_v18 = vld [vmem:[#allocation91_spill] sm:$0xff]  ;;  %v12591_v54 = vadd.f32 %v12109_v32, %v12353_v31  ;;  %v12595_v58 = vadd.f32 %v12109_v32, %v12367_v61  ;;  %v12600_v49 = vmax.f32 %v2729_v51, 0.0  ;;  %v12608_v13 = vmax.f32 %v2733_v56, 0.0 }
 0x5ef   :  { %16807 = vst [vmem:[#allocation10_spill] sm:$0xff] %v12575_v22  ;;  %16809 = vst [vmem:[#allocation160_spill] sm:$0xff] %v12579_v62  ;;  %v12583_v2 = vadd.f32 %v12109_v32, %v16810_v18  ;;  %v12598_v22 = vmax.f32 %v12371_v23, 0.0  ;;  %v12602_v62 = vmax.f32 %v2730_v50, 0.0  ;;  %v12604_v18 = vmax.f32 %v2731_v15, 0.0 }
 0x5f0   :  { %16812 = vst [vmem:[#allocation24_spill] sm:$0xff] %v12595_v58  ;;  %v12612_v31 = vmax.f32 %v2734_v6, 0.0  ;;  %v12614_v61 = vmax.f32 %v2735_v24, 0.0  ;;  %v12616_v58 = vmax.f32 %v2736_v55, 0.0  ;;  %v12618_v23 = vmax.f32 %v2737_v5, 0.0  ;;  %2924 = vst.msk [vmem:[#allocation3 + $0x21] sm:$0xff] %vm2249_vm1, %v12600_v49 }
 0x5f1   :  { %16811 = vst [vmem:[#allocation113_spill] sm:$0xff] %v12583_v2  ;;  %v12606_v2 = vmax.f32 %v2732_v19, 0.0  ;;  %3042 = vrot.lane.b32.xlu1 %v12598_v22, %s8872_s0  ;;  %2921 = vst.msk [vmem:[#allocation3 + $0x11] sm:$0xff] %vm2249_vm1, %v12598_v22  ;;  %v12625_v51 = vmax.f32 %v12397_v39, 0.0  ;;  %v12628_v50 = vmax.f32 %v12401_v17, 0.0  ;;  %v12631_v15 = vmax.f32 %v12405_v4, 0.0  ;;  %3048 = vrot.lane.b32.xlu0 %v12602_v62, %s8872_s0 }
 0x5f2   :  { %v12634_v19 = vmax.f32 %v12409_v1, 0.0  ;;  %2925 = vst.msk [vmem:[#allocation3 + $0x29] sm:$0x7f] %vm2922_vm2, %v12602_v62  ;;  %v12647_v56 = vmax.f32 %v12415_v57, 0.0  ;;  %v12650_v6 = vmax.f32 %v12419_v3, 0.0  ;;  %v12653_v24 = vmax.f32 %v12423_v33, 0.0 }
 0x5f3   :  { %2926 = vst.msk [vmem:[#allocation3 + $0x31] sm:$0xff] %vm2249_vm1, %v12604_v18  ;;  %2928 = vst.msk [vmem:[#allocation3 + $0x41] sm:$0xff] %vm2249_vm1, %v12608_v13  ;;  %v12656_v55 = vmax.f32 %v12427_v7, 0.0  ;;  %v12667_v5 = vmax.f32 %v12431_v43, 0.0  ;;  %v12670_v39 = vmax.f32 %v12435_v16, 0.0  ;;  %v12673_v17 = vmax.f32 %v12439_v9, 0.0 }
 0x5f4   :  { %2927 = vst.msk [vmem:[#allocation3 + $0x39] sm:$0x7f] %vm2922_vm2, %v12606_v2  ;;  %2929 = vst.msk [vmem:[#allocation3 + $0x49] sm:$0x7f] %vm2922_vm2, %v12612_v31  ;;  %v12676_v4 = vmax.f32 %v12443_v46, 0.0  ;;  %v12687_v1 = vmax.f32 %v12447_v48, 0.0  ;;  %v2788_v48 = vadd.f32 %v12109_v32, %v12361_v0 }
 0x5f5   :  { %2930 = vst.msk [vmem:[#allocation3 + $0x51] sm:$0xff] %vm2249_vm1, %v12614_v61  ;;  %2932 = vst.msk [vmem:[#allocation3 + $0x61] sm:$0xff] %vm2249_vm1, %v12618_v23  ;;  %v12690_v57 = vmax.f32 %v12451_v45, 0.0  ;;  %v12693_v3 = vmax.f32 %v12455_v28, 0.0  ;;  %v12696_v33 = vmax.f32 %v12459_v27, 0.0  ;;  %3046 = vrot.lane.b32.xlu1 %v12600_v49, %s8872_s0  ;;  %v16813_v7 = vld [vmem:[#allocation25_spill] sm:$0xff]  ;;  %3052 = vrot.lane.b32.xlu0 %v12606_v2, %s8872_s0 }
 0x5f6   :  { %2931 = vst.msk [vmem:[#allocation3 + $0x59] sm:$0x7f] %vm2922_vm2, %v12616_v58  ;;  %2933 = vst.msk [vmem:[#allocation3 + $0x69] sm:$0x7f] %vm2922_vm2, %v12625_v51  ;;  %v12710_v43 = vadd.f32 %v12109_v32, %v16813_v7  ;;  %v12713_v16 = vmax.f32 %v12463_v53, 0.0  ;;  %v12716_v9 = vmax.f32 %v12467_v40, 0.0 }
 0x5f7   :  { %2934 = vst.msk [vmem:[#allocation3 + $0x71] sm:$0xff] %vm2249_vm1, %v12628_v50  ;;  %2936 = vst.msk [vmem:[#allocation3 + $0x81] sm:$0xff] %vm2249_vm1, %v12634_v19  ;;  %v12719_v46 = vmax.f32 %v12479_v21, 0.0  ;;  %v12734_v45 = vmax.f32 %v12483_v12, 0.0  ;;  %v12737_v28 = vmax.f32 %v12487_v35, 0.0  ;;  %v12740_v27 = vmax.f32 %v12491_v8, 0.0 }
 0x5f8   :  { %2935 = vst.msk [vmem:[#allocation3 + $0x79] sm:$0x7f] %vm2922_vm2, %v12631_v15  ;;  %2937 = vst.msk [vmem:[#allocation3 + $0x89] sm:$0x7f] %vm2922_vm2, %v12647_v56  ;;  %v12751_v32 = vmax.f32 %v12495_v34, 0.0  ;;  %v12754_v0 = vmax.f32 %v12499_v44, 0.0 }
 0x5f9   :  { %2938 = vst.msk [vmem:[#allocation3 + $0x91] sm:$0xff] %vm2249_vm1, %v12650_v6  ;;  %2940 = vst.msk [vmem:[#allocation3 + $0xa1] sm:$0xff] %vm2249_vm1, %v12656_v55  ;;  %v12757_v53 = vmax.f32 %v12503_v52, 0.0  ;;  %v12760_v40 = vmax.f32 %v12507_v42, 0.0  ;;  %v12769_v21 = vmax.f32 %v12511_v25, 0.0  ;;  %v12772_v12 = vmax.f32 %v12515_v20, 0.0  ;;  %3050 = vrot.lane.b32.xlu1 %v12604_v18, %s8872_s0  ;;  %3056 = vrot.lane.b32.xlu0 %v12612_v31, %s8872_s0 }
 0x5fa   :  { %2939 = vst.msk [vmem:[#allocation3 + $0x99] sm:$0x7f] %vm2922_vm2, %v12653_v24  ;;  %2941 = vst.msk [vmem:[#allocation3 + $0xa9] sm:$0x7f] %vm2922_vm2, %v12667_v5  ;;  %v12775_v35 = vmax.f32 %v12519_v60, 0.0  ;;  %v12778_v8 = vmax.f32 %v12523_v10, 0.0 }
 0x5fb   :  { %2942 = vst.msk [vmem:[#allocation3 + $0xb1] sm:$0xff] %vm2249_vm1, %v12670_v39  ;;  %2944 = vst.msk [vmem:[#allocation3 + $0xc1] sm:$0xff] %vm2249_vm1, %v12676_v4  ;;  %v12789_v34 = vmax.f32 %v12527_v38, 0.0  ;;  %v12792_v44 = vmax.f32 %v12531_v36, 0.0  ;;  %v12795_v52 = vmax.f32 %v12535_v59, 0.0  ;;  %v12798_v42 = vmax.f32 %v12539_v47, 0.0 }
 0x5fc   :  { %2943 = vst.msk [vmem:[#allocation3 + $0xb9] sm:$0x7f] %vm2922_vm2, %v12673_v17  ;;  %2945 = vst.msk [vmem:[#allocation3 + $0xc9] sm:$0x7f] %vm2922_vm2, %v12687_v1  ;;  %v12811_v25 = vmax.f32 %v12543_v14, 0.0  ;;  %v12814_v20 = vmax.f32 %v12547_v63, 0.0 }
 0x5fd   :  { %2946 = vst.msk [vmem:[#allocation3 + $0xd1] sm:$0xff] %vm2249_vm1, %v12690_v57  ;;  %2948 = vst.msk [vmem:[#allocation3 + $0xe1] sm:$0xff] %vm2249_vm1, %v12696_v33  ;;  %v12817_v60 = vmax.f32 %v12551_v11, 0.0  ;;  %v12820_v10 = vmax.f32 %v12555_v41, 0.0  ;;  %v16814_v38 = vld [vmem:[#allocation84_spill] sm:$0xff]  ;;  %v12834_v59 = vmax.f32 %v12563_v30, 0.0  ;;  %3054 = vrot.lane.b32.xlu1 %v12608_v13, %s8872_s0  ;;  %3060 = vrot.lane.b32.xlu0 %v12616_v58, %s8872_s0 }
 0x5fe   :  { %2947 = vst.msk [vmem:[#allocation3 + $0xd9] sm:$0x7f] %vm2922_vm2, %v12693_v3  ;;  %2949 = vst.msk [vmem:[#allocation3 + $0xe9] sm:$0x7f] %vm2922_vm2, %v12713_v16  ;;  %v12831_v36 = vmax.f32 %v16814_v38, 0.0  ;;  %v12837_v47 = vmax.f32 %v12567_v37, 0.0 }
 0x5ff   :  { %2950 = vst.msk [vmem:[#allocation3 + $0xf1] sm:$0xff] %vm2249_vm1, %v12716_v9  ;;  %2952 = vst.msk [vmem:[#allocation3 + $0x111] sm:$0xff] %vm2249_vm1, %v12734_v45  ;;  %v12840_v14 = vmax.f32 %v12571_v26, 0.0  ;;  %v16815_v63 = vld [vmem:[#allocation10_spill] sm:$0xff]  ;;  %v16816_v41 = vld [vmem:[#allocation160_spill] sm:$0xff]  ;;  %v12860_v7 = vmax.f32 %v12587_v29, 0.0 }
 0x600   :  { %2951 = vst.msk [vmem:[#allocation3 + $0xf9] sm:$0x7f] %vm2922_vm2, %v12719_v46  ;;  %2953 = vst.msk [vmem:[#allocation3 + $0x119] sm:$0x7f] %vm2922_vm2, %v12737_v28  ;;  %v12851_v11 = vmax.f32 %v16815_v63, 0.0  ;;  %v12854_v30 = vmax.f32 %v16816_v41, 0.0 }
 0x601   :  { %2954 = vst.msk [vmem:[#allocation3 + $0x121] sm:$0xff] %vm2249_vm1, %v12740_v27  ;;  %2956 = vst.msk [vmem:[#allocation3 + $0x131] sm:$0xff] %vm2249_vm1, %v12754_v0  ;;  %v16817_v37 = vld [vmem:[#allocation113_spill] sm:$0xff]  ;;  %v12873_v38 = vmax.f32 %v12591_v54, 0.0  ;;  %v12876_v29 = vmax.f32 %v12710_v43, 0.0  ;;  %v12878_v63 = vmax.f32 %v2788_v48, 0.0  ;;  %3058 = vrot.lane.b32.xlu1 %v12614_v61, %s8872_s0  ;;  %3064 = vrot.lane.b32.xlu0 %v12625_v51, %s8872_s0 }
 0x602   :  { %2955 = vst.msk [vmem:[#allocation3 + $0x129] sm:$0x7f] %vm2922_vm2, %v12751_v32  ;;  %2957 = vst.msk [vmem:[#allocation3 + $0x139] sm:$0x7f] %vm2922_vm2, %v12757_v53  ;;  %v12857_v26 = vmax.f32 %v16817_v37, 0.0  ;;  %v16822_v41 = vld [vmem:[#allocation116_spill] sm:$0xff] }
 0x603   :  { %2958 = vst.msk [vmem:[#allocation3 + $0x141] sm:$0xff] %vm2249_vm1, %v12760_v40  ;;  %2960 = vst.msk [vmem:[#allocation3 + $0x151] sm:$0xff] %vm2249_vm1, %v12772_v12 }
 0x604   :  { %2959 = vst.msk [vmem:[#allocation3 + $0x149] sm:$0x7f] %vm2922_vm2, %v12769_v21  ;;  %2961 = vst.msk [vmem:[#allocation3 + $0x159] sm:$0x7f] %vm2922_vm2, %v12775_v35 }
 0x605   :  { %2962 = vst.msk [vmem:[#allocation3 + $0x161] sm:$0xff] %vm2249_vm1, %v12778_v8  ;;  %2964 = vst.msk [vmem:[#allocation3 + $0x171] sm:$0xff] %vm2249_vm1, %v12792_v44  ;;  %3062 = vrot.lane.b32.xlu1 %v12618_v23, %s8872_s0  ;;  %3068 = vrot.lane.b32.xlu0 %v12631_v15, %s8872_s0 }
 0x606   :  { %2963 = vst.msk [vmem:[#allocation3 + $0x169] sm:$0x7f] %vm2922_vm2, %v12789_v34  ;;  %2965 = vst.msk [vmem:[#allocation3 + $0x179] sm:$0x7f] %vm2922_vm2, %v12795_v52 }
 0x607   :  { %2966 = vst.msk [vmem:[#allocation3 + $0x181] sm:$0xff] %vm2249_vm1, %v12798_v42  ;;  %16818 = vst [vmem:[#allocation28_spill] sm:$0xff] %v12860_v7 }
 0x608   :  { %2967 = vst.msk [vmem:[#allocation3 + $0x189] sm:$0x7f] %vm2922_vm2, %v12811_v25  ;;  %2969 = vst.msk [vmem:[#allocation3 + $0x199] sm:$0x7f] %vm2922_vm2, %v12817_v60 }
 0x609   :  { %2968 = vst.msk [vmem:[#allocation3 + $0x191] sm:$0xff] %vm2249_vm1, %v12814_v20  ;;  %2970 = vst.msk [vmem:[#allocation3 + $0x1a1] sm:$0xff] %vm2249_vm1, %v12820_v10  ;;  %3066 = vrot.lane.b32.xlu1 %v12628_v50, %s8872_s0  ;;  %3072 = vrot.lane.b32.xlu0 %v12647_v56, %s8872_s0 }
 0x60a   :  { %16819 = vst [vmem:[#allocation158_spill] sm:$0xff] %v12873_v38  ;;  %16820 = vst [vmem:[#allocation93_spill] sm:$0xff] %v12876_v29 }
 0x60b   :  { %16821 = vst [vmem:[#allocation27_spill] sm:$0xff] %v12878_v63  ;;  %2971 = vst.msk [vmem:[#allocation3 + $0x1a9] sm:$0x7f] %vm2922_vm2, %v12831_v36 }
 0x60c   :  { %2972 = vst.msk [vmem:[#allocation3 + $0x1b1] sm:$0xff] %vm2249_vm1, %v12834_v59  ;;  %2974 = vst.msk [vmem:[#allocation3 + $0x1c1] sm:$0xff] %vm2249_vm1, %v12840_v14 }
 0x60d   :  { %2973 = vst.msk [vmem:[#allocation3 + $0x1b9] sm:$0x7f] %vm2922_vm2, %v12837_v47  ;;  %2975 = vst.msk [vmem:[#allocation3 + $0x1c9] sm:$0x7f] %vm2922_vm2, %v12851_v11  ;;  %3070 = vrot.lane.b32.xlu1 %v12634_v19, %s8872_s0  ;;  %3076 = vrot.lane.b32.xlu0 %v12653_v24, %s8872_s0 }
 0x60e   :  { %2976 = vst.msk [vmem:[#allocation3 + $0x1d1] sm:$0xff] %vm2249_vm1, %v12854_v30  ;;  %2978 = vst.msk [vmem:[#allocation3 + $0x1e1] sm:$0xff] %vm2249_vm1, %v12860_v7 }
 0x60f   :  { %2977 = vst.msk [vmem:[#allocation3 + $0x1d9] sm:$0x7f] %vm2922_vm2, %v12857_v26  ;;  %2979 = vst.msk [vmem:[#allocation3 + $0x1e9] sm:$0x7f] %vm2922_vm2, %v12873_v38 }
 0x610   :  { %2980 = vst.msk [vmem:[#allocation3 + $0x1f1] sm:$0xff] %vm2249_vm1, %v12876_v29 }
 0x611   :  { %2981 = vst.msk [vmem:[#allocation3 + $0x1f9] sm:$0x7f] %vm2922_vm2, %v12878_v63  ;;  %3074 = vrot.lane.b32.xlu1 %v12650_v6, %s8872_s0  ;;  %3080 = vrot.lane.b32.xlu0 %v12667_v5, %s8872_s0 }
 0x615   :  { %3078 = vrot.lane.b32.xlu1 %v12656_v55, %s8872_s0  ;;  %3084 = vrot.lane.b32.xlu0 %v12673_v17, %s8872_s0 }
 0x619   :  { %3082 = vrot.lane.b32.xlu1 %v12670_v39, %s8872_s0  ;;  %3088 = vrot.lane.b32.xlu0 %v12687_v1, %s8872_s0 }
 0x61d   :  { %3086 = vrot.lane.b32.xlu1 %v12676_v4, %s8872_s0  ;;  %3092 = vrot.lane.b32.xlu0 %v12693_v3, %s8872_s0 }
 0x621   :  { %3090 = vrot.lane.b32.xlu1 %v12690_v57, %s8872_s0  ;;  %3096 = vrot.lane.b32.xlu0 %v12713_v16, %s8872_s0 }
 0x625   :  { %3094 = vrot.lane.b32.xlu1 %v12696_v33, %s8872_s0  ;;  %3100 = vrot.lane.b32.xlu0 %v12719_v46, %s8872_s0 }
 0x629   :  { %3098 = vrot.lane.b32.xlu1 %v12716_v9, %s8872_s0  ;;  %3104 = vrot.lane.b32.xlu0 %v12737_v28, %s8872_s0 }
 0x62d   :  { %3102 = vrot.lane.b32.xlu1 %v12734_v45, %s8872_s0  ;;  %3108 = vrot.lane.b32.xlu0 %v12751_v32, %s8872_s0 }
 0x631   :  { %3106 = vrot.lane.b32.xlu1 %v12740_v27, %s8872_s0  ;;  %3112 = vrot.lane.b32.xlu0 %v12757_v53, %s8872_s0 }
 0x635   :  { %3110 = vrot.lane.b32.xlu1 %v12754_v0, %s8872_s0  ;;  %3116 = vrot.lane.b32.xlu0 %v12769_v21, %s8872_s0 }
 0x639   :  { %3114 = vrot.lane.b32.xlu1 %v12760_v40, %s8872_s0  ;;  %3120 = vrot.lane.b32.xlu0 %v12775_v35, %s8872_s0 }
 0x63d   :  { %3118 = vrot.lane.b32.xlu1 %v12772_v12, %s8872_s0  ;;  %3124 = vrot.lane.b32.xlu0 %v12789_v34, %s8872_s0 }
 0x641   :  { %3122 = vrot.lane.b32.xlu1 %v12778_v8, %s8872_s0  ;;  %3128 = vrot.lane.b32.xlu0 %v12795_v52, %s8872_s0 }
 0x645   :  { %3126 = vrot.lane.b32.xlu1 %v12792_v44, %s8872_s0  ;;  %3132 = vrot.lane.b32.xlu0 %v12811_v25, %s8872_s0 }
 0x649   :  { %3130 = vrot.lane.b32.xlu1 %v12798_v42, %s8872_s0  ;;  %3136 = vrot.lane.b32.xlu0 %v12817_v60, %s8872_s0 }
 0x64d   :  { %3134 = vrot.lane.b32.xlu1 %v12814_v20, %s8872_s0  ;;  %3140 = vrot.lane.b32.xlu0 %v12831_v36, %s8872_s0 }
 0x651   :  { %3138 = vrot.lane.b32.xlu1 %v12820_v10, %s8872_s0  ;;  %3144 = vrot.lane.b32.xlu0 %v12837_v47, %s8872_s0 }
 0x655   :  { %3142 = vrot.lane.b32.xlu1 %v12834_v59, %s8872_s0  ;;  %v3045_v54 = vpop.permute.xlu0 %3044  ;;  %3148 = vrot.lane.b32.xlu0 %v12851_v11, %s8872_s0 }
 0x656   :  { %3224 = vst.msk [vmem:[#allocation3 + $0x18] sm:$0xff] %vm3222_vm3, %v3045_v54 }
 0x659   :  { %3146 = vrot.lane.b32.xlu1 %v12840_v14, %s8872_s0  ;;  %3152 = vrot.lane.b32.xlu0 %v12857_v26, %s8872_s0 }
 0x65d   :  { %3150 = vrot.lane.b32.xlu1 %v12854_v30, %s8872_s0  ;;  %3156 = vrot.lane.b32.xlu0 %v12873_v38, %s8872_s0 }
 0x661   :  { %3154 = vrot.lane.b32.xlu1 %v12860_v7, %s8872_s0  ;;  %3160 = vrot.lane.b32.xlu0 %v12878_v63, %s8872_s0 }
 0x663   :  { %v3043_v43 = vpop.permute.xlu1 %3042  ;;  %v3049_v48 = vpop.permute.xlu0 %3048 }
 0x664   :  { %3223 = vst.msk [vmem:[#allocation3 + $0x10] sm:$0xff] %vm3222_vm3, %v3043_v43  ;;  %3226 = vst.msk [vmem:[#allocation3 + $0x28] sm:$0xff] %vm3222_vm3, %v3049_v48 }
 0x665   :  { %3158 = vrot.lane.b32.xlu1 %v12876_v29, %s8872_s0  ;;  %3285 = vrot.lane.b32.xlu0 %v16822_v41, %s8874_s15 }
 0x667   :  { %v3047_v37 = vpop.permute.xlu1 %3046  ;;  %v3053_v54 = vpop.permute.xlu0 %3052 }
 0x668   :  { %3225 = vst.msk [vmem:[#allocation3 + $0x20] sm:$0xff] %vm3222_vm3, %v3047_v37  ;;  %3228 = vst.msk [vmem:[#allocation3 + $0x38] sm:$0xff] %vm3222_vm3, %v3053_v54 }
 0x669   :  { %3283 = vrot.lane.b32.xlu1 %v12598_v22, %s8874_s15  ;;  %3289 = vrot.lane.b32.xlu0 %v12602_v62, %s8874_s15 }
 0x66b   :  { %v3051_v43 = vpop.permute.xlu1 %3050  ;;  %v3057_v29 = vpop.permute.xlu0 %3056 }
 0x66c   :  { %3227 = vst.msk [vmem:[#allocation3 + $0x30] sm:$0xff] %vm3222_vm3, %v3051_v43  ;;  %3230 = vst.msk [vmem:[#allocation3 + $0x48] sm:$0xff] %vm3222_vm3, %v3057_v29 }
 0x66d   :  { %3287 = vrot.lane.b32.xlu1 %v12600_v49, %s8874_s15  ;;  %3293 = vrot.lane.b32.xlu0 %v12606_v2, %s8874_s15 }
 0x66f   :  { %v3055_v48 = vpop.permute.xlu1 %3054  ;;  %v3061_v37 = vpop.permute.xlu0 %3060 }
 0x670   :  { %3229 = vst.msk [vmem:[#allocation3 + $0x40] sm:$0xff] %vm3222_vm3, %v3055_v48  ;;  %3232 = vst.msk [vmem:[#allocation3 + $0x58] sm:$0xff] %vm3222_vm3, %v3061_v37 }
 0x671   :  { %3291 = vrot.lane.b32.xlu1 %v12604_v18, %s8874_s15  ;;  %3297 = vrot.lane.b32.xlu0 %v12612_v31, %s8874_s15 }
 0x673   :  { %v3059_v54 = vpop.permute.xlu1 %3058  ;;  %v3065_v43 = vpop.permute.xlu0 %3064 }
 0x674   :  { %3231 = vst.msk [vmem:[#allocation3 + $0x50] sm:$0xff] %vm3222_vm3, %v3059_v54  ;;  %3234 = vst.msk [vmem:[#allocation3 + $0x68] sm:$0xff] %vm3222_vm3, %v3065_v43 }
 0x675   :  { %3295 = vrot.lane.b32.xlu1 %v12608_v13, %s8874_s15  ;;  %3301 = vrot.lane.b32.xlu0 %v12616_v58, %s8874_s15 }
 0x677   :  { %v3063_v29 = vpop.permute.xlu1 %3062  ;;  %v3069_v48 = vpop.permute.xlu0 %3068 }
 0x678   :  { %3233 = vst.msk [vmem:[#allocation3 + $0x60] sm:$0xff] %vm3222_vm3, %v3063_v29  ;;  %3236 = vst.msk [vmem:[#allocation3 + $0x78] sm:$0xff] %vm3222_vm3, %v3069_v48 }
 0x679   :  { %3299 = vrot.lane.b32.xlu1 %v12614_v61, %s8874_s15  ;;  %3305 = vrot.lane.b32.xlu0 %v12625_v51, %s8874_s15 }
 0x67b   :  { %v3067_v37 = vpop.permute.xlu1 %3066  ;;  %v3073_v54 = vpop.permute.xlu0 %3072 }
 0x67c   :  { %3235 = vst.msk [vmem:[#allocation3 + $0x70] sm:$0xff] %vm3222_vm3, %v3067_v37  ;;  %3238 = vst.msk [vmem:[#allocation3 + $0x88] sm:$0xff] %vm3222_vm3, %v3073_v54 }
 0x67d   :  { %3303 = vrot.lane.b32.xlu1 %v12618_v23, %s8874_s15  ;;  %3309 = vrot.lane.b32.xlu0 %v12631_v15, %s8874_s15 }
 0x67f   :  { %v3071_v43 = vpop.permute.xlu1 %3070  ;;  %v3077_v29 = vpop.permute.xlu0 %3076 }
 0x680   :  { %3237 = vst.msk [vmem:[#allocation3 + $0x80] sm:$0xff] %vm3222_vm3, %v3071_v43  ;;  %3240 = vst.msk [vmem:[#allocation3 + $0x98] sm:$0xff] %vm3222_vm3, %v3077_v29 }
 0x681   :  { %3307 = vrot.lane.b32.xlu1 %v12628_v50, %s8874_s15  ;;  %3313 = vrot.lane.b32.xlu0 %v12647_v56, %s8874_s15 }
 0x683   :  { %v3075_v48 = vpop.permute.xlu1 %3074  ;;  %v3081_v37 = vpop.permute.xlu0 %3080 }
 0x684   :  { %3239 = vst.msk [vmem:[#allocation3 + $0x90] sm:$0xff] %vm3222_vm3, %v3075_v48  ;;  %3242 = vst.msk [vmem:[#allocation3 + $0xa8] sm:$0xff] %vm3222_vm3, %v3081_v37 }
 0x685   :  { %3311 = vrot.lane.b32.xlu1 %v12634_v19, %s8874_s15  ;;  %3317 = vrot.lane.b32.xlu0 %v12653_v24, %s8874_s15 }
 0x687   :  { %v3079_v54 = vpop.permute.xlu1 %3078  ;;  %v3085_v43 = vpop.permute.xlu0 %3084 }
 0x688   :  { %3241 = vst.msk [vmem:[#allocation3 + $0xa0] sm:$0xff] %vm3222_vm3, %v3079_v54  ;;  %3244 = vst.msk [vmem:[#allocation3 + $0xb8] sm:$0xff] %vm3222_vm3, %v3085_v43 }
 0x689   :  { %3315 = vrot.lane.b32.xlu1 %v12650_v6, %s8874_s15  ;;  %3321 = vrot.lane.b32.xlu0 %v12667_v5, %s8874_s15 }
 0x68b   :  { %v3083_v29 = vpop.permute.xlu1 %3082  ;;  %v3089_v48 = vpop.permute.xlu0 %3088 }
 0x68c   :  { %3243 = vst.msk [vmem:[#allocation3 + $0xb0] sm:$0xff] %vm3222_vm3, %v3083_v29  ;;  %3246 = vst.msk [vmem:[#allocation3 + $0xc8] sm:$0xff] %vm3222_vm3, %v3089_v48 }
 0x68d   :  { %3319 = vrot.lane.b32.xlu1 %v12656_v55, %s8874_s15  ;;  %3325 = vrot.lane.b32.xlu0 %v12673_v17, %s8874_s15 }
 0x68f   :  { %v3087_v37 = vpop.permute.xlu1 %3086  ;;  %v3093_v54 = vpop.permute.xlu0 %3092 }
 0x690   :  { %3245 = vst.msk [vmem:[#allocation3 + $0xc0] sm:$0xff] %vm3222_vm3, %v3087_v37  ;;  %3248 = vst.msk [vmem:[#allocation3 + $0xd8] sm:$0xff] %vm3222_vm3, %v3093_v54 }
 0x691   :  { %3323 = vrot.lane.b32.xlu1 %v12670_v39, %s8874_s15  ;;  %3329 = vrot.lane.b32.xlu0 %v12687_v1, %s8874_s15 }
 0x693   :  { %v3091_v43 = vpop.permute.xlu1 %3090  ;;  %v3097_v29 = vpop.permute.xlu0 %3096 }
 0x694   :  { %3247 = vst.msk [vmem:[#allocation3 + $0xd0] sm:$0xff] %vm3222_vm3, %v3091_v43  ;;  %3250 = vst.msk [vmem:[#allocation3 + $0xe8] sm:$0xff] %vm3222_vm3, %v3097_v29 }
 0x695   :  { %3327 = vrot.lane.b32.xlu1 %v12676_v4, %s8874_s15  ;;  %3333 = vrot.lane.b32.xlu0 %v12693_v3, %s8874_s15 }
 0x697   :  { %v3095_v48 = vpop.permute.xlu1 %3094  ;;  %v3101_v37 = vpop.permute.xlu0 %3100 }
 0x698   :  { %3249 = vst.msk [vmem:[#allocation3 + $0xe0] sm:$0xff] %vm3222_vm3, %v3095_v48  ;;  %3252 = vst.msk [vmem:[#allocation3 + $0xf8] sm:$0xff] %vm3222_vm3, %v3101_v37 }
 0x699   :  { %3331 = vrot.lane.b32.xlu1 %v12690_v57, %s8874_s15  ;;  %3337 = vrot.lane.b32.xlu0 %v12713_v16, %s8874_s15 }
 0x69b   :  { %v3099_v54 = vpop.permute.xlu1 %3098  ;;  %v3105_v43 = vpop.permute.xlu0 %3104 }
 0x69c   :  { %3251 = vst.msk [vmem:[#allocation3 + $0xf0] sm:$0xff] %vm3222_vm3, %v3099_v54  ;;  %3254 = vst.msk [vmem:[#allocation3 + $0x118] sm:$0xff] %vm3222_vm3, %v3105_v43 }
 0x69d   :  { %3335 = vrot.lane.b32.xlu1 %v12696_v33, %s8874_s15  ;;  %3341 = vrot.lane.b32.xlu0 %v12719_v46, %s8874_s15 }
 0x69f   :  { %v3103_v29 = vpop.permute.xlu1 %3102  ;;  %v3109_v48 = vpop.permute.xlu0 %3108 }
 0x6a0   :  { %3253 = vst.msk [vmem:[#allocation3 + $0x110] sm:$0xff] %vm3222_vm3, %v3103_v29  ;;  %3256 = vst.msk [vmem:[#allocation3 + $0x128] sm:$0xff] %vm3222_vm3, %v3109_v48 }
 0x6a1   :  { %3339 = vrot.lane.b32.xlu1 %v12716_v9, %s8874_s15  ;;  %3345 = vrot.lane.b32.xlu0 %v12737_v28, %s8874_s15 }
 0x6a3   :  { %v3107_v37 = vpop.permute.xlu1 %3106  ;;  %v3113_v54 = vpop.permute.xlu0 %3112 }
 0x6a4   :  { %3255 = vst.msk [vmem:[#allocation3 + $0x120] sm:$0xff] %vm3222_vm3, %v3107_v37  ;;  %3258 = vst.msk [vmem:[#allocation3 + $0x138] sm:$0xff] %vm3222_vm3, %v3113_v54 }
 0x6a5   :  { %3343 = vrot.lane.b32.xlu1 %v12734_v45, %s8874_s15  ;;  %3349 = vrot.lane.b32.xlu0 %v12751_v32, %s8874_s15 }
 0x6a7   :  { %v3111_v43 = vpop.permute.xlu1 %3110  ;;  %v3117_v29 = vpop.permute.xlu0 %3116 }
 0x6a8   :  { %3257 = vst.msk [vmem:[#allocation3 + $0x130] sm:$0xff] %vm3222_vm3, %v3111_v43  ;;  %3260 = vst.msk [vmem:[#allocation3 + $0x148] sm:$0xff] %vm3222_vm3, %v3117_v29 }
 0x6a9   :  { %3347 = vrot.lane.b32.xlu1 %v12740_v27, %s8874_s15  ;;  %3353 = vrot.lane.b32.xlu0 %v12757_v53, %s8874_s15 }
 0x6ab   :  { %v3115_v48 = vpop.permute.xlu1 %3114  ;;  %v3121_v37 = vpop.permute.xlu0 %3120 }
 0x6ac   :  { %3259 = vst.msk [vmem:[#allocation3 + $0x140] sm:$0xff] %vm3222_vm3, %v3115_v48  ;;  %3262 = vst.msk [vmem:[#allocation3 + $0x158] sm:$0xff] %vm3222_vm3, %v3121_v37 }
 0x6ad   :  { %3351 = vrot.lane.b32.xlu1 %v12754_v0, %s8874_s15  ;;  %3357 = vrot.lane.b32.xlu0 %v12769_v21, %s8874_s15 }
 0x6af   :  { %v3119_v54 = vpop.permute.xlu1 %3118  ;;  %v3125_v43 = vpop.permute.xlu0 %3124 }
 0x6b0   :  { %3261 = vst.msk [vmem:[#allocation3 + $0x150] sm:$0xff] %vm3222_vm3, %v3119_v54  ;;  %3264 = vst.msk [vmem:[#allocation3 + $0x168] sm:$0xff] %vm3222_vm3, %v3125_v43 }
 0x6b1   :  { %3355 = vrot.lane.b32.xlu1 %v12760_v40, %s8874_s15  ;;  %3361 = vrot.lane.b32.xlu0 %v12775_v35, %s8874_s15 }
 0x6b3   :  { %v3123_v29 = vpop.permute.xlu1 %3122  ;;  %v3129_v48 = vpop.permute.xlu0 %3128 }
 0x6b4   :  { %3263 = vst.msk [vmem:[#allocation3 + $0x160] sm:$0xff] %vm3222_vm3, %v3123_v29  ;;  %3266 = vst.msk [vmem:[#allocation3 + $0x178] sm:$0xff] %vm3222_vm3, %v3129_v48 }
 0x6b5   :  { %3359 = vrot.lane.b32.xlu1 %v12772_v12, %s8874_s15  ;;  %3365 = vrot.lane.b32.xlu0 %v12789_v34, %s8874_s15 }
 0x6b7   :  { %v3127_v37 = vpop.permute.xlu1 %3126  ;;  %v3133_v54 = vpop.permute.xlu0 %3132 }
 0x6b8   :  { %3265 = vst.msk [vmem:[#allocation3 + $0x170] sm:$0xff] %vm3222_vm3, %v3127_v37  ;;  %3268 = vst.msk [vmem:[#allocation3 + $0x188] sm:$0xff] %vm3222_vm3, %v3133_v54 }
 0x6b9   :  { %3363 = vrot.lane.b32.xlu1 %v12778_v8, %s8874_s15  ;;  %3369 = vrot.lane.b32.xlu0 %v12795_v52, %s8874_s15 }
 0x6bb   :  { %v3131_v43 = vpop.permute.xlu1 %3130  ;;  %v3137_v29 = vpop.permute.xlu0 %3136 }
 0x6bc   :  { %3267 = vst.msk [vmem:[#allocation3 + $0x180] sm:$0xff] %vm3222_vm3, %v3131_v43  ;;  %3270 = vst.msk [vmem:[#allocation3 + $0x198] sm:$0xff] %vm3222_vm3, %v3137_v29 }
 0x6bd   :  { %3367 = vrot.lane.b32.xlu1 %v12792_v44, %s8874_s15  ;;  %3373 = vrot.lane.b32.xlu0 %v12811_v25, %s8874_s15 }
 0x6bf   :  { %v3135_v48 = vpop.permute.xlu1 %3134  ;;  %v3141_v37 = vpop.permute.xlu0 %3140 }
 0x6c0   :  { %3269 = vst.msk [vmem:[#allocation3 + $0x190] sm:$0xff] %vm3222_vm3, %v3135_v48  ;;  %3272 = vst.msk [vmem:[#allocation3 + $0x1a8] sm:$0xff] %vm3222_vm3, %v3141_v37 }
 0x6c1   :  { %3371 = vrot.lane.b32.xlu1 %v12798_v42, %s8874_s15  ;;  %3377 = vrot.lane.b32.xlu0 %v12817_v60, %s8874_s15 }
 0x6c3   :  { %v3139_v54 = vpop.permute.xlu1 %3138  ;;  %v3145_v43 = vpop.permute.xlu0 %3144 }
 0x6c4   :  { %3271 = vst.msk [vmem:[#allocation3 + $0x1a0] sm:$0xff] %vm3222_vm3, %v3139_v54  ;;  %3274 = vst.msk [vmem:[#allocation3 + $0x1b8] sm:$0xff] %vm3222_vm3, %v3145_v43 }
 0x6c5   :  { %3375 = vrot.lane.b32.xlu1 %v12814_v20, %s8874_s15  ;;  %3381 = vrot.lane.b32.xlu0 %v12831_v36, %s8874_s15 }
 0x6c7   :  { %v3143_v29 = vpop.permute.xlu1 %3142  ;;  %v3149_v48 = vpop.permute.xlu0 %3148 }
 0x6c8   :  { %3273 = vst.msk [vmem:[#allocation3 + $0x1b0] sm:$0xff] %vm3222_vm3, %v3143_v29  ;;  %3276 = vst.msk [vmem:[#allocation3 + $0x1c8] sm:$0xff] %vm3222_vm3, %v3149_v48 }
 0x6c9   :  { %3379 = vrot.lane.b32.xlu1 %v12820_v10, %s8874_s15  ;;  %3385 = vrot.lane.b32.xlu0 %v12837_v47, %s8874_s15 }
 0x6cb   :  { %v3147_v37 = vpop.permute.xlu1 %3146  ;;  %v3153_v54 = vpop.permute.xlu0 %3152 }
 0x6cc   :  { %3275 = vst.msk [vmem:[#allocation3 + $0x1c0] sm:$0xff] %vm3222_vm3, %v3147_v37  ;;  %3278 = vst.msk [vmem:[#allocation3 + $0x1d8] sm:$0xff] %vm3222_vm3, %v3153_v54 }
 0x6cd   :  { %3383 = vrot.lane.b32.xlu1 %v12834_v59, %s8874_s15  ;;  %3389 = vrot.lane.b32.xlu0 %v12851_v11, %s8874_s15 }
 0x6cf   :  { %v3151_v43 = vpop.permute.xlu1 %3150  ;;  %v3157_v29 = vpop.permute.xlu0 %3156 }
 0x6d0   :  { %3277 = vst.msk [vmem:[#allocation3 + $0x1d0] sm:$0xff] %vm3222_vm3, %v3151_v43  ;;  %3280 = vst.msk [vmem:[#allocation3 + $0x1e8] sm:$0xff] %vm3222_vm3, %v3157_v29 }
 0x6d1   :  { %3387 = vrot.lane.b32.xlu1 %v12840_v14, %s8874_s15  ;;  %3393 = vrot.lane.b32.xlu0 %v12857_v26, %s8874_s15 }
 0x6d3   :  { %v3155_v48 = vpop.permute.xlu1 %3154  ;;  %v3161_v37 = vpop.permute.xlu0 %3160 }
 0x6d4   :  { %3279 = vst.msk [vmem:[#allocation3 + $0x1e0] sm:$0xff] %vm3222_vm3, %v3155_v48  ;;  %3282 = vst.msk [vmem:[#allocation3 + $0x1f8] sm:$0xff] %vm3222_vm3, %v3161_v37  ;;  %v16823_v37 = vld [vmem:[#allocation93_spill] sm:$0xff] }
 0x6d5   :  { %3391 = vrot.lane.b32.xlu1 %v12854_v30, %s8874_s15  ;;  %3397 = vrot.lane.b32.xlu0 %v12873_v38, %s8874_s15 }
 0x6d7   :  { %v3159_v54 = vpop.permute.xlu1 %3158  ;;  %v3286_v43 = vpop.permute.xlu0 %3285 }
 0x6d8   :  { %3281 = vst.msk [vmem:[#allocation3 + $0x1f0] sm:$0xff] %vm3222_vm3, %v3159_v54 }
 0x6d9   :  { %3395 = vrot.lane.b32.xlu1 %v12860_v7, %s8874_s15  ;;  %3466 = vst.msk [vmem:[#allocation3 + $0x17] sm:$0xff] %vm3465_vm4, %v3286_v43  ;;  %3401 = vrot.lane.b32.xlu0 %v12878_v63, %s8874_s15 }
 0x6db   :  { %v3284_v29 = vpop.permute.xlu1 %3283  ;;  %v3290_v48 = vpop.permute.xlu0 %3289 }
 0x6dc   :  { %3464 = vst.msk [vmem:[#allocation3 + $0xf] sm:$0xfe] %vm3463_vm5, %v3284_v29 }
 0x6dd   :  { %3399 = vrot.lane.b32.xlu1 %v16823_v37, %s8874_s15  ;;  %3468 = vst.msk [vmem:[#allocation3 + $0x27] sm:$0xff] %vm3465_vm4, %v3290_v48  ;;  %3531 = vrot.lane.b32.xlu0 %v16822_v41, %s8876_s17 }
 0x6df   :  { %v3288_v54 = vpop.permute.xlu1 %3287  ;;  %v3294_v43 = vpop.permute.xlu0 %3293 }
 0x6e0   :  { %3467 = vst.msk [vmem:[#allocation3 + $0x1f] sm:$0xfe] %vm3463_vm5, %v3288_v54 }
 0x6e1   :  { %3529 = vrot.lane.b32.xlu1 %v12598_v22, %s8876_s17  ;;  %3470 = vst.msk [vmem:[#allocation3 + $0x37] sm:$0xff] %vm3465_vm4, %v3294_v43  ;;  %3535 = vrot.lane.b32.xlu0 %v12602_v62, %s8876_s17 }
 0x6e3   :  { %v3292_v29 = vpop.permute.xlu1 %3291  ;;  %v3298_v37 = vpop.permute.xlu0 %3297 }
 0x6e4   :  { %3469 = vst.msk [vmem:[#allocation3 + $0x2f] sm:$0xfe] %vm3463_vm5, %v3292_v29 }
 0x6e5   :  { %3533 = vrot.lane.b32.xlu1 %v12600_v49, %s8876_s17  ;;  %3472 = vst.msk [vmem:[#allocation3 + $0x47] sm:$0xff] %vm3465_vm4, %v3298_v37  ;;  %3539 = vrot.lane.b32.xlu0 %v12606_v2, %s8876_s17 }
 0x6e7   :  { %v3296_v48 = vpop.permute.xlu1 %3295  ;;  %v3302_v54 = vpop.permute.xlu0 %3301 }
 0x6e8   :  { %3471 = vst.msk [vmem:[#allocation3 + $0x3f] sm:$0xfe] %vm3463_vm5, %v3296_v48 }
 0x6e9   :  { %3537 = vrot.lane.b32.xlu1 %v12604_v18, %s8876_s17  ;;  %3474 = vst.msk [vmem:[#allocation3 + $0x57] sm:$0xff] %vm3465_vm4, %v3302_v54  ;;  %3543 = vrot.lane.b32.xlu0 %v12612_v31, %s8876_s17 }
 0x6eb   :  { %v3300_v43 = vpop.permute.xlu1 %3299  ;;  %v3306_v29 = vpop.permute.xlu0 %3305 }
 0x6ec   :  { %3473 = vst.msk [vmem:[#allocation3 + $0x4f] sm:$0xfe] %vm3463_vm5, %v3300_v43 }
 0x6ed   :  { %3541 = vrot.lane.b32.xlu1 %v12608_v13, %s8876_s17  ;;  %3476 = vst.msk [vmem:[#allocation3 + $0x67] sm:$0xff] %vm3465_vm4, %v3306_v29  ;;  %3547 = vrot.lane.b32.xlu0 %v12616_v58, %s8876_s17 }
 0x6ef   :  { %v3304_v37 = vpop.permute.xlu1 %3303  ;;  %v3310_v48 = vpop.permute.xlu0 %3309 }
 0x6f0   :  { %3475 = vst.msk [vmem:[#allocation3 + $0x5f] sm:$0xfe] %vm3463_vm5, %v3304_v37 }
 0x6f1   :  { %3545 = vrot.lane.b32.xlu1 %v12614_v61, %s8876_s17  ;;  %3478 = vst.msk [vmem:[#allocation3 + $0x77] sm:$0xff] %vm3465_vm4, %v3310_v48  ;;  %3551 = vrot.lane.b32.xlu0 %v12625_v51, %s8876_s17 }
 0x6f3   :  { %v3308_v54 = vpop.permute.xlu1 %3307  ;;  %v3314_v43 = vpop.permute.xlu0 %3313 }
 0x6f4   :  { %3477 = vst.msk [vmem:[#allocation3 + $0x6f] sm:$0xfe] %vm3463_vm5, %v3308_v54 }
 0x6f5   :  { %3549 = vrot.lane.b32.xlu1 %v12618_v23, %s8876_s17  ;;  %3480 = vst.msk [vmem:[#allocation3 + $0x87] sm:$0xff] %vm3465_vm4, %v3314_v43  ;;  %3555 = vrot.lane.b32.xlu0 %v12631_v15, %s8876_s17 }
 0x6f7   :  { %v3312_v29 = vpop.permute.xlu1 %3311  ;;  %v3318_v37 = vpop.permute.xlu0 %3317 }
 0x6f8   :  { %3479 = vst.msk [vmem:[#allocation3 + $0x7f] sm:$0xfe] %vm3463_vm5, %v3312_v29 }
 0x6f9   :  { %3553 = vrot.lane.b32.xlu1 %v12628_v50, %s8876_s17  ;;  %3482 = vst.msk [vmem:[#allocation3 + $0x97] sm:$0xff] %vm3465_vm4, %v3318_v37  ;;  %3559 = vrot.lane.b32.xlu0 %v12647_v56, %s8876_s17 }
 0x6fb   :  { %v3316_v48 = vpop.permute.xlu1 %3315  ;;  %v3322_v54 = vpop.permute.xlu0 %3321 }
 0x6fc   :  { %3481 = vst.msk [vmem:[#allocation3 + $0x8f] sm:$0xfe] %vm3463_vm5, %v3316_v48 }
 0x6fd   :  { %3557 = vrot.lane.b32.xlu1 %v12634_v19, %s8876_s17  ;;  %3484 = vst.msk [vmem:[#allocation3 + $0xa7] sm:$0xff] %vm3465_vm4, %v3322_v54  ;;  %3563 = vrot.lane.b32.xlu0 %v12653_v24, %s8876_s17 }
 0x6ff   :  { %v3320_v43 = vpop.permute.xlu1 %3319  ;;  %v3326_v29 = vpop.permute.xlu0 %3325 }
 0x700   :  { %3483 = vst.msk [vmem:[#allocation3 + $0x9f] sm:$0xfe] %vm3463_vm5, %v3320_v43 }
 0x701   :  { %3561 = vrot.lane.b32.xlu1 %v12650_v6, %s8876_s17  ;;  %3486 = vst.msk [vmem:[#allocation3 + $0xb7] sm:$0xff] %vm3465_vm4, %v3326_v29  ;;  %3567 = vrot.lane.b32.xlu0 %v12667_v5, %s8876_s17 }
 0x703   :  { %v3324_v37 = vpop.permute.xlu1 %3323  ;;  %v3330_v48 = vpop.permute.xlu0 %3329 }
 0x704   :  { %3485 = vst.msk [vmem:[#allocation3 + $0xaf] sm:$0xfe] %vm3463_vm5, %v3324_v37 }
 0x705   :  { %3565 = vrot.lane.b32.xlu1 %v12656_v55, %s8876_s17  ;;  %3488 = vst.msk [vmem:[#allocation3 + $0xc7] sm:$0xff] %vm3465_vm4, %v3330_v48  ;;  %3571 = vrot.lane.b32.xlu0 %v12673_v17, %s8876_s17 }
 0x707   :  { %v3328_v54 = vpop.permute.xlu1 %3327  ;;  %v3334_v43 = vpop.permute.xlu0 %3333 }
 0x708   :  { %3487 = vst.msk [vmem:[#allocation3 + $0xbf] sm:$0xfe] %vm3463_vm5, %v3328_v54 }
 0x709   :  { %3569 = vrot.lane.b32.xlu1 %v12670_v39, %s8876_s17  ;;  %3490 = vst.msk [vmem:[#allocation3 + $0xd7] sm:$0xff] %vm3465_vm4, %v3334_v43  ;;  %3575 = vrot.lane.b32.xlu0 %v12687_v1, %s8876_s17 }
 0x70b   :  { %v3332_v29 = vpop.permute.xlu1 %3331  ;;  %v3338_v37 = vpop.permute.xlu0 %3337 }
 0x70c   :  { %3489 = vst.msk [vmem:[#allocation3 + $0xcf] sm:$0xfe] %vm3463_vm5, %v3332_v29 }
 0x70d   :  { %3573 = vrot.lane.b32.xlu1 %v12676_v4, %s8876_s17  ;;  %3492 = vst.msk [vmem:[#allocation3 + $0xe7] sm:$0xff] %vm3465_vm4, %v3338_v37  ;;  %3579 = vrot.lane.b32.xlu0 %v12693_v3, %s8876_s17 }
 0x70f   :  { %v3336_v48 = vpop.permute.xlu1 %3335  ;;  %v3342_v54 = vpop.permute.xlu0 %3341 }
 0x710   :  { %3491 = vst.msk [vmem:[#allocation3 + $0xdf] sm:$0xfe] %vm3463_vm5, %v3336_v48  ;;  %v16824_v48 = vld [vmem:[#allocation138_spill] sm:$0xff] }
 0x711   :  { %3577 = vrot.lane.b32.xlu1 %v12690_v57, %s8876_s17  ;;  %3494 = vst.msk [vmem:[#allocation3 + $0xf7] sm:$0xff] %vm3465_vm4, %v3342_v54  ;;  %3583 = vrot.lane.b32.xlu0 %v12713_v16, %s8876_s17  ;;  %v13276_v63 = vmax.f32 %v16824_v48, 0.0 }
 0x713   :  { %v3340_v43 = vpop.permute.xlu1 %3339  ;;  %v3346_v29 = vpop.permute.xlu0 %3345 }
 0x714   :  { %3493 = vst.msk [vmem:[#allocation3 + $0xef] sm:$0xfe] %vm3463_vm5, %v3340_v43  ;;  %v16825_v43 = vld [vmem:[#allocation55_spill] sm:$0xff] }
 0x715   :  { %3581 = vrot.lane.b32.xlu1 %v12696_v33, %s8876_s17  ;;  %3496 = vst.msk [vmem:[#allocation3 + $0x117] sm:$0xff] %vm3465_vm4, %v3346_v29  ;;  %3587 = vrot.lane.b32.xlu0 %v12719_v46, %s8876_s17  ;;  %v13285_v29 = vmax.f32 %v16825_v43, 0.0 }
 0x717   :  { %v3344_v37 = vpop.permute.xlu1 %3343  ;;  %v3350_v54 = vpop.permute.xlu0 %3349 }
 0x718   :  { %3495 = vst.msk [vmem:[#allocation3 + $0x10f] sm:$0xfe] %vm3463_vm5, %v3344_v37 }
 0x719   :  { %3585 = vrot.lane.b32.xlu1 %v12716_v9, %s8876_s17  ;;  %3498 = vst.msk [vmem:[#allocation3 + $0x127] sm:$0xff] %vm3465_vm4, %v3350_v54  ;;  %3591 = vrot.lane.b32.xlu0 %v13276_v63, %s8876_s17 }
 0x71b   :  { %v3348_v7 = vpop.permute.xlu1 %3347  ;;  %v3354_v38 = vpop.permute.xlu0 %3353 }
 0x71c   :  { %3497 = vst.msk [vmem:[#allocation3 + $0x11f] sm:$0xfe] %vm3463_vm5, %v3348_v7 }
 0x71d   :  { %3589 = vrot.lane.b32.xlu1 %v13285_v29, %s8876_s17  ;;  %3500 = vst.msk [vmem:[#allocation3 + $0x137] sm:$0xff] %vm3465_vm4, %v3354_v38  ;;  %3595 = vrot.lane.b32.xlu0 %v12737_v28, %s8876_s17 }
 0x71f   :  { %v3352_v37 = vpop.permute.xlu1 %3351  ;;  %v3358_v48 = vpop.permute.xlu0 %3357 }
 0x720   :  { %3499 = vst.msk [vmem:[#allocation3 + $0x12f] sm:$0xfe] %vm3463_vm5, %v3352_v37 }
 0x721   :  { %3593 = vrot.lane.b32.xlu1 %v12734_v45, %s8876_s17  ;;  %3502 = vst.msk [vmem:[#allocation3 + $0x147] sm:$0xff] %vm3465_vm4, %v3358_v48  ;;  %3599 = vrot.lane.b32.xlu0 %v12751_v32, %s8876_s17 }
 0x723   :  { %v3356_v7 = vpop.permute.xlu1 %3355  ;;  %v3362_v54 = vpop.permute.xlu0 %3361 }
 0x724   :  { %3501 = vst.msk [vmem:[#allocation3 + $0x13f] sm:$0xfe] %vm3463_vm5, %v3356_v7 }
 0x725   :  { %3597 = vrot.lane.b32.xlu1 %v12740_v27, %s8876_s17  ;;  %3504 = vst.msk [vmem:[#allocation3 + $0x157] sm:$0xff] %vm3465_vm4, %v3362_v54  ;;  %3603 = vrot.lane.b32.xlu0 %v12757_v53, %s8876_s17 }
 0x727   :  { %v3360_v38 = vpop.permute.xlu1 %3359  ;;  %v3366_v43 = vpop.permute.xlu0 %3365 }
 0x728   :  { %3503 = vst.msk [vmem:[#allocation3 + $0x14f] sm:$0xfe] %vm3463_vm5, %v3360_v38 }
 0x729   :  { %3601 = vrot.lane.b32.xlu1 %v12754_v0, %s8876_s17  ;;  %3506 = vst.msk [vmem:[#allocation3 + $0x167] sm:$0xff] %vm3465_vm4, %v3366_v43  ;;  %3607 = vrot.lane.b32.xlu0 %v12769_v21, %s8876_s17 }
 0x72b   :  { %v3364_v37 = vpop.permute.xlu1 %3363  ;;  %v3370_v48 = vpop.permute.xlu0 %3369 }
 0x72c   :  { %3505 = vst.msk [vmem:[#allocation3 + $0x15f] sm:$0xfe] %vm3463_vm5, %v3364_v37 }
 0x72d   :  { %3605 = vrot.lane.b32.xlu1 %v12760_v40, %s8876_s17  ;;  %3508 = vst.msk [vmem:[#allocation3 + $0x177] sm:$0xff] %vm3465_vm4, %v3370_v48  ;;  %3611 = vrot.lane.b32.xlu0 %v12775_v35, %s8876_s17 }
 0x72f   :  { %v3368_v7 = vpop.permute.xlu1 %3367  ;;  %v3374_v54 = vpop.permute.xlu0 %3373 }
 0x730   :  { %3507 = vst.msk [vmem:[#allocation3 + $0x16f] sm:$0xfe] %vm3463_vm5, %v3368_v7 }
 0x731   :  { %3609 = vrot.lane.b32.xlu1 %v12772_v12, %s8876_s17  ;;  %3510 = vst.msk [vmem:[#allocation3 + $0x187] sm:$0xff] %vm3465_vm4, %v3374_v54  ;;  %3615 = vrot.lane.b32.xlu0 %v12789_v34, %s8876_s17 }
 0x733   :  { %v3372_v38 = vpop.permute.xlu1 %3371  ;;  %v3378_v43 = vpop.permute.xlu0 %3377 }
 0x734   :  { %3509 = vst.msk [vmem:[#allocation3 + $0x17f] sm:$0xfe] %vm3463_vm5, %v3372_v38 }
 0x735   :  { %3613 = vrot.lane.b32.xlu1 %v12778_v8, %s8876_s17  ;;  %3512 = vst.msk [vmem:[#allocation3 + $0x197] sm:$0xff] %vm3465_vm4, %v3378_v43  ;;  %3619 = vrot.lane.b32.xlu0 %v12795_v52, %s8876_s17 }
 0x737   :  { %v3376_v37 = vpop.permute.xlu1 %3375  ;;  %v3382_v48 = vpop.permute.xlu0 %3381 }
 0x738   :  { %3511 = vst.msk [vmem:[#allocation3 + $0x18f] sm:$0xfe] %vm3463_vm5, %v3376_v37 }
 0x739   :  { %3617 = vrot.lane.b32.xlu1 %v12792_v44, %s8876_s17  ;;  %3514 = vst.msk [vmem:[#allocation3 + $0x1a7] sm:$0xff] %vm3465_vm4, %v3382_v48  ;;  %3623 = vrot.lane.b32.xlu0 %v12811_v25, %s8876_s17 }
 0x73b   :  { %v3380_v7 = vpop.permute.xlu1 %3379  ;;  %v3386_v54 = vpop.permute.xlu0 %3385 }
 0x73c   :  { %3513 = vst.msk [vmem:[#allocation3 + $0x19f] sm:$0xfe] %vm3463_vm5, %v3380_v7 }
 0x73d   :  { %3621 = vrot.lane.b32.xlu1 %v12798_v42, %s8876_s17  ;;  %3516 = vst.msk [vmem:[#allocation3 + $0x1b7] sm:$0xff] %vm3465_vm4, %v3386_v54  ;;  %3627 = vrot.lane.b32.xlu0 %v12817_v60, %s8876_s17 }
 0x73f   :  { %v3384_v38 = vpop.permute.xlu1 %3383  ;;  %v3390_v43 = vpop.permute.xlu0 %3389 }
 0x740   :  { %3515 = vst.msk [vmem:[#allocation3 + $0x1af] sm:$0xfe] %vm3463_vm5, %v3384_v38 }
 0x741   :  { %3625 = vrot.lane.b32.xlu1 %v12814_v20, %s8876_s17  ;;  %3518 = vst.msk [vmem:[#allocation3 + $0x1c7] sm:$0xff] %vm3465_vm4, %v3390_v43  ;;  %3631 = vrot.lane.b32.xlu0 %v12831_v36, %s8876_s17 }
 0x743   :  { %v3388_v37 = vpop.permute.xlu1 %3387  ;;  %v3394_v48 = vpop.permute.xlu0 %3393 }
 0x744   :  { %3517 = vst.msk [vmem:[#allocation3 + $0x1bf] sm:$0xfe] %vm3463_vm5, %v3388_v37  ;;  %v5099_v37 = vld [vmem:[%s15927_s4 + $0x40] sm:$0xff] }
 0x745   :  { %3629 = vrot.lane.b32.xlu1 %v12820_v10, %s8876_s17  ;;  %3520 = vst.msk [vmem:[#allocation3 + $0x1d7] sm:$0xff] %vm3465_vm4, %v3394_v48  ;;  %3635 = vrot.lane.b32.xlu0 %v12837_v47, %s8876_s17 }
 0x746   :  { %8627 = vmatprep.subr.mxu1 %v5099_v37 }
 0x747   :  { %v3392_v7 = vpop.permute.xlu1 %3391  ;;  %v3398_v54 = vpop.permute.xlu0 %3397  ;;  %8628 = vmatpush3.msra.mxu1 %v5099_v37 }
 0x748   :  { %3519 = vst.msk [vmem:[#allocation3 + $0x1cf] sm:$0xfe] %vm3463_vm5, %v3392_v7 }
 0x749   :  { %3633 = vrot.lane.b32.xlu1 %v12834_v59, %s8876_s17  ;;  %3522 = vst.msk [vmem:[#allocation3 + $0x1e7] sm:$0xff] %vm3465_vm4, %v3398_v54  ;;  %3639 = vrot.lane.b32.xlu0 %v12851_v11, %s8876_s17  ;;  %v5098_v54 = vld [vmem:[%s15927_s4 + $0x38] sm:$0xff] }
 0x74a   :  { %8629 = vmatprep.subr.mxu1 %v5098_v54 }
 0x74b   :  { %v3396_v38 = vpop.permute.xlu1 %3395  ;;  %v3402_v43 = vpop.permute.xlu0 %3401  ;;  %8630 = vmatpush3.msra.mxu1 %v5098_v54 }
 0x74c   :  { %3521 = vst.msk [vmem:[#allocation3 + $0x1df] sm:$0xfe] %vm3463_vm5, %v3396_v38  ;;  %v5097_v38 = vld [vmem:[%s15927_s4 + $0x30] sm:$0xff] }
 0x74d   :  { %3637 = vrot.lane.b32.xlu1 %v12840_v14, %s8876_s17  ;;  %3524 = vst.msk [vmem:[#allocation3 + $0x1f7] sm:$0xff] %vm3465_vm4, %v3402_v43  ;;  %3789 = vrot.lane.b32.xlu0 %v16822_v41, %s8878_s19 }
 0x74e   :  { %8631 = vmatprep.subr.mxu1 %v5097_v38 }
 0x74f   :  { %v3400_v48 = vpop.permute.xlu1 %3399  ;;  %v3532_v7 = vpop.permute.xlu0 %3531  ;;  %8632 = vmatpush3.msra.mxu1 %v5097_v38  ;;  %v5093_v38 = vld [vmem:[%s15927_s4 + $0x10] sm:$0xff] }
 0x750   :  { %3523 = vst.msk [vmem:[#allocation3 + $0x1ef] sm:$0xfe] %vm3463_vm5, %v3400_v48  ;;  %v5096_v48 = vld [vmem:[%s15927_s4 + $0x28] sm:$0xff] }
 0x751   :  { %3787 = vrot.lane.b32.xlu1 %v12598_v22, %s8878_s19  ;;  %3724 = vst.msk [vmem:[#allocation3 + $0x9] sm:$0x7f] %vm3723_vm6, %v3532_v7  ;;  %4046 = vrot.lane.b32.xlu0 %v16822_v41, %s8880_s20  ;;  %v5095_v41 = vld [vmem:[%s15927_s4 + $0x20] sm:$0xff] }
 0x752   :  { %8633 = vmatprep.subr.mxu1 %v5096_v48 }
 0x753   :  { %v3530_v43 = vpop.permute.xlu1 %3529  ;;  %v3536_v37 = vpop.permute.xlu0 %3535  ;;  %8634 = vmatpush3.msra.mxu1 %v5096_v48  ;;  %v5092_v48 = vld [vmem:[%s15927_s4 + $0x8] sm:$0xff] }
 0x754   :  { %3722 = vst.msk [vmem:[#allocation3 + $0x1] sm:$0xff] %vm3721_vm7, %v3530_v43  ;;  %8635 = vmatprep.subr.mxu1 %v5095_v41 }
 0x755   :  { %4044 = vrot.lane.b32.xlu1 %v12598_v22, %s8880_s20  ;;  %3726 = vst.msk [vmem:[#allocation3 + $0x19] sm:$0x7f] %vm3723_vm6, %v3536_v37  ;;  %4304 = vrot.lane.b32.xlu0 %v12602_v62, %s8881_s25  ;;  %v5094_v22 = vld [vmem:[%s15927_s4 + $0x18] sm:$0xff] }
 0x756   :  { %8636 = vmatpush3.msra.mxu1 %v5095_v41  ;;  %v5091_v41 = vld [vmem:[%s15927_s4] sm:$0xff]  ;;  %s8885_s4 = smov 120  }
 0x757   :  { %v3534_v7 = vpop.permute.xlu1 %3533  ;;  %v3540_v54 = vpop.permute.xlu0 %3539  ;;  %8637 = vmatprep.subr.mxu1 %v5094_v22 }
 0x758   :  { %3725 = vst.msk [vmem:[#allocation3 + $0x11] sm:$0xff] %vm3721_vm7, %v3534_v7  ;;  %8638 = vmatpush3.msra.mxu1 %v5094_v22 }
 0x759   :  { %4302 = vrot.lane.b32.xlu1 %v12600_v49, %s8881_s25  ;;  %3728 = vst.msk [vmem:[#allocation3 + $0x29] sm:$0x7f] %vm3723_vm6, %v3540_v54  ;;  %4546 = vrot.lane.b32.xlu0 %v12602_v62, %s8882_s1 }
 0x75a   :  { %8639 = vmatprep.subr.mxu1 %v5093_v38 }
 0x75b   :  { %v3538_v43 = vpop.permute.xlu1 %3537  ;;  %v3544_v37 = vpop.permute.xlu0 %3543  ;;  %8640 = vmatpush3.msra.mxu1 %v5093_v38 }
 0x75c   :  { %3727 = vst.msk [vmem:[#allocation3 + $0x21] sm:$0xff] %vm3721_vm7, %v3538_v43  ;;  %8641 = vmatprep.subr.mxu1 %v5092_v48 }
 0x75d   :  { %4544 = vrot.lane.b32.xlu1 %v12600_v49, %s8882_s1  ;;  %3730 = vst.msk [vmem:[#allocation3 + $0x39] sm:$0x7f] %vm3723_vm6, %v3544_v37  ;;  %3793 = vrot.lane.b32.xlu0 %v12602_v62, %s8878_s19 }
 0x75e   :  { %8642 = vmatpush3.msra.mxu1 %v5092_v48 }
 0x75f   :  { %v3542_v7 = vpop.permute.xlu1 %3541  ;;  %8643 = vmatprep.subr.mxu1 %v5091_v41  ;;  %v3548_v54 = vpop.permute.xlu0 %3547 }
 0x760   :  { %3729 = vst.msk [vmem:[#allocation3 + $0x31] sm:$0xff] %vm3721_vm7, %v3542_v7  ;;  %8644 = vmatpush3.msra.mxu1 %v5091_v41 }
 0x761   :  { %3791 = vrot.lane.b32.xlu1 %v12600_v49, %s8878_s19  ;;  %3732 = vst.msk [vmem:[#allocation3 + $0x49] sm:$0x7f] %vm3723_vm6, %v3548_v54  ;;  %4787 = vrot.lane.b32.xlu0 %v12602_v62, %s8883_s2 }
 0x763   :  { %v3546_v22 = vpop.permute.xlu1 %3545  ;;  %v3552_v38 = vpop.permute.xlu0 %3551 }
 0x764   :  { %3731 = vst.msk [vmem:[#allocation3 + $0x41] sm:$0xff] %vm3721_vm7, %v3546_v22 }
 0x765   :  { %4785 = vrot.lane.b32.xlu1 %v12600_v49, %s8883_s2  ;;  %3734 = vst.msk [vmem:[#allocation3 + $0x59] sm:$0x7f] %vm3723_vm6, %v3552_v38  ;;  %4050 = vrot.lane.b32.xlu0 %v12602_v62, %s8880_s20 }
 0x767   :  { %v3550_v43 = vpop.permute.xlu1 %3549  ;;  %v3556_v37 = vpop.permute.xlu0 %3555 }
 0x768   :  { %3733 = vst.msk [vmem:[#allocation3 + $0x51] sm:$0xff] %vm3721_vm7, %v3550_v43 }
 0x769   :  { %4048 = vrot.lane.b32.xlu1 %v12600_v49, %s8880_s20  ;;  %3736 = vst.msk [vmem:[#allocation3 + $0x69] sm:$0x7f] %vm3723_vm6, %v3556_v37  ;;  %4308 = vrot.lane.b32.xlu0 %v12606_v2, %s8881_s25 }
 0x76b   :  { %v3554_v48 = vpop.permute.xlu1 %3553  ;;  %v3560_v41 = vpop.permute.xlu0 %3559 }
 0x76c   :  { %3735 = vst.msk [vmem:[#allocation3 + $0x61] sm:$0xff] %vm3721_vm7, %v3554_v48 }
 0x76d   :  { %4306 = vrot.lane.b32.xlu1 %v12604_v18, %s8881_s25  ;;  %3738 = vst.msk [vmem:[#allocation3 + $0x79] sm:$0x7f] %vm3723_vm6, %v3560_v41  ;;  %4550 = vrot.lane.b32.xlu0 %v12606_v2, %s8882_s1 }
 0x76f   :  { %v3558_v62 = vpop.permute.xlu1 %3557  ;;  %v3564_v49 = vpop.permute.xlu0 %3563 }
 0x770   :  { %3737 = vst.msk [vmem:[#allocation3 + $0x71] sm:$0xff] %vm3721_vm7, %v3558_v62 }
 0x771   :  { %4548 = vrot.lane.b32.xlu1 %v12604_v18, %s8882_s1  ;;  %3740 = vst.msk [vmem:[#allocation3 + $0x89] sm:$0x7f] %vm3723_vm6, %v3564_v49  ;;  %3797 = vrot.lane.b32.xlu0 %v12606_v2, %s8878_s19 }
 0x773   :  { %v3562_v7 = vpop.permute.xlu1 %3561  ;;  %v3568_v54 = vpop.permute.xlu0 %3567 }
 0x774   :  { %3739 = vst.msk [vmem:[#allocation3 + $0x81] sm:$0xff] %vm3721_vm7, %v3562_v7 }
 0x775   :  { %3795 = vrot.lane.b32.xlu1 %v12604_v18, %s8878_s19  ;;  %3742 = vst.msk [vmem:[#allocation3 + $0x99] sm:$0x7f] %vm3723_vm6, %v3568_v54  ;;  %4791 = vrot.lane.b32.xlu0 %v12606_v2, %s8883_s2 }
 0x777   :  { %v3566_v22 = vpop.permute.xlu1 %3565  ;;  %v3572_v38 = vpop.permute.xlu0 %3571 }
 0x778   :  { %3741 = vst.msk [vmem:[#allocation3 + $0x91] sm:$0xff] %vm3721_vm7, %v3566_v22 }
 0x779   :  { %4789 = vrot.lane.b32.xlu1 %v12604_v18, %s8883_s2  ;;  %3744 = vst.msk [vmem:[#allocation3 + $0xa9] sm:$0x7f] %vm3723_vm6, %v3572_v38  ;;  %4054 = vrot.lane.b32.xlu0 %v12606_v2, %s8880_s20 }
 0x77b   :  { %v3570_v43 = vpop.permute.xlu1 %3569  ;;  %v3576_v37 = vpop.permute.xlu0 %3575 }
 0x77c   :  { %3743 = vst.msk [vmem:[#allocation3 + $0xa1] sm:$0xff] %vm3721_vm7, %v3570_v43 }
 0x77d   :  { %4052 = vrot.lane.b32.xlu1 %v12604_v18, %s8880_s20  ;;  %3746 = vst.msk [vmem:[#allocation3 + $0xb9] sm:$0x7f] %vm3723_vm6, %v3576_v37  ;;  %4312 = vrot.lane.b32.xlu0 %v12612_v31, %s8881_s25 }
 0x77f   :  { %v3574_v48 = vpop.permute.xlu1 %3573  ;;  %v3580_v41 = vpop.permute.xlu0 %3579 }
 0x780   :  { %3745 = vst.msk [vmem:[#allocation3 + $0xb1] sm:$0xff] %vm3721_vm7, %v3574_v48 }
 0x781   :  { %4310 = vrot.lane.b32.xlu1 %v12608_v13, %s8881_s25  ;;  %3748 = vst.msk [vmem:[#allocation3 + $0xc9] sm:$0x7f] %vm3723_vm6, %v3580_v41  ;;  %4554 = vrot.lane.b32.xlu0 %v12612_v31, %s8882_s1 }
 0x783   :  { %v3578_v2 = vpop.permute.xlu1 %3577  ;;  %v3584_v18 = vpop.permute.xlu0 %3583 }
 0x784   :  { %3747 = vst.msk [vmem:[#allocation3 + $0xc1] sm:$0xff] %vm3721_vm7, %v3578_v2 }
 0x785   :  { %4552 = vrot.lane.b32.xlu1 %v12608_v13, %s8882_s1  ;;  %3750 = vst.msk [vmem:[#allocation3 + $0xd9] sm:$0x7f] %vm3723_vm6, %v3584_v18  ;;  %3801 = vrot.lane.b32.xlu0 %v12612_v31, %s8878_s19 }
 0x787   :  { %v3582_v62 = vpop.permute.xlu1 %3581  ;;  %v3588_v49 = vpop.permute.xlu0 %3587 }
 0x788   :  { %3749 = vst.msk [vmem:[#allocation3 + $0xd1] sm:$0xff] %vm3721_vm7, %v3582_v62 }
 0x789   :  { %3799 = vrot.lane.b32.xlu1 %v12608_v13, %s8878_s19  ;;  %3752 = vst.msk [vmem:[#allocation3 + $0xe9] sm:$0x7f] %vm3723_vm6, %v3588_v49  ;;  %4795 = vrot.lane.b32.xlu0 %v12612_v31, %s8883_s2 }
 0x78b   :  { %v3586_v7 = vpop.permute.xlu1 %3585  ;;  %v3592_v54 = vpop.permute.xlu0 %3591 }
 0x78c   :  { %3751 = vst.msk [vmem:[#allocation3 + $0xe1] sm:$0xff] %vm3721_vm7, %v3586_v7 }
 0x78d   :  { %4793 = vrot.lane.b32.xlu1 %v12608_v13, %s8883_s2  ;;  %3754 = vst.msk [vmem:[#allocation3 + $0xf9] sm:$0x7f] %vm3723_vm6, %v3592_v54  ;;  %4058 = vrot.lane.b32.xlu0 %v12612_v31, %s8880_s20 }
 0x78f   :  { %v3590_v22 = vpop.permute.xlu1 %3589  ;;  %v3596_v38 = vpop.permute.xlu0 %3595 }
 0x790   :  { %3753 = vst.msk [vmem:[#allocation3 + $0xf1] sm:$0xff] %vm3721_vm7, %v3590_v22 }
 0x791   :  { %4056 = vrot.lane.b32.xlu1 %v12608_v13, %s8880_s20  ;;  %3756 = vst.msk [vmem:[#allocation3 + $0x109] sm:$0x7f] %vm3723_vm6, %v3596_v38  ;;  %4316 = vrot.lane.b32.xlu0 %v12616_v58, %s8881_s25 }
 0x793   :  { %v3594_v43 = vpop.permute.xlu1 %3593  ;;  %v3600_v37 = vpop.permute.xlu0 %3599 }
 0x794   :  { %3755 = vst.msk [vmem:[#allocation3 + $0x101] sm:$0xff] %vm3721_vm7, %v3594_v43 }
 0x795   :  { %4314 = vrot.lane.b32.xlu1 %v12614_v61, %s8881_s25  ;;  %3758 = vst.msk [vmem:[#allocation3 + $0x119] sm:$0x7f] %vm3723_vm6, %v3600_v37  ;;  %4558 = vrot.lane.b32.xlu0 %v12616_v58, %s8882_s1 }
 0x797   :  { %v3598_v31 = vpop.permute.xlu1 %3597  ;;  %v3604_v13 = vpop.permute.xlu0 %3603 }
 0x798   :  { %3757 = vst.msk [vmem:[#allocation3 + $0x111] sm:$0xff] %vm3721_vm7, %v3598_v31 }
 0x799   :  { %4556 = vrot.lane.b32.xlu1 %v12614_v61, %s8882_s1  ;;  %3760 = vst.msk [vmem:[#allocation3 + $0x129] sm:$0x7f] %vm3723_vm6, %v3604_v13  ;;  %3805 = vrot.lane.b32.xlu0 %v12616_v58, %s8878_s19 }
 0x79b   :  { %v3602_v48 = vpop.permute.xlu1 %3601  ;;  %v3608_v41 = vpop.permute.xlu0 %3607 }
 0x79c   :  { %3759 = vst.msk [vmem:[#allocation3 + $0x121] sm:$0xff] %vm3721_vm7, %v3602_v48 }
 0x79d   :  { %3803 = vrot.lane.b32.xlu1 %v12614_v61, %s8878_s19  ;;  %3762 = vst.msk [vmem:[#allocation3 + $0x139] sm:$0x7f] %vm3723_vm6, %v3608_v41  ;;  %4799 = vrot.lane.b32.xlu0 %v12616_v58, %s8883_s2 }
 0x79f   :  { %v3606_v2 = vpop.permute.xlu1 %3605  ;;  %v3612_v18 = vpop.permute.xlu0 %3611 }
 0x7a0   :  { %3761 = vst.msk [vmem:[#allocation3 + $0x131] sm:$0xff] %vm3721_vm7, %v3606_v2 }
 0x7a1   :  { %4797 = vrot.lane.b32.xlu1 %v12614_v61, %s8883_s2  ;;  %3764 = vst.msk [vmem:[#allocation3 + $0x149] sm:$0x7f] %vm3723_vm6, %v3612_v18  ;;  %4062 = vrot.lane.b32.xlu0 %v12616_v58, %s8880_s20 }
 0x7a3   :  { %v3610_v62 = vpop.permute.xlu1 %3609  ;;  %v3616_v49 = vpop.permute.xlu0 %3615 }
 0x7a4   :  { %3763 = vst.msk [vmem:[#allocation3 + $0x141] sm:$0xff] %vm3721_vm7, %v3610_v62 }
 0x7a5   :  { %4060 = vrot.lane.b32.xlu1 %v12614_v61, %s8880_s20  ;;  %3766 = vst.msk [vmem:[#allocation3 + $0x159] sm:$0x7f] %vm3723_vm6, %v3616_v49  ;;  %4320 = vrot.lane.b32.xlu0 %v12625_v51, %s8881_s25 }
 0x7a7   :  { %v3614_v7 = vpop.permute.xlu1 %3613  ;;  %v3620_v54 = vpop.permute.xlu0 %3619 }
 0x7a8   :  { %3765 = vst.msk [vmem:[#allocation3 + $0x151] sm:$0xff] %vm3721_vm7, %v3614_v7 }
 0x7a9   :  { %4318 = vrot.lane.b32.xlu1 %v12618_v23, %s8881_s25  ;;  %3768 = vst.msk [vmem:[#allocation3 + $0x169] sm:$0x7f] %vm3723_vm6, %v3620_v54  ;;  %4562 = vrot.lane.b32.xlu0 %v12625_v51, %s8882_s1 }
 0x7ab   :  { %v3618_v58 = vpop.permute.xlu1 %3617  ;;  %v3624_v61 = vpop.permute.xlu0 %3623 }
 0x7ac   :  { %3767 = vst.msk [vmem:[#allocation3 + $0x161] sm:$0xff] %vm3721_vm7, %v3618_v58 }
 0x7ad   :  { %4560 = vrot.lane.b32.xlu1 %v12618_v23, %s8882_s1  ;;  %3770 = vst.msk [vmem:[#allocation3 + $0x179] sm:$0x7f] %vm3723_vm6, %v3624_v61  ;;  %3809 = vrot.lane.b32.xlu0 %v12625_v51, %s8878_s19 }
 0x7af   :  { %v3622_v22 = vpop.permute.xlu1 %3621  ;;  %v3628_v38 = vpop.permute.xlu0 %3627 }
 0x7b0   :  { %3769 = vst.msk [vmem:[#allocation3 + $0x171] sm:$0xff] %vm3721_vm7, %v3622_v22 }
 0x7b1   :  { %3807 = vrot.lane.b32.xlu1 %v12618_v23, %s8878_s19  ;;  %3772 = vst.msk [vmem:[#allocation3 + $0x189] sm:$0x7f] %vm3723_vm6, %v3628_v38  ;;  %4803 = vrot.lane.b32.xlu0 %v12625_v51, %s8883_s2 }
 0x7b3   :  { %v3626_v43 = vpop.permute.xlu1 %3625  ;;  %v3632_v37 = vpop.permute.xlu0 %3631 }
 0x7b4   :  { %3771 = vst.msk [vmem:[#allocation3 + $0x181] sm:$0xff] %vm3721_vm7, %v3626_v43 }
 0x7b5   :  { %4801 = vrot.lane.b32.xlu1 %v12618_v23, %s8883_s2  ;;  %3774 = vst.msk [vmem:[#allocation3 + $0x199] sm:$0x7f] %vm3723_vm6, %v3632_v37  ;;  %4066 = vrot.lane.b32.xlu0 %v12625_v51, %s8880_s20 }
 0x7b7   :  { %v3630_v31 = vpop.permute.xlu1 %3629  ;;  %v3636_v13 = vpop.permute.xlu0 %3635 }
 0x7b8   :  { %3773 = vst.msk [vmem:[#allocation3 + $0x191] sm:$0xff] %vm3721_vm7, %v3630_v31 }
 0x7b9   :  { %4064 = vrot.lane.b32.xlu1 %v12618_v23, %s8880_s20  ;;  %3776 = vst.msk [vmem:[#allocation3 + $0x1a9] sm:$0x7f] %vm3723_vm6, %v3636_v13  ;;  %4324 = vrot.lane.b32.xlu0 %v12631_v15, %s8881_s25 }
 0x7bb   :  { %v3634_v48 = vpop.permute.xlu1 %3633  ;;  %v3640_v41 = vpop.permute.xlu0 %3639 }
 0x7bc   :  { %3775 = vst.msk [vmem:[#allocation3 + $0x1a1] sm:$0xff] %vm3721_vm7, %v3634_v48 }
 0x7bd   :  { %4322 = vrot.lane.b32.xlu1 %v12628_v50, %s8881_s25  ;;  %3778 = vst.msk [vmem:[#allocation3 + $0x1b9] sm:$0x7f] %vm3723_vm6, %v3640_v41  ;;  %4566 = vrot.lane.b32.xlu0 %v12631_v15, %s8882_s1 }
 0x7bf   :  { %v3638_v51 = vpop.permute.xlu1 %3637  ;;  %v3790_v23 = vpop.permute.xlu0 %3789 }
 0x7c0   :  { %3777 = vst.msk [vmem:[#allocation3 + $0x1b1] sm:$0xff] %vm3721_vm7, %v3638_v51 }
 0x7c1   :  { %4564 = vrot.lane.b32.xlu1 %v12628_v50, %s8882_s1  ;;  %3981 = vst.msk [vmem:[#allocation3 + $0x8] sm:$0xff] %vm3979_vm8, %v3790_v23  ;;  %3813 = vrot.lane.b32.xlu0 %v12631_v15, %s8878_s19 }
 0x7c3   :  { %v3788_v2 = vpop.permute.xlu1 %3787  ;;  %v4047_v18 = vpop.permute.xlu0 %4046 }
 0x7c4   :  { %3980 = vst.msk [vmem:[#allocation3] sm:$0xff] %vm3979_vm8, %v3788_v2 }
 0x7c5   :  { %3811 = vrot.lane.b32.xlu1 %v12628_v50, %s8878_s19  ;;  %4239 = vst.msk [vmem:[#allocation3 + $0x7] sm:$0xff] %vm4238_vm9, %v4047_v18  ;;  %4807 = vrot.lane.b32.xlu0 %v12631_v15, %s8883_s2 }
 0x7c7   :  { %v4045_v62 = vpop.permute.xlu1 %4044  ;;  %v4305_v49 = vpop.permute.xlu0 %4304 }
 0x7c8   :  { %4237 = vst.msk [vmem:[#allocation3 - $0x1] sm:$0xfe] %vm4236_vm10, %v4045_v62 }
 0x7c9   :  { %4805 = vrot.lane.b32.xlu1 %v12628_v50, %s8883_s2  ;;  %4485 = vst.msk [vmem:[#allocation3 + $0x9] sm:$0x7f] %vm4484_vm11, %v4305_v49  ;;  %4070 = vrot.lane.b32.xlu0 %v12631_v15, %s8880_s20 }
 0x7cb   :  { %v4303_v7 = vpop.permute.xlu1 %4302  ;;  %v4547_v54 = vpop.permute.xlu0 %4546 }
 0x7cc   :  { %4483 = vst.msk [vmem:[#allocation3 + $0x1] sm:$0xff] %vm4482_vm13, %v4303_v7 }
 0x7cd   :  { %4068 = vrot.lane.b32.xlu1 %v12628_v50, %s8880_s20  ;;  %4726 = vst.msk [vmem:[#allocation3 + $0x8] sm:$0xff] %vm4724_vm14, %v4547_v54  ;;  %4328 = vrot.lane.b32.xlu0 %v12647_v56, %s8881_s25 }
 0x7cf   :  { %v4545_v58 = vpop.permute.xlu1 %4544  ;;  %v3794_v61 = vpop.permute.xlu0 %3793 }
 0x7d0   :  { %4725 = vst.msk [vmem:[#allocation3] sm:$0xff] %vm4724_vm14, %v4545_v58 }
 0x7d1   :  { %4326 = vrot.lane.b32.xlu1 %v12634_v19, %s8881_s25  ;;  %3983 = vst.msk [vmem:[#allocation3 + $0x18] sm:$0xff] %vm3979_vm8, %v3794_v61  ;;  %4570 = vrot.lane.b32.xlu0 %v12647_v56, %s8882_s1 }
 0x7d3   :  { %v3792_v15 = vpop.permute.xlu1 %3791  ;;  %v4788_v50 = vpop.permute.xlu0 %4787 }
 0x7d4   :  { %3982 = vst.msk [vmem:[#allocation3 + $0x10] sm:$0xff] %vm3979_vm8, %v3792_v15 }
 0x7d5   :  { %4568 = vrot.lane.b32.xlu1 %v12634_v19, %s8882_s1  ;;  %4968 = vst.msk [vmem:[#allocation3 + $0x7] sm:$0xff] %vm4967_vm15, %v4788_v50  ;;  %3817 = vrot.lane.b32.xlu0 %v12647_v56, %s8878_s19 }
 0x7d7   :  { %v4786_v22 = vpop.permute.xlu1 %4785  ;;  %v4051_v38 = vpop.permute.xlu0 %4050 }
 0x7d8   :  { %4966 = vst.msk [vmem:[#allocation3 - $0x1] sm:$0xfe] %vm4965_vm12, %v4786_v22 }
 0x7d9   :  { %3815 = vrot.lane.b32.xlu1 %v12634_v19, %s8878_s19  ;;  %4241 = vst.msk [vmem:[#allocation3 + $0x17] sm:$0xff] %vm4238_vm9, %v4051_v38  ;;  %4811 = vrot.lane.b32.xlu0 %v12647_v56, %s8883_s2 }
 0x7db   :  { %v4049_v43 = vpop.permute.xlu1 %4048  ;;  %v4309_v37 = vpop.permute.xlu0 %4308 }
 0x7dc   :  { %4240 = vst.msk [vmem:[#allocation3 + $0xf] sm:$0xfe] %vm4236_vm10, %v4049_v43  ;;  %v5028_v31 = vld [vmem:[#allocation3 + $0x8] sm:$0xff] }
 0x7dd   :  { %4809 = vrot.lane.b32.xlu1 %v12634_v19, %s8883_s2  ;;  %4487 = vst.msk [vmem:[#allocation3 + $0x19] sm:$0x7f] %vm4484_vm11, %v4309_v37  ;;  %4074 = vrot.lane.b32.xlu0 %v12647_v56, %s8880_s20 }
 0x7df   :  { %v4307_v13 = vpop.permute.xlu1 %4306  ;;  %v5027_v48 = vld [vmem:[#allocation3] sm:$0xff]  ;;  %v4551_v41 = vpop.permute.xlu0 %4550 }
 0x7e0   :  { %4486 = vst.msk [vmem:[#allocation3 + $0x11] sm:$0xff] %vm4482_vm13, %v4307_v13  ;;  %8645 = vmatprep.mubr.msk.f32.mxu1 %vm2855_vm0, %v5027_v48 }
 0x7e1   :  { %4072 = vrot.lane.b32.xlu1 %v12634_v19, %s8880_s20  ;;  %8646 = vmatmul.mubr.msk.f32.vlgmr.msra.gmra.mxu1 %vm2855_vm0, %v5028_v31  ;;  %4728 = vst.msk [vmem:[#allocation3 + $0x18] sm:$0xff] %vm4724_vm14, %v4551_v41 }
 0x7e2   :  { %4332 = vrot.lane.b32.xlu0 %v12653_v24, %s8881_s25 }
 0x7e3   :  { %v4549_v51 = vpop.permute.xlu1 %4548  ;;  %v3798_v56 = vpop.permute.xlu0 %3797 }
 0x7e4   :  { %4727 = vst.msk [vmem:[#allocation3 + $0x10] sm:$0xff] %vm4724_vm14, %v4549_v51 }
 0x7e5   :  { %4330 = vrot.lane.b32.xlu1 %v12650_v6, %s8881_s25  ;;  %3985 = vst.msk [vmem:[#allocation3 + $0x28] sm:$0xff] %vm3979_vm8, %v3798_v56 }
 0x7e6   :  { %4574 = vrot.lane.b32.xlu0 %v12653_v24, %s8882_s1 }
 0x7e7   :  { %v3796_v19 = vpop.permute.xlu1 %3795  ;;  %v4792_v23 = vpop.permute.xlu0 %4791 }
 0x7e8   :  { %3984 = vst.msk [vmem:[#allocation3 + $0x20] sm:$0xff] %vm3979_vm8, %v3796_v19 }
 0x7e9   :  { %4572 = vrot.lane.b32.xlu1 %v12650_v6, %s8882_s1  ;;  %4970 = vst.msk [vmem:[#allocation3 + $0x17] sm:$0xff] %vm4967_vm15, %v4792_v23 }
 0x7ea   :  { %3821 = vrot.lane.b32.xlu0 %v12653_v24, %s8878_s19 }
 0x7eb   :  { %v4790_v2 = vpop.permute.xlu1 %4789  ;;  %v4055_v18 = vpop.permute.xlu0 %4054 }
 0x7ec   :  { %4969 = vst.msk [vmem:[#allocation3 + $0xf] sm:$0xfe] %vm4965_vm12, %v4790_v2 }
 0x7ed   :  { %3819 = vrot.lane.b32.xlu1 %v12650_v6, %s8878_s19  ;;  %4243 = vst.msk [vmem:[#allocation3 + $0x27] sm:$0xff] %vm4238_vm9, %v4055_v18 }
 0x7ee   :  { %4815 = vrot.lane.b32.xlu0 %v12653_v24, %s8883_s2 }
 0x7ef   :  { %v4053_v62 = vpop.permute.xlu1 %4052  ;;  %v4313_v49 = vpop.permute.xlu0 %4312 }
 0x7f0   :  { %4242 = vst.msk [vmem:[#allocation3 + $0x1f] sm:$0xfe] %vm4236_vm10, %v4053_v62  ;;  %v5030_v7 = vld [vmem:[#allocation3 + $0x18] sm:$0xff] }
 0x7f1   :  { %4813 = vrot.lane.b32.xlu1 %v12650_v6, %s8883_s2  ;;  %4489 = vst.msk [vmem:[#allocation3 + $0x29] sm:$0x7f] %vm4484_vm11, %v4313_v49 }
 0x7f2   :  { %4078 = vrot.lane.b32.xlu0 %v12653_v24, %s8880_s20 }
 0x7f3   :  { %v4311_v54 = vpop.permute.xlu1 %4310  ;;  %v5029_v58 = vld [vmem:[#allocation3 + $0x10] sm:$0xff]  ;;  %v4555_v61 = vpop.permute.xlu0 %4554 }
 0x7f4   :  { %4488 = vst.msk [vmem:[#allocation3 + $0x21] sm:$0xff] %vm4482_vm13, %v4311_v54  ;;  %8648 = vmatprep.mubr.msk.f32.mxu1 %vm2855_vm0, %v5029_v58 }
 0x7f5   :  { %4076 = vrot.lane.b32.xlu1 %v12650_v6, %s8880_s20  ;;  %8649 = vmatmul.mubr.msk.f32.gmra.mxu1 %vm2855_vm0, %v5030_v7  ;;  %4730 = vst.msk [vmem:[#allocation3 + $0x28] sm:$0xff] %vm4724_vm14, %v4555_v61 }
 0x7f6   :  { %4336 = vrot.lane.b32.xlu0 %v12667_v5, %s8881_s25 }
 0x7f7   :  { %v4553_v15 = vpop.permute.xlu1 %4552  ;;  %v3802_v24 = vpop.permute.xlu0 %3801 }
 0x7f8   :  { %4729 = vst.msk [vmem:[#allocation3 + $0x20] sm:$0xff] %vm4724_vm14, %v4553_v15 }
 0x7f9   :  { %4334 = vrot.lane.b32.xlu1 %v12656_v55, %s8881_s25  ;;  %3987 = vst.msk [vmem:[#allocation3 + $0x38] sm:$0xff] %vm3979_vm8, %v3802_v24 }
 0x7fa   :  { %4578 = vrot.lane.b32.xlu0 %v12667_v5, %s8882_s1 }
 0x7fb   :  { %v3800_v6 = vpop.permute.xlu1 %3799  ;;  %v4796_v50 = vpop.permute.xlu0 %4795 }
 0x7fc   :  { %3986 = vst.msk [vmem:[#allocation3 + $0x30] sm:$0xff] %vm3979_vm8, %v3800_v6 }
 0x7fd   :  { %4576 = vrot.lane.b32.xlu1 %v12656_v55, %s8882_s1  ;;  %4972 = vst.msk [vmem:[#allocation3 + $0x27] sm:$0xff] %vm4967_vm15, %v4796_v50 }
 0x7fe   :  { %3825 = vrot.lane.b32.xlu0 %v12667_v5, %s8878_s19 }
 0x7ff   :  { %v4794_v22 = vpop.permute.xlu1 %4793  ;;  %v4059_v38 = vpop.permute.xlu0 %4058 }
 0x800   :  { %4971 = vst.msk [vmem:[#allocation3 + $0x1f] sm:$0xfe] %vm4965_vm12, %v4794_v22 }
 0x801   :  { %3823 = vrot.lane.b32.xlu1 %v12656_v55, %s8878_s19  ;;  %4245 = vst.msk [vmem:[#allocation3 + $0x37] sm:$0xff] %vm4238_vm9, %v4059_v38 }
 0x802   :  { %4819 = vrot.lane.b32.xlu0 %v12667_v5, %s8883_s2 }
 0x803   :  { %v4057_v43 = vpop.permute.xlu1 %4056  ;;  %v4317_v37 = vpop.permute.xlu0 %4316 }
 0x804   :  { %4244 = vst.msk [vmem:[#allocation3 + $0x2f] sm:$0xfe] %vm4236_vm10, %v4057_v43  ;;  %v5032_v31 = vld [vmem:[#allocation3 + $0x28] sm:$0xff] }
 0x805   :  { %4817 = vrot.lane.b32.xlu1 %v12656_v55, %s8883_s2  ;;  %4491 = vst.msk [vmem:[#allocation3 + $0x39] sm:$0x7f] %vm4484_vm11, %v4317_v37 }
 0x806   :  { %4082 = vrot.lane.b32.xlu0 %v12667_v5, %s8880_s20 }
 0x807   :  { %v4315_v13 = vpop.permute.xlu1 %4314  ;;  %v5031_v48 = vld [vmem:[#allocation3 + $0x20] sm:$0xff]  ;;  %v4559_v41 = vpop.permute.xlu0 %4558 }
 0x808   :  { %4490 = vst.msk [vmem:[#allocation3 + $0x31] sm:$0xff] %vm4482_vm13, %v4315_v13  ;;  %8651 = vmatprep.mubr.msk.f32.mxu1 %vm2855_vm0, %v5031_v48 }
 0x809   :  { %4080 = vrot.lane.b32.xlu1 %v12656_v55, %s8880_s20  ;;  %8652 = vmatmul.mubr.msk.f32.gmra.mxu1 %vm2855_vm0, %v5032_v31  ;;  %4732 = vst.msk [vmem:[#allocation3 + $0x38] sm:$0xff] %vm4724_vm14, %v4559_v41 }
 0x80a   :  { %4340 = vrot.lane.b32.xlu0 %v12673_v17, %s8881_s25 }
 0x80b   :  { %v4557_v51 = vpop.permute.xlu1 %4556  ;;  %v3806_v5 = vpop.permute.xlu0 %3805 }
 0x80c   :  { %4731 = vst.msk [vmem:[#allocation3 + $0x30] sm:$0xff] %vm4724_vm14, %v4557_v51 }
 0x80d   :  { %4338 = vrot.lane.b32.xlu1 %v12670_v39, %s8881_s25  ;;  %3989 = vst.msk [vmem:[#allocation3 + $0x48] sm:$0xff] %vm3979_vm8, %v3806_v5 }
 0x80e   :  { %4582 = vrot.lane.b32.xlu0 %v12673_v17, %s8882_s1 }
 0x80f   :  { %v3804_v55 = vpop.permute.xlu1 %3803  ;;  %v4800_v56 = vpop.permute.xlu0 %4799 }
 0x810   :  { %3988 = vst.msk [vmem:[#allocation3 + $0x40] sm:$0xff] %vm3979_vm8, %v3804_v55 }
 0x811   :  { %4580 = vrot.lane.b32.xlu1 %v12670_v39, %s8882_s1  ;;  %4974 = vst.msk [vmem:[#allocation3 + $0x37] sm:$0xff] %vm4967_vm15, %v4800_v56 }
 0x812   :  { %3829 = vrot.lane.b32.xlu0 %v12673_v17, %s8878_s19 }
 0x813   :  { %v4798_v19 = vpop.permute.xlu1 %4797  ;;  %v4063_v23 = vpop.permute.xlu0 %4062 }
 0x814   :  { %4973 = vst.msk [vmem:[#allocation3 + $0x2f] sm:$0xfe] %vm4965_vm12, %v4798_v19 }
 0x815   :  { %3827 = vrot.lane.b32.xlu1 %v12670_v39, %s8878_s19  ;;  %4247 = vst.msk [vmem:[#allocation3 + $0x47] sm:$0xff] %vm4238_vm9, %v4063_v23 }
 0x816   :  { %4823 = vrot.lane.b32.xlu0 %v12673_v17, %s8883_s2 }
 0x817   :  { %v4061_v2 = vpop.permute.xlu1 %4060  ;;  %v4321_v18 = vpop.permute.xlu0 %4320 }
 0x818   :  { %4246 = vst.msk [vmem:[#allocation3 + $0x3f] sm:$0xfe] %vm4236_vm10, %v4061_v2  ;;  %v5034_v62 = vld [vmem:[#allocation3 + $0x38] sm:$0xff] }
 0x819   :  { %4821 = vrot.lane.b32.xlu1 %v12670_v39, %s8883_s2  ;;  %4493 = vst.msk [vmem:[#allocation3 + $0x49] sm:$0x7f] %vm4484_vm11, %v4321_v18 }
 0x81a   :  { %4086 = vrot.lane.b32.xlu0 %v12673_v17, %s8880_s20 }
 0x81b   :  { %v4319_v49 = vpop.permute.xlu1 %4318  ;;  %v5033_v7 = vld [vmem:[#allocation3 + $0x30] sm:$0xff]  ;;  %v4563_v54 = vpop.permute.xlu0 %4562 }
 0x81c   :  { %4492 = vst.msk [vmem:[#allocation3 + $0x41] sm:$0xff] %vm4482_vm13, %v4319_v49  ;;  %8654 = vmatprep.mubr.msk.f32.mxu1 %vm2855_vm0, %v5033_v7 }
 0x81d   :  { %4084 = vrot.lane.b32.xlu1 %v12670_v39, %s8880_s20  ;;  %8655 = vmatmul.mubr.msk.f32.gmra.mxu1 %vm2855_vm0, %v5034_v62  ;;  %4734 = vst.msk [vmem:[#allocation3 + $0x48] sm:$0xff] %vm4724_vm14, %v4563_v54 }
 0x81e   :  { %4344 = vrot.lane.b32.xlu0 %v12687_v1, %s8881_s25 }
 0x81f   :  { %v4561_v58 = vpop.permute.xlu1 %4560  ;;  %v3810_v17 = vpop.permute.xlu0 %3809 }
 0x820   :  { %4733 = vst.msk [vmem:[#allocation3 + $0x40] sm:$0xff] %vm4724_vm14, %v4561_v58 }
 0x821   :  { %4342 = vrot.lane.b32.xlu1 %v12676_v4, %s8881_s25  ;;  %3991 = vst.msk [vmem:[#allocation3 + $0x58] sm:$0xff] %vm3979_vm8, %v3810_v17 }
 0x822   :  { %4586 = vrot.lane.b32.xlu0 %v12687_v1, %s8882_s1 }
 0x823   :  { %v3808_v39 = vpop.permute.xlu1 %3807  ;;  %v4804_v61 = vpop.permute.xlu0 %4803 }
 0x824   :  { %3990 = vst.msk [vmem:[#allocation3 + $0x50] sm:$0xff] %vm3979_vm8, %v3808_v39 }
 0x825   :  { %4584 = vrot.lane.b32.xlu1 %v12676_v4, %s8882_s1  ;;  %4976 = vst.msk [vmem:[#allocation3 + $0x47] sm:$0xff] %vm4967_vm15, %v4804_v61 }
 0x826   :  { %3833 = vrot.lane.b32.xlu0 %v12687_v1, %s8878_s19 }
 0x827   :  { %v4802_v15 = vpop.permute.xlu1 %4801  ;;  %v4067_v24 = vpop.permute.xlu0 %4066 }
 0x828   :  { %4975 = vst.msk [vmem:[#allocation3 + $0x3f] sm:$0xfe] %vm4965_vm12, %v4802_v15 }
 0x829   :  { %3831 = vrot.lane.b32.xlu1 %v12676_v4, %s8878_s19  ;;  %4249 = vst.msk [vmem:[#allocation3 + $0x57] sm:$0xff] %vm4238_vm9, %v4067_v24 }
 0x82a   :  { %4827 = vrot.lane.b32.xlu0 %v12687_v1, %s8883_s2 }
 0x82b   :  { %v4065_v6 = vpop.permute.xlu1 %4064  ;;  %v4325_v50 = vpop.permute.xlu0 %4324 }
 0x82c   :  { %4248 = vst.msk [vmem:[#allocation3 + $0x4f] sm:$0xfe] %vm4236_vm10, %v4065_v6  ;;  %v5036_v22 = vld [vmem:[#allocation3 + $0x48] sm:$0xff] }
 0x82d   :  { %4825 = vrot.lane.b32.xlu1 %v12676_v4, %s8883_s2  ;;  %4495 = vst.msk [vmem:[#allocation3 + $0x59] sm:$0x7f] %vm4484_vm11, %v4325_v50 }
 0x82e   :  { %4090 = vrot.lane.b32.xlu0 %v12687_v1, %s8880_s20 }
 0x82f   :  { %v4323_v38 = vpop.permute.xlu1 %4322  ;;  %v5035_v43 = vld [vmem:[#allocation3 + $0x40] sm:$0xff]  ;;  %v4567_v37 = vpop.permute.xlu0 %4566 }
 0x830   :  { %4494 = vst.msk [vmem:[#allocation3 + $0x51] sm:$0xff] %vm4482_vm13, %v4323_v38  ;;  %8657 = vmatprep.mubr.msk.f32.mxu1 %vm2855_vm0, %v5035_v43 }
 0x831   :  { %4088 = vrot.lane.b32.xlu1 %v12676_v4, %s8880_s20  ;;  %8658 = vmatmul.mubr.msk.f32.gmra.mxu1 %vm2855_vm0, %v5036_v22  ;;  %4736 = vst.msk [vmem:[#allocation3 + $0x58] sm:$0xff] %vm4724_vm14, %v4567_v37 }
 0x832   :  { %4348 = vrot.lane.b32.xlu0 %v12693_v3, %s8881_s25 }
 0x833   :  { %v4565_v31 = vpop.permute.xlu1 %4564  ;;  %v3814_v1 = vpop.permute.xlu0 %3813 }
 0x834   :  { %4735 = vst.msk [vmem:[#allocation3 + $0x50] sm:$0xff] %vm4724_vm14, %v4565_v31 }
 0x835   :  { %4346 = vrot.lane.b32.xlu1 %v12690_v57, %s8881_s25  ;;  %3993 = vst.msk [vmem:[#allocation3 + $0x68] sm:$0xff] %vm3979_vm8, %v3814_v1 }
 0x836   :  { %4590 = vrot.lane.b32.xlu0 %v12693_v3, %s8882_s1 }
 0x837   :  { %v3812_v4 = vpop.permute.xlu1 %3811  ;;  %v4808_v13 = vpop.permute.xlu0 %4807 }
 0x838   :  { %3992 = vst.msk [vmem:[#allocation3 + $0x60] sm:$0xff] %vm3979_vm8, %v3812_v4 }
 0x839   :  { %4588 = vrot.lane.b32.xlu1 %v12690_v57, %s8882_s1  ;;  %4978 = vst.msk [vmem:[#allocation3 + $0x57] sm:$0xff] %vm4967_vm15, %v4808_v13 }
 0x83a   :  { %3837 = vrot.lane.b32.xlu0 %v12693_v3, %s8878_s19 }
 0x83b   :  { %v4806_v48 = vpop.permute.xlu1 %4805  ;;  %v4071_v41 = vpop.permute.xlu0 %4070 }
 0x83c   :  { %4977 = vst.msk [vmem:[#allocation3 + $0x4f] sm:$0xfe] %vm4965_vm12, %v4806_v48 }
 0x83d   :  { %3835 = vrot.lane.b32.xlu1 %v12690_v57, %s8878_s19  ;;  %4251 = vst.msk [vmem:[#allocation3 + $0x67] sm:$0xff] %vm4238_vm9, %v4071_v41 }
 0x83e   :  { %4831 = vrot.lane.b32.xlu0 %v12693_v3, %s8883_s2 }
 0x83f   :  { %v4069_v51 = vpop.permute.xlu1 %4068  ;;  %v4329_v5 = vpop.permute.xlu0 %4328 }
 0x840   :  { %4250 = vst.msk [vmem:[#allocation3 + $0x5f] sm:$0xfe] %vm4236_vm10, %v4069_v51  ;;  %v5038_v55 = vld [vmem:[#allocation3 + $0x58] sm:$0xff] }
 0x841   :  { %4829 = vrot.lane.b32.xlu1 %v12690_v57, %s8883_s2  ;;  %4497 = vst.msk [vmem:[#allocation3 + $0x69] sm:$0x7f] %vm4484_vm11, %v4329_v5 }
 0x842   :  { %4094 = vrot.lane.b32.xlu0 %v12693_v3, %s8880_s20 }
 0x843   :  { %v4327_v56 = vpop.permute.xlu1 %4326  ;;  %v5037_v19 = vld [vmem:[#allocation3 + $0x50] sm:$0xff]  ;;  %v4571_v23 = vpop.permute.xlu0 %4570 }
 0x844   :  { %4496 = vst.msk [vmem:[#allocation3 + $0x61] sm:$0xff] %vm4482_vm13, %v4327_v56  ;;  %8660 = vmatprep.mubr.msk.f32.mxu1 %vm2855_vm0, %v5037_v19 }
 0x845   :  { %4092 = vrot.lane.b32.xlu1 %v12690_v57, %s8880_s20  ;;  %8661 = vmatmul.mubr.msk.f32.gmra.mxu1 %vm2855_vm0, %v5038_v55  ;;  %4738 = vst.msk [vmem:[#allocation3 + $0x68] sm:$0xff] %vm4724_vm14, %v4571_v23 }
 0x846   :  { %4352 = vrot.lane.b32.xlu0 %v12713_v16, %s8881_s25 }
 0x847   :  { %v4569_v2 = vpop.permute.xlu1 %4568  ;;  %v3818_v3 = vpop.permute.xlu0 %3817 }
 0x848   :  { %4737 = vst.msk [vmem:[#allocation3 + $0x60] sm:$0xff] %vm4724_vm14, %v4569_v2 }
 0x849   :  { %4350 = vrot.lane.b32.xlu1 %v12696_v33, %s8881_s25  ;;  %3995 = vst.msk [vmem:[#allocation3 + $0x78] sm:$0xff] %vm3979_vm8, %v3818_v3 }
 0x84a   :  { %4594 = vrot.lane.b32.xlu0 %v12713_v16, %s8882_s1 }
 0x84b   :  { %v3816_v57 = vpop.permute.xlu1 %3815  ;;  %v4812_v18 = vpop.permute.xlu0 %4811 }
 0x84c   :  { %3994 = vst.msk [vmem:[#allocation3 + $0x70] sm:$0xff] %vm3979_vm8, %v3816_v57 }
 0x84d   :  { %4592 = vrot.lane.b32.xlu1 %v12696_v33, %s8882_s1  ;;  %4980 = vst.msk [vmem:[#allocation3 + $0x67] sm:$0xff] %vm4967_vm15, %v4812_v18 }
 0x84e   :  { %3841 = vrot.lane.b32.xlu0 %v12713_v16, %s8878_s19 }
 0x84f   :  { %v4810_v62 = vpop.permute.xlu1 %4809  ;;  %v4075_v49 = vpop.permute.xlu0 %4074 }
 0x850   :  { %4979 = vst.msk [vmem:[#allocation3 + $0x5f] sm:$0xfe] %vm4965_vm12, %v4810_v62 }
 0x851   :  { %3839 = vrot.lane.b32.xlu1 %v12696_v33, %s8878_s19  ;;  %4253 = vst.msk [vmem:[#allocation3 + $0x77] sm:$0xff] %vm4238_vm9, %v4075_v49 }
 0x852   :  { %4835 = vrot.lane.b32.xlu0 %v12713_v16, %s8883_s2 }
 0x853   :  { %v4073_v7 = vpop.permute.xlu1 %4072 }
 0x854   :  { %4252 = vst.msk [vmem:[#allocation3 + $0x6f] sm:$0xfe] %vm4236_vm10, %v4073_v7  ;;  %v4333_v54 = vpop.permute.xlu0 %4332  ;;  %v5040_v58 = vld [vmem:[#allocation3 + $0x68] sm:$0xff] }
 0x855   :  { %4833 = vrot.lane.b32.xlu1 %v12696_v33, %s8883_s2  ;;  %4499 = vst.msk [vmem:[#allocation3 + $0x79] sm:$0x7f] %vm4484_vm11, %v4333_v54 }
 0x856   :  { %4098 = vrot.lane.b32.xlu0 %v12713_v16, %s8880_s20 }
 0x857   :  { %v4331_v17 = vpop.permute.xlu1 %4330  ;;  %v5039_v39 = vld [vmem:[#allocation3 + $0x60] sm:$0xff] }
 0x858   :  { %4498 = vst.msk [vmem:[#allocation3 + $0x71] sm:$0xff] %vm4482_vm13, %v4331_v17  ;;  %8663 = vmatprep.mubr.msk.f32.mxu1 %vm2855_vm0, %v5039_v39  ;;  %v4575_v61 = vpop.permute.xlu0 %4574 }
 0x859   :  { %4096 = vrot.lane.b32.xlu1 %v12696_v33, %s8880_s20  ;;  %8664 = vmatmul.mubr.msk.f32.gmra.mxu1 %vm2855_vm0, %v5040_v58  ;;  %4740 = vst.msk [vmem:[#allocation3 + $0x78] sm:$0xff] %vm4724_vm14, %v4575_v61 }
 0x85a   :  { %4356 = vrot.lane.b32.xlu0 %v12719_v46, %s8881_s25 }
 0x85b   :  { %v4573_v15 = vpop.permute.xlu1 %4572 }
 0x85c   :  { %4739 = vst.msk [vmem:[#allocation3 + $0x70] sm:$0xff] %vm4724_vm14, %v4573_v15  ;;  %v3822_v16 = vpop.permute.xlu0 %3821 }
 0x85d   :  { %4354 = vrot.lane.b32.xlu1 %v12716_v9, %s8881_s25  ;;  %3997 = vst.msk [vmem:[#allocation3 + $0x88] sm:$0xff] %vm3979_vm8, %v3822_v16 }
 0x85e   :  { %4598 = vrot.lane.b32.xlu0 %v12719_v46, %s8882_s1 }
 0x85f   :  { %v3820_v33 = vpop.permute.xlu1 %3819 }
 0x860   :  { %3996 = vst.msk [vmem:[#allocation3 + $0x80] sm:$0xff] %vm3979_vm8, %v3820_v33  ;;  %v4816_v24 = vpop.permute.xlu0 %4815 }
 0x861   :  { %4596 = vrot.lane.b32.xlu1 %v12716_v9, %s8882_s1  ;;  %4982 = vst.msk [vmem:[#allocation3 + $0x77] sm:$0xff] %vm4967_vm15, %v4816_v24 }
 0x862   :  { %3845 = vrot.lane.b32.xlu0 %v12719_v46, %s8878_s19 }
 0x863   :  { %v4814_v6 = vpop.permute.xlu1 %4813 }
 0x864   :  { %4981 = vst.msk [vmem:[#allocation3 + $0x6f] sm:$0xfe] %vm4965_vm12, %v4814_v6  ;;  %v4079_v50 = vpop.permute.xlu0 %4078 }
 0x865   :  { %3843 = vrot.lane.b32.xlu1 %v12716_v9, %s8878_s19  ;;  %4255 = vst.msk [vmem:[#allocation3 + $0x87] sm:$0xff] %vm4238_vm9, %v4079_v50 }
 0x866   :  { %4839 = vrot.lane.b32.xlu0 %v12719_v46, %s8883_s2 }
 0x867   :  { %v4077_v22 = vpop.permute.xlu1 %4076 }
 0x868   :  { %4254 = vst.msk [vmem:[#allocation3 + $0x7f] sm:$0xfe] %vm4236_vm10, %v4077_v22  ;;  %v4337_v38 = vpop.permute.xlu0 %4336  ;;  %v5042_v43 = vld [vmem:[#allocation3 + $0x78] sm:$0xff] }
 0x869   :  { %4837 = vrot.lane.b32.xlu1 %v12716_v9, %s8883_s2  ;;  %4501 = vst.msk [vmem:[#allocation3 + $0x89] sm:$0x7f] %vm4484_vm11, %v4337_v38 }
 0x86a   :  { %4102 = vrot.lane.b32.xlu0 %v12719_v46, %s8880_s20 }
 0x86b   :  { %v4335_v37 = vpop.permute.xlu1 %4334  ;;  %v5041_v31 = vld [vmem:[#allocation3 + $0x70] sm:$0xff] }
 0x86c   :  { %4500 = vst.msk [vmem:[#allocation3 + $0x81] sm:$0xff] %vm4482_vm13, %v4335_v37  ;;  %8666 = vmatprep.mubr.msk.f32.mxu1 %vm2855_vm0, %v5041_v31  ;;  %v4579_v1 = vpop.permute.xlu0 %4578 }
 0x86d   :  { %4100 = vrot.lane.b32.xlu1 %v12716_v9, %s8880_s20  ;;  %8667 = vmatmul.mubr.msk.f32.gmra.mxu1 %vm2855_vm0, %v5042_v43  ;;  %4742 = vst.msk [vmem:[#allocation3 + $0x88] sm:$0xff] %vm4724_vm14, %v4579_v1 }
 0x86e   :  { %4360 = vrot.lane.b32.xlu0 %v13276_v63, %s8881_s25 }
 0x86f   :  { %v4577_v4 = vpop.permute.xlu1 %4576 }
 0x870   :  { %4741 = vst.msk [vmem:[#allocation3 + $0x80] sm:$0xff] %vm4724_vm14, %v4577_v4  ;;  %v3826_v46 = vpop.permute.xlu0 %3825 }
 0x871   :  { %4358 = vrot.lane.b32.xlu1 %v13285_v29, %s8881_s25  ;;  %3999 = vst.msk [vmem:[#allocation3 + $0x98] sm:$0xff] %vm3979_vm8, %v3826_v46 }
 0x872   :  { %4602 = vrot.lane.b32.xlu0 %v13276_v63, %s8882_s1 }
 0x873   :  { %v3824_v9 = vpop.permute.xlu1 %3823 }
 0x874   :  { %3998 = vst.msk [vmem:[#allocation3 + $0x90] sm:$0xff] %vm3979_vm8, %v3824_v9  ;;  %v4820_v13 = vpop.permute.xlu0 %4819 }
 0x875   :  { %4600 = vrot.lane.b32.xlu1 %v13285_v29, %s8882_s1  ;;  %4984 = vst.msk [vmem:[#allocation3 + $0x87] sm:$0xff] %vm4967_vm15, %v4820_v13 }
 0x876   :  { %4843 = vrot.lane.b32.xlu0 %v13276_v63, %s8883_s2 }
 0x877   :  { %v4818_v48 = vpop.permute.xlu1 %4817 }
 0x878   :  { %4983 = vst.msk [vmem:[#allocation3 + $0x7f] sm:$0xfe] %vm4965_vm12, %v4818_v48  ;;  %v4083_v41 = vpop.permute.xlu0 %4082 }
 0x879   :  { %4841 = vrot.lane.b32.xlu1 %v13285_v29, %s8883_s2  ;;  %4257 = vst.msk [vmem:[#allocation3 + $0x97] sm:$0xff] %vm4238_vm9, %v4083_v41 }
 0x87a   :  { %3849 = vrot.lane.b32.xlu0 %v13276_v63, %s8878_s19 }
 0x87b   :  { %v4081_v51 = vpop.permute.xlu1 %4080 }
 0x87c   :  { %4256 = vst.msk [vmem:[#allocation3 + $0x8f] sm:$0xfe] %vm4236_vm10, %v4081_v51  ;;  %v4341_v5 = vpop.permute.xlu0 %4340  ;;  %v5044_v55 = vld [vmem:[#allocation3 + $0x88] sm:$0xff] }
 0x87d   :  { %3847 = vrot.lane.b32.xlu1 %v13285_v29, %s8878_s19  ;;  %4503 = vst.msk [vmem:[#allocation3 + $0x99] sm:$0x7f] %vm4484_vm11, %v4341_v5 }
 0x87e   :  { %3853 = vrot.lane.b32.xlu0 %v12737_v28, %s8878_s19 }
 0x87f   :  { %v4339_v56 = vpop.permute.xlu1 %4338  ;;  %v5043_v19 = vld [vmem:[#allocation3 + $0x80] sm:$0xff] }
 0x880   :  { %4502 = vst.msk [vmem:[#allocation3 + $0x91] sm:$0xff] %vm4482_vm13, %v4339_v56  ;;  %8669 = vmatprep.mubr.msk.f32.mxu1 %vm2855_vm0, %v5043_v19  ;;  %v4583_v23 = vpop.permute.xlu0 %4582 }
 0x881   :  { %3851 = vrot.lane.b32.xlu1 %v12734_v45, %s8878_s19  ;;  %8670 = vmatmul.mubr.msk.f32.gmra.mxu1 %vm2855_vm0, %v5044_v55  ;;  %4744 = vst.msk [vmem:[#allocation3 + $0x98] sm:$0xff] %vm4724_vm14, %v4583_v23 }
 0x882   :  { %4106 = vrot.lane.b32.xlu0 %v13276_v63, %s8880_s20 }
 0x883   :  { %v4581_v2 = vpop.permute.xlu1 %4580 }
 0x884   :  { %4743 = vst.msk [vmem:[#allocation3 + $0x90] sm:$0xff] %vm4724_vm14, %v4581_v2  ;;  %v3830_v3 = vpop.permute.xlu0 %3829 }
 0x885   :  { %4104 = vrot.lane.b32.xlu1 %v13285_v29, %s8880_s20  ;;  %4001 = vst.msk [vmem:[#allocation3 + $0xa8] sm:$0xff] %vm3979_vm8, %v3830_v3 }
 0x886   :  { %4110 = vrot.lane.b32.xlu0 %v12737_v28, %s8880_s20 }
 0x887   :  { %v3828_v57 = vpop.permute.xlu1 %3827 }
 0x888   :  { %4000 = vst.msk [vmem:[#allocation3 + $0xa0] sm:$0xff] %vm3979_vm8, %v3828_v57  ;;  %v4824_v18 = vpop.permute.xlu0 %4823 }
 0x889   :  { %4108 = vrot.lane.b32.xlu1 %v12734_v45, %s8880_s20  ;;  %4986 = vst.msk [vmem:[#allocation3 + $0x97] sm:$0xff] %vm4967_vm15, %v4824_v18 }
 0x88a   :  { %4364 = vrot.lane.b32.xlu0 %v12751_v32, %s8881_s25 }
 0x88b   :  { %v4822_v63 = vpop.permute.xlu1 %4821 }
 0x88c   :  { %4985 = vst.msk [vmem:[#allocation3 + $0x8f] sm:$0xfe] %vm4965_vm12, %v4822_v63  ;;  %v4087_v29 = vpop.permute.xlu0 %4086 }
 0x88d   :  { %4362 = vrot.lane.b32.xlu1 %v12740_v27, %s8881_s25  ;;  %4259 = vst.msk [vmem:[#allocation3 + $0xa7] sm:$0xff] %vm4238_vm9, %v4087_v29 }
 0x88e   :  { %4606 = vrot.lane.b32.xlu0 %v12751_v32, %s8882_s1 }
 0x88f   :  { %v4085_v28 = vpop.permute.xlu1 %4084 }
 0x890   :  { %4258 = vst.msk [vmem:[#allocation3 + $0x9f] sm:$0xfe] %vm4236_vm10, %v4085_v28  ;;  %v4345_v45 = vpop.permute.xlu0 %4344  ;;  %v5046_v62 = vld [vmem:[#allocation3 + $0x98] sm:$0xff] }
 0x891   :  { %4604 = vrot.lane.b32.xlu1 %v12740_v27, %s8882_s1  ;;  %4505 = vst.msk [vmem:[#allocation3 + $0xa9] sm:$0x7f] %vm4484_vm11, %v4345_v45 }
 0x892   :  { %3857 = vrot.lane.b32.xlu0 %v12751_v32, %s8878_s19 }
 0x893   :  { %v4343_v49 = vpop.permute.xlu1 %4342  ;;  %v5045_v7 = vld [vmem:[#allocation3 + $0x90] sm:$0xff] }
 0x894   :  { %4504 = vst.msk [vmem:[#allocation3 + $0xa1] sm:$0xff] %vm4482_vm13, %v4343_v49  ;;  %8672 = vmatprep.mubr.msk.f32.mxu1 %vm2855_vm0, %v5045_v7  ;;  %v4587_v54 = vpop.permute.xlu0 %4586 }
 0x895   :  { %3855 = vrot.lane.b32.xlu1 %v12740_v27, %s8878_s19  ;;  %8673 = vmatmul.mubr.msk.f32.gmra.mxu1 %vm2855_vm0, %v5046_v62  ;;  %4746 = vst.msk [vmem:[#allocation3 + $0xa8] sm:$0xff] %vm4724_vm14, %v4587_v54 }
 0x896   :  { %4847 = vrot.lane.b32.xlu0 %v12751_v32, %s8883_s2 }
 0x897   :  { %v4585_v58 = vpop.permute.xlu1 %4584 }
 0x898   :  { %4745 = vst.msk [vmem:[#allocation3 + $0xa0] sm:$0xff] %vm4724_vm14, %v4585_v58  ;;  %v3834_v17 = vpop.permute.xlu0 %3833 }
 0x899   :  { %4845 = vrot.lane.b32.xlu1 %v12740_v27, %s8883_s2  ;;  %4003 = vst.msk [vmem:[#allocation3 + $0xb8] sm:$0xff] %vm3979_vm8, %v3834_v17 }
 0x89a   :  { %4114 = vrot.lane.b32.xlu0 %v12751_v32, %s8880_s20 }
 0x89b   :  { %v3832_v39 = vpop.permute.xlu1 %3831 }
 0x89c   :  { %4002 = vst.msk [vmem:[#allocation3 + $0xb0] sm:$0xff] %vm3979_vm8, %v3832_v39  ;;  %v4828_v61 = vpop.permute.xlu0 %4827 }
 0x89d   :  { %4112 = vrot.lane.b32.xlu1 %v12740_v27, %s8880_s20  ;;  %4988 = vst.msk [vmem:[#allocation3 + $0xa7] sm:$0xff] %vm4967_vm15, %v4828_v61 }
 0x89e   :  { %4368 = vrot.lane.b32.xlu0 %v12757_v53, %s8881_s25 }
 0x89f   :  { %v4826_v15 = vpop.permute.xlu1 %4825 }
 0x8a0   :  { %4987 = vst.msk [vmem:[#allocation3 + $0x9f] sm:$0xfe] %vm4965_vm12, %v4826_v15  ;;  %v4091_v16 = vpop.permute.xlu0 %4090 }
 0x8a1   :  { %4366 = vrot.lane.b32.xlu1 %v12754_v0, %s8881_s25  ;;  %4261 = vst.msk [vmem:[#allocation3 + $0xb7] sm:$0xff] %vm4238_vm9, %v4091_v16 }
 0x8a2   :  { %4610 = vrot.lane.b32.xlu0 %v12757_v53, %s8882_s1 }
 0x8a3   :  { %v4089_v32 = vpop.permute.xlu1 %4088 }
 0x8a4   :  { %4260 = vst.msk [vmem:[#allocation3 + $0xaf] sm:$0xfe] %vm4236_vm10, %v4089_v32  ;;  %v4349_v27 = vpop.permute.xlu0 %4348  ;;  %v5048_v33 = vld [vmem:[#allocation3 + $0xa8] sm:$0xff] }
 0x8a5   :  { %4608 = vrot.lane.b32.xlu1 %v12754_v0, %s8882_s1  ;;  %4507 = vst.msk [vmem:[#allocation3 + $0xb9] sm:$0x7f] %vm4484_vm11, %v4349_v27 }
 0x8a6   :  { %3861 = vrot.lane.b32.xlu0 %v12757_v53, %s8878_s19 }
 0x8a7   :  { %v4347_v24 = vpop.permute.xlu1 %4346  ;;  %v5047_v6 = vld [vmem:[#allocation3 + $0xa0] sm:$0xff] }
 0x8a8   :  { %4506 = vst.msk [vmem:[#allocation3 + $0xb1] sm:$0xff] %vm4482_vm13, %v4347_v24  ;;  %8675 = vmatprep.mubr.msk.f32.mxu1 %vm2855_vm0, %v5047_v6  ;;  %v4591_v50 = vpop.permute.xlu0 %4590 }
 0x8a9   :  { %3859 = vrot.lane.b32.xlu1 %v12754_v0, %s8878_s19  ;;  %8676 = vmatmul.mubr.msk.f32.gmra.mxu1 %vm2855_vm0, %v5048_v33  ;;  %4748 = vst.msk [vmem:[#allocation3 + $0xb8] sm:$0xff] %vm4724_vm14, %v4591_v50 }
 0x8aa   :  { %4851 = vrot.lane.b32.xlu0 %v12757_v53, %s8883_s2 }
 0x8ab   :  { %v4589_v22 = vpop.permute.xlu1 %4588 }
 0x8ac   :  { %4747 = vst.msk [vmem:[#allocation3 + $0xb0] sm:$0xff] %vm4724_vm14, %v4589_v22  ;;  %v3838_v38 = vpop.permute.xlu0 %3837 }
 0x8ad   :  { %4849 = vrot.lane.b32.xlu1 %v12754_v0, %s8883_s2  ;;  %4005 = vst.msk [vmem:[#allocation3 + $0xc8] sm:$0xff] %vm3979_vm8, %v3838_v38 }
 0x8ae   :  { %4118 = vrot.lane.b32.xlu0 %v12757_v53, %s8880_s20 }
 0x8af   :  { %v3836_v43 = vpop.permute.xlu1 %3835 }
 0x8b0   :  { %4004 = vst.msk [vmem:[#allocation3 + $0xc0] sm:$0xff] %vm3979_vm8, %v3836_v43  ;;  %v4832_v37 = vpop.permute.xlu0 %4831 }
 0x8b1   :  { %4116 = vrot.lane.b32.xlu1 %v12754_v0, %s8880_s20  ;;  %4990 = vst.msk [vmem:[#allocation3 + $0xb7] sm:$0xff] %vm4967_vm15, %v4832_v37 }
 0x8b2   :  { %4372 = vrot.lane.b32.xlu0 %v12769_v21, %s8881_s25 }
 0x8b3   :  { %v4830_v31 = vpop.permute.xlu1 %4829 }
 0x8b4   :  { %4989 = vst.msk [vmem:[#allocation3 + $0xaf] sm:$0xfe] %vm4965_vm12, %v4830_v31  ;;  %v4095_v1 = vpop.permute.xlu0 %4094 }
 0x8b5   :  { %4370 = vrot.lane.b32.xlu1 %v12760_v40, %s8881_s25  ;;  %4263 = vst.msk [vmem:[#allocation3 + $0xc7] sm:$0xff] %vm4238_vm9, %v4095_v1 }
 0x8b6   :  { %4614 = vrot.lane.b32.xlu0 %v12769_v21, %s8882_s1 }
 0x8b7   :  { %v4093_v53 = vpop.permute.xlu1 %4092 }
 0x8b8   :  { %4262 = vst.msk [vmem:[#allocation3 + $0xbf] sm:$0xfe] %vm4236_vm10, %v4093_v53  ;;  %v4353_v0 = vpop.permute.xlu0 %4352  ;;  %v5050_v4 = vld [vmem:[#allocation3 + $0xb8] sm:$0xff] }
 0x8b9   :  { %4612 = vrot.lane.b32.xlu1 %v12760_v40, %s8882_s1  ;;  %4509 = vst.msk [vmem:[#allocation3 + $0xc9] sm:$0x7f] %vm4484_vm11, %v4353_v0 }
 0x8ba   :  { %3865 = vrot.lane.b32.xlu0 %v12769_v21, %s8878_s19 }
 0x8bb   :  { %v4351_v46 = vpop.permute.xlu1 %4350  ;;  %v5049_v9 = vld [vmem:[#allocation3 + $0xb0] sm:$0xff] }
 0x8bc   :  { %4508 = vst.msk [vmem:[#allocation3 + $0xc1] sm:$0xff] %vm4482_vm13, %v4351_v46  ;;  %8678 = vmatprep.mubr.msk.f32.mxu1 %vm2855_vm0, %v5049_v9  ;;  %v4595_v13 = vpop.permute.xlu0 %4594 }
 0x8bd   :  { %3863 = vrot.lane.b32.xlu1 %v12760_v40, %s8878_s19  ;;  %8679 = vmatmul.mubr.msk.f32.gmra.mxu1 %vm2855_vm0, %v5050_v4  ;;  %4750 = vst.msk [vmem:[#allocation3 + $0xc8] sm:$0xff] %vm4724_vm14, %v4595_v13 }
 0x8be   :  { %4855 = vrot.lane.b32.xlu0 %v12769_v21, %s8883_s2 }
 0x8bf   :  { %v4593_v48 = vpop.permute.xlu1 %4592 }
 0x8c0   :  { %4749 = vst.msk [vmem:[#allocation3 + $0xc0] sm:$0xff] %vm4724_vm14, %v4593_v48  ;;  %v3842_v41 = vpop.permute.xlu0 %3841 }
 0x8c1   :  { %4853 = vrot.lane.b32.xlu1 %v12760_v40, %s8883_s2  ;;  %4007 = vst.msk [vmem:[#allocation3 + $0xd8] sm:$0xff] %vm3979_vm8, %v3842_v41 }
 0x8c2   :  { %4122 = vrot.lane.b32.xlu0 %v12769_v21, %s8880_s20 }
 0x8c3   :  { %v3840_v51 = vpop.permute.xlu1 %3839 }
 0x8c4   :  { %4006 = vst.msk [vmem:[#allocation3 + $0xd0] sm:$0xff] %vm3979_vm8, %v3840_v51  ;;  %v4836_v5 = vpop.permute.xlu0 %4835 }
 0x8c5   :  { %4120 = vrot.lane.b32.xlu1 %v12760_v40, %s8880_s20  ;;  %4992 = vst.msk [vmem:[#allocation3 + $0xc7] sm:$0xff] %vm4967_vm15, %v4836_v5 }
 0x8c6   :  { %4376 = vrot.lane.b32.xlu0 %v12775_v35, %s8881_s25 }
 0x8c7   :  { %v4834_v55 = vpop.permute.xlu1 %4833 }
 0x8c8   :  { %4991 = vst.msk [vmem:[#allocation3 + $0xbf] sm:$0xfe] %vm4965_vm12, %v4834_v55  ;;  %v4099_v56 = vpop.permute.xlu0 %4098 }
 0x8c9   :  { %4374 = vrot.lane.b32.xlu1 %v12772_v12, %s8881_s25  ;;  %4265 = vst.msk [vmem:[#allocation3 + $0xd7] sm:$0xff] %vm4238_vm9, %v4099_v56 }
 0x8ca   :  { %4618 = vrot.lane.b32.xlu0 %v12775_v35, %s8882_s1 }
 0x8cb   :  { %v4097_v21 = vpop.permute.xlu1 %4096 }
 0x8cc   :  { %4264 = vst.msk [vmem:[#allocation3 + $0xcf] sm:$0xfe] %vm4236_vm10, %v4097_v21  ;;  %v4357_v40 = vpop.permute.xlu0 %4356  ;;  %v5052_v19 = vld [vmem:[#allocation3 + $0xc8] sm:$0xff] }
 0x8cd   :  { %4616 = vrot.lane.b32.xlu1 %v12772_v12, %s8882_s1  ;;  %4511 = vst.msk [vmem:[#allocation3 + $0xd9] sm:$0x7f] %vm4484_vm11, %v4357_v40 }
 0x8ce   :  { %3869 = vrot.lane.b32.xlu0 %v12775_v35, %s8878_s19 }
 0x8cf   :  { %v4355_v23 = vpop.permute.xlu1 %4354  ;;  %v5051_v2 = vld [vmem:[#allocation3 + $0xc0] sm:$0xff] }
 0x8d0   :  { %4510 = vst.msk [vmem:[#allocation3 + $0xd1] sm:$0xff] %vm4482_vm13, %v4355_v23  ;;  %8681 = vmatprep.mubr.msk.f32.mxu1 %vm2855_vm0, %v5051_v2  ;;  %v4599_v3 = vpop.permute.xlu0 %4598 }
 0x8d1   :  { %3867 = vrot.lane.b32.xlu1 %v12772_v12, %s8878_s19  ;;  %8682 = vmatmul.mubr.msk.f32.gmra.mxu1 %vm2855_vm0, %v5052_v19  ;;  %4752 = vst.msk [vmem:[#allocation3 + $0xd8] sm:$0xff] %vm4724_vm14, %v4599_v3 }
 0x8d2   :  { %4859 = vrot.lane.b32.xlu0 %v12775_v35, %s8883_s2 }
 0x8d3   :  { %v4597_v57 = vpop.permute.xlu1 %4596 }
 0x8d4   :  { %4751 = vst.msk [vmem:[#allocation3 + $0xd0] sm:$0xff] %vm4724_vm14, %v4597_v57  ;;  %v3846_v18 = vpop.permute.xlu0 %3845 }
 0x8d5   :  { %4857 = vrot.lane.b32.xlu1 %v12772_v12, %s8883_s2  ;;  %4009 = vst.msk [vmem:[#allocation3 + $0xe8] sm:$0xff] %vm3979_vm8, %v3846_v18 }
 0x8d6   :  { %4126 = vrot.lane.b32.xlu0 %v12775_v35, %s8880_s20 }
 0x8d7   :  { %v3844_v63 = vpop.permute.xlu1 %3843 }
 0x8d8   :  { %4008 = vst.msk [vmem:[#allocation3 + $0xe0] sm:$0xff] %vm3979_vm8, %v3844_v63  ;;  %v4840_v29 = vpop.permute.xlu0 %4839 }
 0x8d9   :  { %4124 = vrot.lane.b32.xlu1 %v12772_v12, %s8880_s20  ;;  %4994 = vst.msk [vmem:[#allocation3 + $0xd7] sm:$0xff] %vm4967_vm15, %v4840_v29 }
 0x8da   :  { %4380 = vrot.lane.b32.xlu0 %v12789_v34, %s8881_s25 }
 0x8db   :  { %v4838_v28 = vpop.permute.xlu1 %4837 }
 0x8dc   :  { %4993 = vst.msk [vmem:[#allocation3 + $0xcf] sm:$0xfe] %vm4965_vm12, %v4838_v28  ;;  %v4103_v45 = vpop.permute.xlu0 %4102 }
 0x8dd   :  { %4378 = vrot.lane.b32.xlu1 %v12778_v8, %s8881_s25  ;;  %4267 = vst.msk [vmem:[#allocation3 + $0xe7] sm:$0xff] %vm4238_vm9, %v4103_v45 }
 0x8de   :  { %4622 = vrot.lane.b32.xlu0 %v12789_v34, %s8882_s1 }
 0x8df   :  { %v4101_v35 = vpop.permute.xlu1 %4100 }
 0x8e0   :  { %4266 = vst.msk [vmem:[#allocation3 + $0xdf] sm:$0xfe] %vm4236_vm10, %v4101_v35  ;;  %v4361_v12 = vpop.permute.xlu0 %4360  ;;  %v5054_v62 = vld [vmem:[#allocation3 + $0xd8] sm:$0xff] }
 0x8e1   :  { %4620 = vrot.lane.b32.xlu1 %v12778_v8, %s8882_s1  ;;  %4513 = vst.msk [vmem:[#allocation3 + $0xe9] sm:$0x7f] %vm4484_vm11, %v4361_v12 }
 0x8e2   :  { %3873 = vrot.lane.b32.xlu0 %v12789_v34, %s8878_s19 }
 0x8e3   :  { %v4359_v49 = vpop.permute.xlu1 %4358  ;;  %v5053_v7 = vld [vmem:[#allocation3 + $0xd0] sm:$0xff] }
 0x8e4   :  { %4512 = vst.msk [vmem:[#allocation3 + $0xe1] sm:$0xff] %vm4482_vm13, %v4359_v49  ;;  %8684 = vmatprep.mubr.msk.f32.mxu1 %vm2855_vm0, %v5053_v7  ;;  %v4603_v54 = vpop.permute.xlu0 %4602 }
 0x8e5   :  { %3871 = vrot.lane.b32.xlu1 %v12778_v8, %s8878_s19  ;;  %8685 = vmatmul.mubr.msk.f32.gmra.mxu1 %vm2855_vm0, %v5054_v62  ;;  %4754 = vst.msk [vmem:[#allocation3 + $0xe8] sm:$0xff] %vm4724_vm14, %v4603_v54 }
 0x8e6   :  { %4863 = vrot.lane.b32.xlu0 %v12789_v34, %s8883_s2 }
 0x8e7   :  { %v4601_v58 = vpop.permute.xlu1 %4600 }
 0x8e8   :  { %4753 = vst.msk [vmem:[#allocation3 + $0xe0] sm:$0xff] %vm4724_vm14, %v4601_v58  ;;  %v4844_v17 = vpop.permute.xlu0 %4843 }
 0x8e9   :  { %4861 = vrot.lane.b32.xlu1 %v12778_v8, %s8883_s2  ;;  %4996 = vst.msk [vmem:[#allocation3 + $0xe7] sm:$0xff] %vm4967_vm15, %v4844_v17 }
 0x8ea   :  { %4130 = vrot.lane.b32.xlu0 %v12789_v34, %s8880_s20 }
 0x8eb   :  { %v4842_v39 = vpop.permute.xlu1 %4841 }
 0x8ec   :  { %4995 = vst.msk [vmem:[#allocation3 + $0xdf] sm:$0xfe] %vm4965_vm12, %v4842_v39  ;;  %v3850_v61 = vpop.permute.xlu0 %3849 }
 0x8ed   :  { %4128 = vrot.lane.b32.xlu1 %v12778_v8, %s8880_s20  ;;  %4011 = vst.msk [vmem:[#allocation3 + $0xf8] sm:$0xff] %vm3979_vm8, %v3850_v61 }
 0x8ee   :  { %4384 = vrot.lane.b32.xlu0 %v12795_v52, %s8881_s25 }
 0x8ef   :  { %v3848_v15 = vpop.permute.xlu1 %3847 }
 0x8f0   :  { %4010 = vst.msk [vmem:[#allocation3 + $0xf0] sm:$0xff] %vm3979_vm8, %v3848_v15  ;;  %v3854_v16 = vpop.permute.xlu0 %3853  ;;  %v5056_v34 = vld [vmem:[#allocation3 + $0xe8] sm:$0xff] }
 0x8f1   :  { %4382 = vrot.lane.b32.xlu1 %v12792_v44, %s8881_s25  ;;  %4013 = vst.msk [vmem:[#allocation3 + $0x108] sm:$0xff] %vm3979_vm8, %v3854_v16 }
 0x8f2   :  { %4626 = vrot.lane.b32.xlu0 %v12795_v52, %s8882_s1 }
 0x8f3   :  { %v3852_v32 = vpop.permute.xlu1 %3851  ;;  %v5055_v8 = vld [vmem:[#allocation3 + $0xe0] sm:$0xff] }
 0x8f4   :  { %4012 = vst.msk [vmem:[#allocation3 + $0x100] sm:$0xff] %vm3979_vm8, %v3852_v32  ;;  %8687 = vmatprep.mubr.msk.f32.mxu1 %vm2855_vm0, %v5055_v8  ;;  %v4107_v27 = vpop.permute.xlu0 %4106 }
 0x8f5   :  { %4624 = vrot.lane.b32.xlu1 %v12792_v44, %s8882_s1  ;;  %8688 = vmatmul.mubr.msk.f32.gmra.mxu1 %vm2855_vm0, %v5056_v34  ;;  %4269 = vst.msk [vmem:[#allocation3 + $0xf7] sm:$0xff] %vm4238_vm9, %v4107_v27 }
 0x8f6   :  { %3877 = vrot.lane.b32.xlu0 %v12795_v52, %s8878_s19 }
 0x8f7   :  { %v4105_v33 = vpop.permute.xlu1 %4104 }
 0x8f8   :  { %4268 = vst.msk [vmem:[#allocation3 + $0xef] sm:$0xfe] %vm4236_vm10, %v4105_v33  ;;  %v4111_v24 = vpop.permute.xlu0 %4110 }
 0x8f9   :  { %3875 = vrot.lane.b32.xlu1 %v12792_v44, %s8878_s19  ;;  %4271 = vst.msk [vmem:[#allocation3 + $0x107] sm:$0xff] %vm4238_vm9, %v4111_v24 }
 0x8fa   :  { %4867 = vrot.lane.b32.xlu0 %v12795_v52, %s8883_s2 }
 0x8fb   :  { %v4109_v6 = vpop.permute.xlu1 %4108 }
 0x8fc   :  { %4270 = vst.msk [vmem:[#allocation3 + $0xff] sm:$0xfe] %vm4236_vm10, %v4109_v6  ;;  %v4365_v50 = vpop.permute.xlu0 %4364  ;;  %v5058_v22 = vld [vmem:[#allocation3 + $0xf8] sm:$0xff] }
 0x8fd   :  { %4865 = vrot.lane.b32.xlu1 %v12792_v44, %s8883_s2  ;;  %4515 = vst.msk [vmem:[#allocation3 + $0x109] sm:$0x7f] %vm4484_vm11, %v4365_v50 }
 0x8fe   :  { %4134 = vrot.lane.b32.xlu0 %v12795_v52, %s8880_s20 }
 0x8ff   :  { %v4363_v38 = vpop.permute.xlu1 %4362  ;;  %v5057_v43 = vld [vmem:[#allocation3 + $0xf0] sm:$0xff] }
 0x900   :  { %4514 = vst.msk [vmem:[#allocation3 + $0x101] sm:$0xff] %vm4482_vm13, %v4363_v38  ;;  %8690 = vmatprep.mubr.msk.f32.mxu1 %vm2855_vm0, %v5057_v43  ;;  %v4607_v37 = vpop.permute.xlu0 %4606 }
 0x901   :  { %4132 = vrot.lane.b32.xlu1 %v12792_v44, %s8880_s20  ;;  %8691 = vmatmul.mubr.msk.f32.gmra.mxu1 %vm2855_vm0, %v5058_v22  ;;  %4756 = vst.msk [vmem:[#allocation3 + $0x108] sm:$0xff] %vm4724_vm14, %v4607_v37 }
 0x902   :  { %4388 = vrot.lane.b32.xlu0 %v12811_v25, %s8881_s25 }
 0x903   :  { %v4605_v31 = vpop.permute.xlu1 %4604 }
 0x904   :  { %4755 = vst.msk [vmem:[#allocation3 + $0x100] sm:$0xff] %vm4724_vm14, %v4605_v31  ;;  %v3858_v52 = vpop.permute.xlu0 %3857 }
 0x905   :  { %4386 = vrot.lane.b32.xlu1 %v12798_v42, %s8881_s25  ;;  %4015 = vst.msk [vmem:[#allocation3 + $0x118] sm:$0xff] %vm3979_vm8, %v3858_v52 }
 0x906   :  { %4630 = vrot.lane.b32.xlu0 %v12811_v25, %s8882_s1 }
 0x907   :  { %v3856_v44 = vpop.permute.xlu1 %3855 }
 0x908   :  { %4014 = vst.msk [vmem:[#allocation3 + $0x110] sm:$0xff] %vm3979_vm8, %v3856_v44  ;;  %v4848_v1 = vpop.permute.xlu0 %4847 }
 0x909   :  { %4628 = vrot.lane.b32.xlu1 %v12798_v42, %s8882_s1  ;;  %4998 = vst.msk [vmem:[#allocation3 + $0x107] sm:$0xff] %vm4967_vm15, %v4848_v1 }
 0x90a   :  { %3881 = vrot.lane.b32.xlu0 %v12811_v25, %s8878_s19 }
 0x90b   :  { %v4846_v53 = vpop.permute.xlu1 %4845 }
 0x90c   :  { %4997 = vst.msk [vmem:[#allocation3 + $0xff] sm:$0xfe] %vm4965_vm12, %v4846_v53  ;;  %v4115_v0 = vpop.permute.xlu0 %4114 }
 0x90d   :  { %3879 = vrot.lane.b32.xlu1 %v12798_v42, %s8878_s19  ;;  %4273 = vst.msk [vmem:[#allocation3 + $0x117] sm:$0xff] %vm4238_vm9, %v4115_v0 }
 0x90e   :  { %4871 = vrot.lane.b32.xlu0 %v12811_v25, %s8883_s2 }
 0x90f   :  { %v4113_v4 = vpop.permute.xlu1 %4112 }
 0x910   :  { %4272 = vst.msk [vmem:[#allocation3 + $0x10f] sm:$0xfe] %vm4236_vm10, %v4113_v4  ;;  %v4369_v46 = vpop.permute.xlu0 %4368  ;;  %v5060_v9 = vld [vmem:[#allocation3 + $0x108] sm:$0xff] }
 0x911   :  { %4869 = vrot.lane.b32.xlu1 %v12798_v42, %s8883_s2  ;;  %4517 = vst.msk [vmem:[#allocation3 + $0x119] sm:$0x7f] %vm4484_vm11, %v4369_v46 }
 0x912   :  { %4138 = vrot.lane.b32.xlu0 %v12811_v25, %s8880_s20 }
 0x913   :  { %v4367_v13 = vpop.permute.xlu1 %4366  ;;  %v5059_v48 = vld [vmem:[#allocation3 + $0x100] sm:$0xff] }
 0x914   :  { %4516 = vst.msk [vmem:[#allocation3 + $0x111] sm:$0xff] %vm4482_vm13, %v4367_v13  ;;  %8693 = vmatprep.mubr.msk.f32.mxu1 %vm2855_vm0, %v5059_v48  ;;  %v4611_v41 = vpop.permute.xlu0 %4610 }
 0x915   :  { %4136 = vrot.lane.b32.xlu1 %v12798_v42, %s8880_s20  ;;  %8694 = vmatmul.mubr.msk.f32.gmra.mxu1 %vm2855_vm0, %v5060_v9  ;;  %4758 = vst.msk [vmem:[#allocation3 + $0x118] sm:$0xff] %vm4724_vm14, %v4611_v41 }
 0x916   :  { %4392 = vrot.lane.b32.xlu0 %v12817_v60, %s8881_s25 }
 0x917   :  { %v4609_v51 = vpop.permute.xlu1 %4608 }
 0x918   :  { %4757 = vst.msk [vmem:[#allocation3 + $0x110] sm:$0xff] %vm4724_vm14, %v4609_v51  ;;  %v3862_v25 = vpop.permute.xlu0 %3861  ;;  %v16826_v51 = vld [vmem:[#allocation158_spill] sm:$0xff] }
 0x919   :  { %4390 = vrot.lane.b32.xlu1 %v12814_v20, %s8881_s25  ;;  %4017 = vst.msk [vmem:[#allocation3 + $0x128] sm:$0xff] %vm3979_vm8, %v3862_v25 }
 0x91a   :  { %4634 = vrot.lane.b32.xlu0 %v12817_v60, %s8882_s1 }
 0x91b   :  { %v3860_v42 = vpop.permute.xlu1 %3859 }
 0x91c   :  { %4016 = vst.msk [vmem:[#allocation3 + $0x120] sm:$0xff] %vm3979_vm8, %v3860_v42  ;;  %v4852_v5 = vpop.permute.xlu0 %4851 }
 0x91d   :  { %4632 = vrot.lane.b32.xlu1 %v12814_v20, %s8882_s1  ;;  %5000 = vst.msk [vmem:[#allocation3 + $0x117] sm:$0xff] %vm4967_vm15, %v4852_v5  ;;  %v16827_v5 = vld [vmem:[#allocation28_spill] sm:$0xff] }
 0x91e   :  { %3885 = vrot.lane.b32.xlu0 %v12817_v60, %s8878_s19 }
 0x91f   :  { %v4850_v55 = vpop.permute.xlu1 %4849 }
 0x920   :  { %4999 = vst.msk [vmem:[#allocation3 + $0x10f] sm:$0xfe] %vm4965_vm12, %v4850_v55  ;;  %v4119_v56 = vpop.permute.xlu0 %4118 }
 0x921   :  { %3883 = vrot.lane.b32.xlu1 %v12814_v20, %s8878_s19  ;;  %4275 = vst.msk [vmem:[#allocation3 + $0x127] sm:$0xff] %vm4238_vm9, %v4119_v56 }
 0x922   :  { %4875 = vrot.lane.b32.xlu0 %v12817_v60, %s8883_s2 }
 0x923   :  { %v4117_v21 = vpop.permute.xlu1 %4116 }
 0x924   :  { %4274 = vst.msk [vmem:[#allocation3 + $0x11f] sm:$0xfe] %vm4236_vm10, %v4117_v21  ;;  %v4373_v40 = vpop.permute.xlu0 %4372  ;;  %v5062_v19 = vld [vmem:[#allocation3 + $0x118] sm:$0xff] }
 0x925   :  { %4873 = vrot.lane.b32.xlu1 %v12814_v20, %s8883_s2  ;;  %4519 = vst.msk [vmem:[#allocation3 + $0x129] sm:$0x7f] %vm4484_vm11, %v4373_v40 }
 0x926   :  { %4142 = vrot.lane.b32.xlu0 %v12817_v60, %s8880_s20 }
 0x927   :  { %v4371_v23 = vpop.permute.xlu1 %4370  ;;  %v5061_v2 = vld [vmem:[#allocation3 + $0x110] sm:$0xff] }
 0x928   :  { %4518 = vst.msk [vmem:[#allocation3 + $0x121] sm:$0xff] %vm4482_vm13, %v4371_v23  ;;  %8696 = vmatprep.mubr.msk.f32.mxu1 %vm2855_vm0, %v5061_v2  ;;  %v4615_v3 = vpop.permute.xlu0 %4614 }
 0x929   :  { %4140 = vrot.lane.b32.xlu1 %v12814_v20, %s8880_s20  ;;  %8697 = vmatmul.mubr.msk.f32.gmra.mxu1 %vm2855_vm0, %v5062_v19  ;;  %4760 = vst.msk [vmem:[#allocation3 + $0x128] sm:$0xff] %vm4724_vm14, %v4615_v3 }
 0x92a   :  { %4396 = vrot.lane.b32.xlu0 %v12831_v36, %s8881_s25 }
 0x92b   :  { %v4613_v57 = vpop.permute.xlu1 %4612 }
 0x92c   :  { %4759 = vst.msk [vmem:[#allocation3 + $0x120] sm:$0xff] %vm4724_vm14, %v4613_v57  ;;  %v3866_v60 = vpop.permute.xlu0 %3865 }
 0x92d   :  { %4394 = vrot.lane.b32.xlu1 %v12820_v10, %s8881_s25  ;;  %4019 = vst.msk [vmem:[#allocation3 + $0x138] sm:$0xff] %vm3979_vm8, %v3866_v60 }
 0x92e   :  { %4638 = vrot.lane.b32.xlu0 %v12831_v36, %s8882_s1 }
 0x92f   :  { %v3864_v20 = vpop.permute.xlu1 %3863 }
 0x930   :  { %4018 = vst.msk [vmem:[#allocation3 + $0x130] sm:$0xff] %vm3979_vm8, %v3864_v20  ;;  %v4856_v18 = vpop.permute.xlu0 %4855  ;;  %v16828_v20 = vld [vmem:[#allocation27_spill] sm:$0xff] }
 0x931   :  { %4636 = vrot.lane.b32.xlu1 %v12820_v10, %s8882_s1  ;;  %5002 = vst.msk [vmem:[#allocation3 + $0x127] sm:$0xff] %vm4967_vm15, %v4856_v18 }
 0x932   :  { %3889 = vrot.lane.b32.xlu0 %v12831_v36, %s8878_s19 }
 0x933   :  { %v4854_v63 = vpop.permute.xlu1 %4853 }
 0x934   :  { %5001 = vst.msk [vmem:[#allocation3 + $0x11f] sm:$0xfe] %vm4965_vm12, %v4854_v63  ;;  %v4123_v29 = vpop.permute.xlu0 %4122 }
 0x935   :  { %3887 = vrot.lane.b32.xlu1 %v12820_v10, %s8878_s19  ;;  %4277 = vst.msk [vmem:[#allocation3 + $0x137] sm:$0xff] %vm4238_vm9, %v4123_v29  ;;  %v16829_v29 = vld [vmem:[#allocation93_spill] sm:$0xff] }
 0x936   :  { %4879 = vrot.lane.b32.xlu0 %v12831_v36, %s8883_s2 }
 0x937   :  { %v4121_v28 = vpop.permute.xlu1 %4120 }
 0x938   :  { %4276 = vst.msk [vmem:[#allocation3 + $0x12f] sm:$0xfe] %vm4236_vm10, %v4121_v28  ;;  %v4377_v45 = vpop.permute.xlu0 %4376  ;;  %v5064_v35 = vld [vmem:[#allocation3 + $0x128] sm:$0xff] }
 0x939   :  { %4877 = vrot.lane.b32.xlu1 %v12820_v10, %s8883_s2  ;;  %4521 = vst.msk [vmem:[#allocation3 + $0x139] sm:$0x7f] %vm4484_vm11, %v4377_v45 }
 0x93a   :  { %4146 = vrot.lane.b32.xlu0 %v12831_v36, %s8880_s20 }
 0x93b   :  { %v4375_v12 = vpop.permute.xlu1 %4374  ;;  %v5063_v62 = vld [vmem:[#allocation3 + $0x120] sm:$0xff] }
 0x93c   :  { %4520 = vst.msk [vmem:[#allocation3 + $0x131] sm:$0xff] %vm4482_vm13, %v4375_v12  ;;  %8699 = vmatprep.mubr.msk.f32.mxu1 %vm2855_vm0, %v5063_v62  ;;  %v4619_v49 = vpop.permute.xlu0 %4618  ;;  %v14326_v12 = vpop.f32.mrf.mxu1 }
 0x93d   :  { %4144 = vrot.lane.b32.xlu1 %v12820_v10, %s8880_s20  ;;  %8700 = vmatmul.mubr.msk.f32.gmra.mxu1 %vm2855_vm0, %v5064_v35  ;;  %4762 = vst.msk [vmem:[#allocation3 + $0x138] sm:$0xff] %vm4724_vm14, %v4619_v49 }
 0x93e   :  { %4400 = vrot.lane.b32.xlu0 %v12837_v47, %s8881_s25 }
 0x93f   :  { %v4617_v7 = vpop.permute.xlu1 %4616 }
 0x940   :  { %4761 = vst.msk [vmem:[#allocation3 + $0x130] sm:$0xff] %vm4724_vm14, %v4617_v7  ;;  %v3870_v36 = vpop.permute.xlu0 %3869 }
 0x941   :  { %4398 = vrot.lane.b32.xlu1 %v12834_v59, %s8881_s25  ;;  %4021 = vst.msk [vmem:[#allocation3 + $0x148] sm:$0xff] %vm3979_vm8, %v3870_v36  ;;  %v14336_v36 = vpop.f32.mrf.mxu1 }
 0x942   :  { %4642 = vrot.lane.b32.xlu0 %v12837_v47, %s8882_s1 }
 0x943   :  { %v3868_v10 = vpop.permute.xlu1 %3867 }
 0x944   :  { %4020 = vst.msk [vmem:[#allocation3 + $0x140] sm:$0xff] %vm3979_vm8, %v3868_v10  ;;  %v4860_v54 = vpop.permute.xlu0 %4859 }
 0x945   :  { %4640 = vrot.lane.b32.xlu1 %v12834_v59, %s8882_s1  ;;  %5004 = vst.msk [vmem:[#allocation3 + $0x137] sm:$0xff] %vm4967_vm15, %v4860_v54 }
 0x946   :  { %3893 = vrot.lane.b32.xlu0 %v12837_v47, %s8878_s19 }
 0x947   :  { %v4858_v58 = vpop.permute.xlu1 %4857 }
 0x948   :  { %5003 = vst.msk [vmem:[#allocation3 + $0x12f] sm:$0xfe] %vm4965_vm12, %v4858_v58  ;;  %v4127_v17 = vpop.permute.xlu0 %4126  ;;  %v14339_v58 = vpop.f32.mrf.mxu1 }
 0x949   :  { %3891 = vrot.lane.b32.xlu1 %v12834_v59, %s8878_s19  ;;  %4279 = vst.msk [vmem:[#allocation3 + $0x147] sm:$0xff] %vm4238_vm9, %v4127_v17 }
 0x94a   :  { %4883 = vrot.lane.b32.xlu0 %v12837_v47, %s8883_s2 }
 0x94b   :  { %v4125_v39 = vpop.permute.xlu1 %4124 }
 0x94c   :  { %4278 = vst.msk [vmem:[#allocation3 + $0x13f] sm:$0xfe] %vm4236_vm10, %v4125_v39  ;;  %v4381_v61 = vpop.permute.xlu0 %4380  ;;  %v5066_v15 = vld [vmem:[#allocation3 + $0x138] sm:$0xff] }
 0x94d   :  { %4881 = vrot.lane.b32.xlu1 %v12834_v59, %s8883_s2  ;;  %4523 = vst.msk [vmem:[#allocation3 + $0x149] sm:$0x7f] %vm4484_vm11, %v4381_v61  ;;  %v14347_v61 = vpop.f32.mrf.mxu1 }
 0x94e   :  { %4150 = vrot.lane.b32.xlu0 %v12837_v47, %s8880_s20 }
 0x94f   :  { %v4379_v16 = vpop.permute.xlu1 %4378  ;;  %v5065_v34 = vld [vmem:[#allocation3 + $0x130] sm:$0xff] }
 0x950   :  { %4522 = vst.msk [vmem:[#allocation3 + $0x141] sm:$0xff] %vm4482_vm13, %v4379_v16  ;;  %8702 = vmatprep.mubr.msk.f32.mxu1 %vm2855_vm0, %v5065_v34  ;;  %v4623_v32 = vpop.permute.xlu0 %4622  ;;  %v16830_v34 = vld [vmem:[#allocation24_spill] sm:$0xff] }
 0x951   :  { %4148 = vrot.lane.b32.xlu1 %v12834_v59, %s8880_s20  ;;  %8703 = vmatmul.mubr.msk.f32.gmra.mxu1 %vm2855_vm0, %v5066_v15  ;;  %4764 = vst.msk [vmem:[#allocation3 + $0x148] sm:$0xff] %vm4724_vm14, %v4623_v32  ;;  %v14354_v15 = vpop.f32.mrf.mxu1  ;;  %v2854_v32 = vmax.f32 %v16830_v34, 0.0 }
 0x952   :  { %4404 = vrot.lane.b32.xlu0 %v12851_v11, %s8881_s25 }
 0x953   :  { %v4621_v8 = vpop.permute.xlu1 %4620 }
 0x954   :  { %4763 = vst.msk [vmem:[#allocation3 + $0x140] sm:$0xff] %vm4724_vm14, %v4621_v8  ;;  %v3874_v47 = vpop.permute.xlu0 %3873 }
 0x955   :  { %4402 = vrot.lane.b32.xlu1 %v12840_v14, %s8881_s25  ;;  %4023 = vst.msk [vmem:[#allocation3 + $0x158] sm:$0xff] %vm3979_vm8, %v3874_v47  ;;  %v16831_v47 = vld [vmem:[#allocation82_spill] sm:$0xff] }
 0x956   :  { %4646 = vrot.lane.b32.xlu0 %v12851_v11, %s8882_s1 }
 0x957   :  { %v3872_v59 = vpop.permute.xlu1 %3871 }
 0x958   :  { %4022 = vst.msk [vmem:[#allocation3 + $0x150] sm:$0xff] %vm3979_vm8, %v3872_v59  ;;  %v4864_v27 = vpop.permute.xlu0 %4863  ;;  %v2853_v59 = vmax.f32 %v16831_v47, 0.0 }
 0x959   :  { %4644 = vrot.lane.b32.xlu1 %v12840_v14, %s8882_s1  ;;  %5006 = vst.msk [vmem:[#allocation3 + $0x147] sm:$0xff] %vm4967_vm15, %v4864_v27  ;;  %v14363_v27 = vpop.f32.mrf.mxu1 }
 0x95a   :  { %3897 = vrot.lane.b32.xlu0 %v12851_v11, %s8878_s19 }
 0x95b   :  { %v4862_v33 = vpop.permute.xlu1 %4861 }
 0x95c   :  { %5005 = vst.msk [vmem:[#allocation3 + $0x13f] sm:$0xfe] %vm4965_vm12, %v4862_v33  ;;  %v4131_v24 = vpop.permute.xlu0 %4130 }
 0x95d   :  { %3895 = vrot.lane.b32.xlu1 %v12840_v14, %s8878_s19  ;;  %4281 = vst.msk [vmem:[#allocation3 + $0x157] sm:$0xff] %vm4238_vm9, %v4131_v24 }
 0x95e   :  { %4887 = vrot.lane.b32.xlu0 %v12851_v11, %s8883_s2 }
 0x95f   :  { %v4129_v6 = vpop.permute.xlu1 %4128 }
 0x960   :  { %4280 = vst.msk [vmem:[#allocation3 + $0x14f] sm:$0xfe] %vm4236_vm10, %v4129_v6  ;;  %v4385_v50 = vpop.permute.xlu0 %4384  ;;  %v5068_v22 = vld [vmem:[#allocation3 + $0x148] sm:$0xff]  ;;  %v14366_v6 = vpop.f32.mrf.mxu1 }
 0x961   :  { %4885 = vrot.lane.b32.xlu1 %v12840_v14, %s8883_s2  ;;  %4525 = vst.msk [vmem:[#allocation3 + $0x159] sm:$0x7f] %vm4484_vm11, %v4385_v50 }
 0x962   :  { %4154 = vrot.lane.b32.xlu0 %v12851_v11, %s8880_s20 }
 0x963   :  { %v4383_v38 = vpop.permute.xlu1 %4382  ;;  %v5067_v43 = vld [vmem:[#allocation3 + $0x140] sm:$0xff] }
 0x964   :  { %4524 = vst.msk [vmem:[#allocation3 + $0x151] sm:$0xff] %vm4482_vm13, %v4383_v38  ;;  %8705 = vmatprep.mubr.msk.f32.mxu1 %vm2855_vm0, %v5067_v43  ;;  %v4627_v37 = vpop.permute.xlu0 %4626 }
 0x965   :  { %4152 = vrot.lane.b32.xlu1 %v12840_v14, %s8880_s20  ;;  %8706 = vmatmul.mubr.msk.f32.gmra.mxu1 %vm2855_vm0, %v5068_v22  ;;  %4766 = vst.msk [vmem:[#allocation3 + $0x158] sm:$0xff] %vm4724_vm14, %v4627_v37  ;;  %v14373_v37 = vpop.f32.mrf.mxu1 }
 0x966   :  { %4408 = vrot.lane.b32.xlu0 %v12857_v26, %s8881_s25 }
 0x967   :  { %v4625_v31 = vpop.permute.xlu1 %4624 }
 0x968   :  { %4765 = vst.msk [vmem:[#allocation3 + $0x150] sm:$0xff] %vm4724_vm14, %v4625_v31  ;;  %v3878_v11 = vpop.permute.xlu0 %3877  ;;  %v8659_v31 = vpop.f32.mrf.mxu1 }
 0x969   :  { %4406 = vrot.lane.b32.xlu1 %v12854_v30, %s8881_s25  ;;  %4025 = vst.msk [vmem:[#allocation3 + $0x168] sm:$0xff] %vm3979_vm8, %v3878_v11 }
 0x96a   :  { %3643 = vrot.lane.b32.xlu0 %v12857_v26, %s8876_s17 }
 0x96b   :  { %v3876_v14 = vpop.permute.xlu1 %3875 }
 0x96c   :  { %4024 = vst.msk [vmem:[#allocation3 + $0x160] sm:$0xff] %vm3979_vm8, %v3876_v14  ;;  %v4868_v52 = vpop.permute.xlu0 %4867 }
 0x96d   :  { %3641 = vrot.lane.b32.xlu1 %v12854_v30, %s8876_s17  ;;  %5008 = vst.msk [vmem:[#allocation3 + $0x157] sm:$0xff] %vm4967_vm15, %v4868_v52  ;;  %v5398_v52 = vpop.f32.mrf.mxu1 }
 0x96e   :  { %4650 = vrot.lane.b32.xlu0 %v12857_v26, %s8882_s1 }
 0x96f   :  { %v4866_v44 = vpop.permute.xlu1 %4865 }
 0x970   :  { %5007 = vst.msk [vmem:[#allocation3 + $0x14f] sm:$0xfe] %vm4965_vm12, %v4866_v44  ;;  %v4135_v1 = vpop.permute.xlu0 %4134 }
 0x971   :  { %4648 = vrot.lane.b32.xlu1 %v12854_v30, %s8882_s1  ;;  %4283 = vst.msk [vmem:[#allocation3 + $0x167] sm:$0xff] %vm4238_vm9, %v4135_v1 }
 0x972   :  { %3901 = vrot.lane.b32.xlu0 %v12857_v26, %s8878_s19 }
 0x973   :  { %v4133_v53 = vpop.permute.xlu1 %4132 }
 0x974   :  { %4282 = vst.msk [vmem:[#allocation3 + $0x15f] sm:$0xfe] %vm4236_vm10, %v4133_v53  ;;  %v4389_v0 = vpop.permute.xlu0 %4388  ;;  %v5070_v4 = vld [vmem:[#allocation3 + $0x158] sm:$0xff]  ;;  %v8662_v53 = vpop.f32.mrf.mxu1 }
 0x975   :  { %3899 = vrot.lane.b32.xlu1 %v12854_v30, %s8878_s19  ;;  %4527 = vst.msk [vmem:[#allocation3 + $0x169] sm:$0x7f] %vm4484_vm11, %v4389_v0 }
 0x976   :  { %4891 = vrot.lane.b32.xlu0 %v12857_v26, %s8883_s2 }
 0x977   :  { %v4387_v46 = vpop.permute.xlu1 %4386  ;;  %v5069_v9 = vld [vmem:[#allocation3 + $0x150] sm:$0xff] }
 0x978   :  { %4526 = vst.msk [vmem:[#allocation3 + $0x161] sm:$0xff] %vm4482_vm13, %v4387_v46  ;;  %8708 = vmatprep.mubr.msk.f32.mxu1 %vm2855_vm0, %v5069_v9  ;;  %v4631_v13 = vpop.permute.xlu0 %4630  ;;  %v5408_v46 = vpop.f32.mrf.mxu1 }
 0x979   :  { %4889 = vrot.lane.b32.xlu1 %v12854_v30, %s8883_s2  ;;  %8709 = vmatmul.mubr.msk.f32.gmra.mxu1 %vm2855_vm0, %v5070_v4  ;;  %4768 = vst.msk [vmem:[#allocation3 + $0x168] sm:$0xff] %vm4724_vm14, %v4631_v13 }
 0x97a   :  { %4158 = vrot.lane.b32.xlu0 %v12857_v26, %s8880_s20  ;;  %v8665_v9 = vpop.f32.mrf.mxu1 }
 0x97b   :  { %v4629_v48 = vpop.permute.xlu1 %4628 }
 0x97c   :  { %4767 = vst.msk [vmem:[#allocation3 + $0x160] sm:$0xff] %vm4724_vm14, %v4629_v48  ;;  %v3882_v41 = vpop.permute.xlu0 %3881 }
 0x97d   :  { %4156 = vrot.lane.b32.xlu1 %v12854_v30, %s8880_s20  ;;  %4027 = vst.msk [vmem:[#allocation3 + $0x178] sm:$0xff] %vm3979_vm8, %v3882_v41 }
 0x97e   :  { %4412 = vrot.lane.b32.xlu0 %v16826_v51, %s8881_s25 }
 0x97f   :  { %v3880_v25 = vpop.permute.xlu1 %3879 }
 0x980   :  { %4026 = vst.msk [vmem:[#allocation3 + $0x170] sm:$0xff] %vm3979_vm8, %v3880_v25  ;;  %v4872_v42 = vpop.permute.xlu0 %4871 }
 0x981   :  { %4410 = vrot.lane.b32.xlu1 %v16827_v5, %s8881_s25  ;;  %5010 = vst.msk [vmem:[#allocation3 + $0x167] sm:$0xff] %vm4967_vm15, %v4872_v42 }
 0x982   :  { %3647 = vrot.lane.b32.xlu0 %v16826_v51, %s8876_s17 }
 0x983   :  { %v4870_v26 = vpop.permute.xlu1 %4869 }
 0x984   :  { %5009 = vst.msk [vmem:[#allocation3 + $0x15f] sm:$0xfe] %vm4965_vm12, %v4870_v26  ;;  %v4139_v30 = vpop.permute.xlu0 %4138 }
 0x985   :  { %3645 = vrot.lane.b32.xlu1 %v16827_v5, %s8876_s17  ;;  %4285 = vst.msk [vmem:[#allocation3 + $0x177] sm:$0xff] %vm4238_vm9, %v4139_v30 }
 0x986   :  { %4654 = vrot.lane.b32.xlu0 %v16826_v51, %s8882_s1 }
 0x987   :  { %v4137_v55 = vpop.permute.xlu1 %4136 }
 0x988   :  { %4284 = vst.msk [vmem:[#allocation3 + $0x16f] sm:$0xfe] %vm4236_vm10, %v4137_v55  ;;  %v4393_v56 = vpop.permute.xlu0 %4392  ;;  %v5072_v21 = vld [vmem:[#allocation3 + $0x168] sm:$0xff] }
 0x989   :  { %4652 = vrot.lane.b32.xlu1 %v16827_v5, %s8882_s1  ;;  %4529 = vst.msk [vmem:[#allocation3 + $0x179] sm:$0x7f] %vm4484_vm11, %v4393_v56 }
 0x98a   :  { %3905 = vrot.lane.b32.xlu0 %v16826_v51, %s8878_s19 }
 0x98b   :  { %v4391_v40 = vpop.permute.xlu1 %4390  ;;  %v5071_v19 = vld [vmem:[#allocation3 + $0x160] sm:$0xff] }
 0x98c   :  { %4528 = vst.msk [vmem:[#allocation3 + $0x171] sm:$0xff] %vm4482_vm13, %v4391_v40  ;;  %8711 = vmatprep.mubr.msk.f32.mxu1 %vm2855_vm0, %v5071_v19  ;;  %v4635_v23 = vpop.permute.xlu0 %4634 }
 0x98d   :  { %3903 = vrot.lane.b32.xlu1 %v16827_v5, %s8878_s19  ;;  %8712 = vmatmul.mubr.msk.f32.gmra.mxu1 %vm2855_vm0, %v5072_v21  ;;  %4770 = vst.msk [vmem:[#allocation3 + $0x178] sm:$0xff] %vm4724_vm14, %v4635_v23 }
 0x98e   :  { %4895 = vrot.lane.b32.xlu0 %v16826_v51, %s8883_s2 }
 0x98f   :  { %v4633_v2 = vpop.permute.xlu1 %4632 }
 0x990   :  { %4769 = vst.msk [vmem:[#allocation3 + $0x170] sm:$0xff] %vm4724_vm14, %v4633_v2  ;;  %v3886_v3 = vpop.permute.xlu0 %3885 }
 0x991   :  { %4893 = vrot.lane.b32.xlu1 %v16827_v5, %s8883_s2  ;;  %4029 = vst.msk [vmem:[#allocation3 + $0x188] sm:$0xff] %vm3979_vm8, %v3886_v3 }
 0x992   :  { %4162 = vrot.lane.b32.xlu0 %v16826_v51, %s8880_s20  ;;  %v5418_v51 = vpop.f32.mrf.mxu1 }
 0x993   :  { %v3884_v57 = vpop.permute.xlu1 %3883 }
 0x994   :  { %4028 = vst.msk [vmem:[#allocation3 + $0x180] sm:$0xff] %vm3979_vm8, %v3884_v57  ;;  %v4876_v60 = vpop.permute.xlu0 %4875  ;;  %v8668_v26 = vpop.f32.mrf.mxu1 }
 0x995   :  { %4160 = vrot.lane.b32.xlu1 %v16827_v5, %s8880_s20  ;;  %5012 = vst.msk [vmem:[#allocation3 + $0x177] sm:$0xff] %vm4967_vm15, %v4876_v60 }
 0x996   :  { %4416 = vrot.lane.b32.xlu0 %v16828_v20, %s8881_s25  ;;  %v5428_v56 = vpop.f32.mrf.mxu1 }
 0x997   :  { %v4874_v18 = vpop.permute.xlu1 %4873 }
 0x998   :  { %5011 = vst.msk [vmem:[#allocation3 + $0x16f] sm:$0xfe] %vm4965_vm12, %v4874_v18  ;;  %v4143_v63 = vpop.permute.xlu0 %4142  ;;  %v8671_v21 = vpop.f32.mrf.mxu1 }
 0x999   :  { %4414 = vrot.lane.b32.xlu1 %v16829_v29, %s8881_s25  ;;  %4287 = vst.msk [vmem:[#allocation3 + $0x187] sm:$0xff] %vm4238_vm9, %v4143_v63 }
 0x99a   :  { %3651 = vrot.lane.b32.xlu0 %v16828_v20, %s8876_s17  ;;  %v5438_v23 = vpop.f32.mrf.mxu1 }
 0x99b   :  { %v4141_v28 = vpop.permute.xlu1 %4140 }
 0x99c   :  { %4286 = vst.msk [vmem:[#allocation3 + $0x17f] sm:$0xfe] %vm4236_vm10, %v4141_v28  ;;  %v4397_v45 = vpop.permute.xlu0 %4396  ;;  %v5074_v35 = vld [vmem:[#allocation3 + $0x178] sm:$0xff]  ;;  %v8674_v57 = vpop.f32.mrf.mxu1 }
 0x99d   :  { %3649 = vrot.lane.b32.xlu1 %v16829_v29, %s8876_s17  ;;  %4531 = vst.msk [vmem:[#allocation3 + $0x189] sm:$0x7f] %vm4484_vm11, %v4397_v45 }
 0x99e   :  { %4658 = vrot.lane.b32.xlu0 %v16828_v20, %s8882_s1  ;;  %v5448_v18 = vpop.f32.mrf.mxu1 }
 0x99f   :  { %v4395_v62 = vpop.permute.xlu1 %4394  ;;  %v5073_v49 = vld [vmem:[#allocation3 + $0x170] sm:$0xff] }
 0x9a0   :  { %4530 = vst.msk [vmem:[#allocation3 + $0x181] sm:$0xff] %vm4482_vm13, %v4395_v62  ;;  %8714 = vmatprep.mubr.msk.f32.mxu1 %vm2855_vm0, %v5073_v49  ;;  %v4639_v7 = vpop.permute.xlu0 %4638 }
 0x9a1   :  { %4656 = vrot.lane.b32.xlu1 %v16829_v29, %s8882_s1  ;;  %8715 = vmatmul.mubr.msk.f32.gmra.mxu1 %vm2855_vm0, %v5074_v35  ;;  %4772 = vst.msk [vmem:[#allocation3 + $0x188] sm:$0xff] %vm4724_vm14, %v4639_v7 }
 0x9a2   :  { %3909 = vrot.lane.b32.xlu0 %v16828_v20, %s8878_s19 }
 0x9a3   :  { %v4637_v10 = vpop.permute.xlu1 %4636 }
 0x9a4   :  { %4771 = vst.msk [vmem:[#allocation3 + $0x180] sm:$0xff] %vm4724_vm14, %v4637_v10  ;;  %v3890_v54 = vpop.permute.xlu0 %3889 }
 0x9a5   :  { %3907 = vrot.lane.b32.xlu1 %v16829_v29, %s8878_s19  ;;  %4031 = vst.msk [vmem:[#allocation3 + $0x198] sm:$0xff] %vm3979_vm8, %v3890_v54 }
 0x9a6   :  { %4899 = vrot.lane.b32.xlu0 %v16828_v20, %s8883_s2 }
 0x9a7   :  { %v3888_v17 = vpop.permute.xlu1 %3887 }
 0x9a8   :  { %4030 = vst.msk [vmem:[#allocation3 + $0x190] sm:$0xff] %vm3979_vm8, %v3888_v17  ;;  %v4880_v39 = vpop.permute.xlu0 %4879 }
 0x9a9   :  { %4897 = vrot.lane.b32.xlu1 %v16829_v29, %s8883_s2  ;;  %5014 = vst.msk [vmem:[#allocation3 + $0x187] sm:$0xff] %vm4967_vm15, %v4880_v39 }
 0x9aa   :  { %4166 = vrot.lane.b32.xlu0 %v16828_v20, %s8880_s20 }
 0x9ab   :  { %v4878_v16 = vpop.permute.xlu1 %4877 }
 0x9ac   :  { %5013 = vst.msk [vmem:[#allocation3 + $0x17f] sm:$0xfe] %vm4965_vm12, %v4878_v16  ;;  %v4147_v8 = vpop.permute.xlu0 %4146 }
 0x9ad   :  { %4164 = vrot.lane.b32.xlu1 %v16829_v29, %s8880_s20  ;;  %4289 = vst.msk [vmem:[#allocation3 + $0x197] sm:$0xff] %vm4238_vm9, %v4147_v8  ;;  %v8677_v29 = vpop.f32.mrf.mxu1 }
 0x9ae   :  { %4420 = vrot.lane.b32.xlu0 %v2854_v32, %s8881_s25 }
 0x9af   :  { %v4145_v33 = vpop.permute.xlu1 %4144 }
 0x9b0   :  { %4288 = vst.msk [vmem:[#allocation3 + $0x18f] sm:$0xfe] %vm4236_vm10, %v4145_v33  ;;  %v4401_v24 = vpop.permute.xlu0 %4400  ;;  %v5076_v50 = vld [vmem:[#allocation3 + $0x188] sm:$0xff] }
 0x9b1   :  { %4418 = vrot.lane.b32.xlu1 %v2853_v59, %s8881_s25  ;;  %4533 = vst.msk [vmem:[#allocation3 + $0x199] sm:$0x7f] %vm4484_vm11, %v4401_v24 }
 0x9b2   :  { %4662 = vrot.lane.b32.xlu0 %v2854_v32, %s8882_s1 }
 0x9b3   :  { %v4399_v22 = vpop.permute.xlu1 %4398  ;;  %v5075_v38 = vld [vmem:[#allocation3 + $0x180] sm:$0xff] }
 0x9b4   :  { %4532 = vst.msk [vmem:[#allocation3 + $0x191] sm:$0xff] %vm4482_vm13, %v4399_v22  ;;  %8717 = vmatprep.mubr.msk.f32.mxu1 %vm2855_vm0, %v5075_v38  ;;  %v4643_v43 = vpop.permute.xlu0 %4642 }
 0x9b5   :  { %4660 = vrot.lane.b32.xlu1 %v2853_v59, %s8882_s1  ;;  %8718 = vmatmul.mubr.msk.f32.gmra.mxu1 %vm2855_vm0, %v5076_v50  ;;  %4774 = vst.msk [vmem:[#allocation3 + $0x198] sm:$0xff] %vm4724_vm14, %v4643_v43 }
 0x9b6   :  { %4903 = vrot.lane.b32.xlu0 %v2854_v32, %s8883_s2 }
 0x9b7   :  { %v4641_v11 = vpop.permute.xlu1 %4640 }
 0x9b8   :  { %4773 = vst.msk [vmem:[#allocation3 + $0x190] sm:$0xff] %vm4724_vm14, %v4641_v11  ;;  %v3894_v14 = vpop.permute.xlu0 %3893 }
 0x9b9   :  { %4901 = vrot.lane.b32.xlu1 %v2853_v59, %s8883_s2  ;;  %4033 = vst.msk [vmem:[#allocation3 + $0x1a8] sm:$0xff] %vm3979_vm8, %v3894_v14 }
 0x9ba   :  { %3655 = vrot.lane.b32.xlu0 %v2854_v32, %s8876_s17 }
 0x9bb   :  { %v3892_v44 = vpop.permute.xlu1 %3891 }
 0x9bc   :  { %4032 = vst.msk [vmem:[#allocation3 + $0x1a0] sm:$0xff] %vm3979_vm8, %v3892_v44  ;;  %v4884_v1 = vpop.permute.xlu0 %4883 }
 0x9bd   :  { %3653 = vrot.lane.b32.xlu1 %v2853_v59, %s8876_s17  ;;  %5016 = vst.msk [vmem:[#allocation3 + $0x197] sm:$0xff] %vm4967_vm15, %v4884_v1 }
 0x9be   :  { %3913 = vrot.lane.b32.xlu0 %v2854_v32, %s8878_s19 }
 0x9bf   :  { %v4882_v0 = vpop.permute.xlu1 %4881 }
 0x9c0   :  { %5015 = vst.msk [vmem:[#allocation3 + $0x18f] sm:$0xfe] %vm4965_vm12, %v4882_v0  ;;  %v4151_v4 = vpop.permute.xlu0 %4150 }
 0x9c1   :  { %3911 = vrot.lane.b32.xlu1 %v2853_v59, %s8878_s19  ;;  %4291 = vst.msk [vmem:[#allocation3 + $0x1a7] sm:$0xff] %vm4238_vm9, %v4151_v4 }
 0x9c2   :  { %4170 = vrot.lane.b32.xlu0 %v2854_v32, %s8880_s20 }
 0x9c3   :  { %v4149_v13 = vpop.permute.xlu1 %4148 }
 0x9c4   :  { %4290 = vst.msk [vmem:[#allocation3 + $0x19f] sm:$0xfe] %vm4236_vm10, %v4149_v13  ;;  %v4405_v48 = vpop.permute.xlu0 %4404  ;;  %v5078_v41 = vld [vmem:[#allocation3 + $0x198] sm:$0xff] }
 0x9c5   :  { %4168 = vrot.lane.b32.xlu1 %v2853_v59, %s8880_s20  ;;  %4535 = vst.msk [vmem:[#allocation3 + $0x1a9] sm:$0x7f] %vm4484_vm11, %v4405_v48 }
 0x9c6   :  { %5743 = vrot.lane.b32.xlu0 %v14326_v12, %s8872_s0  ;;  %v5458_v12 = vpop.f32.mrf.mxu1 }
 0x9c7   :  { %v4403_v25 = vpop.permute.xlu1 %4402  ;;  %v5077_v42 = vld [vmem:[#allocation3 + $0x190] sm:$0xff] }
 0x9c8   :  { %4534 = vst.msk [vmem:[#allocation3 + $0x1a1] sm:$0xff] %vm4482_vm13, %v4403_v25  ;;  %8720 = vmatprep.mubr.msk.f32.mxu1 %vm2855_vm0, %v5077_v42  ;;  %v4647_v5 = vpop.permute.xlu0 %4646  ;;  %v8680_v7 = vpop.f32.mrf.mxu1 }
 0x9c9   :  { %5741 = vrot.lane.b32.xlu1 %v14336_v36, %s8872_s0  ;;  %8721 = vmatmul.mubr.msk.f32.gmra.mxu1 %vm2855_vm0, %v5078_v41  ;;  %4776 = vst.msk [vmem:[#allocation3 + $0x1a8] sm:$0xff] %vm4724_vm14, %v4647_v5 }
 0x9ca   :  { %5747 = vrot.lane.b32.xlu0 %v14339_v58, %s8872_s0  ;;  %v5468_v54 = vpop.f32.mrf.mxu1 }
 0x9cb   :  { %v4645_v30 = vpop.permute.xlu1 %4644 }
 0x9cc   :  { %4775 = vst.msk [vmem:[#allocation3 + $0x1a0] sm:$0xff] %vm4724_vm14, %v4645_v30  ;;  %v3898_v55 = vpop.permute.xlu0 %3897  ;;  %v8683_v58 = vpop.f32.mrf.mxu1 }
 0x9cd   :  { %5745 = vrot.lane.b32.xlu1 %v14347_v61, %s8872_s0  ;;  %4035 = vst.msk [vmem:[#allocation3 + $0x1b8] sm:$0xff] %vm3979_vm8, %v3898_v55 }
 0x9ce   :  { %5751 = vrot.lane.b32.xlu0 %v14354_v15, %s8872_s0  ;;  %v5478_v61 = vpop.f32.mrf.mxu1 }
 0x9cf   :  { %v3896_v40 = vpop.permute.xlu1 %3895 }
 0x9d0   :  { %4034 = vst.msk [vmem:[#allocation3 + $0x1b0] sm:$0xff] %vm3979_vm8, %v3896_v40  ;;  %v4888_v19 = vpop.permute.xlu0 %4887  ;;  %v8686_v34 = vpop.f32.mrf.mxu1 }
 0x9d1   :  { %5749 = vrot.lane.b32.xlu1 %v14363_v27, %s8872_s0  ;;  %5018 = vst.msk [vmem:[#allocation3 + $0x1a7] sm:$0xff] %vm4967_vm15, %v4888_v19 }
 0x9d2   :  { %5755 = vrot.lane.b32.xlu0 %v14366_v6, %s8872_s0  ;;  %v5488_v47 = vpop.f32.mrf.mxu1 }
 0x9d3   :  { %v4886_v2 = vpop.permute.xlu1 %4885 }
 0x9d4   :  { %5017 = vst.msk [vmem:[#allocation3 + $0x19f] sm:$0xfe] %vm4965_vm12, %v4886_v2  ;;  %v4155_v3 = vpop.permute.xlu0 %4154  ;;  %v8689_v27 = vpop.f32.mrf.mxu1 }
 0x9d5   :  { %5753 = vrot.lane.b32.xlu1 %v14373_v37, %s8872_s0  ;;  %4293 = vst.msk [vmem:[#allocation3 + $0x1b7] sm:$0xff] %vm4238_vm9, %v4155_v3 }
 0x9d6   :  { %5759 = vrot.lane.b32.xlu0 %v8659_v31, %s8872_s0  ;;  %v5498_v50 = vpop.f32.mrf.mxu1 }
 0x9d7   :  { %v4153_v60 = vpop.permute.xlu1 %4152 }
 0x9d8   :  { %4292 = vst.msk [vmem:[#allocation3 + $0x1af] sm:$0xfe] %vm4236_vm10, %v4153_v60  ;;  %v4409_v20 = vpop.permute.xlu0 %4408  ;;  %v5080_v63 = vld [vmem:[#allocation3 + $0x1a8] sm:$0xff]  ;;  %v8692_v43 = vpop.f32.mrf.mxu1 }
 0x9d9   :  { %5757 = vrot.lane.b32.xlu1 %v5398_v52, %s8872_s0  ;;  %4537 = vst.msk [vmem:[#allocation3 + $0x1b9] sm:$0x7f] %vm4484_vm11, %v4409_v20 }
 0x9da   :  { %5763 = vrot.lane.b32.xlu0 %v8662_v53, %s8872_s0  ;;  %v5508_v11 = vpop.f32.mrf.mxu1 }
 0x9db   :  { %v4407_v28 = vpop.permute.xlu1 %4406  ;;  %v5079_v45 = vld [vmem:[#allocation3 + $0x1a0] sm:$0xff] }
 0x9dc   :  { %4536 = vst.msk [vmem:[#allocation3 + $0x1b1] sm:$0xff] %vm4482_vm13, %v4407_v28  ;;  %8723 = vmatprep.mubr.msk.f32.mxu1 %vm2855_vm0, %v5079_v45  ;;  %v3644_v35 = vpop.permute.xlu0 %3643  ;;  %v8695_v14 = vpop.f32.mrf.mxu1 }
 0x9dd   :  { %8724 = vmatmul.mubr.msk.f32.gmra.mxu1 %vm2855_vm0, %v5080_v63  ;;  %5761 = vrot.lane.b32.xlu1 %v5408_v46, %s8872_s0  ;;  %3780 = vst.msk [vmem:[#allocation3 + $0x1c9] sm:$0x7f] %vm3723_vm6, %v3644_v35 }
 0x9de   :  { %5767 = vrot.lane.b32.xlu0 %v8665_v9, %s8872_s0  ;;  %v5518_v1 = vpop.f32.mrf.mxu1 }
 0x9df   :  { %v3642_v62 = vpop.permute.xlu1 %3641 }
 0x9e0   :  { %3779 = vst.msk [vmem:[#allocation3 + $0x1c1] sm:$0xff] %vm3721_vm7, %v3642_v62  ;;  %v4651_v49 = vpop.permute.xlu0 %4650 }
 0x9e1   :  { %5765 = vrot.lane.b32.xlu1 %v5418_v51, %s8872_s0  ;;  %4778 = vst.msk [vmem:[#allocation3 + $0x1b8] sm:$0xff] %vm4724_vm14, %v4651_v49 }
 0x9e2   :  { %5771 = vrot.lane.b32.xlu0 %v8668_v26, %s8872_s0 }
 0x9e3   :  { %v4649_v36 = vpop.permute.xlu1 %4648 }
 0x9e4   :  { %4777 = vst.msk [vmem:[#allocation3 + $0x1b0] sm:$0xff] %vm4724_vm14, %v4649_v36  ;;  %v3902_v10 = vpop.permute.xlu0 %3901 }
 0x9e5   :  { %5769 = vrot.lane.b32.xlu1 %v5428_v56, %s8872_s0  ;;  %4037 = vst.msk [vmem:[#allocation3 + $0x1c8] sm:$0xff] %vm3979_vm8, %v3902_v10 }
 0x9e6   :  { %5775 = vrot.lane.b32.xlu0 %v8671_v21, %s8872_s0 }
 0x9e7   :  { %v3900_v17 = vpop.permute.xlu1 %3899 }
 0x9e8   :  { %4036 = vst.msk [vmem:[#allocation3 + $0x1c0] sm:$0xff] %vm3979_vm8, %v3900_v17  ;;  %v4892_v39 = vpop.permute.xlu0 %4891 }
 0x9e9   :  { %5773 = vrot.lane.b32.xlu1 %v5438_v23, %s8872_s0  ;;  %5020 = vst.msk [vmem:[#allocation3 + $0x1b7] sm:$0xff] %vm4967_vm15, %v4892_v39  ;;  %v8698_v4 = vpop.f32.mrf.mxu1 }
 0x9ea   :  { %5779 = vrot.lane.b32.xlu0 %v8674_v57, %s8872_s0 }
 0x9eb   :  { %v4890_v15 = vpop.permute.xlu1 %4889  ;;  %v5528_v13 = vpop.f32.mrf.mxu1 }
 0x9ec   :  { %5019 = vst.msk [vmem:[#allocation3 + $0x1af] sm:$0xfe] %vm4965_vm12, %v4890_v15  ;;  %v4159_v16 = vpop.permute.xlu0 %4158 }
 0x9ed   :  { %5777 = vrot.lane.b32.xlu1 %v5448_v18, %s8872_s0  ;;  %4295 = vst.msk [vmem:[#allocation3 + $0x1c7] sm:$0xff] %vm4238_vm9, %v4159_v16 }
 0x9ee   :  { %5783 = vrot.lane.b32.xlu0 %v8677_v29, %s8872_s0 }
 0x9ef   :  { %v4157_v32 = vpop.permute.xlu1 %4156 }
 0x9f0   :  { %4294 = vst.msk [vmem:[#allocation3 + $0x1bf] sm:$0xfe] %vm4236_vm10, %v4157_v32  ;;  %v4413_v8 = vpop.permute.xlu0 %4412  ;;  %v5082_v59 = vld [vmem:[#allocation3 + $0x1b8] sm:$0xff] }
 0x9f1   :  { %5781 = vrot.lane.b32.xlu1 %v5458_v12, %s8872_s0  ;;  %4539 = vst.msk [vmem:[#allocation3 + $0x1c9] sm:$0x7f] %vm4484_vm11, %v4413_v8 }
 0x9f2   :  { %5787 = vrot.lane.b32.xlu0 %v8680_v7, %s8872_s0 }
 0x9f3   :  { %v4411_v33 = vpop.permute.xlu1 %4410  ;;  %v5081_v24 = vld [vmem:[#allocation3 + $0x1b0] sm:$0xff] }
 0x9f4   :  { %4538 = vst.msk [vmem:[#allocation3 + $0x1c1] sm:$0xff] %vm4482_vm13, %v4411_v33  ;;  %8726 = vmatprep.mubr.msk.f32.mxu1 %vm2855_vm0, %v5081_v24  ;;  %v3648_v6 = vpop.permute.xlu0 %3647 }
 0x9f5   :  { %8727 = vmatmul.mubr.msk.f32.gmra.mxu1 %vm2855_vm0, %v5082_v59  ;;  %5785 = vrot.lane.b32.xlu1 %v5468_v54, %s8872_s0  ;;  %3782 = vst.msk [vmem:[#allocation3 + $0x1d9] sm:$0x7f] %vm3723_vm6, %v3648_v6 }
 0x9f6   :  { %5791 = vrot.lane.b32.xlu0 %v8683_v58, %s8872_s0 }
 0x9f7   :  { %v3646_v22 = vpop.permute.xlu1 %3645 }
 0x9f8   :  { %3781 = vst.msk [vmem:[#allocation3 + $0x1d1] sm:$0xff] %vm3721_vm7, %v3646_v22  ;;  %v4655_v38 = vpop.permute.xlu0 %4654 }
 0x9f9   :  { %5789 = vrot.lane.b32.xlu1 %v5478_v61, %s8872_s0  ;;  %4780 = vst.msk [vmem:[#allocation3 + $0x1c8] sm:$0xff] %vm4724_vm14, %v4655_v38 }
 0x9fa   :  { %5795 = vrot.lane.b32.xlu0 %v8686_v34, %s8872_s0 }
 0x9fb   :  { %v4653_v37 = vpop.permute.xlu1 %4652 }
 0x9fc   :  { %4779 = vst.msk [vmem:[#allocation3 + $0x1c0] sm:$0xff] %vm4724_vm14, %v4653_v37  ;;  %v3906_v31 = vpop.permute.xlu0 %3905  ;;  %v16832_v37 = vld [vmem:[#allocation26_spill] sm:$0xff] }
 0x9fd   :  { %5793 = vrot.lane.b32.xlu1 %v5488_v47, %s8872_s0  ;;  %4039 = vst.msk [vmem:[#allocation3 + $0x1d8] sm:$0xff] %vm3979_vm8, %v3906_v31  ;;  %v8701_v41 = vpop.f32.mrf.mxu1 }
 0x9fe   :  { %5799 = vrot.lane.b32.xlu0 %v8689_v27, %s8872_s0 }
 0x9ff   :  { %v3904_v52 = vpop.permute.xlu1 %3903  ;;  %v5538_v5 = vpop.f32.mrf.mxu1 }
 0xa00   :  { %4038 = vst.msk [vmem:[#allocation3 + $0x1d0] sm:$0xff] %vm3979_vm8, %v3904_v52  ;;  %v4896_v44 = vpop.permute.xlu0 %4895 }
 0xa01   :  { %5797 = vrot.lane.b32.xlu1 %v5498_v50, %s8872_s0  ;;  %5022 = vst.msk [vmem:[#allocation3 + $0x1c7] sm:$0xff] %vm4967_vm15, %v4896_v44  ;;  %v16836_v44 = vld [vmem:[#allocation71_spill] sm:$0xff] }
 0xa02   :  { %5803 = vrot.lane.b32.xlu0 %v8692_v43, %s8872_s0 }
 0xa03   :  { %v4894_v53 = vpop.permute.xlu1 %4893 }
 0xa04   :  { %5021 = vst.msk [vmem:[#allocation3 + $0x1bf] sm:$0xfe] %vm4965_vm12, %v4894_v53  ;;  %v4163_v0 = vpop.permute.xlu0 %4162 }
 0xa05   :  { %5801 = vrot.lane.b32.xlu1 %v5508_v11, %s8872_s0  ;;  %4297 = vst.msk [vmem:[#allocation3 + $0x1d7] sm:$0xff] %vm4238_vm9, %v4163_v0  ;;  %v16834_v11 = vld [vmem:[#allocation126_spill] sm:$0xff] }
 0xa06   :  { %5807 = vrot.lane.b32.xlu0 %v8695_v14, %s8872_s0 }
 0xa07   :  { %v4161_v46 = vpop.permute.xlu1 %4160 }
 0xa08   :  { %4296 = vst.msk [vmem:[#allocation3 + $0x1cf] sm:$0xfe] %vm4236_vm10, %v4161_v46  ;;  %v4417_v9 = vpop.permute.xlu0 %4416  ;;  %v5084_v48 = vld [vmem:[#allocation3 + $0x1c8] sm:$0xff] }
 0xa09   :  { %5805 = vrot.lane.b32.xlu1 %v5518_v1, %s8872_s0  ;;  %4541 = vst.msk [vmem:[#allocation3 + $0x1d9] sm:$0x7f] %vm4484_vm11, %v4417_v9 }
 0xa0a   :  { %5811 = vrot.lane.b32.xlu0 %v8698_v4, %s8872_s0 }
 0xa0b   :  { %v4415_v51 = vpop.permute.xlu1 %4414  ;;  %v5083_v25 = vld [vmem:[#allocation3 + $0x1c0] sm:$0xff] }
 0xa0c   :  { %4540 = vst.msk [vmem:[#allocation3 + $0x1d1] sm:$0xff] %vm4482_vm13, %v4415_v51  ;;  %8729 = vmatprep.mubr.msk.f32.mxu1 %vm2855_vm0, %v5083_v25  ;;  %v3652_v42 = vpop.permute.xlu0 %3651  ;;  %v16840_v25 = vld [vmem:[#allocation41_spill] sm:$0xff] }
 0xa0d   :  { %8730 = vmatmul.mubr.msk.f32.gmra.mxu1 %vm2855_vm0, %v5084_v48  ;;  %5809 = vrot.lane.b32.xlu1 %v5528_v13, %s8872_s0  ;;  %3784 = vst.msk [vmem:[#allocation3 + $0x1e9] sm:$0x7f] %vm3723_vm6, %v3652_v42  ;;  %v16838_v48 = vld [vmem:[#allocation69_spill] sm:$0xff] }
 0xa0e   :  { %5815 = vrot.lane.b32.xlu0 %v8701_v41, %s8872_s0 }
 0xa0f   :  { %v3650_v26 = vpop.permute.xlu1 %3649 }
 0xa10   :  { %3783 = vst.msk [vmem:[#allocation3 + $0x1e1] sm:$0xff] %vm3721_vm7, %v3650_v26  ;;  %v4659_v30 = vpop.permute.xlu0 %4658 }
 0xa11   :  { %5813 = vrot.lane.b32.xlu1 %v5538_v5, %s8872_s0  ;;  %v8704_v55 = vpop.f32.mrf.mxu1  ;;  %4782 = vst.msk [vmem:[#allocation3 + $0x1d8] sm:$0xff] %vm4724_vm14, %v4659_v30 }
 0xa12   :  { %5819 = vrot.lane.b32.xlu0 %v8704_v55, %s8872_s0 }
 0xa13   :  { %v4657_v56 = vpop.permute.xlu1 %4656  ;;  %v5548_v21 = vpop.f32.mrf.mxu1 }
 0xa14   :  { %4781 = vst.msk [vmem:[#allocation3 + $0x1d0] sm:$0xff] %vm4724_vm14, %v4657_v56  ;;  %v3910_v40 = vpop.permute.xlu0 %3909 }
 0xa15   :  { %5817 = vrot.lane.b32.xlu1 %v5548_v21, %s8872_s0  ;;  %4041 = vst.msk [vmem:[#allocation3 + $0x1e8] sm:$0xff] %vm3979_vm8, %v3910_v40  ;;  %v16842_v21 = vld [vmem:[#allocation102_spill] sm:$0xff] }
 0xa17   :  { %v3908_v19 = vpop.permute.xlu1 %3907 }
 0xa18   :  { %4040 = vst.msk [vmem:[#allocation3 + $0x1e0] sm:$0xff] %vm3979_vm8, %v3908_v19  ;;  %v4900_v23 = vpop.permute.xlu0 %4899 }
 0xa19   :  { %5024 = vst.msk [vmem:[#allocation3 + $0x1d7] sm:$0xff] %vm4967_vm15, %v4900_v23  ;;  %v16844_v23 = vld [vmem:[#allocation70_spill] sm:$0xff] }
 0xa1b   :  { %v4898_v2 = vpop.permute.xlu1 %4897 }
 0xa1c   :  { %5023 = vst.msk [vmem:[#allocation3 + $0x1cf] sm:$0xfe] %vm4965_vm12, %v4898_v2  ;;  %v4167_v3 = vpop.permute.xlu0 %4166 }
 0xa1d   :  { %4299 = vst.msk [vmem:[#allocation3 + $0x1e7] sm:$0xff] %vm4238_vm9, %v4167_v3 }
 0xa1f   :  { %v4165_v57 = vpop.permute.xlu1 %4164 }
 0xa20   :  { %4298 = vst.msk [vmem:[#allocation3 + $0x1df] sm:$0xfe] %vm4236_vm10, %v4165_v57  ;;  %v4421_v60 = vpop.permute.xlu0 %4420  ;;  %v5086_v20 = vld [vmem:[#allocation3 + $0x1d8] sm:$0xff] }
 0xa21   :  { %4543 = vst.msk [vmem:[#allocation3 + $0x1e9] sm:$0x7f] %vm4484_vm11, %v4421_v60 }
 0xa23   :  { %v4419_v18 = vpop.permute.xlu1 %4418  ;;  %v5085_v63 = vld [vmem:[#allocation3 + $0x1d0] sm:$0xff] }
 0xa24   :  { %4542 = vst.msk [vmem:[#allocation3 + $0x1e1] sm:$0xff] %vm4482_vm13, %v4419_v18  ;;  %8732 = vmatprep.mubr.msk.f32.mxu1 %vm2855_vm0, %v5085_v63  ;;  %v4663_v29 = vpop.permute.xlu0 %4662 }
 0xa25   :  { %v8707_v28 = vpop.f32.mrf.mxu1  ;;  %8733 = vmatmul.mubr.msk.f32.gmra.mxu1 %vm2855_vm0, %v5086_v20  ;;  %4784 = vst.msk [vmem:[#allocation3 + $0x1e8] sm:$0xff] %vm4724_vm14, %v4663_v29  ;;  %v16846_v29 = vld [vmem:[#allocation130_spill] sm:$0xff] }
 0xa26   :  { %5823 = vrot.lane.b32.xlu0 %v8707_v28, %s8872_s0 }
 0xa27   :  { %v4661_v45 = vpop.permute.xlu1 %4660  ;;  %v5558_v35 = vpop.f32.mrf.mxu1 }
 0xa28   :  { %4783 = vst.msk [vmem:[#allocation3 + $0x1e0] sm:$0xff] %vm4724_vm14, %v4661_v45  ;;  %5821 = vrot.lane.b32.xlu1 %v5558_v35, %s8872_s0  ;;  %v4904_v12 = vpop.permute.xlu0 %4903 }
 0xa29   :  { %5026 = vst.msk [vmem:[#allocation3 + $0x1e7] sm:$0xff] %vm4967_vm15, %v4904_v12  ;;  %v16848_v12 = vld [vmem:[#allocation30_spill] sm:$0xff] }
 0xa2b   :  { %v4902_v62 = vpop.permute.xlu1 %4901 }
 0xa2c   :  { %5025 = vst.msk [vmem:[#allocation3 + $0x1df] sm:$0xfe] %vm4965_vm12, %v4902_v62  ;;  %v3656_v49 = vpop.permute.xlu0 %3655 }
 0xa2d   :  { %3786 = vst.msk [vmem:[#allocation3 + $0x1f9] sm:$0x7f] %vm3723_vm6, %v3656_v49 }
 0xa2f   :  { %v3654_v7 = vpop.permute.xlu1 %3653 }
 0xa30   :  { %3785 = vst.msk [vmem:[#allocation3 + $0x1f1] sm:$0xff] %vm3721_vm7, %v3654_v7  ;;  %v3914_v36 = vpop.permute.xlu0 %3913  ;;  %v5088_v10 = vld [vmem:[#allocation3 + $0x1e8] sm:$0xff] }
 0xa31   :  { %4043 = vst.msk [vmem:[#allocation3 + $0x1f8] sm:$0xff] %vm3979_vm8, %v3914_v36 }
 0xa33   :  { %v3912_v54 = vpop.permute.xlu1 %3911  ;;  %v5087_v58 = vld [vmem:[#allocation3 + $0x1e0] sm:$0xff] }
 0xa34   :  { %4042 = vst.msk [vmem:[#allocation3 + $0x1f0] sm:$0xff] %vm3979_vm8, %v3912_v54  ;;  %8735 = vmatprep.mubr.msk.f32.mxu1 %vm2855_vm0, %v5087_v58  ;;  %v4171_v17 = vpop.permute.xlu0 %4170  ;;  %v16850_v58 = vld [vmem:[#allocation100_spill] sm:$0xff] }
 0xa35   :  { %8736 = vmatmul.mubr.msk.f32.gmra.mxu1 %vm2855_vm0, %v5088_v10  ;;  %4301 = vst.msk [vmem:[#allocation3 + $0x1f7] sm:$0xff] %vm4238_vm9, %v4171_v17 }
 0xa37   :  { %v4169_v39 = vpop.permute.xlu1 %4168 }
 0xa38   :  { %4300 = vst.msk [vmem:[#allocation3 + $0x1ef] sm:$0xfe] %vm4236_vm10, %v4169_v39  ;;  %v5744_v22 = vpop.permute.xlu0 %5743 }
 0xa39   :  { %v8710_v61 = vpop.f32.mrf.mxu1  ;;  %v14527_v31 = vadd.f32 %v16832_v37, %v5744_v22 }
 0xa3a   :  { %5827 = vrot.lane.b32.xlu0 %v8710_v61, %s8872_s0  ;;  %v16852_v61 = vld [vmem:[#allocation128_spill] sm:$0xff] }
 0xa3b   :  { %v5568_v15 = vpop.f32.mrf.mxu1  ;;  %v5742_v50 = vpop.permute.xlu1 %5741  ;;  %16833 = vst [vmem:[#allocation118_spill] sm:$0xff] %v14527_v31  ;;  %v5998_v53 = vsel %vm3222_vm3, %v14527_v31, 0.0 }
 0xa3c   :  { %5825 = vrot.lane.b32.xlu1 %v5568_v15, %s8872_s0  ;;  %v5090_v16 = vld [vmem:[#allocation3 + $0x1f8] sm:$0xff]  ;;  %v14530_v14 = vadd.f32 %v5742_v50, %v16834_v11  ;;  %v5748_v4 = vpop.permute.xlu0 %5747 }
 0xa3d   :  { %v14543_v41 = vadd.f32 %v16838_v48, %v5748_v4  ;;  %v16860_v4 = vld [vmem:[#allocation104_spill] sm:$0xff] }
 0xa3e   :  { %16835 = vst [vmem:[#allocation57_spill] sm:$0xff] %v14530_v14  ;;  %v5997_v0 = vsel %vm3222_vm3, %v14530_v14, 0.0 }
 0xa3f   :  { %v5089_v34 = vld [vmem:[#allocation3 + $0x1f0] sm:$0xff]  ;;  %v5746_v43 = vpop.permute.xlu1 %5745  ;;  %v5999_v9 = vadd.f32 %v5998_v53, %v5997_v0  ;;  %16839 = vst [vmem:[#allocation86_spill] sm:$0xff] %v14543_v41  ;;  %v6002_v5 = vsel %vm3222_vm3, %v14543_v41, 0.0 }
 0xa40   :  { %8738 = vmatprep.mubr.msk.f32.mxu1 %vm2855_vm0, %v5089_v34  ;;  %v14534_v1 = vadd.f32 %v5746_v43, %v16836_v44  ;;  %v5752_v30 = vpop.permute.xlu0 %5751 }
 0xa41   :  { %8739 = vmatmul.mubr.msk.f32.gmra.mxu1 %vm2855_vm0, %v5090_v16  ;;  %v14553_v40 = vadd.f32 %v16842_v21, %v5752_v30 }
 0xa42   :  { %16837 = vst [vmem:[#allocation140_spill] sm:$0xff] %v14534_v1  ;;  %v6000_v46 = vsel %vm3222_vm3, %v14534_v1, 0.0 }
 0xa43   :  { %v5750_v13 = vpop.permute.xlu1 %5749  ;;  %v6001_v51 = vadd.f32 %v6000_v46, %v5999_v9  ;;  %16843 = vst [vmem:[#allocation161_spill] sm:$0xff] %v14553_v40  ;;  %v6006_v3 = vsel %vm3222_vm3, %v14553_v40, 0.0 }
 0xa44   :  { %v14546_v42 = vadd.f32 %v5750_v13, %v16840_v25  ;;  %v5756_v57 = vpop.permute.xlu0 %5755 }
 0xa45   :  { %v6003_v26 = vadd.f32 %v6002_v5, %v6001_v51  ;;  %v14564_v28 = vadd.f32 %v16846_v29, %v5756_v57  ;;  %v16862_v5 = vld [vmem:[#allocation175_spill] sm:$0xff] }
 0xa46   :  { %16841 = vst [vmem:[#allocation11_spill] sm:$0xff] %v14546_v42  ;;  %v6004_v55 = vsel %vm3222_vm3, %v14546_v42, 0.0 }
 0xa47   :  { %v5754_v56 = vpop.permute.xlu1 %5753  ;;  %v6005_v19 = vadd.f32 %v6004_v55, %v6003_v26  ;;  %16847 = vst [vmem:[#allocation31_spill] sm:$0xff] %v14564_v28  ;;  %v6010_v49 = vsel %vm3222_vm3, %v14564_v28, 0.0  ;;  %v16864_v55 = vld [vmem:[#allocation131_spill] sm:$0xff] }
 0xa48   :  { %v14556_v2 = vadd.f32 %v5754_v56, %v16844_v23  ;;  %v5760_v7 = vpop.permute.xlu0 %5759 }
 0xa49   :  { %v6007_v60 = vadd.f32 %v6006_v3, %v6005_v19  ;;  %v14575_v17 = vadd.f32 %v16850_v58, %v5760_v7 }
 0xa4a   :  { %16845 = vst [vmem:[#allocation115_spill] sm:$0xff] %v14556_v2  ;;  %v6008_v20 = vsel %vm3222_vm3, %v14556_v2, 0.0 }
 0xa4b   :  { %v5758_v63 = vpop.permute.xlu1 %5757  ;;  %v6009_v35 = vadd.f32 %v6008_v20, %v6007_v60  ;;  %16851 = vst [vmem:[#allocation162_spill] sm:$0xff] %v14575_v17  ;;  %v6014_v16 = vsel %vm3222_vm3, %v14575_v17, 0.0  ;;  %v16866_v60 = vld [vmem:[#allocation43_spill] sm:$0xff] }
 0xa4c   :  { %v14568_v62 = vadd.f32 %v5758_v63, %v16848_v12  ;;  %v5764_v34 = vpop.permute.xlu0 %5763  ;;  %v16868_v63 = vld [vmem:[#allocation4_spill] sm:$0xff] }
 0xa4d   :  { %v8713_v32 = vpop.f32.mrf.mxu1  ;;  %v6011_v36 = vadd.f32 %v6010_v49, %v6009_v35 }
 0xa4e   :  { %5831 = vrot.lane.b32.xlu0 %v8713_v32, %s8872_s0  ;;  %16849 = vst [vmem:[#allocation35_spill] sm:$0xff] %v14568_v62  ;;  %v6012_v10 = vsel %vm3222_vm3, %v14568_v62, 0.0 }
 0xa4f   :  { %v5578_v8 = vpop.f32.mrf.mxu1  ;;  %v5762_v54 = vpop.permute.xlu1 %5761  ;;  %v6013_v39 = vadd.f32 %v6012_v10, %v6011_v36  ;;  %v16870_v10 = vld [vmem:[#allocation72_spill] sm:$0xff] }
 0xa50   :  { %5829 = vrot.lane.b32.xlu1 %v5578_v8, %s8872_s0  ;;  %v14578_v15 = vadd.f32 %v5762_v54, %v16852_v61  ;;  %v5768_v22 = vpop.permute.xlu0 %5767  ;;  %v16872_v61 = vld [vmem:[#allocation101_spill] sm:$0xff] }
 0xa51   :  { %v6015_v32 = vadd.f32 %v6014_v16, %v6013_v39 }
 0xa52   :  { %16853 = vst [vmem:[#allocation95_spill] sm:$0xff] %v14578_v15  ;;  %v6016_v8 = vsel %vm3222_vm3, %v14578_v15, 0.0 }
 0xa54   :  { %v5772_v13 = vpop.permute.xlu0 %5771 }
 0xa55   :  { %v14607_v26 = vadd.f32 %v16862_v5, %v5772_v13 }
 0xa57   :  { %16863 = vst [vmem:[#allocation88_spill] sm:$0xff] %v14607_v26  ;;  %v6026_v21 = vsel %vm3222_vm3, %v14607_v26, 0.0 }
 0xa58   :  { %v5776_v19 = vpop.permute.xlu0 %5775 }
 0xa59   :  { %v14617_v20 = vadd.f32 %v16866_v60, %v5776_v19  ;;  %v16884_v60 = vld [vmem:[#allocation79_spill] sm:$0xff] }
 0xa5b   :  { %16867 = vst [vmem:[#allocation13_spill] sm:$0xff] %v14617_v20 }
 0xa5c   :  { %v5780_v35 = vpop.permute.xlu0 %5779 }
 0xa5d   :  { %v14628_v54 = vadd.f32 %v16870_v10, %v5780_v35  ;;  %v16886_v10 = vld [vmem:[#allocation77_spill] sm:$0xff] }
 0xa5f   :  { %16871 = vst [vmem:[#allocation117_spill] sm:$0xff] %v14628_v54 }
 0xa61   :  { %v8716_v47 = vpop.f32.mrf.mxu1 }
 0xa62   :  { %5835 = vrot.lane.b32.xlu0 %v8716_v47, %s8872_s0  ;;  %v5766_v47 = vpop.permute.xlu1 %5765 }
 0xa63   :  { %v5588_v59 = vpop.f32.mrf.mxu1 }
 0xa64   :  { %5833 = vrot.lane.b32.xlu1 %v5588_v59, %s8872_s0  ;;  %v16854_v59 = vld [vmem:[#allocation33_spill] sm:$0xff] }
 0xa66   :  { %v5770_v11 = vpop.permute.xlu1 %5769 }
 0xa67   :  { %v14600_v46 = vadd.f32 %v5770_v11, %v16860_v4  ;;  %v16878_v4 = vld [vmem:[#allocation36_spill] sm:$0xff] }
 0xa69   :  { %16861 = vst [vmem:[#allocation142_spill] sm:$0xff] %v14600_v46  ;;  %v6024_v51 = vsel %vm3222_vm3, %v14600_v46, 0.0 }
 0xa6a   :  { %v5774_v25 = vpop.permute.xlu1 %5773 }
 0xa6b   :  { %v14610_v56 = vadd.f32 %v5774_v25, %v16864_v55 }
 0xa6d   :  { %16865 = vst [vmem:[#allocation12_spill] sm:$0xff] %v14610_v56  ;;  %v6028_v3 = vsel %vm3222_vm3, %v14610_v56, 0.0 }
 0xa6e   :  { %v5778_v57 = vpop.permute.xlu1 %5777 }
 0xa6f   :  { %v14620_v29 = vadd.f32 %v5778_v57, %v16868_v63 }
 0xa71   :  { %16869 = vst [vmem:[#allocation163_spill] sm:$0xff] %v14620_v29  ;;  %v6032_v49 = vsel %vm3222_vm3, %v14620_v29, 0.0 }
 0xa72   :  { %v5782_v36 = vpop.permute.xlu1 %5781 }
 0xa73   :  { %v14632_v16 = vadd.f32 %v5782_v36, %v16872_v61  ;;  %v16888_v61 = vld [vmem:[#allocation176_spill] sm:$0xff] }
 0xa75   :  { %v8719_v27 = vpop.f32.mrf.mxu1  ;;  %16873 = vst [vmem:[#allocation38_spill] sm:$0xff] %v14632_v16 }
 0xa76   :  { %5839 = vrot.lane.b32.xlu0 %v8719_v27, %s8872_s0  ;;  %v14585_v27 = vadd.f32 %v16854_v59, %v5764_v34  ;;  %v6034_v34 = vsel %vm3222_vm3, %v14628_v54, 0.0  ;;  %v5786_v59 = vpop.permute.xlu1 %5785 }
 0xa77   :  { %v5598_v33 = vpop.f32.mrf.mxu1 }
 0xa78   :  { %5837 = vrot.lane.b32.xlu1 %v5598_v33, %s8872_s0  ;;  %16855 = vst [vmem:[#allocation29_spill] sm:$0xff] %v14585_v27  ;;  %v6017_v33 = vadd.f32 %v6016_v8, %v6015_v32  ;;  %v6018_v50 = vsel %vm3222_vm3, %v14585_v27, 0.0  ;;  %v5784_v32 = vpop.permute.xlu0 %5783 }
 0xa89   :  { %v8722_v24 = vpop.f32.mrf.mxu1 }
 0xa8a   :  { %5843 = vrot.lane.b32.xlu0 %v8722_v24, %s8872_s0  ;;  %v16856_v24 = vld [vmem:[#allocation75_spill] sm:$0xff] }
 0xa8b   :  { %v5608_v6 = vpop.f32.mrf.mxu1 }
 0xa8c   :  { %5841 = vrot.lane.b32.xlu1 %v5608_v6, %s8872_s0  ;;  %v14588_v6 = vadd.f32 %v5766_v47, %v16856_v24  ;;  %v6036_v47 = vsel %vm3222_vm3, %v14632_v16, 0.0 }
 0xa8e   :  { %16857 = vst [vmem:[#allocation120_spill] sm:$0xff] %v14588_v6  ;;  %v6020_v43 = vsel %vm3222_vm3, %v14588_v6, 0.0 }
 0xa9d   :  { %v8725_v38 = vpop.f32.mrf.mxu1 }
 0xa9e   :  { %5847 = vrot.lane.b32.xlu0 %v8725_v38, %s8872_s0  ;;  %v6019_v38 = vadd.f32 %v6018_v50, %v6017_v33  ;;  %v16874_v33 = vld [vmem:[#allocation152_spill] sm:$0xff] }
 0xa9f   :  { %v5618_v52 = vpop.f32.mrf.mxu1  ;;  %v14639_v24 = vadd.f32 %v16874_v33, %v5784_v32 }
 0xaa0   :  { %5845 = vrot.lane.b32.xlu1 %v5618_v52, %s8872_s0  ;;  %v16858_v52 = vld [vmem:[#allocation73_spill] sm:$0xff]  ;;  %v6021_v0 = vadd.f32 %v6020_v43, %v6019_v38 }
 0xaa1   :  { %v14596_v44 = vadd.f32 %v16858_v52, %v5768_v22  ;;  %16875 = vst [vmem:[#allocation40_spill] sm:$0xff] %v14639_v24  ;;  %v16876_v22 = vld [vmem:[#allocation39_spill] sm:$0xff]  ;;  %v6038_v43 = vsel %vm3222_vm3, %v14639_v24, 0.0 }
 0xaa2   :  { %v14642_v38 = vadd.f32 %v5786_v59, %v16876_v22 }
 0xaa3   :  { %16859 = vst [vmem:[#allocation59_spill] sm:$0xff] %v14596_v44  ;;  %v6022_v9 = vsel %vm3222_vm3, %v14596_v44, 0.0 }
 0xaa4   :  { %v6023_v48 = vadd.f32 %v6022_v9, %v6021_v0  ;;  %16877 = vst [vmem:[#allocation166_spill] sm:$0xff] %v14642_v38  ;;  %v6040_v52 = vsel %vm3222_vm3, %v14642_v38, 0.0  ;;  %v5790_v0 = vpop.permute.xlu1 %5789 }
 0xaa6   :  { %v6025_v30 = vadd.f32 %v6024_v51, %v6023_v48  ;;  %v16880_v51 = vld [vmem:[#allocation129_spill] sm:$0xff] }
 0xaa7   :  { %v14654_v25 = vadd.f32 %v5790_v0, %v16880_v51 }
 0xaa8   :  { %v6027_v23 = vadd.f32 %v6026_v21, %v6025_v30  ;;  %v5794_v19 = vpop.permute.xlu1 %5793 }
 0xaa9   :  { %16881 = vst [vmem:[#allocation32_spill] sm:$0xff] %v14654_v25  ;;  %v6044_v21 = vsel %vm3222_vm3, %v14654_v25, 0.0 }
 0xaac   :  { %v5798_v36 = vpop.permute.xlu1 %5797 }
 0xab0   :  { %v5802_v33 = vpop.permute.xlu1 %5801 }
 0xab5   :  { %v8728_v18 = vpop.f32.mrf.mxu1 }
 0xab6   :  { %5851 = vrot.lane.b32.xlu0 %v8728_v18, %s8872_s0  ;;  %v6029_v18 = vadd.f32 %v6028_v3, %v6027_v23  ;;  %v16882_v23 = vld [vmem:[#allocation170_spill] sm:$0xff] }
 0xab7   :  { %v5628_v45 = vpop.f32.mrf.mxu1 }
 0xab8   :  { %5849 = vrot.lane.b32.xlu1 %v5628_v45, %s8872_s0  ;;  %v6030_v45 = vsel %vm3222_vm3, %v14617_v20, 0.0 }
 0xab9   :  { %v6031_v12 = vadd.f32 %v6030_v45, %v6029_v18  ;;  %v14664_v18 = vadd.f32 %v5794_v19, %v16884_v60 }
 0xabb   :  { %v6033_v39 = vadd.f32 %v6032_v49, %v6031_v12  ;;  %16885 = vst [vmem:[#allocation61_spill] sm:$0xff] %v14664_v18 }
 0xabd   :  { %v6035_v8 = vadd.f32 %v6034_v34, %v6033_v39  ;;  %v14676_v34 = vadd.f32 %v5798_v36, %v16888_v61 }
 0xabf   :  { %v6037_v50 = vadd.f32 %v6036_v47, %v6035_v8  ;;  %16889 = vst [vmem:[#allocation90_spill] sm:$0xff] %v14676_v34  ;;  %v6052_v59 = vsel %vm3222_vm3, %v14676_v34, 0.0 }
 0xac1   :  { %v6039_v11 = vadd.f32 %v6038_v43, %v6037_v50  ;;  %v16890_v50 = vld [vmem:[#allocation136_spill] sm:$0xff] }
 0xac3   :  { %v6041_v48 = vadd.f32 %v6040_v52, %v6039_v11 }
 0xacd   :  { %v8731_v37 = vpop.f32.mrf.mxu1 }
 0xace   :  { %5855 = vrot.lane.b32.xlu0 %v8731_v37, %s8872_s0  ;;  %v5788_v37 = vpop.permute.xlu0 %5787 }
 0xacf   :  { %v5638_v53 = vpop.f32.mrf.mxu1  ;;  %v14650_v9 = vadd.f32 %v16878_v4, %v5788_v37  ;;  %v16892_v37 = vld [vmem:[#allocation132_spill] sm:$0xff] }
 0xad0   :  { %5853 = vrot.lane.b32.xlu1 %v5638_v53, %s8872_s0  ;;  %v14686_v11 = vadd.f32 %v5802_v33, %v16892_v37 }
 0xad1   :  { %16879 = vst [vmem:[#allocation97_spill] sm:$0xff] %v14650_v9  ;;  %v6042_v5 = vsel %vm3222_vm3, %v14650_v9, 0.0 }
 0xad2   :  { %v5792_v30 = vpop.permute.xlu0 %5791  ;;  %v6043_v55 = vadd.f32 %v6042_v5, %v6041_v48  ;;  %16893 = vst [vmem:[#allocation164_spill] sm:$0xff] %v14686_v11  ;;  %v6056_v4 = vsel %vm3222_vm3, %v14686_v11, 0.0  ;;  %v16894_v48 = vld [vmem:[#allocation45_spill] sm:$0xff] }
 0xad3   :  { %v14661_v3 = vadd.f32 %v16882_v23, %v5792_v30  ;;  %v16896_v30 = vld [vmem:[#allocation74_spill] sm:$0xff] }
 0xad4   :  { %v6045_v57 = vadd.f32 %v6044_v21, %v6043_v55 }
 0xad5   :  { %16883 = vst [vmem:[#allocation122_spill] sm:$0xff] %v14661_v3  ;;  %v6046_v45 = vsel %vm3222_vm3, %v14661_v3, 0.0 }
 0xad6   :  { %v5796_v12 = vpop.permute.xlu0 %5795  ;;  %v6047_v49 = vadd.f32 %v6046_v45, %v6045_v57 }
 0xada   :  { %v5800_v8 = vpop.permute.xlu0 %5799 }
 0xadb   :  { %v14683_v22 = vadd.f32 %v16890_v50, %v5800_v8 }
 0xadd   :  { %16891 = vst [vmem:[#allocation14_spill] sm:$0xff] %v14683_v22  ;;  %v6054_v52 = vsel %vm3222_vm3, %v14683_v22, 0.0 }
 0xae5   :  { %v8734_v7 = vpop.f32.mrf.mxu1 }
 0xae6   :  { %5859 = vrot.lane.b32.xlu0 %v8734_v7, %s8872_s0  ;;  %v6048_v7 = vsel %vm3222_vm3, %v14664_v18, 0.0 }
 0xae7   :  { %v5648_v58 = vpop.f32.mrf.mxu1  ;;  %v6049_v39 = vadd.f32 %v6048_v7, %v6047_v49 }
 0xae8   :  { %5857 = vrot.lane.b32.xlu1 %v5648_v58, %s8872_s0  ;;  %v14673_v58 = vadd.f32 %v16886_v10, %v5796_v12  ;;  %v16900_v12 = vld [vmem:[#allocation153_spill] sm:$0xff] }
 0xaea   :  { %16887 = vst [vmem:[#allocation143_spill] sm:$0xff] %v14673_v58  ;;  %v6050_v32 = vsel %vm3222_vm3, %v14673_v58, 0.0 }
 0xaeb   :  { %v6051_v47 = vadd.f32 %v6050_v32, %v6049_v39  ;;  %v16902_v32 = vld [vmem:[#allocation5_spill] sm:$0xff] }
 0xaed   :  { %v6053_v43 = vadd.f32 %v6052_v59, %v6051_v47  ;;  %v16904_v59 = vld [vmem:[#allocation42_spill] sm:$0xff] }
 0xaef   :  { %v6055_v0 = vadd.f32 %v6054_v52, %v6053_v43 }
 0xaf1   :  { %v6057_v5 = vadd.f32 %v6056_v4, %v6055_v0  ;;  %v16906_v0 = vld [vmem:[#allocation103_spill] sm:$0xff] }
 0xaf5   :  { %v8737_v53 = vpop.f32.mrf.mxu1 }
 0xaf6   :  { %5863 = vrot.lane.b32.xlu0 %v8737_v53, %s8872_s0  ;;  %v5804_v53 = vpop.permute.xlu0 %5803 }
 0xaf7   :  { %v5658_v13 = vpop.f32.mrf.mxu1  ;;  %v14693_v51 = vadd.f32 %v16894_v48, %v5804_v53  ;;  %v16908_v48 = vld [vmem:[#allocation171_spill] sm:$0xff] }
 0xaf8   :  { %5861 = vrot.lane.b32.xlu1 %v5658_v13, %s8872_s0  ;;  %v5806_v13 = vpop.permute.xlu1 %5805 }
 0xaf9   :  { %16895 = vst [vmem:[#allocation119_spill] sm:$0xff] %v14693_v51  ;;  %v14696_v55 = vadd.f32 %v5806_v13, %v16896_v30  ;;  %v6058_v21 = vsel %vm3222_vm3, %v14693_v51, 0.0 }
 0xafa   :  { %v5808_v19 = vpop.permute.xlu0 %5807  ;;  %v6059_v23 = vadd.f32 %v6058_v21, %v6057_v5 }
 0xafb   :  { %16897 = vst [vmem:[#allocation44_spill] sm:$0xff] %v14696_v55  ;;  %v6060_v57 = vsel %vm3222_vm3, %v14696_v55, 0.0 }
 0xafc   :  { %v5810_v60 = vpop.permute.xlu1 %5809 }
 0xafd   :  { %v14706_v49 = vadd.f32 %v5810_v60, %v16900_v12  ;;  %v16910_v60 = vld [vmem:[#allocation46_spill] sm:$0xff] }
 0xafe   :  { %v5812_v36 = vpop.permute.xlu0 %5811 }
 0xaff   :  { %16901 = vst [vmem:[#allocation168_spill] sm:$0xff] %v14706_v49  ;;  %v6064_v39 = vsel %vm3222_vm3, %v14706_v49, 0.0  ;;  %v14713_v8 = vadd.f32 %v16902_v32, %v5812_v36 }
 0xb00   :  { %v5814_v61 = vpop.permute.xlu1 %5813 }
 0xb01   :  { %v8740_v63 = vpop.f32.mrf.mxu1  ;;  %16903 = vst [vmem:[#allocation98_spill] sm:$0xff] %v14713_v8  ;;  %v14716_v33 = vadd.f32 %v5814_v61, %v16904_v59  ;;  %v6066_v50 = vsel %vm3222_vm3, %v14713_v8, 0.0 }
 0xb02   :  { %5867 = vrot.lane.b32.xlu0 %v8740_v63, %s8872_s0  ;;  %v16898_v63 = vld [vmem:[#allocation106_spill] sm:$0xff]  ;;  %v5816_v43 = vpop.permute.xlu0 %5815 }
 0xb03   :  { %v5668_v35 = vpop.f32.mrf.mxu1  ;;  %v14703_v45 = vadd.f32 %v16898_v63, %v5808_v19  ;;  %16905 = vst [vmem:[#allocation34_spill] sm:$0xff] %v14716_v33  ;;  %v6068_v52 = vsel %vm3222_vm3, %v14716_v33, 0.0  ;;  %v14723_v4 = vadd.f32 %v16906_v0, %v5816_v43 }
 0xb04   :  { %5865 = vrot.lane.b32.xlu1 %v5668_v35, %s8872_s0  ;;  %v6061_v35 = vadd.f32 %v6060_v57, %v6059_v23  ;;  %v5818_v53 = vpop.permute.xlu1 %5817 }
 0xb05   :  { %16899 = vst [vmem:[#allocation48_spill] sm:$0xff] %v14703_v45  ;;  %v6062_v7 = vsel %vm3222_vm3, %v14703_v45, 0.0  ;;  %16907 = vst [vmem:[#allocation169_spill] sm:$0xff] %v14723_v4  ;;  %v14726_v5 = vadd.f32 %v5818_v53, %v16908_v48  ;;  %v6070_v30 = vsel %vm3222_vm3, %v14723_v4, 0.0 }
 0xb06   :  { %v6063_v10 = vadd.f32 %v6062_v7, %v6061_v35  ;;  %v5820_v21 = vpop.permute.xlu0 %5819  ;;  %v16912_v35 = vld [vmem:[#allocation81_spill] sm:$0xff] }
 0xb07   :  { %16909 = vst [vmem:[#allocation124_spill] sm:$0xff] %v14726_v5  ;;  %v6072_v57 = vsel %vm3222_vm3, %v14726_v5, 0.0  ;;  %v14733_v63 = vadd.f32 %v16910_v60, %v5820_v21 }
 0xb08   :  { %v6065_v47 = vadd.f32 %v6064_v39, %v6063_v10  ;;  %v5822_v23 = vpop.permute.xlu1 %5821 }
 0xb09   :  { %16911 = vst [vmem:[#allocation63_spill] sm:$0xff] %v14733_v63  ;;  %v14736_v12 = vadd.f32 %v5822_v23, %v16912_v35  ;;  %v6074_v39 = vsel %vm3222_vm3, %v14733_v63, 0.0 }
 0xb0a   :  { %v6067_v37 = vadd.f32 %v6066_v50, %v6065_v47  ;;  %v5824_v36 = vpop.permute.xlu0 %5823  ;;  %v16914_v47 = vld [vmem:[#allocation139_spill] sm:$0xff]  ;;  %v16916_v50 = vld [vmem:[#allocation141_spill] sm:$0xff] }
 0xb0b   :  { %16913 = vst [vmem:[#allocation145_spill] sm:$0xff] %v14736_v12  ;;  %v6076_v61 = vsel %vm3222_vm3, %v14736_v12, 0.0  ;;  %v14743_v59 = vadd.f32 %v16914_v47, %v5824_v36 }
 0xb0c   :  { %v6069_v13 = vadd.f32 %v6068_v52, %v6067_v37  ;;  %v5826_v10 = vpop.permute.xlu1 %5825 }
 0xb0d   :  { %16915 = vst [vmem:[#allocation92_spill] sm:$0xff] %v14743_v59  ;;  %v14746_v43 = vadd.f32 %v5826_v10, %v16916_v50  ;;  %v6078_v0 = vsel %vm3222_vm3, %v14743_v59, 0.0 }
 0xb0e   :  { %v6071_v19 = vadd.f32 %v6070_v30, %v6069_v13  ;;  %v5828_v52 = vpop.permute.xlu0 %5827  ;;  %v16918_v30 = vld [vmem:[#allocation83_spill] sm:$0xff] }
 0xb0f   :  { %16917 = vst [vmem:[#allocation15_spill] sm:$0xff] %v14746_v43  ;;  %v6080_v13 = vsel %vm3222_vm3, %v14746_v43, 0.0  ;;  %v14753_v21 = vadd.f32 %v16918_v30, %v5828_v52 }
 0xb10   :  { %v6073_v7 = vadd.f32 %v6072_v57, %v6071_v19  ;;  %v5830_v53 = vpop.permute.xlu1 %5829  ;;  %v16920_v19 = vld [vmem:[#allocation47_spill] sm:$0xff] }
 0xb11   :  { %16919 = vst [vmem:[#allocation16_spill] sm:$0xff] %v14753_v21  ;;  %v14756_v23 = vadd.f32 %v5830_v53, %v16920_v19  ;;  %v16928_v19 = vld [vmem:[#allocation155_spill] sm:$0xff] }
 0xb12   :  { %v6075_v32 = vadd.f32 %v6074_v39, %v6073_v7  ;;  %v5832_v60 = vpop.permute.xlu0 %5831  ;;  %v6082_v7 = vsel %vm3222_vm3, %v14753_v21, 0.0  ;;  %v16922_v39 = vld [vmem:[#allocation108_spill] sm:$0xff] }
 0xb13   :  { %16921 = vst [vmem:[#allocation165_spill] sm:$0xff] %v14756_v23  ;;  %v6084_v36 = vsel %vm3222_vm3, %v14756_v23, 0.0 }
 0xb14   :  { %v6077_v37 = vadd.f32 %v6076_v61, %v6075_v32  ;;  %v5834_v35 = vpop.permute.xlu1 %5833  ;;  %v14763_v61 = vadd.f32 %v16922_v39, %v5832_v60  ;;  %v16924_v32 = vld [vmem:[#allocation76_spill] sm:$0xff] }
 0xb15   :  { %v14766_v47 = vadd.f32 %v5834_v35, %v16924_v32  ;;  %v16930_v32 = vld [vmem:[#allocation6_spill] sm:$0xff] }
 0xb16   :  { %v6079_v48 = vadd.f32 %v6078_v0, %v6077_v37  ;;  %16923 = vst [vmem:[#allocation121_spill] sm:$0xff] %v14763_v61  ;;  %v5836_v37 = vpop.permute.xlu0 %5835  ;;  %v6086_v53 = vsel %vm3222_vm3, %v14763_v61, 0.0 }
 0xb17   :  { %16925 = vst [vmem:[#allocation52_spill] sm:$0xff] %v14766_v47  ;;  %v6088_v0 = vsel %vm3222_vm3, %v14766_v47, 0.0 }
 0xb18   :  { %v6081_v57 = vadd.f32 %v6080_v13, %v6079_v48  ;;  %v5838_v52 = vpop.permute.xlu1 %5837  ;;  %v16926_v48 = vld [vmem:[#allocation133_spill] sm:$0xff] }
 0xb19   :  { %v14773_v30 = vadd.f32 %v16926_v48, %v5836_v37 }
 0xb1a   :  { %v6083_v10 = vadd.f32 %v6082_v7, %v6081_v57  ;;  %v14776_v57 = vadd.f32 %v5838_v52, %v16928_v19  ;;  %v5840_v7 = vpop.permute.xlu0 %5839 }
 0xb1b   :  { %16927 = vst [vmem:[#allocation56_spill] sm:$0xff] %v14773_v30  ;;  %v14783_v61 = vadd.f32 %v16930_v32, %v5840_v7 }
 0xb1c   :  { %v6085_v50 = vadd.f32 %v6084_v36, %v6083_v10  ;;  %16929 = vst [vmem:[#allocation172_spill] sm:$0xff] %v14776_v57  ;;  %v5842_v35 = vpop.permute.xlu1 %5841  ;;  %v6090_v36 = vsel %vm3222_vm3, %v14773_v30, 0.0  ;;  %v6092_v10 = vsel %vm3222_vm3, %v14776_v57, 0.0  ;;  %v16934_v30 = vld [vmem:[#allocation105_spill] sm:$0xff] }
 0xb1d   :  { %16931 = vst [vmem:[#allocation99_spill] sm:$0xff] %v14783_v61 }
 0xb1e   :  { %v6087_v13 = vadd.f32 %v6086_v53, %v6085_v50  ;;  %v16932_v50 = vld [vmem:[#allocation50_spill] sm:$0xff]  ;;  %v5844_v48 = vpop.permute.xlu0 %5843 }
 0xb1f   :  { %v14786_v53 = vadd.f32 %v5842_v35, %v16932_v50  ;;  %v14793_v47 = vadd.f32 %v16934_v30, %v5844_v48 }
 0xb20   :  { %v6089_v60 = vadd.f32 %v6088_v0, %v6087_v13  ;;  %v5846_v52 = vpop.permute.xlu1 %5845  ;;  %v6094_v0 = vsel %vm3222_vm3, %v14783_v61, 0.0  ;;  %v16938_v61 = vld [vmem:[#allocation54_spill] sm:$0xff] }
 0xb21   :  { %16933 = vst [vmem:[#allocation37_spill] sm:$0xff] %v14786_v53  ;;  %v6096_v13 = vsel %vm3222_vm3, %v14786_v53, 0.0  ;;  %16935 = vst [vmem:[#allocation173_spill] sm:$0xff] %v14793_v47 }
 0xb22   :  { %v6091_v39 = vadd.f32 %v6090_v36, %v6089_v60  ;;  %v16936_v60 = vld [vmem:[#allocation144_spill] sm:$0xff]  ;;  %v5848_v32 = vpop.permute.xlu0 %5847 }
 0xb23   :  { %v14796_v36 = vadd.f32 %v5846_v52, %v16936_v60  ;;  %v14803_v57 = vadd.f32 %v16938_v61, %v5848_v32 }
 0xb24   :  { %v6093_v37 = vadd.f32 %v6092_v10, %v6091_v39  ;;  %v6098_v10 = vsel %vm3222_vm3, %v14793_v47, 0.0  ;;  %v16942_v47 = vld [vmem:[#allocation85_spill] sm:$0xff] }
 0xb25   :  { %16937 = vst [vmem:[#allocation125_spill] sm:$0xff] %v14796_v36  ;;  %v6100_v39 = vsel %vm3222_vm3, %v14796_v36, 0.0  ;;  %16939 = vst [vmem:[#allocation65_spill] sm:$0xff] %v14803_v57 }
 0xb26   :  { %v6095_v19 = vadd.f32 %v6094_v0, %v6093_v37  ;;  %v16940_v37 = vld [vmem:[#allocation21_spill] sm:$0xff] }
 0xb28   :  { %v6097_v7 = vadd.f32 %v6096_v13, %v6095_v19  ;;  %v5852_v48 = vpop.permute.xlu0 %5851  ;;  %v6102_v13 = vsel %vm3222_vm3, %v14803_v57, 0.0  ;;  %v16946_v57 = vld [vmem:[#allocation110_spill] sm:$0xff] }
 0xb29   :  { %v14813_v53 = vadd.f32 %v16942_v47, %v5852_v48 }
 0xb2a   :  { %v5850_v35 = vpop.permute.xlu1 %5849  ;;  %v6099_v50 = vadd.f32 %v6098_v10, %v6097_v7  ;;  %v16944_v7 = vld [vmem:[#allocation49_spill] sm:$0xff] }
 0xb2b   :  { %v14806_v0 = vadd.f32 %v5850_v35, %v16940_v37  ;;  %16943 = vst [vmem:[#allocation94_spill] sm:$0xff] %v14813_v53 }
 0xb2c   :  { %v6101_v30 = vadd.f32 %v6100_v39, %v6099_v50  ;;  %v6106_v39 = vsel %vm3222_vm3, %v14813_v53, 0.0  ;;  %v16950_v53 = vld [vmem:[#allocation134_spill] sm:$0xff] }
 0xb2d   :  { %16941 = vst [vmem:[#allocation146_spill] sm:$0xff] %v14806_v0  ;;  %v6104_v19 = vsel %vm3222_vm3, %v14806_v0, 0.0 }
 0xb2e   :  { %v6103_v60 = vadd.f32 %v6102_v13, %v6101_v30  ;;  %v16948_v30 = vld [vmem:[#allocation78_spill] sm:$0xff] }
 0xb30   :  { %v6105_v61 = vadd.f32 %v6104_v19, %v6103_v60 }
 0xb32   :  { %v6107_v37 = vadd.f32 %v6106_v39, %v6105_v61  ;;  %v16952_v61 = vld [vmem:[#allocation156_spill] sm:$0xff] }
 0xb40   :  { %v5856_v32 = vpop.permute.xlu0 %5855 }
 0xb41   :  { %v14823_v36 = vadd.f32 %v16946_v57, %v5856_v32 }
 0xb42   :  { %v5854_v52 = vpop.permute.xlu1 %5853 }
 0xb43   :  { %v14816_v10 = vadd.f32 %v5854_v52, %v16944_v7  ;;  %16947 = vst [vmem:[#allocation18_spill] sm:$0xff] %v14823_v36  ;;  %v6110_v19 = vsel %vm3222_vm3, %v14823_v36, 0.0  ;;  %v16954_v36 = vld [vmem:[#allocation7_spill] sm:$0xff] }
 0xb45   :  { %16945 = vst [vmem:[#allocation17_spill] sm:$0xff] %v14816_v10  ;;  %v6108_v50 = vsel %vm3222_vm3, %v14816_v10, 0.0 }
 0xb46   :  { %v6109_v47 = vadd.f32 %v6108_v50, %v6107_v37 }
 0xb48   :  { %v6111_v7 = vadd.f32 %v6110_v19, %v6109_v47  ;;  %v16956_v47 = vld [vmem:[#allocation58_spill] sm:$0xff] }
 0xb58   :  { %v5860_v48 = vpop.permute.xlu0 %5859 }
 0xb59   :  { %v14833_v0 = vadd.f32 %v16950_v53, %v5860_v48 }
 0xb5a   :  { %v5858_v35 = vpop.permute.xlu1 %5857 }
 0xb5b   :  { %v14826_v13 = vadd.f32 %v5858_v35, %v16948_v30  ;;  %16951 = vst [vmem:[#allocation123_spill] sm:$0xff] %v14833_v0  ;;  %v6114_v50 = vsel %vm3222_vm3, %v14833_v0, 0.0 }
 0xb5d   :  { %16949 = vst [vmem:[#allocation167_spill] sm:$0xff] %v14826_v13  ;;  %v6112_v60 = vsel %vm3222_vm3, %v14826_v13, 0.0 }
 0xb5e   :  { %v6113_v57 = vadd.f32 %v6112_v60, %v6111_v7 }
 0xb60   :  { %v6115_v30 = vadd.f32 %v6114_v50, %v6113_v57 }
 0xb68   :  { %v5864_v32 = vpop.permute.xlu0 %5863 }
 0xb69   :  { %v14843_v10 = vadd.f32 %v16954_v36, %v5864_v32 }
 0xb6a   :  { %v5862_v52 = vpop.permute.xlu1 %5861 }
 0xb6b   :  { %v14836_v39 = vadd.f32 %v5862_v52, %v16952_v61  ;;  %16955 = vst [vmem:[#allocation64_spill] sm:$0xff] %v14843_v10  ;;  %v6118_v52 = vsel %vm3222_vm3, %v14843_v10, 0.0  ;;  %v16958_v61 = vld [vmem:[#allocation107_spill] sm:$0xff] }
 0xb6d   :  { %16953 = vst [vmem:[#allocation60_spill] sm:$0xff] %v14836_v39  ;;  %v6116_v37 = vsel %vm3222_vm3, %v14836_v39, 0.0 }
 0xb6e   :  { %v6117_v53 = vadd.f32 %v6116_v37, %v6115_v30 }
 0xb70   :  { %v6119_v7 = vadd.f32 %v6118_v52, %v6117_v53 }
 0xb74   :  { %v5868_v48 = vpop.permute.xlu0 %5867 }
 0xb75   :  { %v14853_v0 = vadd.f32 %v16958_v61, %v5868_v48 }
 0xb76   :  { %v5866_v35 = vpop.permute.xlu1 %5865 }
 0xb77   :  { %v14846_v19 = vadd.f32 %v5866_v35, %v16956_v47  ;;  %16959 = vst [vmem:[#allocation127_spill] sm:$0xff] %v14853_v0  ;;  %v6122_v36 = vsel %vm3222_vm3, %v14853_v0, 0.0 }
 0xb79   :  { %16957 = vst [vmem:[#allocation174_spill] sm:$0xff] %v14846_v19  ;;  %v6120_v60 = vsel %vm3222_vm3, %v14846_v19, 0.0 }
 0xb7a   :  { %v6121_v39 = vadd.f32 %v6120_v60, %v6119_v7 }
 0xb7c   :  { %v6123_v57 = vadd.f32 %v6122_v36, %v6121_v39 }
 0xb7e   :  { %v6124_v32 = vrot.slane %v6123_v57, 4 }
 0xb80   :  { %v6125_v35 = vadd.f32 %v6124_v32, %v6123_v57 }
 0xb82   :  { %v6126_v50 = vrot.slane %v6125_v35, 2 }
 0xb84   :  { %v6127_v37 = vadd.f32 %v6126_v50, %v6125_v35 }
 0xb86   :  { %v6128_v30 = vrot.slane %v6127_v37, 1 }
 0xb88   :  { %v6129_v47 = vadd.f32 %v6128_v30, %v6127_v37 }
 0xb8a   :  { %v14857_v13 = vmul.f32 0.001953125, %v6129_v47 }
 0xb8c   :  { %v14861_v19 = vsub.f32 %v14530_v14, %v14857_v13  ;;  %v14865_v53 = vsub.f32 %v14527_v31, %v14857_v13  ;;  %v14869_v48 = vsub.f32 %v14534_v1, %v14857_v13  ;;  %v14873_v39 = vsub.f32 %v14543_v41, %v14857_v13 }
 0xb8d   :  { %v14881_v7 = vsub.f32 %v14546_v42, %v14857_v13  ;;  %v14887_v36 = vsub.f32 %v14553_v40, %v14857_v13  ;;  %v14895_v37 = vsub.f32 %v14556_v2, %v14857_v13  ;;  %v14902_v40 = vsub.f32 %v14564_v28, %v14857_v13 }
 0xb8e   :  { %v6195_v52 = vmul.f32 %v14861_v19, %v14861_v19  ;;  %v6196_v60 = vmul.f32 %v14865_v53, %v14865_v53  ;;  %v6197_v61 = vmul.f32 %v14869_v48, %v14869_v48  ;;  %v6198_v57 = vmul.f32 %v14873_v39, %v14873_v39 }
 0xb8f   :  { %v6199_v30 = vmul.f32 %v14881_v7, %v14881_v7  ;;  %v6201_v2 = vmul.f32 %v14895_v37, %v14895_v37  ;;  %v6202_v28 = vmul.f32 %v14902_v40, %v14902_v40 }
 0xb90   :  { %v6259_v32 = vsel %vm3222_vm3, %v6195_v52, 0.0  ;;  %v6260_v35 = vsel %vm3222_vm3, %v6196_v60, 0.0  ;;  %v6262_v47 = vsel %vm3222_vm3, %v6197_v61, 0.0  ;;  %v6200_v52 = vmul.f32 %v14887_v36, %v14887_v36 }
 0xb91   :  { %v6261_v50 = vadd.f32 %v6260_v35, %v6259_v32  ;;  %v6264_v60 = vsel %vm3222_vm3, %v6198_v57, 0.0  ;;  %v14909_v35 = vsub.f32 %v14568_v62, %v14857_v13  ;;  %v6266_v61 = vsel %vm3222_vm3, %v6199_v30, 0.0 }
 0xb92   :  { %v6268_v57 = vsel %vm3222_vm3, %v6200_v52, 0.0  ;;  %v6270_v30 = vsel %vm3222_vm3, %v6201_v2, 0.0  ;;  %v6272_v52 = vsel %vm3222_vm3, %v6202_v28, 0.0 }
 0xb93   :  { %v6263_v42 = vadd.f32 %v6262_v47, %v6261_v50  ;;  %v14916_v47 = vsub.f32 %v14575_v17, %v14857_v13  ;;  %v6203_v62 = vmul.f32 %v14909_v35, %v14909_v35 }
 0xb95   :  { %v6265_v32 = vadd.f32 %v6264_v60, %v6263_v42  ;;  %v14923_v60 = vsub.f32 %v14578_v15, %v14857_v13  ;;  %v6204_v17 = vmul.f32 %v14916_v47, %v14916_v47  ;;  %v6274_v2 = vsel %vm3222_vm3, %v6203_v62, 0.0 }
 0xb97   :  { %v6267_v50 = vadd.f32 %v6266_v61, %v6265_v32  ;;  %v14930_v61 = vsub.f32 %v14585_v27, %v14857_v13  ;;  %v6205_v15 = vmul.f32 %v14923_v60, %v14923_v60  ;;  %v6276_v28 = vsel %vm3222_vm3, %v6204_v17, 0.0 }
 0xb99   :  { %v6269_v42 = vadd.f32 %v6268_v57, %v6267_v50  ;;  %v14937_v57 = vsub.f32 %v14588_v6, %v14857_v13  ;;  %v6206_v27 = vmul.f32 %v14930_v61, %v14930_v61  ;;  %v6278_v62 = vsel %vm3222_vm3, %v6205_v15, 0.0 }
 0xb9b   :  { %v6271_v32 = vadd.f32 %v6270_v30, %v6269_v42  ;;  %v14944_v30 = vsub.f32 %v14596_v44, %v14857_v13  ;;  %v6207_v6 = vmul.f32 %v14937_v57, %v14937_v57  ;;  %v6280_v17 = vsel %vm3222_vm3, %v6206_v27, 0.0 }
 0xb9d   :  { %v6273_v50 = vadd.f32 %v6272_v52, %v6271_v32  ;;  %v14951_v52 = vsub.f32 %v14600_v46, %v14857_v13  ;;  %v6208_v44 = vmul.f32 %v14944_v30, %v14944_v30  ;;  %v6282_v15 = vsel %vm3222_vm3, %v6207_v6, 0.0 }
 0xb9f   :  { %v6275_v42 = vadd.f32 %v6274_v2, %v6273_v50  ;;  %v14958_v2 = vsub.f32 %v14607_v26, %v14857_v13  ;;  %v6209_v46 = vmul.f32 %v14951_v52, %v14951_v52  ;;  %v6284_v27 = vsel %vm3222_vm3, %v6208_v44, 0.0 }
 0xba1   :  { %v6277_v32 = vadd.f32 %v6276_v28, %v6275_v42  ;;  %v14965_v28 = vsub.f32 %v14610_v56, %v14857_v13  ;;  %v6210_v26 = vmul.f32 %v14958_v2, %v14958_v2  ;;  %v6286_v6 = vsel %vm3222_vm3, %v6209_v46, 0.0 }
 0xba3   :  { %v6279_v50 = vadd.f32 %v6278_v62, %v6277_v32  ;;  %v14972_v62 = vsub.f32 %v14617_v20, %v14857_v13  ;;  %v6211_v56 = vmul.f32 %v14965_v28, %v14965_v28  ;;  %v6288_v44 = vsel %vm3222_vm3, %v6210_v26, 0.0 }
 0xba5   :  { %v6281_v42 = vadd.f32 %v6280_v17, %v6279_v50  ;;  %v14979_v17 = vsub.f32 %v14620_v29, %v14857_v13  ;;  %v6212_v20 = vmul.f32 %v14972_v62, %v14972_v62  ;;  %v6290_v46 = vsel %vm3222_vm3, %v6211_v56, 0.0 }
 0xba7   :  { %v6283_v32 = vadd.f32 %v6282_v15, %v6281_v42  ;;  %v14986_v15 = vsub.f32 %v14628_v54, %v14857_v13  ;;  %v6213_v29 = vmul.f32 %v14979_v17, %v14979_v17  ;;  %v6292_v26 = vsel %vm3222_vm3, %v6212_v20, 0.0 }
 0xba9   :  { %v6285_v50 = vadd.f32 %v6284_v27, %v6283_v32  ;;  %v14993_v27 = vsub.f32 %v14632_v16, %v14857_v13  ;;  %v6214_v54 = vmul.f32 %v14986_v15, %v14986_v15  ;;  %v6294_v56 = vsel %vm3222_vm3, %v6213_v29, 0.0 }
 0xbab   :  { %v6287_v42 = vadd.f32 %v6286_v6, %v6285_v50  ;;  %v15000_v6 = vsub.f32 %v14639_v24, %v14857_v13  ;;  %v6215_v16 = vmul.f32 %v14993_v27, %v14993_v27  ;;  %v6296_v20 = vsel %vm3222_vm3, %v6214_v54, 0.0 }
 0xbad   :  { %v6289_v32 = vadd.f32 %v6288_v44, %v6287_v42  ;;  %v15007_v44 = vsub.f32 %v14642_v38, %v14857_v13  ;;  %v6216_v24 = vmul.f32 %v15000_v6, %v15000_v6  ;;  %v6298_v29 = vsel %vm3222_vm3, %v6215_v16, 0.0 }
 0xbaf   :  { %v6291_v50 = vadd.f32 %v6290_v46, %v6289_v32  ;;  %v15014_v46 = vsub.f32 %v14650_v9, %v14857_v13  ;;  %v6217_v38 = vmul.f32 %v15007_v44, %v15007_v44  ;;  %v6300_v54 = vsel %vm3222_vm3, %v6216_v24, 0.0 }
 0xbb1   :  { %v6293_v42 = vadd.f32 %v6292_v26, %v6291_v50  ;;  %v15021_v26 = vsub.f32 %v14654_v25, %v14857_v13  ;;  %v6218_v9 = vmul.f32 %v15014_v46, %v15014_v46  ;;  %v6302_v16 = vsel %vm3222_vm3, %v6217_v38, 0.0 }
 0xbb3   :  { %v6295_v32 = vadd.f32 %v6294_v56, %v6293_v42  ;;  %v15028_v56 = vsub.f32 %v14661_v3, %v14857_v13  ;;  %v6219_v25 = vmul.f32 %v15021_v26, %v15021_v26  ;;  %v6304_v24 = vsel %vm3222_vm3, %v6218_v9, 0.0 }
 0xbb5   :  { %v6297_v50 = vadd.f32 %v6296_v20, %v6295_v32  ;;  %v15035_v20 = vsub.f32 %v14664_v18, %v14857_v13  ;;  %v6220_v3 = vmul.f32 %v15028_v56, %v15028_v56  ;;  %v6306_v38 = vsel %vm3222_vm3, %v6219_v25, 0.0 }
 0xbb7   :  { %v6299_v42 = vadd.f32 %v6298_v29, %v6297_v50  ;;  %v15042_v29 = vsub.f32 %v14673_v58, %v14857_v13  ;;  %v6221_v18 = vmul.f32 %v15035_v20, %v15035_v20  ;;  %v6308_v9 = vsel %vm3222_vm3, %v6220_v3, 0.0 }
 0xbb9   :  { %v6301_v32 = vadd.f32 %v6300_v54, %v6299_v42  ;;  %v15049_v54 = vsub.f32 %v14676_v34, %v14857_v13  ;;  %v6222_v58 = vmul.f32 %v15042_v29, %v15042_v29  ;;  %v6310_v25 = vsel %vm3222_vm3, %v6221_v18, 0.0 }
 0xbbb   :  { %v6303_v50 = vadd.f32 %v6302_v16, %v6301_v32  ;;  %v15056_v16 = vsub.f32 %v14683_v22, %v14857_v13  ;;  %v6223_v34 = vmul.f32 %v15049_v54, %v15049_v54  ;;  %v6312_v3 = vsel %vm3222_vm3, %v6222_v58, 0.0 }
 0xbbd   :  { %v6305_v42 = vadd.f32 %v6304_v24, %v6303_v50  ;;  %v15063_v24 = vsub.f32 %v14686_v11, %v14857_v13  ;;  %v6224_v22 = vmul.f32 %v15056_v16, %v15056_v16  ;;  %v6314_v18 = vsel %vm3222_vm3, %v6223_v34, 0.0 }
 0xbbf   :  { %v6307_v32 = vadd.f32 %v6306_v38, %v6305_v42  ;;  %v15070_v38 = vsub.f32 %v14693_v51, %v14857_v13  ;;  %v6225_v11 = vmul.f32 %v15063_v24, %v15063_v24  ;;  %v6316_v58 = vsel %vm3222_vm3, %v6224_v22, 0.0 }
 0xbc1   :  { %v6309_v50 = vadd.f32 %v6308_v9, %v6307_v32  ;;  %v15077_v9 = vsub.f32 %v14696_v55, %v14857_v13  ;;  %v6226_v51 = vmul.f32 %v15070_v38, %v15070_v38  ;;  %v6318_v34 = vsel %vm3222_vm3, %v6225_v11, 0.0 }
 0xbc3   :  { %v6311_v42 = vadd.f32 %v6310_v25, %v6309_v50  ;;  %v15084_v25 = vsub.f32 %v14703_v45, %v14857_v13  ;;  %v6227_v55 = vmul.f32 %v15077_v9, %v15077_v9  ;;  %v6320_v22 = vsel %vm3222_vm3, %v6226_v51, 0.0 }
 0xbc5   :  { %v6313_v32 = vadd.f32 %v6312_v3, %v6311_v42  ;;  %v15091_v3 = vsub.f32 %v14706_v49, %v14857_v13  ;;  %v6228_v45 = vmul.f32 %v15084_v25, %v15084_v25  ;;  %v6322_v11 = vsel %vm3222_vm3, %v6227_v55, 0.0 }
 0xbc7   :  { %v6315_v50 = vadd.f32 %v6314_v18, %v6313_v32  ;;  %v15098_v18 = vsub.f32 %v14713_v8, %v14857_v13  ;;  %v6229_v49 = vmul.f32 %v15091_v3, %v15091_v3  ;;  %v6324_v51 = vsel %vm3222_vm3, %v6228_v45, 0.0 }
 0xbc9   :  { %v6317_v42 = vadd.f32 %v6316_v58, %v6315_v50  ;;  %v15105_v58 = vsub.f32 %v14716_v33, %v14857_v13  ;;  %v6230_v8 = vmul.f32 %v15098_v18, %v15098_v18  ;;  %v6326_v55 = vsel %vm3222_vm3, %v6229_v49, 0.0 }
 0xbcb   :  { %v6319_v32 = vadd.f32 %v6318_v34, %v6317_v42  ;;  %v15112_v34 = vsub.f32 %v14723_v4, %v14857_v13  ;;  %v6231_v33 = vmul.f32 %v15105_v58, %v15105_v58  ;;  %v6328_v45 = vsel %vm3222_vm3, %v6230_v8, 0.0 }
 0xbcd   :  { %v6321_v50 = vadd.f32 %v6320_v22, %v6319_v32  ;;  %v15119_v22 = vsub.f32 %v14726_v5, %v14857_v13  ;;  %v6232_v4 = vmul.f32 %v15112_v34, %v15112_v34  ;;  %v6330_v49 = vsel %vm3222_vm3, %v6231_v33, 0.0 }
 0xbcf   :  { %v6323_v42 = vadd.f32 %v6322_v11, %v6321_v50  ;;  %v15126_v11 = vsub.f32 %v14733_v63, %v14857_v13  ;;  %v6233_v5 = vmul.f32 %v15119_v22, %v15119_v22  ;;  %v6332_v8 = vsel %vm3222_vm3, %v6232_v4, 0.0 }
 0xbd1   :  { %v6325_v32 = vadd.f32 %v6324_v51, %v6323_v42  ;;  %v15133_v51 = vsub.f32 %v14736_v12, %v14857_v13  ;;  %v6234_v63 = vmul.f32 %v15126_v11, %v15126_v11  ;;  %v6334_v33 = vsel %vm3222_vm3, %v6233_v5, 0.0 }
 0xbd3   :  { %v6327_v50 = vadd.f32 %v6326_v55, %v6325_v32  ;;  %v15140_v55 = vsub.f32 %v14743_v59, %v14857_v13  ;;  %v6235_v12 = vmul.f32 %v15133_v51, %v15133_v51  ;;  %v6336_v4 = vsel %vm3222_vm3, %v6234_v63, 0.0 }
 0xbd5   :  { %v6329_v42 = vadd.f32 %v6328_v45, %v6327_v50  ;;  %v15147_v45 = vsub.f32 %v14746_v43, %v14857_v13  ;;  %v6236_v59 = vmul.f32 %v15140_v55, %v15140_v55  ;;  %v6338_v5 = vsel %vm3222_vm3, %v6235_v12, 0.0 }
 0xbd7   :  { %v6331_v32 = vadd.f32 %v6330_v49, %v6329_v42  ;;  %16960 = vst [vmem:[#allocation67_spill] sm:$0xff] %v15147_v45  ;;  %v15154_v49 = vsub.f32 %v14753_v21, %v14857_v13  ;;  %v6237_v43 = vmul.f32 %v15147_v45, %v15147_v45  ;;  %v6340_v63 = vsel %vm3222_vm3, %v6236_v59, 0.0 }
 0xbd9   :  { %v6333_v50 = vadd.f32 %v6332_v8, %v6331_v32  ;;  %v15161_v8 = vsub.f32 %v14756_v23, %v14857_v13  ;;  %v6238_v1 = vmul.f32 %v15154_v49, %v15154_v49  ;;  %v6342_v12 = vsel %vm3222_vm3, %v6237_v43, 0.0 }
 0xbdb   :  { %v6335_v42 = vadd.f32 %v6334_v33, %v6333_v50  ;;  %16961 = vst [vmem:[#allocation147_spill] sm:$0xff] %v15161_v8  ;;  %v16962_v33 = vld [vmem:[#allocation121_spill] sm:$0xff]  ;;  %v6239_v41 = vmul.f32 %v15161_v8, %v15161_v8  ;;  %v6344_v59 = vsel %vm3222_vm3, %v6238_v1, 0.0 }
 0xbdc   :  { %v15168_v21 = vsub.f32 %v16962_v33, %v14857_v13 }
 0xbdd   :  { %v6337_v32 = vadd.f32 %v6336_v4, %v6335_v42  ;;  %v16964_v4 = vld [vmem:[#allocation52_spill] sm:$0xff]  ;;  %v6346_v43 = vsel %vm3222_vm3, %v6239_v41, 0.0 }
 0xbde   :  { %16963 = vst [vmem:[#allocation96_spill] sm:$0xff] %v15168_v21  ;;  %v15175_v23 = vsub.f32 %v16964_v4, %v14857_v13  ;;  %v6240_v14 = vmul.f32 %v15168_v21, %v15168_v21 }
 0xbdf   :  { %v6339_v50 = vadd.f32 %v6338_v5, %v6337_v32  ;;  %v16966_v5 = vld [vmem:[#allocation56_spill] sm:$0xff] }
 0xbe0   :  { %16965 = vst [vmem:[#allocation62_spill] sm:$0xff] %v15175_v23  ;;  %v15182_v33 = vsub.f32 %v16966_v5, %v14857_v13  ;;  %v6241_v31 = vmul.f32 %v15175_v23, %v15175_v23  ;;  %v6348_v1 = vsel %vm3222_vm3, %v6240_v14, 0.0 }
 0xbe1   :  { %v6341_v42 = vadd.f32 %v6340_v63, %v6339_v50  ;;  %v16968_v63 = vld [vmem:[#allocation172_spill] sm:$0xff] }
 0xbe2   :  { %16967 = vst [vmem:[#allocation148_spill] sm:$0xff] %v15182_v33  ;;  %v15189_v4 = vsub.f32 %v16968_v63, %v14857_v13  ;;  %v6242_v8 = vmul.f32 %v15182_v33, %v15182_v33  ;;  %v6350_v41 = vsel %vm3222_vm3, %v6241_v31, 0.0 }
 0xbe3   :  { %v6343_v32 = vadd.f32 %v6342_v12, %v6341_v42  ;;  %v16970_v12 = vld [vmem:[#allocation99_spill] sm:$0xff] }
 0xbe4   :  { %16969 = vst [vmem:[#allocation87_spill] sm:$0xff] %v15189_v4  ;;  %v15196_v5 = vsub.f32 %v16970_v12, %v14857_v13  ;;  %v6243_v23 = vmul.f32 %v15189_v4, %v15189_v4  ;;  %v6352_v14 = vsel %vm3222_vm3, %v6242_v8, 0.0 }
 0xbe5   :  { %v6345_v50 = vadd.f32 %v6344_v59, %v6343_v32  ;;  %v16972_v59 = vld [vmem:[#allocation37_spill] sm:$0xff] }
 0xbe6   :  { %16971 = vst [vmem:[#allocation22_spill] sm:$0xff] %v15196_v5  ;;  %v15203_v63 = vsub.f32 %v16972_v59, %v14857_v13  ;;  %v6244_v33 = vmul.f32 %v15196_v5, %v15196_v5  ;;  %v6354_v31 = vsel %vm3222_vm3, %v6243_v23, 0.0 }
 0xbe7   :  { %v6347_v42 = vadd.f32 %v6346_v43, %v6345_v50  ;;  %v16974_v43 = vld [vmem:[#allocation173_spill] sm:$0xff] }
 0xbe8   :  { %16973 = vst [vmem:[#allocation149_spill] sm:$0xff] %v15203_v63  ;;  %v15210_v12 = vsub.f32 %v16974_v43, %v14857_v13  ;;  %v6245_v4 = vmul.f32 %v15203_v63, %v15203_v63  ;;  %v6356_v8 = vsel %vm3222_vm3, %v6244_v33, 0.0 }
 0xbe9   :  { %v6349_v32 = vadd.f32 %v6348_v1, %v6347_v42  ;;  %v16976_v1 = vld [vmem:[#allocation125_spill] sm:$0xff] }
 0xbea   :  { %16975 = vst [vmem:[#allocation112_spill] sm:$0xff] %v15210_v12  ;;  %v15217_v59 = vsub.f32 %v16976_v1, %v14857_v13  ;;  %v6246_v5 = vmul.f32 %v15210_v12, %v15210_v12  ;;  %v6358_v23 = vsel %vm3222_vm3, %v6245_v4, 0.0 }
 0xbeb   :  { %v6351_v50 = vadd.f32 %v6350_v41, %v6349_v32  ;;  %v16978_v41 = vld [vmem:[#allocation65_spill] sm:$0xff] }
 0xbec   :  { %16977 = vst [vmem:[#allocation51_spill] sm:$0xff] %v15217_v59  ;;  %v15224_v43 = vsub.f32 %v16978_v41, %v14857_v13  ;;  %v6247_v63 = vmul.f32 %v15217_v59, %v15217_v59  ;;  %v6360_v33 = vsel %vm3222_vm3, %v6246_v5, 0.0 }
 0xbed   :  { %v6353_v42 = vadd.f32 %v6352_v14, %v6351_v50  ;;  %v16980_v14 = vld [vmem:[#allocation146_spill] sm:$0xff] }
 0xbee   :  { %16979 = vst [vmem:[#allocation135_spill] sm:$0xff] %v15224_v43  ;;  %v15231_v1 = vsub.f32 %v16980_v14, %v14857_v13  ;;  %v6248_v12 = vmul.f32 %v15224_v43, %v15224_v43  ;;  %v6362_v4 = vsel %vm3222_vm3, %v6247_v63, 0.0 }
 0xbef   :  { %v6355_v32 = vadd.f32 %v6354_v31, %v6353_v42  ;;  %v16982_v31 = vld [vmem:[#allocation94_spill] sm:$0xff] }
 0xbf0   :  { %16981 = vst [vmem:[#allocation80_spill] sm:$0xff] %v15231_v1  ;;  %v15238_v41 = vsub.f32 %v16982_v31, %v14857_v13  ;;  %v6249_v59 = vmul.f32 %v15231_v1, %v15231_v1  ;;  %v6364_v5 = vsel %vm3222_vm3, %v6248_v12, 0.0 }
 0xbf1   :  { %v6357_v50 = vadd.f32 %v6356_v8, %v6355_v32  ;;  %v16984_v8 = vld [vmem:[#allocation17_spill] sm:$0xff] }
 0xbf2   :  { %16983 = vst [vmem:[#allocation8_spill] sm:$0xff] %v15238_v41  ;;  %v15245_v14 = vsub.f32 %v16984_v8, %v14857_v13  ;;  %v6250_v43 = vmul.f32 %v15238_v41, %v15238_v41  ;;  %v6366_v63 = vsel %vm3222_vm3, %v6249_v59, 0.0 }
 0xbf3   :  { %v6359_v42 = vadd.f32 %v6358_v23, %v6357_v50  ;;  %v16986_v23 = vld [vmem:[#allocation18_spill] sm:$0xff] }
 0xbf4   :  { %16985 = vst [vmem:[#allocation157_spill] sm:$0xff] %v15245_v14  ;;  %v15252_v31 = vsub.f32 %v16986_v23, %v14857_v13  ;;  %v6251_v1 = vmul.f32 %v15245_v14, %v15245_v14  ;;  %v6368_v12 = vsel %vm3222_vm3, %v6250_v43, 0.0 }
 0xbf5   :  { %v6361_v32 = vadd.f32 %v6360_v33, %v6359_v42  ;;  %v16988_v33 = vld [vmem:[#allocation167_spill] sm:$0xff] }
 0xbf6   :  { %16987 = vst [vmem:[#allocation109_spill] sm:$0xff] %v15252_v31  ;;  %v15259_v8 = vsub.f32 %v16988_v33, %v14857_v13  ;;  %v6252_v41 = vmul.f32 %v15252_v31, %v15252_v31  ;;  %v6370_v59 = vsel %vm3222_vm3, %v6251_v1, 0.0 }
 0xbf7   :  { %v6363_v50 = vadd.f32 %v6362_v4, %v6361_v32  ;;  %v16990_v4 = vld [vmem:[#allocation123_spill] sm:$0xff] }
 0xbf8   :  { %16989 = vst [vmem:[#allocation66_spill] sm:$0xff] %v15259_v8  ;;  %v15266_v23 = vsub.f32 %v16990_v4, %v14857_v13  ;;  %v6253_v14 = vmul.f32 %v15259_v8, %v15259_v8  ;;  %v6372_v43 = vsel %vm3222_vm3, %v6252_v41, 0.0 }
 0xbf9   :  { %v6365_v42 = vadd.f32 %v6364_v5, %v6363_v50  ;;  %v16992_v5 = vld [vmem:[#allocation60_spill] sm:$0xff] }
 0xbfa   :  { %16991 = vst [vmem:[#allocation68_spill] sm:$0xff] %v15266_v23  ;;  %v15273_v33 = vsub.f32 %v16992_v5, %v14857_v13  ;;  %v6254_v4 = vmul.f32 %v15266_v23, %v15266_v23  ;;  %v6374_v1 = vsel %vm3222_vm3, %v6253_v14, 0.0 }
 0xbfb   :  { %v6367_v32 = vadd.f32 %v6366_v63, %v6365_v42  ;;  %v15280_v63 = vsub.f32 %v14843_v10, %v14857_v13 }
 0xbfc   :  { %16993 = vst [vmem:[#allocation150_spill] sm:$0xff] %v15273_v33  ;;  %v6255_v8 = vmul.f32 %v15273_v33, %v15273_v33  ;;  %v6376_v41 = vsel %vm3222_vm3, %v6254_v4, 0.0 }
 0xbfd   :  { %v6369_v50 = vadd.f32 %v6368_v12, %v6367_v32  ;;  %16994 = vst [vmem:[#allocation89_spill] sm:$0xff] %v15280_v63  ;;  %v16995_v12 = vld [vmem:[#allocation174_spill] sm:$0xff]  ;;  %v6256_v10 = vmul.f32 %v15280_v63, %v15280_v63 }
 0xbfe   :  { %v15287_v5 = vsub.f32 %v16995_v12, %v14857_v13  ;;  %v6378_v12 = vsel %vm3222_vm3, %v6255_v8, 0.0 }
 0xbff   :  { %v6371_v42 = vadd.f32 %v6370_v59, %v6369_v50  ;;  %v15294_v59 = vsub.f32 %v14853_v0, %v14857_v13 }
 0xc00   :  { %16996 = vst [vmem:[#allocation23_spill] sm:$0xff] %v15287_v5 }
 0xc01   :  { %v6373_v32 = vadd.f32 %v6372_v43, %v6371_v42  ;;  %16997 = vst [vmem:[#allocation151_spill] sm:$0xff] %v15294_v59  ;;  %v6257_v43 = vmul.f32 %v15287_v5, %v15287_v5  ;;  %v6258_v14 = vmul.f32 %v15294_v59, %v15294_v59 }
 0xc03   :  { %v6375_v50 = vadd.f32 %v6374_v1, %v6373_v32  ;;  %v6380_v32 = vsel %vm3222_vm3, %v6256_v10, 0.0  ;;  %v6382_v13 = vsel %vm3222_vm3, %v6257_v43, 0.0  ;;  %v6384_v33 = vsel %vm3222_vm3, %v6258_v14, 0.0  ;;  %v16998_v10 = vld [vmem:[#allocation137_spill] sm:$0xff] }
 0xc05   :  { %v6377_v42 = vadd.f32 %v6376_v41, %v6375_v50 }
 0xc07   :  { %v6379_v23 = vadd.f32 %v6378_v12, %v6377_v42  ;;  %v8884_v42 = vmov 1966171168  }
 0xc08   :  { %v6398_v59 = vunpack.c.l.s4 %v8884_v42 }
 0xc09   :  { %v6381_v1 = vadd.f32 %v6380_v32, %v6379_v23 }
 0xc0a   :  { %v6399_v45 = vunpack.c.0.s8 %v6398_v59 }
 0xc0b   :  { %v6383_v0 = vadd.f32 %v6382_v13, %v6381_v1 }
 0xc0c   :  { %v6402_v23 = vsub.s32 %v6399_v45, %v16998_v10  ;;  %v16999_v45 = vsub.s32 0, %v16998_v10 }
 0xc0d   :  { %v6385_v63 = vadd.f32 %v6384_v33, %v6383_v0  ;;  %v8246_v0 = vld [vmem:[%s15928_s6] ss:$0 sm:$0xff] }
 0xc0f   :  { %v6386_v4 = vrot.slane %v6385_v63, 4 }
 0xc11   :  { %v6387_v50 = vadd.f32 %v6386_v4, %v6385_v63  ;;  %v6624_v63 = vld [vmem:[%s15930_s7] sm:$0xff]  ;;  %s8886_s7 = smov 112  }
 0xc12   :  { %8741 = vmatprep.subr.mxu0 %v6624_v63 }
 0xc13   :  { %v6388_v41 = vrot.slane %v6387_v50, 2  ;;  %8742 = vmatpush3.msra.mxu0 %v6624_v63 }
 0xc15   :  { %v6389_v31 = vadd.f32 %v6388_v41, %v6387_v50 }
 0xc17   :  { %v6390_v5 = vrot.slane %v6389_v31, 1 }
 0xc19   :  { %v6391_v21 = vadd.f32 %v6390_v5, %v6389_v31 }
 0xc1b   :  { %v6392_v8 = vmul.f32 0.001953125, %v6391_v21  ;;  %v6393_v21 = vld [vmem:[%s15929_s5] sm:$0x1] }
 0xc1d   :  { %v6394_v12 = vadd.f32 1e-05, %v6392_v8 }
 0xc1f   :  { %8868 = vrsqrt.f32 %v6394_v12 }
 0xc2c   :  { %v8869_v32 = vpop.eup %8868 }
 0xc2d   :  { %v6403_v43 = vrot.slane %v8869_v32, %v6402_v23 }
 0xc2f   :  { %v6410_v1 = vrot.slane %v6403_v43, %v6402_v23 }
 0xc31   :  { %6411 = vrot.lane.b32.xlu1 %v6410_v1, %s8885_s4 }
 0xc35   :  { %6493 = vrot.lane.b32.xlu1 %v8246_v0, %s8872_s0 }
 0xca3   :  { %v6412_v31 = vpop.permute.xlu1 %6411 }
 0xca4   :  { %v6414_v33 = vmul.f32 %v6412_v31, %v6393_v21 }
 0xca6   :  { %v6419_v5 = vrot.slane %v6414_v33, %v16999_v45 }
 0xca7   :  { %v15324_v14 = vpop.permute.xlu1 %6493 }
 0xca8   :  { %6420 = vrot.lane.b32.xlu0 %v6419_v5, %s8872_s0 }
 0xd1a   :  { %v15322_v59 = vpop.permute.xlu0 %6420 }
 0xd1b   :  { %v6424_v13 = vmul.f32 %v15322_v59, %v14865_v53  ;;  %v6423_v4 = vmul.f32 %v15322_v59, %v14861_v19  ;;  %v6426_v50 = vmul.f32 %v15322_v59, %v14873_v39  ;;  %v6425_v41 = vmul.f32 %v15322_v59, %v14869_v48 }
 0xd1c   :  { %v6428_v42 = vmul.f32 %v15322_v59, %v14887_v36  ;;  %v6427_v10 = vmul.f32 %v15322_v59, %v14881_v7  ;;  %v6430_v48 = vmul.f32 %v15322_v59, %v14902_v40  ;;  %v6429_v39 = vmul.f32 %v15322_v59, %v14895_v37 }
 0xd1d   :  { %v6497_v8 = vadd.f32 %v15324_v14, %v6424_v13  ;;  %v6496_v12 = vadd.f32 %v15324_v14, %v6423_v4  ;;  %v6499_v19 = vadd.f32 %v15324_v14, %v6426_v50  ;;  %v6498_v32 = vadd.f32 %v15324_v14, %v6425_v41 }
 0xd1e   :  { %v6501_v7 = vadd.f32 %v15324_v14, %v6428_v42  ;;  %v6500_v1 = vadd.f32 %v15324_v14, %v6427_v10  ;;  %v6503_v0 = vadd.f32 %v15324_v14, %v6430_v48  ;;  %v6502_v21 = vadd.f32 %v15324_v14, %v6429_v39 }
 0xd1f   :  { %v6561_v53 = vmax.f32 %v6497_v8, 0.0  ;;  %v6560_v23 = vmax.f32 %v6496_v12, 0.0  ;;  %v6563_v36 = vmax.f32 %v6499_v19, 0.0  ;;  %v6562_v43 = vmax.f32 %v6498_v32, 0.0 }
 0xd20   :  { %v6565_v31 = vmax.f32 %v6501_v7, 0.0  ;;  %v6564_v33 = vmax.f32 %v6500_v1, 0.0  ;;  %v6432_v40 = vmul.f32 %v15322_v59, %v14916_v47  ;;  %v6431_v37 = vmul.f32 %v15322_v59, %v14909_v35 }
 0xd21   :  { %6691 = vrot.lane.b32.xlu1 %v6561_v53, %s8885_s4  ;;  %6689 = vrot.lane.b32.xlu0 %v6560_v23, %s8885_s4  ;;  %v6567_v45 = vmax.f32 %v6503_v0, 0.0  ;;  %v6566_v5 = vmax.f32 %v6502_v21, 0.0  ;;  %v6434_v4 = vmul.f32 %v15322_v59, %v14930_v61  ;;  %v6433_v50 = vmul.f32 %v15322_v59, %v14923_v60 }
 0xd22   :  { %v6505_v63 = vadd.f32 %v15324_v14, %v6432_v40  ;;  %v6504_v13 = vadd.f32 %v15324_v14, %v6431_v37  ;;  %v6436_v35 = vmul.f32 %v15322_v59, %v14944_v30  ;;  %v6435_v47 = vmul.f32 %v15322_v59, %v14937_v57 }
 0xd23   :  { %v6507_v12 = vadd.f32 %v15324_v14, %v6434_v4  ;;  %v6506_v42 = vadd.f32 %v15324_v14, %v6433_v50  ;;  %v6438_v60 = vmul.f32 %v15322_v59, %v14958_v2  ;;  %v6437_v61 = vmul.f32 %v15322_v59, %v14951_v52 }
 0xd24   :  { %v6569_v41 = vmax.f32 %v6505_v63, 0.0  ;;  %v6568_v8 = vmax.f32 %v6504_v13, 0.0  ;;  %v6509_v57 = vadd.f32 %v15324_v14, %v6436_v35  ;;  %v6508_v53 = vadd.f32 %v15324_v14, %v6435_v47 }
 0xd25   :  { %6695 = vrot.lane.b32.xlu1 %v6563_v36, %s8885_s4  ;;  %6693 = vrot.lane.b32.xlu0 %v6562_v43, %s8885_s4  ;;  %v6571_v30 = vmax.f32 %v6507_v12, 0.0  ;;  %v6570_v10 = vmax.f32 %v6506_v42, 0.0  ;;  %v6511_v23 = vadd.f32 %v15324_v14, %v6438_v60  ;;  %v6510_v19 = vadd.f32 %v15324_v14, %v6437_v61 }
 0xd26   :  { %v6573_v32 = vmax.f32 %v6509_v57, 0.0  ;;  %v6572_v48 = vmax.f32 %v6508_v53, 0.0  ;;  %v6440_v2 = vmul.f32 %v15322_v59, %v14972_v62  ;;  %v6439_v52 = vmul.f32 %v15322_v59, %v14965_v28 }
 0xd27   :  { %v6575_v39 = vmax.f32 %v6511_v23, 0.0  ;;  %v6574_v36 = vmax.f32 %v6510_v19, 0.0  ;;  %v6442_v1 = vmul.f32 %v15322_v59, %v14986_v15  ;;  %v6441_v0 = vmul.f32 %v15322_v59, %v14979_v17 }
 0xd28   :  { %v6513_v43 = vadd.f32 %v15324_v14, %v6440_v2  ;;  %v6512_v7 = vadd.f32 %v15324_v14, %v6439_v52  ;;  %v6444_v28 = vmul.f32 %v15322_v59, %v15000_v6  ;;  %v6443_v62 = vmul.f32 %v15322_v59, %v14993_v27 }
 0xd29   :  { %6699 = vrot.lane.b32.xlu1 %v6565_v31, %s8885_s4  ;;  %6697 = vrot.lane.b32.xlu0 %v6564_v33, %s8885_s4  ;;  %v6515_v33 = vadd.f32 %v15324_v14, %v6442_v1  ;;  %v6514_v40 = vadd.f32 %v15324_v14, %v6441_v0  ;;  %v6446_v15 = vmul.f32 %v15322_v59, %v15014_v46 }
 0xd2a   :  { %v6577_v21 = vmax.f32 %v6513_v43, 0.0  ;;  %v6576_v31 = vmax.f32 %v6512_v7, 0.0  ;;  %v6517_v17 = vadd.f32 %v15324_v14, %v6444_v28  ;;  %v6445_v27 = vmul.f32 %v15322_v59, %v15007_v44 }
 0xd2b   :  { %v6579_v37 = vmax.f32 %v6515_v33, 0.0  ;;  %v6578_v6 = vmax.f32 %v6514_v40, 0.0  ;;  %v6519_v63 = vadd.f32 %v15324_v14, %v6446_v15  ;;  %v6448_v46 = vmul.f32 %v15322_v59, %v15028_v56 }
 0xd2c   :  { %v6518_v4 = vadd.f32 %v15324_v14, %v6445_v27  ;;  %v6447_v50 = vmul.f32 %v15322_v59, %v15021_v26  ;;  %v6450_v35 = vmul.f32 %v15322_v59, %v15042_v29  ;;  %v6449_v12 = vmul.f32 %v15322_v59, %v15035_v20 }
 0xd2d   :  { %6703 = vrot.lane.b32.xlu1 %v6567_v45, %s8885_s4  ;;  %6701 = vrot.lane.b32.xlu0 %v6566_v5, %s8885_s4  ;;  %v6516_v45 = vadd.f32 %v15324_v14, %v6443_v62  ;;  %v6581_v5 = vmax.f32 %v6517_v17, 0.0  ;;  %v6583_v44 = vmax.f32 %v6519_v63, 0.0  ;;  %v6452_v26 = vmul.f32 %v15322_v59, %v15056_v16 }
 0xd2e   :  { %v6582_v47 = vmax.f32 %v6518_v4, 0.0  ;;  %v6451_v56 = vmul.f32 %v15322_v59, %v15049_v54  ;;  %v6523_v60 = vadd.f32 %v15324_v14, %v6450_v35  ;;  %v6522_v61 = vadd.f32 %v15324_v14, %v6449_v12 }
 0xd2f   :  { %v6580_v13 = vmax.f32 %v6516_v45, 0.0  ;;  %v6525_v20 = vadd.f32 %v15324_v14, %v6452_v26  ;;  %v6453_v54 = vmul.f32 %v15322_v59, %v15063_v24  ;;  %v6458_v2 = vmul.f32 %v15322_v59, %v15098_v18 }
 0xd30   :  { %v6586_v16 = vmax.f32 %v6522_v61, 0.0  ;;  %v6524_v57 = vadd.f32 %v15324_v14, %v6451_v56  ;;  %v6457_v43 = vmul.f32 %v15322_v59, %v15091_v3  ;;  %v6462_v28 = vmul.f32 %v15322_v59, %v15126_v11  ;;  %v17004_v56 = vld [vmem:[#allocation62_spill] sm:$0xff] }
 0xd31   :  { %6707 = vrot.lane.b32.xlu1 %v6569_v41, %s8885_s4  ;;  %6705 = vrot.lane.b32.xlu0 %v6568_v8, %s8885_s4  ;;  %v6521_v41 = vadd.f32 %v15324_v14, %v6448_v46  ;;  %v6520_v8 = vadd.f32 %v15324_v14, %v6447_v50  ;;  %v6589_v53 = vmax.f32 %v6525_v20, 0.0  ;;  %v6531_v1 = vadd.f32 %v15324_v14, %v6458_v2  ;;  %v17009_v2 = vld [vmem:[#allocation135_spill] sm:$0xff] }
 0xd32   :  { %v6588_v19 = vmax.f32 %v6524_v57, 0.0  ;;  %v6530_v0 = vadd.f32 %v15324_v14, %v6457_v43  ;;  %v6535_v33 = vadd.f32 %v15324_v14, %v6462_v28  ;;  %v6464_v11 = vmul.f32 %v15322_v59, %v15140_v55 }
 0xd33   :  { %v6585_v42 = vmax.f32 %v6521_v41, 0.0  ;;  %v6584_v29 = vmax.f32 %v6520_v8, 0.0  ;;  %v6595_v62 = vmax.f32 %v6531_v1, 0.0  ;;  %v6463_v15 = vmul.f32 %v15322_v59, %v15133_v51  ;;  %v17001_v51 = vld [vmem:[#allocation96_spill] sm:$0xff] }
 0xd34   :  { %v6537_v45 = vadd.f32 %v15324_v14, %v6464_v11  ;;  %v6468_v55 = vmul.f32 %v15322_v59, %v17001_v51  ;;  %v17011_v1 = vld [vmem:[#allocation8_spill] sm:$0xff]  ;;  %v17016_v51 = vld [vmem:[#allocation66_spill] sm:$0xff] }
 0xd35   :  { %6711 = vrot.lane.b32.xlu1 %v6571_v30, %s8885_s4  ;;  %6709 = vrot.lane.b32.xlu0 %v6570_v10, %s8885_s4  ;;  %v6454_v30 = vmul.f32 %v15322_v59, %v15070_v38  ;;  %v6587_v10 = vmax.f32 %v6523_v60, 0.0  ;;  %v6456_v38 = vmul.f32 %v15322_v59, %v15084_v25  ;;  %v6459_v25 = vmul.f32 %v15322_v59, %v15105_v58 }
 0xd36   :  { %v6461_v58 = vmul.f32 %v15322_v59, %v15119_v22  ;;  %v6599_v22 = vmax.f32 %v6535_v33, 0.0  ;;  %v6536_v27 = vadd.f32 %v15324_v14, %v6463_v15  ;;  %v6601_v46 = vmax.f32 %v6537_v45, 0.0  ;;  %v17014_v15 = vld [vmem:[#allocation157_spill] sm:$0xff] }
 0xd37   :  { %v6527_v23 = vadd.f32 %v15324_v14, %v6454_v30  ;;  %v6541_v35 = vadd.f32 %v15324_v14, %v6468_v55  ;;  %v17005_v30 = vld [vmem:[#allocation22_spill] sm:$0xff]  ;;  %v6481_v55 = vmul.f32 %v15322_v59, %v17016_v51 }
 0xd38   :  { %v6534_v17 = vadd.f32 %v15324_v14, %v6461_v58 }
 0xd39   :  { %6715 = vrot.lane.b32.xlu1 %v6573_v32, %s8885_s4  ;;  %6713 = vrot.lane.b32.xlu0 %v6572_v48, %s8885_s4  ;;  %v6526_v32 = vadd.f32 %v15324_v14, %v6453_v54  ;;  %v6455_v48 = vmul.f32 %v15322_v59, %v15077_v9  ;;  %v6591_v24 = vmax.f32 %v6527_v23, 0.0  ;;  %v6460_v9 = vmul.f32 %v15322_v59, %v15112_v34 }
 0xd3a   :  { %v6594_v34 = vmax.f32 %v6530_v0, 0.0  ;;  %v6478_v0 = vmul.f32 %v15322_v59, %v17011_v1 }
 0xd3b   :  { %v6590_v52 = vmax.f32 %v6526_v32, 0.0  ;;  %v6533_v3 = vadd.f32 %v15324_v14, %v6460_v9 }
 0xd3d   :  { %6719 = vrot.lane.b32.xlu1 %v6575_v39, %s8885_s4  ;;  %6717 = vrot.lane.b32.xlu0 %v6574_v36, %s8885_s4  ;;  %v6529_v39 = vadd.f32 %v15324_v14, %v6456_v38  ;;  %v6528_v36 = vadd.f32 %v15324_v14, %v6455_v48  ;;  %v17008_v48 = vld [vmem:[#allocation149_spill] sm:$0xff] }
 0xd3f   :  { %v6593_v7 = vmax.f32 %v6529_v39, 0.0  ;;  %v6592_v18 = vmax.f32 %v6528_v36, 0.0  ;;  %v17010_v39 = vld [vmem:[#allocation51_spill] sm:$0xff] }
 0xd40   :  { %v6475_v36 = vmul.f32 %v15322_v59, %v17010_v39 }
 0xd41   :  { %6723 = vrot.lane.b32.xlu1 %v6577_v21, %s8885_s4  ;;  %6721 = vrot.lane.b32.xlu0 %v6576_v31, %s8885_s4  ;;  %v6532_v21 = vadd.f32 %v15324_v14, %v6459_v25  ;;  %v6597_v31 = vmax.f32 %v6533_v3, 0.0 }
 0xd43   :  { %v6596_v40 = vmax.f32 %v6532_v21, 0.0 }
 0xd45   :  { %6727 = vrot.lane.b32.xlu1 %v6579_v37, %s8885_s4  ;;  %6725 = vrot.lane.b32.xlu0 %v6578_v6, %s8885_s4  ;;  %v6466_v37 = vmul.f32 %v15322_v59, %v15154_v49  ;;  %v6598_v6 = vmax.f32 %v6534_v17, 0.0  ;;  %v6600_v49 = vmax.f32 %v6536_v27, 0.0  ;;  %v17013_v17 = vld [vmem:[#allocation109_spill] sm:$0xff] }
 0xd46   :  { %v6480_v11 = vmul.f32 %v15322_v59, %v17013_v17 }
 0xd47   :  { %v6539_v50 = vadd.f32 %v15324_v14, %v6466_v37 }
 0xd49   :  { %6731 = vrot.lane.b32.xlu1 %v6581_v5, %s8885_s4  ;;  %6729 = vrot.lane.b32.xlu0 %v6580_v13, %s8885_s4  ;;  %v17000_v5 = vld [vmem:[#allocation67_spill] sm:$0xff]  ;;  %v6603_v8 = vmax.f32 %v6539_v50, 0.0 }
 0xd4a   :  { %v6465_v63 = vmul.f32 %v15322_v59, %v17000_v5  ;;  %v17002_v13 = vld [vmem:[#allocation147_spill] sm:$0xff]  ;;  %v6553_v5 = vadd.f32 %v15324_v14, %v6480_v11 }
 0xd4b   :  { %v6467_v4 = vmul.f32 %v15322_v59, %v17002_v13  ;;  %v17017_v13 = vld [vmem:[#allocation89_spill] sm:$0xff] }
 0xd4c   :  { %v6617_v50 = vmax.f32 %v6553_v5, 0.0 }
 0xd4d   :  { %6735 = vrot.lane.b32.xlu1 %v6583_v44, %s8885_s4  ;;  %6733 = vrot.lane.b32.xlu0 %v6582_v47, %s8885_s4  ;;  %v6538_v44 = vadd.f32 %v15324_v14, %v6465_v63  ;;  %v17003_v47 = vld [vmem:[#allocation148_spill] sm:$0xff]  ;;  %v6540_v26 = vadd.f32 %v15324_v14, %v6467_v4  ;;  %v6484_v4 = vmul.f32 %v15322_v59, %v17017_v13 }
 0xd4e   :  { %v6470_v41 = vmul.f32 %v15322_v59, %v17003_v47  ;;  %v6554_v47 = vadd.f32 %v15324_v14, %v6481_v55 }
 0xd4f   :  { %v6602_v12 = vmax.f32 %v6538_v44, 0.0  ;;  %v6604_v61 = vmax.f32 %v6540_v26, 0.0 }
 0xd50   :  { %v6543_v60 = vadd.f32 %v15324_v14, %v6470_v41  ;;  %v6557_v41 = vadd.f32 %v15324_v14, %v6484_v4 }
 0xd51   :  { %6739 = vrot.lane.b32.xlu1 %v6585_v42, %s8885_s4  ;;  %6737 = vrot.lane.b32.xlu0 %v6584_v29, %s8885_s4  ;;  %v6469_v42 = vmul.f32 %v15322_v59, %v17004_v56  ;;  %v6605_v29 = vmax.f32 %v6541_v35, 0.0 }
 0xd52   :  { %v6607_v54 = vmax.f32 %v6543_v60, 0.0 }
 0xd53   :  { %v6542_v20 = vadd.f32 %v15324_v14, %v6469_v42 }
 0xd55   :  { %6743 = vrot.lane.b32.xlu1 %v6587_v10, %s8885_s4  ;;  %6741 = vrot.lane.b32.xlu0 %v6586_v16, %s8885_s4  ;;  %v6472_v10 = vmul.f32 %v15322_v59, %v17005_v30  ;;  %v17006_v16 = vld [vmem:[#allocation87_spill] sm:$0xff] }
 0xd56   :  { %v6471_v57 = vmul.f32 %v15322_v59, %v17006_v16  ;;  %v6621_v16 = vmax.f32 %v6557_v41, 0.0 }
 0xd57   :  { %v6545_v32 = vadd.f32 %v15324_v14, %v6472_v10 }
 0xd58   :  { %v6544_v38 = vadd.f32 %v15324_v14, %v6471_v57 }
 0xd59   :  { %6747 = vrot.lane.b32.xlu1 %v6589_v53, %s8885_s4  ;;  %6745 = vrot.lane.b32.xlu0 %v6588_v19, %s8885_s4  ;;  %v17007_v53 = vld [vmem:[#allocation112_spill] sm:$0xff]  ;;  %v6606_v19 = vmax.f32 %v6542_v20, 0.0  ;;  %v6609_v43 = vmax.f32 %v6545_v32, 0.0 }
 0xd5a   :  { %v6474_v23 = vmul.f32 %v15322_v59, %v17007_v53  ;;  %v6608_v9 = vmax.f32 %v6544_v38, 0.0 }
 0xd5c   :  { %v6547_v25 = vadd.f32 %v15324_v14, %v6474_v23 }
 0xd5d   :  { %6751 = vrot.lane.b32.xlu1 %v6591_v24, %s8885_s4  ;;  %6749 = vrot.lane.b32.xlu0 %v6590_v52, %s8885_s4  ;;  %v6473_v24 = vmul.f32 %v15322_v59, %v17008_v48  ;;  %v6476_v52 = vmul.f32 %v15322_v59, %v17009_v2 }
 0xd5e   :  { %v6611_v3 = vmax.f32 %v6547_v25, 0.0 }
 0xd61   :  { %6755 = vrot.lane.b32.xlu1 %v6593_v7, %s8885_s4  ;;  %6753 = vrot.lane.b32.xlu0 %v6592_v18, %s8885_s4  ;;  %v6546_v7 = vadd.f32 %v15324_v14, %v6473_v24  ;;  %v6549_v18 = vadd.f32 %v15324_v14, %v6476_v52 }
 0xd63   :  { %v6610_v28 = vmax.f32 %v6546_v7, 0.0  ;;  %v6613_v58 = vmax.f32 %v6549_v18, 0.0 }
 0xd65   :  { %6759 = vrot.lane.b32.xlu1 %v6595_v62, %s8885_s4  ;;  %6757 = vrot.lane.b32.xlu0 %v6594_v34, %s8885_s4  ;;  %v6548_v62 = vadd.f32 %v15324_v14, %v6475_v36  ;;  %v17012_v34 = vld [vmem:[#allocation80_spill] sm:$0xff] }
 0xd66   :  { %v6477_v21 = vmul.f32 %v15322_v59, %v17012_v34 }
 0xd67   :  { %v6612_v33 = vmax.f32 %v6548_v62, 0.0 }
 0xd69   :  { %6763 = vrot.lane.b32.xlu1 %v6597_v31, %s8885_s4  ;;  %6761 = vrot.lane.b32.xlu0 %v6596_v40, %s8885_s4  ;;  %v6551_v31 = vadd.f32 %v15324_v14, %v6478_v0  ;;  %v6550_v40 = vadd.f32 %v15324_v14, %v6477_v21 }
 0xd6b   :  { %v6615_v37 = vmax.f32 %v6551_v31, 0.0  ;;  %v6614_v27 = vmax.f32 %v6550_v40, 0.0 }
 0xd6d   :  { %6767 = vrot.lane.b32.xlu1 %v6599_v22, %s8885_s4  ;;  %6765 = vrot.lane.b32.xlu0 %v6598_v6, %s8885_s4  ;;  %v6479_v22 = vmul.f32 %v15322_v59, %v17014_v15  ;;  %v17015_v6 = vld [vmem:[#allocation68_spill] sm:$0xff] }
 0xd6e   :  { %v6482_v45 = vmul.f32 %v15322_v59, %v17015_v6 }
 0xd6f   :  { %v6552_v63 = vadd.f32 %v15324_v14, %v6479_v22 }
 0xd70   :  { %v6555_v35 = vadd.f32 %v15324_v14, %v6482_v45 }
 0xd71   :  { %6771 = vrot.lane.b32.xlu1 %v6601_v46, %s8885_s4  ;;  %6769 = vrot.lane.b32.xlu0 %v6600_v49, %s8885_s4  ;;  %v17018_v46 = vld [vmem:[#allocation150_spill] sm:$0xff]  ;;  %v6616_v44 = vmax.f32 %v6552_v63, 0.0 }
 0xd72   :  { %v6483_v49 = vmul.f32 %v15322_v59, %v17018_v46  ;;  %v6619_v42 = vmax.f32 %v6555_v35, 0.0 }
 0xd74   :  { %v6556_v60 = vadd.f32 %v15324_v14, %v6483_v49 }
 0xd75   :  { %6775 = vrot.lane.b32.xlu1 %v6603_v8, %s8885_s4  ;;  %6773 = vrot.lane.b32.xlu0 %v6602_v12, %s8885_s4  ;;  %v17019_v8 = vld [vmem:[#allocation151_spill] sm:$0xff] }
 0xd76   :  { %v6486_v12 = vmul.f32 %v15322_v59, %v17019_v8  ;;  %v6620_v57 = vmax.f32 %v6556_v60, 0.0 }
 0xd79   :  { %6779 = vrot.lane.b32.xlu1 %v6605_v29, %s8885_s4  ;;  %6777 = vrot.lane.b32.xlu0 %v6604_v61, %s8885_s4  ;;  %v6618_v29 = vmax.f32 %v6554_v47, 0.0  ;;  %v17020_v61 = vld [vmem:[#allocation23_spill] sm:$0xff] }
 0xd7a   :  { %v6485_v20 = vmul.f32 %v15322_v59, %v17020_v61 }
 0xd7c   :  { %v6558_v53 = vadd.f32 %v15324_v14, %v6485_v20 }
 0xd7d   :  { %6783 = vrot.lane.b32.xlu1 %v6607_v54, %s8885_s4  ;;  %6781 = vrot.lane.b32.xlu0 %v6606_v19, %s8885_s4  ;;  %v6559_v54 = vadd.f32 %v15324_v14, %v6486_v12  ;;  %v8311_v14 = vld [vmem:[%s15931_s8] ss:$0 sm:$0xff] }
 0xd7e   :  { %v6622_v32 = vmax.f32 %v6558_v53, 0.0 }
 0xd7f   :  { %v6623_v19 = vmax.f32 %v6559_v54, 0.0 }
 0xd81   :  { %6787 = vrot.lane.b32.xlu1 %v6609_v43, %s8885_s4  ;;  %6785 = vrot.lane.b32.xlu0 %v6608_v9, %s8885_s4 }
 0xd85   :  { %6791 = vrot.lane.b32.xlu1 %v6611_v3, %s8885_s4  ;;  %6789 = vrot.lane.b32.xlu0 %v6610_v28, %s8885_s4 }
 0xd89   :  { %6795 = vrot.lane.b32.xlu1 %v6613_v58, %s8885_s4  ;;  %6793 = vrot.lane.b32.xlu0 %v6612_v33, %s8885_s4 }
 0xd8d   :  { %6799 = vrot.lane.b32.xlu1 %v6615_v37, %s8885_s4  ;;  %6797 = vrot.lane.b32.xlu0 %v6614_v27, %s8885_s4 }
 0xd91   :  { %6803 = vrot.lane.b32.xlu1 %v6617_v50, %s8885_s4  ;;  %6801 = vrot.lane.b32.xlu0 %v6616_v44, %s8885_s4 }
 0xd93   :  { %v6692_v26 = vpop.permute.xlu1 %6691  ;;  %v6690_v56 = vpop.permute.xlu0 %6689 }
 0xd94   :  { %8743 = vmatprep.mubr.msk.f32.mxu0 %vm2249_vm1, %v6690_v56 }
 0xd95   :  { %6807 = vrot.lane.b32.xlu1 %v6619_v42, %s8885_s4  ;;  %6805 = vrot.lane.b32.xlu0 %v6618_v29, %s8885_s4 }
 0xd96   :  { %8744 = vmatmul.mubr.msk.f32.vlgmr.msra.gmra.mxu0 %vm2249_vm1, %v6692_v26 }
 0xd97   :  { %v6696_v30 = vpop.permute.xlu1 %6695  ;;  %v6694_v10 = vpop.permute.xlu0 %6693 }
 0xd98   :  { %8746 = vmatprep.mubr.msk.f32.mxu0 %vm2249_vm1, %v6694_v10 }
 0xd99   :  { %6811 = vrot.lane.b32.xlu1 %v6621_v16, %s8885_s4  ;;  %6809 = vrot.lane.b32.xlu0 %v6620_v57, %s8885_s4 }
 0xd9a   :  { %8747 = vmatmul.mubr.msk.f32.gmra.mxu0 %vm2249_vm1, %v6696_v30 }
 0xd9b   :  { %v6700_v59 = vpop.permute.xlu1 %6699  ;;  %v6698_v23 = vpop.permute.xlu0 %6697 }
 0xd9c   :  { %8749 = vmatprep.mubr.msk.f32.mxu0 %vm2249_vm1, %v6698_v23 }
 0xd9d   :  { %6815 = vrot.lane.b32.xlu1 %v6623_v19, %s8885_s4  ;;  %6813 = vrot.lane.b32.xlu0 %v6622_v32, %s8885_s4 }
 0xd9e   :  { %8750 = vmatmul.mubr.msk.f32.gmra.mxu0 %vm2249_vm1, %v6700_v59 }
 0xd9f   :  { %v6704_v38 = vpop.permute.xlu1 %6703  ;;  %v6702_v48 = vpop.permute.xlu0 %6701 }
 0xda0   :  { %8752 = vmatprep.mubr.msk.f32.mxu0 %vm2249_vm1, %v6702_v48 }
 0xda1   :  { %7656 = vrot.lane.b32.xlu0 %v8311_v14, %s8874_s15 }
 0xda2   :  { %8753 = vmatmul.mubr.msk.f32.gmra.mxu0 %vm2249_vm1, %v6704_v38 }
 0xda3   :  { %v6708_v24 = vpop.permute.xlu1 %6707  ;;  %v6706_v2 = vpop.permute.xlu0 %6705 }
 0xda4   :  { %8755 = vmatprep.mubr.msk.f32.mxu0 %vm2249_vm1, %v6706_v2 }
 0xda6   :  { %8756 = vmatmul.mubr.msk.f32.gmra.mxu0 %vm2249_vm1, %v6708_v24 }
 0xda7   :  { %v6712_v52 = vpop.permute.xlu1 %6711  ;;  %v6710_v39 = vpop.permute.xlu0 %6709 }
 0xda8   :  { %8758 = vmatprep.mubr.msk.f32.mxu0 %vm2249_vm1, %v6710_v39 }
 0xdaa   :  { %8759 = vmatmul.mubr.msk.f32.gmra.mxu0 %vm2249_vm1, %v6712_v52 }
 0xdab   :  { %v6716_v36 = vpop.permute.xlu1 %6715  ;;  %v6714_v43 = vpop.permute.xlu0 %6713 }
 0xdac   :  { %8761 = vmatprep.mubr.msk.f32.mxu0 %vm2249_vm1, %v6714_v43 }
 0xdae   :  { %8762 = vmatmul.mubr.msk.f32.gmra.mxu0 %vm2249_vm1, %v6716_v36 }
 0xdaf   :  { %v6720_v9 = vpop.permute.xlu1 %6719  ;;  %v6718_v25 = vpop.permute.xlu0 %6717 }
 0xdb0   :  { %8764 = vmatprep.mubr.msk.f32.mxu0 %vm2249_vm1, %v6718_v25 }
 0xdb2   :  { %8765 = vmatmul.mubr.msk.f32.gmra.mxu0 %vm2249_vm1, %v6720_v9 }
 0xdb3   :  { %v6724_v7 = vpop.permute.xlu1 %6723  ;;  %v6722_v18 = vpop.permute.xlu0 %6721 }
 0xdb4   :  { %8767 = vmatprep.mubr.msk.f32.mxu0 %vm2249_vm1, %v6722_v18 }
 0xdb6   :  { %8768 = vmatmul.mubr.msk.f32.gmra.mxu0 %vm2249_vm1, %v6724_v7 }
 0xdb7   :  { %v6728_v1 = vpop.permute.xlu1 %6727  ;;  %v6726_v0 = vpop.permute.xlu0 %6725 }
 0xdb8   :  { %8770 = vmatprep.mubr.msk.f32.mxu0 %vm2249_vm1, %v6726_v0 }
 0xdba   :  { %8771 = vmatmul.mubr.msk.f32.gmra.mxu0 %vm2249_vm1, %v6728_v1 }
 0xdbb   :  { %v6732_v3 = vpop.permute.xlu1 %6731  ;;  %v6730_v28 = vpop.permute.xlu0 %6729 }
 0xdbc   :  { %8773 = vmatprep.mubr.msk.f32.mxu0 %vm2249_vm1, %v6730_v28 }
 0xdbe   :  { %8774 = vmatmul.mubr.msk.f32.gmra.mxu0 %vm2249_vm1, %v6732_v3 }
 0xdbf   :  { %v6736_v62 = vpop.permute.xlu1 %6735  ;;  %v6734_v34 = vpop.permute.xlu0 %6733 }
 0xdc0   :  { %8776 = vmatprep.mubr.msk.f32.mxu0 %vm2249_vm1, %v6734_v34 }
 0xdc2   :  { %8777 = vmatmul.mubr.msk.f32.gmra.mxu0 %vm2249_vm1, %v6736_v62 }
 0xdc3   :  { %v6740_v21 = vpop.permute.xlu1 %6739  ;;  %v6738_v58 = vpop.permute.xlu0 %6737 }
 0xdc4   :  { %8779 = vmatprep.mubr.msk.f32.mxu0 %vm2249_vm1, %v6738_v58 }
 0xdc6   :  { %8780 = vmatmul.mubr.msk.f32.gmra.mxu0 %vm2249_vm1, %v6740_v21 }
 0xdc7   :  { %v6744_v31 = vpop.permute.xlu1 %6743  ;;  %v6742_v33 = vpop.permute.xlu0 %6741 }
 0xdc8   :  { %8782 = vmatprep.mubr.msk.f32.mxu0 %vm2249_vm1, %v6742_v33 }
 0xdca   :  { %8783 = vmatmul.mubr.msk.f32.gmra.mxu0 %vm2249_vm1, %v6744_v31 }
 0xdcb   :  { %v6748_v40 = vpop.permute.xlu1 %6747  ;;  %v6746_v17 = vpop.permute.xlu0 %6745 }
 0xdcc   :  { %8785 = vmatprep.mubr.msk.f32.mxu0 %vm2249_vm1, %v6746_v17 }
 0xdce   :  { %8786 = vmatmul.mubr.msk.f32.gmra.mxu0 %vm2249_vm1, %v6748_v40 }
 0xdcf   :  { %v6752_v11 = vpop.permute.xlu1 %6751  ;;  %v6750_v15 = vpop.permute.xlu0 %6749 }
 0xdd0   :  { %8788 = vmatprep.mubr.msk.f32.mxu0 %vm2249_vm1, %v6750_v15 }
 0xdd2   :  { %8789 = vmatmul.mubr.msk.f32.gmra.mxu0 %vm2249_vm1, %v6752_v11 }
 0xdd3   :  { %v6756_v22 = vpop.permute.xlu1 %6755  ;;  %v6754_v37 = vpop.permute.xlu0 %6753 }
 0xdd4   :  { %8791 = vmatprep.mubr.msk.f32.mxu0 %vm2249_vm1, %v6754_v37 }
 0xdd6   :  { %8792 = vmatmul.mubr.msk.f32.gmra.mxu0 %vm2249_vm1, %v6756_v22 }
 0xdd7   :  { %v6760_v6 = vpop.permute.xlu1 %6759  ;;  %v6758_v45 = vpop.permute.xlu0 %6757 }
 0xdd8   :  { %8794 = vmatprep.mubr.msk.f32.mxu0 %vm2249_vm1, %v6758_v45 }
 0xdda   :  { %8795 = vmatmul.mubr.msk.f32.gmra.mxu0 %vm2249_vm1, %v6760_v6 }
 0xddb   :  { %v6764_v27 = vpop.permute.xlu1 %6763  ;;  %v6762_v5 = vpop.permute.xlu0 %6761 }
 0xddc   :  { %8797 = vmatprep.mubr.msk.f32.mxu0 %vm2249_vm1, %v6762_v5 }
 0xdde   :  { %8798 = vmatmul.mubr.msk.f32.gmra.mxu0 %vm2249_vm1, %v6764_v27 }
 0xddf   :  { %v6768_v63 = vpop.permute.xlu1 %6767  ;;  %v6766_v51 = vpop.permute.xlu0 %6765 }
 0xde0   :  { %8800 = vmatprep.mubr.msk.f32.mxu0 %vm2249_vm1, %v6766_v51 }
 0xde2   :  { %8801 = vmatmul.mubr.msk.f32.gmra.mxu0 %vm2249_vm1, %v6768_v63 }
 0xde3   :  { %v6772_v55 = vpop.permute.xlu1 %6771  ;;  %v6770_v13 = vpop.permute.xlu0 %6769 }
 0xde4   :  { %8803 = vmatprep.mubr.msk.f32.mxu0 %vm2249_vm1, %v6770_v13 }
 0xde6   :  { %8804 = vmatmul.mubr.msk.f32.gmra.mxu0 %vm2249_vm1, %v6772_v55 }
 0xde7   :  { %v6776_v4 = vpop.permute.xlu1 %6775  ;;  %v6774_v46 = vpop.permute.xlu0 %6773 }
 0xde8   :  { %8806 = vmatprep.mubr.msk.f32.mxu0 %vm2249_vm1, %v6774_v46 }
 0xdea   :  { %8807 = vmatmul.mubr.msk.f32.gmra.mxu0 %vm2249_vm1, %v6776_v4 }
 0xdeb   :  { %v6780_v49 = vpop.permute.xlu1 %6779  ;;  %v6778_v50 = vpop.permute.xlu0 %6777 }
 0xdec   :  { %8809 = vmatprep.mubr.msk.f32.mxu0 %vm2249_vm1, %v6778_v50 }
 0xdee   :  { %8810 = vmatmul.mubr.msk.f32.gmra.mxu0 %vm2249_vm1, %v6780_v49 }
 0xdef   :  { %v6784_v44 = vpop.permute.xlu1 %6783  ;;  %v6782_v35 = vpop.permute.xlu0 %6781 }
 0xdf0   :  { %8812 = vmatprep.mubr.msk.f32.mxu0 %vm2249_vm1, %v6782_v35 }
 0xdf2   :  { %8813 = vmatmul.mubr.msk.f32.gmra.mxu0 %vm2249_vm1, %v6784_v44 }
 0xdf3   :  { %v6788_v47 = vpop.permute.xlu1 %6787  ;;  %v6786_v41 = vpop.permute.xlu0 %6785 }
 0xdf4   :  { %8815 = vmatprep.mubr.msk.f32.mxu0 %vm2249_vm1, %v6786_v41 }
 0xdf6   :  { %8816 = vmatmul.mubr.msk.f32.gmra.mxu0 %vm2249_vm1, %v6788_v47 }
 0xdf7   :  { %v6792_v8 = vpop.permute.xlu1 %6791  ;;  %v6790_v12 = vpop.permute.xlu0 %6789 }
 0xdf8   :  { %8818 = vmatprep.mubr.msk.f32.mxu0 %vm2249_vm1, %v6790_v12 }
 0xdfa   :  { %8819 = vmatmul.mubr.msk.f32.gmra.mxu0 %vm2249_vm1, %v6792_v8 }
 0xdfb   :  { %v6796_v26 = vpop.permute.xlu1 %6795  ;;  %v6794_v56 = vpop.permute.xlu0 %6793 }
 0xdfc   :  { %8821 = vmatprep.mubr.msk.f32.mxu0 %vm2249_vm1, %v6794_v56 }
 0xdfe   :  { %8822 = vmatmul.mubr.msk.f32.gmra.mxu0 %vm2249_vm1, %v6796_v26 }
 0xdff   :  { %v6800_v42 = vpop.permute.xlu1 %6799  ;;  %v6798_v29 = vpop.permute.xlu0 %6797 }
 0xe00   :  { %8824 = vmatprep.mubr.msk.f32.mxu0 %vm2249_vm1, %v6798_v29 }
 0xe02   :  { %8825 = vmatmul.mubr.msk.f32.gmra.mxu0 %vm2249_vm1, %v6800_v42 }
 0xe03   :  { %v6804_v60 = vpop.permute.xlu1 %6803  ;;  %v6802_v61 = vpop.permute.xlu0 %6801 }
 0xe04   :  { %8827 = vmatprep.mubr.msk.f32.mxu0 %vm2249_vm1, %v6802_v61 }
 0xe06   :  { %8828 = vmatmul.mubr.msk.f32.gmra.mxu0 %vm2249_vm1, %v6804_v60 }
 0xe07   :  { %v6808_v20 = vpop.permute.xlu1 %6807  ;;  %v6806_v30 = vpop.permute.xlu0 %6805 }
 0xe08   :  { %8830 = vmatprep.mubr.msk.f32.mxu0 %vm2249_vm1, %v6806_v30 }
 0xe0a   :  { %8831 = vmatmul.mubr.msk.f32.gmra.mxu0 %vm2249_vm1, %v6808_v20 }
 0xe0b   :  { %v6812_v10 = vpop.permute.xlu1 %6811  ;;  %v6810_v16 = vpop.permute.xlu0 %6809 }
 0xe0c   :  { %8833 = vmatprep.mubr.msk.f32.mxu0 %vm2249_vm1, %v6810_v16  ;;  %v17021_v16 = vld [vmem:[#allocation118_spill] sm:$0xff] }
 0xe0e   :  { %8834 = vmatmul.mubr.msk.f32.gmra.mxu0 %vm2249_vm1, %v6812_v10 }
 0xe0f   :  { %v6816_v57 = vpop.permute.xlu1 %6815  ;;  %v6814_v54 = vpop.permute.xlu0 %6813 }
 0xe10   :  { %8836 = vmatprep.mubr.msk.f32.mxu0 %vm2249_vm1, %v6814_v54 }
 0xe12   :  { %8837 = vmatmul.mubr.msk.f32.gmra.mxu0 %vm2249_vm1, %v6816_v57 }
 0xe13   :  { %v15706_v60 = vpop.permute.xlu0 %7656 }
 0xe56   :  { %v8745_v53 = vpop.f32.mrf.mxu0 }
 0xe57   :  { %7396 = vrot.lane.b32.xlu1 %v8745_v53, %s8874_s15 }
 0xe58   :  { %v7011_v59 = vpop.f32.mrf.mxu0 }
 0xe59   :  { %7394 = vrot.lane.b32.xlu0 %v7011_v59, %s8874_s15  ;;  %v17022_v59 = vld [vmem:[#allocation57_spill] sm:$0xff] }
 0xe5a   :  { %v8748_v23 = vpop.f32.mrf.mxu0 }
 0xe5b   :  { %7400 = vrot.lane.b32.xlu1 %v8748_v23, %s8874_s15 }
 0xe5c   :  { %v7021_v19 = vpop.f32.mrf.mxu0 }
 0xe5d   :  { %7398 = vrot.lane.b32.xlu0 %v7021_v19, %s8874_s15 }
 0xe5e   :  { %v8751_v32 = vpop.f32.mrf.mxu0 }
 0xe5f   :  { %7404 = vrot.lane.b32.xlu1 %v8751_v32, %s8874_s15 }
 0xe60   :  { %v7031_v14 = vpop.f32.mrf.mxu0 }
 0xe61   :  { %7402 = vrot.lane.b32.xlu0 %v7031_v14, %s8874_s15 }
 0xe62   :  { %v8754_v38 = vpop.f32.mrf.mxu0 }
 0xe63   :  { %7408 = vrot.lane.b32.xlu1 %v8754_v38, %s8874_s15 }
 0xe64   :  { %v7041_v48 = vpop.f32.mrf.mxu0 }
 0xe65   :  { %7406 = vrot.lane.b32.xlu0 %v7041_v48, %s8874_s15 }
 0xe66   :  { %v8757_v24 = vpop.f32.mrf.mxu0 }
 0xe67   :  { %7412 = vrot.lane.b32.xlu1 %v8757_v24, %s8874_s15 }
 0xe68   :  { %v7051_v2 = vpop.f32.mrf.mxu0 }
 0xe69   :  { %7410 = vrot.lane.b32.xlu0 %v7051_v2, %s8874_s15 }
 0xe6a   :  { %v8760_v52 = vpop.f32.mrf.mxu0 }
 0xe6b   :  { %7416 = vrot.lane.b32.xlu1 %v8760_v52, %s8874_s15  ;;  %v17023_v52 = vld [vmem:[#allocation86_spill] sm:$0xff] }
 0xe6c   :  { %v7061_v39 = vpop.f32.mrf.mxu0 }
 0xe6d   :  { %7414 = vrot.lane.b32.xlu0 %v7061_v39, %s8874_s15 }
 0xe6e   :  { %v8763_v36 = vpop.f32.mrf.mxu0 }
 0xe6f   :  { %7420 = vrot.lane.b32.xlu1 %v8763_v36, %s8874_s15 }
 0xe70   :  { %v7071_v43 = vpop.f32.mrf.mxu0 }
 0xe71   :  { %7418 = vrot.lane.b32.xlu0 %v7071_v43, %s8874_s15  ;;  %v17024_v43 = vld [vmem:[#allocation140_spill] sm:$0xff] }
 0xe72   :  { %v8766_v9 = vpop.f32.mrf.mxu0 }
 0xe73   :  { %7424 = vrot.lane.b32.xlu1 %v8766_v9, %s8874_s15 }
 0xe74   :  { %v7081_v25 = vpop.f32.mrf.mxu0 }
 0xe75   :  { %7422 = vrot.lane.b32.xlu0 %v7081_v25, %s8874_s15 }
 0xe76   :  { %v8769_v7 = vpop.f32.mrf.mxu0 }
 0xe77   :  { %7428 = vrot.lane.b32.xlu1 %v8769_v7, %s8874_s15 }
 0xe78   :  { %v7091_v18 = vpop.f32.mrf.mxu0 }
 0xe79   :  { %7426 = vrot.lane.b32.xlu0 %v7091_v18, %s8874_s15 }
 0xe7a   :  { %v8772_v1 = vpop.f32.mrf.mxu0 }
 0xe7b   :  { %7432 = vrot.lane.b32.xlu1 %v8772_v1, %s8874_s15 }
 0xe7c   :  { %v7101_v0 = vpop.f32.mrf.mxu0 }
 0xe7d   :  { %7430 = vrot.lane.b32.xlu0 %v7101_v0, %s8874_s15 }
 0xe7e   :  { %v8775_v3 = vpop.f32.mrf.mxu0 }
 0xe7f   :  { %7436 = vrot.lane.b32.xlu1 %v8775_v3, %s8874_s15  ;;  %v17025_v3 = vld [vmem:[#allocation11_spill] sm:$0xff] }
 0xe80   :  { %v7111_v28 = vpop.f32.mrf.mxu0 }
 0xe81   :  { %7434 = vrot.lane.b32.xlu0 %v7111_v28, %s8874_s15 }
 0xe82   :  { %v8778_v62 = vpop.f32.mrf.mxu0 }
 0xe83   :  { %7440 = vrot.lane.b32.xlu1 %v8778_v62, %s8874_s15 }
 0xe84   :  { %v7121_v34 = vpop.f32.mrf.mxu0 }
 0xe85   :  { %7438 = vrot.lane.b32.xlu0 %v7121_v34, %s8874_s15  ;;  %v17026_v34 = vld [vmem:[#allocation161_spill] sm:$0xff] }
 0xe86   :  { %v8781_v21 = vpop.f32.mrf.mxu0 }
 0xe87   :  { %7444 = vrot.lane.b32.xlu1 %v8781_v21, %s8874_s15 }
 0xe88   :  { %v7131_v58 = vpop.f32.mrf.mxu0 }
 0xe89   :  { %7442 = vrot.lane.b32.xlu0 %v7131_v58, %s8874_s15 }
 0xe8a   :  { %v8784_v31 = vpop.f32.mrf.mxu0 }
 0xe8b   :  { %7448 = vrot.lane.b32.xlu1 %v8784_v31, %s8874_s15 }
 0xe8c   :  { %v7141_v33 = vpop.f32.mrf.mxu0 }
 0xe8d   :  { %7446 = vrot.lane.b32.xlu0 %v7141_v33, %s8874_s15 }
 0xe8e   :  { %v8787_v40 = vpop.f32.mrf.mxu0 }
 0xe8f   :  { %7452 = vrot.lane.b32.xlu1 %v8787_v40, %s8874_s15  ;;  %v17027_v40 = vld [vmem:[#allocation115_spill] sm:$0xff] }
 0xe90   :  { %v7151_v17 = vpop.f32.mrf.mxu0 }
 0xe91   :  { %7450 = vrot.lane.b32.xlu0 %v7151_v17, %s8874_s15 }
 0xe92   :  { %v8790_v11 = vpop.f32.mrf.mxu0 }
 0xe93   :  { %7456 = vrot.lane.b32.xlu1 %v8790_v11, %s8874_s15 }
 0xe94   :  { %v7161_v15 = vpop.f32.mrf.mxu0 }
 0xe95   :  { %7454 = vrot.lane.b32.xlu0 %v7161_v15, %s8874_s15 }
 0xe96   :  { %v8793_v22 = vpop.f32.mrf.mxu0 }
 0xe97   :  { %7460 = vrot.lane.b32.xlu1 %v8793_v22, %s8874_s15  ;;  %v17028_v22 = vld [vmem:[#allocation31_spill] sm:$0xff] }
 0xe98   :  { %v7171_v37 = vpop.f32.mrf.mxu0 }
 0xe99   :  { %7458 = vrot.lane.b32.xlu0 %v7171_v37, %s8874_s15 }
 0xe9a   :  { %v8796_v6 = vpop.f32.mrf.mxu0 }
 0xe9b   :  { %7464 = vrot.lane.b32.xlu1 %v8796_v6, %s8874_s15 }
 0xe9c   :  { %v7181_v45 = vpop.f32.mrf.mxu0 }
 0xe9d   :  { %7462 = vrot.lane.b32.xlu0 %v7181_v45, %s8874_s15 }
 0xe9e   :  { %v8799_v27 = vpop.f32.mrf.mxu0 }
 0xe9f   :  { %7468 = vrot.lane.b32.xlu1 %v8799_v27, %s8874_s15  ;;  %v17029_v27 = vld [vmem:[#allocation35_spill] sm:$0xff] }
 0xea0   :  { %v7191_v5 = vpop.f32.mrf.mxu0 }
 0xea1   :  { %7466 = vrot.lane.b32.xlu0 %v7191_v5, %s8874_s15 }
 0xea2   :  { %v8802_v63 = vpop.f32.mrf.mxu0 }
 0xea3   :  { %7472 = vrot.lane.b32.xlu1 %v8802_v63, %s8874_s15 }
 0xea4   :  { %v7201_v51 = vpop.f32.mrf.mxu0 }
 0xea5   :  { %7470 = vrot.lane.b32.xlu0 %v7201_v51, %s8874_s15 }
 0xea6   :  { %v8805_v55 = vpop.f32.mrf.mxu0 }
 0xea7   :  { %7476 = vrot.lane.b32.xlu1 %v8805_v55, %s8874_s15  ;;  %v17030_v55 = vld [vmem:[#allocation162_spill] sm:$0xff] }
 0xea8   :  { %v7211_v13 = vpop.f32.mrf.mxu0 }
 0xea9   :  { %7474 = vrot.lane.b32.xlu0 %v7211_v13, %s8874_s15 }
 0xeaa   :  { %v8808_v4 = vpop.f32.mrf.mxu0 }
 0xeab   :  { %7480 = vrot.lane.b32.xlu1 %v8808_v4, %s8874_s15 }
 0xeac   :  { %v7221_v46 = vpop.f32.mrf.mxu0 }
 0xead   :  { %7478 = vrot.lane.b32.xlu0 %v7221_v46, %s8874_s15 }
 0xeae   :  { %v8811_v49 = vpop.f32.mrf.mxu0 }
 0xeaf   :  { %7484 = vrot.lane.b32.xlu1 %v8811_v49, %s8874_s15  ;;  %v17031_v49 = vld [vmem:[#allocation95_spill] sm:$0xff] }
 0xeb0   :  { %v7231_v50 = vpop.f32.mrf.mxu0 }
 0xeb1   :  { %7482 = vrot.lane.b32.xlu0 %v7231_v50, %s8874_s15 }
 0xeb2   :  { %v8814_v44 = vpop.f32.mrf.mxu0 }
 0xeb3   :  { %7488 = vrot.lane.b32.xlu1 %v8814_v44, %s8874_s15 }
 0xeb4   :  { %v7241_v35 = vpop.f32.mrf.mxu0 }
 0xeb5   :  { %7486 = vrot.lane.b32.xlu0 %v7241_v35, %s8874_s15 }
 0xeb6   :  { %v8817_v47 = vpop.f32.mrf.mxu0 }
 0xeb7   :  { %7492 = vrot.lane.b32.xlu1 %v8817_v47, %s8874_s15  ;;  %v17032_v47 = vld [vmem:[#allocation29_spill] sm:$0xff] }
 0xeb8   :  { %v7251_v41 = vpop.f32.mrf.mxu0 }
 0xeb9   :  { %7490 = vrot.lane.b32.xlu0 %v7251_v41, %s8874_s15 }
 0xeba   :  { %v8820_v8 = vpop.f32.mrf.mxu0 }
 0xebb   :  { %7496 = vrot.lane.b32.xlu1 %v8820_v8, %s8874_s15 }
 0xebc   :  { %v7261_v12 = vpop.f32.mrf.mxu0 }
 0xebd   :  { %7494 = vrot.lane.b32.xlu0 %v7261_v12, %s8874_s15 }
 0xebe   :  { %v8823_v26 = vpop.f32.mrf.mxu0 }
 0xebf   :  { %7500 = vrot.lane.b32.xlu1 %v8823_v26, %s8874_s15  ;;  %v17033_v26 = vld [vmem:[#allocation120_spill] sm:$0xff] }
 0xec0   :  { %v7271_v56 = vpop.f32.mrf.mxu0 }
 0xec1   :  { %7498 = vrot.lane.b32.xlu0 %v7271_v56, %s8874_s15 }
 0xec2   :  { %v8826_v42 = vpop.f32.mrf.mxu0 }
 0xec3   :  { %7504 = vrot.lane.b32.xlu1 %v8826_v42, %s8874_s15 }
 0xec4   :  { %v7281_v29 = vpop.f32.mrf.mxu0 }
 0xec5   :  { %7502 = vrot.lane.b32.xlu0 %v7281_v29, %s8874_s15 }
 0xec6   :  { %v8829_v61 = vpop.f32.mrf.mxu0 }
 0xec7   :  { %7508 = vrot.lane.b32.xlu1 %v8829_v61, %s8874_s15  ;;  %v17034_v61 = vld [vmem:[#allocation59_spill] sm:$0xff] }
 0xec8   :  { %v7291_v20 = vpop.f32.mrf.mxu0 }
 0xec9   :  { %v7397_v30 = vpop.permute.xlu1 %7396  ;;  %7506 = vrot.lane.b32.xlu0 %v7291_v20, %s8874_s15 }
 0xeca   :  { %v8832_v10 = vpop.f32.mrf.mxu0  ;;  %v7587_v57 = vadd.f32 %v7397_v30, %v17021_v16  ;;  %v17035_v16 = vld [vmem:[#allocation142_spill] sm:$0xff] }
 0xecb   :  { %7512 = vrot.lane.b32.xlu1 %v8832_v10, %s8874_s15  ;;  %v7395_v54 = vpop.permute.xlu0 %7394 }
 0xecc   :  { %v7301_v53 = vpop.f32.mrf.mxu0  ;;  %v7586_v23 = vadd.f32 %v7395_v54, %v17022_v59  ;;  %v7660_v14 = vadd.f32 %v15706_v60, %v7587_v57  ;;  %v17036_v59 = vld [vmem:[#allocation88_spill] sm:$0xff] }
 0xecd   :  { %v7401_v19 = vpop.permute.xlu1 %7400  ;;  %7510 = vrot.lane.b32.xlu0 %v7301_v53, %s8874_s15 }
 0xece   :  { %v8835_v32 = vpop.f32.mrf.mxu0  ;;  %v7659_v48 = vadd.f32 %v15706_v60, %v7586_v23  ;;  %v7589_v39 = vadd.f32 %v7401_v19, %v17023_v52 }
 0xecf   :  { %7516 = vrot.lane.b32.xlu1 %v8835_v32, %s8874_s15  ;;  %v7399_v38 = vpop.permute.xlu0 %7398 }
 0xed0   :  { %v7311_v2 = vpop.f32.mrf.mxu0  ;;  %v7588_v9 = vadd.f32 %v7399_v38, %v17024_v43  ;;  %v7662_v18 = vadd.f32 %v15706_v60, %v7589_v39  ;;  %v17039_v43 = vld [vmem:[#allocation163_spill] sm:$0xff] }
 0xed1   :  { %v7405_v24 = vpop.permute.xlu1 %7404  ;;  %7789 = vrot.lane.b32.xlu0 %v7660_v14, %s8886_s7  ;;  %v17037_v14 = vld [vmem:[#allocation12_spill] sm:$0xff] }
 0xed2   :  { %v8838_v7 = vpop.f32.mrf.mxu0  ;;  %v7661_v0 = vadd.f32 %v15706_v60, %v7588_v9  ;;  %v7591_v21 = vadd.f32 %v7405_v24, %v17026_v34 }
 0xed3   :  { %7787 = vrot.lane.b32.xlu1 %v7659_v48, %s8886_s7  ;;  %v7403_v36 = vpop.permute.xlu0 %7402 }
 0xed4   :  { %v7590_v28 = vadd.f32 %v7403_v36, %v17025_v3  ;;  %v7321_v31 = vpop.f32.mrf.mxu0  ;;  %v7664_v15 = vadd.f32 %v15706_v60, %v7591_v21 }
 0xed5   :  { %v7409_v25 = vpop.permute.xlu1 %7408  ;;  %7514 = vrot.lane.b32.xlu0 %v7311_v2, %s8874_s15  ;;  %v17038_v2 = vld [vmem:[#allocation13_spill] sm:$0xff] }
 0xed6   :  { %v7663_v33 = vadd.f32 %v15706_v60, %v7590_v28  ;;  %v7593_v37 = vadd.f32 %v7409_v25, %v17028_v22  ;;  %v17041_v28 = vld [vmem:[#allocation38_spill] sm:$0xff] }
 0xed7   :  { %7520 = vrot.lane.b32.xlu1 %v8838_v7, %s8874_s15  ;;  %v7407_v1 = vpop.permute.xlu0 %7406 }
 0xed8   :  { %v7592_v17 = vadd.f32 %v7407_v1, %v17027_v40  ;;  %v7666_v51 = vadd.f32 %v15706_v60, %v7593_v37  ;;  %v17044_v37 = vld [vmem:[#allocation97_spill] sm:$0xff] }
 0xed9   :  { %v7413_v62 = vpop.permute.xlu1 %7412  ;;  %7793 = vrot.lane.b32.xlu0 %v7662_v18, %s8886_s7  ;;  %v17040_v18 = vld [vmem:[#allocation117_spill] sm:$0xff] }
 0xeda   :  { %v7665_v45 = vadd.f32 %v15706_v60, %v7592_v17  ;;  %v7595_v13 = vadd.f32 %v7413_v62, %v17030_v55  ;;  %v17043_v17 = vld [vmem:[#allocation166_spill] sm:$0xff] }
 0xedb   :  { %7791 = vrot.lane.b32.xlu1 %v7661_v0, %s8886_s7  ;;  %v7411_v58 = vpop.permute.xlu0 %7410 }
 0xedc   :  { %v7594_v5 = vadd.f32 %v7411_v58, %v17029_v27  ;;  %v7668_v35 = vadd.f32 %v15706_v60, %v7595_v13  ;;  %v17042_v58 = vld [vmem:[#allocation40_spill] sm:$0xff]  ;;  %v17046_v13 = vld [vmem:[#allocation122_spill] sm:$0xff] }
 0xedd   :  { %v7417_v11 = vpop.permute.xlu1 %7416  ;;  %7518 = vrot.lane.b32.xlu0 %v7321_v31, %s8874_s15 }
 0xede   :  { %v7667_v46 = vadd.f32 %v15706_v60, %v7594_v5  ;;  %v7597_v41 = vadd.f32 %v7417_v11, %v17032_v47  ;;  %v17045_v5 = vld [vmem:[#allocation32_spill] sm:$0xff] }
 0xedf   :  { %7795 = vrot.lane.b32.xlu1 %v7663_v33, %s8886_s7  ;;  %v7415_v6 = vpop.permute.xlu0 %7414 }
 0xee0   :  { %v7596_v50 = vadd.f32 %v7415_v6, %v17031_v49  ;;  %v7670_v29 = vadd.f32 %v15706_v60, %v7597_v41  ;;  %v17048_v41 = vld [vmem:[#allocation143_spill] sm:$0xff] }
 0xee1   :  { %v7421_v63 = vpop.permute.xlu1 %7420  ;;  %7797 = vrot.lane.b32.xlu0 %v7664_v15, %s8886_s7 }
 0xee2   :  { %v7669_v12 = vadd.f32 %v15706_v60, %v7596_v50  ;;  %v7599_v20 = vadd.f32 %v7421_v63, %v17034_v61  ;;  %v17047_v50 = vld [vmem:[#allocation61_spill] sm:$0xff] }
 0xee3   :  { %7799 = vrot.lane.b32.xlu1 %v7665_v45, %s8886_s7  ;;  %v7419_v4 = vpop.permute.xlu0 %7418 }
 0xee4   :  { %v7598_v56 = vadd.f32 %v7419_v4, %v17033_v26  ;;  %v7672_v53 = vadd.f32 %v15706_v60, %v7599_v20  ;;  %v17050_v20 = vld [vmem:[#allocation14_spill] sm:$0xff] }
 0xee5   :  { %v7425_v44 = vpop.permute.xlu1 %7424  ;;  %7801 = vrot.lane.b32.xlu0 %v7666_v51, %s8886_s7 }
 0xee6   :  { %v7671_v10 = vadd.f32 %v15706_v60, %v7598_v56  ;;  %v7601_v23 = vadd.f32 %v7425_v44, %v17036_v59  ;;  %v17049_v56 = vld [vmem:[#allocation90_spill] sm:$0xff] }
 0xee7   :  { %7803 = vrot.lane.b32.xlu1 %v7667_v46, %s8886_s7  ;;  %v7423_v8 = vpop.permute.xlu0 %7422 }
 0xee8   :  { %v7600_v57 = vadd.f32 %v7423_v8, %v17035_v16  ;;  %v7674_v24 = vadd.f32 %v15706_v60, %v7601_v23  ;;  %v17052_v23 = vld [vmem:[#allocation119_spill] sm:$0xff] }
 0xee9   :  { %v7429_v42 = vpop.permute.xlu1 %7428  ;;  %7805 = vrot.lane.b32.xlu0 %v7668_v35, %s8886_s7 }
 0xeea   :  { %v7673_v32 = vadd.f32 %v15706_v60, %v7600_v57  ;;  %v7603_v52 = vadd.f32 %v7429_v42, %v17038_v2  ;;  %v17051_v57 = vld [vmem:[#allocation164_spill] sm:$0xff] }
 0xeeb   :  { %7807 = vrot.lane.b32.xlu1 %v7669_v12, %s8886_s7  ;;  %v7427_v30 = vpop.permute.xlu0 %7426 }
 0xeec   :  { %v7602_v38 = vadd.f32 %v7427_v30, %v17037_v14  ;;  %v7676_v7 = vadd.f32 %v15706_v60, %v7603_v52  ;;  %v17054_v52 = vld [vmem:[#allocation48_spill] sm:$0xff] }
 0xeed   :  { %v7433_v54 = vpop.permute.xlu1 %7432  ;;  %7809 = vrot.lane.b32.xlu0 %v7670_v29, %s8886_s7 }
 0xeee   :  { %v7675_v36 = vadd.f32 %v15706_v60, %v7602_v38  ;;  %v7605_v1 = vadd.f32 %v7433_v54, %v17040_v18  ;;  %v17053_v38 = vld [vmem:[#allocation44_spill] sm:$0xff] }
 0xeef   :  { %7811 = vrot.lane.b32.xlu1 %v7671_v10, %s8886_s7  ;;  %v7431_v19 = vpop.permute.xlu0 %7430 }
 0xef0   :  { %v7604_v9 = vadd.f32 %v7431_v19, %v17039_v43  ;;  %v7678_v21 = vadd.f32 %v15706_v60, %v7605_v1  ;;  %v17056_v1 = vld [vmem:[#allocation98_spill] sm:$0xff] }
 0xef1   :  { %v7437_v48 = vpop.permute.xlu1 %7436  ;;  %7813 = vrot.lane.b32.xlu0 %v7672_v53, %s8886_s7 }
 0xef2   :  { %v7677_v3 = vadd.f32 %v15706_v60, %v7604_v9  ;;  %v7607_v31 = vadd.f32 %v7437_v48, %v17042_v58  ;;  %v17055_v9 = vld [vmem:[#allocation168_spill] sm:$0xff] }
 0xef3   :  { %7815 = vrot.lane.b32.xlu1 %v7673_v32, %s8886_s7  ;;  %v7435_v39 = vpop.permute.xlu0 %7434 }
 0xef4   :  { %v7606_v62 = vadd.f32 %v7435_v39, %v17041_v28  ;;  %v7680_v22 = vadd.f32 %v15706_v60, %v7607_v31  ;;  %v17058_v31 = vld [vmem:[#allocation169_spill] sm:$0xff] }
 0xef5   :  { %v7441_v25 = vpop.permute.xlu1 %7440  ;;  %7817 = vrot.lane.b32.xlu0 %v7674_v24, %s8886_s7 }
 0xef6   :  { %v7679_v40 = vadd.f32 %v15706_v60, %v7606_v62  ;;  %v7609_v6 = vadd.f32 %v7441_v25, %v17044_v37  ;;  %v17057_v62 = vld [vmem:[#allocation34_spill] sm:$0xff] }
 0xef7   :  { %7819 = vrot.lane.b32.xlu1 %v7675_v36, %s8886_s7  ;;  %v7439_v0 = vpop.permute.xlu0 %7438 }
 0xef8   :  { %v7608_v11 = vadd.f32 %v7439_v0, %v17043_v17  ;;  %v7682_v55 = vadd.f32 %v15706_v60, %v7609_v6  ;;  %v17060_v6 = vld [vmem:[#allocation63_spill] sm:$0xff] }
 0xef9   :  { %v7445_v34 = vpop.permute.xlu1 %7444  ;;  %7821 = vrot.lane.b32.xlu0 %v7676_v7, %s8886_s7 }
 0xefa   :  { %v7681_v27 = vadd.f32 %v15706_v60, %v7608_v11  ;;  %v7611_v4 = vadd.f32 %v7445_v34, %v17046_v13  ;;  %v17059_v11 = vld [vmem:[#allocation124_spill] sm:$0xff] }
 0xefb   :  { %7823 = vrot.lane.b32.xlu1 %v7677_v3, %s8886_s7  ;;  %v7443_v33 = vpop.permute.xlu0 %7442 }
 0xefc   :  { %v7610_v63 = vadd.f32 %v7443_v33, %v17045_v5  ;;  %v7684_v47 = vadd.f32 %v15706_v60, %v7611_v4  ;;  %v17062_v4 = vld [vmem:[#allocation92_spill] sm:$0xff] }
 0xefd   :  { %v7449_v15 = vpop.permute.xlu1 %7448  ;;  %7825 = vrot.lane.b32.xlu0 %v7678_v21, %s8886_s7 }
 0xefe   :  { %v7683_v49 = vadd.f32 %v15706_v60, %v7610_v63  ;;  %v7613_v8 = vadd.f32 %v7449_v15, %v17048_v41  ;;  %v17061_v63 = vld [vmem:[#allocation145_spill] sm:$0xff] }
 0xeff   :  { %7827 = vrot.lane.b32.xlu1 %v7679_v40, %s8886_s7  ;;  %v7447_v45 = vpop.permute.xlu0 %7446 }
 0xf00   :  { %v7612_v44 = vadd.f32 %v7447_v45, %v17047_v50  ;;  %v7686_v61 = vadd.f32 %v15706_v60, %v7613_v8  ;;  %v17064_v8 = vld [vmem:[#allocation16_spill] sm:$0xff] }
 0xf01   :  { %v7453_v51 = vpop.permute.xlu1 %7452  ;;  %7829 = vrot.lane.b32.xlu0 %v7680_v22, %s8886_s7 }
 0xf02   :  { %v7685_v26 = vadd.f32 %v15706_v60, %v7612_v44  ;;  %v7615_v30 = vadd.f32 %v7453_v51, %v17050_v20  ;;  %v17063_v44 = vld [vmem:[#allocation15_spill] sm:$0xff] }
 0xf03   :  { %7831 = vrot.lane.b32.xlu1 %v7681_v27, %s8886_s7  ;;  %v7451_v46 = vpop.permute.xlu0 %7450 }
 0xf04   :  { %v7614_v42 = vadd.f32 %v7451_v46, %v17049_v56  ;;  %v7688_v59 = vadd.f32 %v15706_v60, %v7615_v30  ;;  %v17066_v30 = vld [vmem:[#allocation121_spill] sm:$0xff] }
 0xf05   :  { %v7457_v35 = vpop.permute.xlu1 %7456  ;;  %7833 = vrot.lane.b32.xlu0 %v7682_v55, %s8886_s7 }
 0xf06   :  { %v7687_v16 = vadd.f32 %v15706_v60, %v7614_v42  ;;  %v7617_v19 = vadd.f32 %v7457_v35, %v17052_v23  ;;  %v17065_v42 = vld [vmem:[#allocation165_spill] sm:$0xff] }
 0xf07   :  { %7835 = vrot.lane.b32.xlu1 %v7683_v49, %s8886_s7  ;;  %v7455_v12 = vpop.permute.xlu0 %7454 }
 0xf08   :  { %v7616_v54 = vadd.f32 %v7455_v12, %v17051_v57  ;;  %v7690_v2 = vadd.f32 %v15706_v60, %v7617_v19  ;;  %v17068_v19 = vld [vmem:[#allocation56_spill] sm:$0xff] }
 0xf09   :  { %v7461_v29 = vpop.permute.xlu1 %7460  ;;  %7837 = vrot.lane.b32.xlu0 %v7684_v47, %s8886_s7 }
 0xf0a   :  { %v7689_v14 = vadd.f32 %v15706_v60, %v7616_v54  ;;  %v7619_v39 = vadd.f32 %v7461_v29, %v17054_v52  ;;  %v17067_v54 = vld [vmem:[#allocation52_spill] sm:$0xff] }
 0xf0b   :  { %7839 = vrot.lane.b32.xlu1 %v7685_v26, %s8886_s7  ;;  %v7459_v10 = vpop.permute.xlu0 %7458 }
 0xf0c   :  { %v7618_v48 = vadd.f32 %v7459_v10, %v17053_v38  ;;  %v7692_v18 = vadd.f32 %v15706_v60, %v7619_v39  ;;  %v17070_v39 = vld [vmem:[#allocation99_spill] sm:$0xff] }
 0xf0d   :  { %v7465_v53 = vpop.permute.xlu1 %7464  ;;  %7841 = vrot.lane.b32.xlu0 %v7686_v61, %s8886_s7 }
 0xf0e   :  { %v7691_v43 = vadd.f32 %v15706_v60, %v7618_v48  ;;  %v7621_v0 = vadd.f32 %v7465_v53, %v17056_v1  ;;  %v17069_v48 = vld [vmem:[#allocation172_spill] sm:$0xff] }
 0xf0f   :  { %7843 = vrot.lane.b32.xlu1 %v7687_v16, %s8886_s7  ;;  %v7463_v32 = vpop.permute.xlu0 %7462 }
 0xf10   :  { %v7620_v25 = vadd.f32 %v7463_v32, %v17055_v9  ;;  %v7694_v58 = vadd.f32 %v15706_v60, %v7621_v0  ;;  %v17072_v0 = vld [vmem:[#allocation173_spill] sm:$0xff] }
 0xf11   :  { %v7469_v24 = vpop.permute.xlu1 %7468  ;;  %7845 = vrot.lane.b32.xlu0 %v7688_v59, %s8886_s7 }
 0xf12   :  { %v7693_v28 = vadd.f32 %v15706_v60, %v7620_v25  ;;  %v7623_v33 = vadd.f32 %v7469_v24, %v17058_v31  ;;  %v17071_v25 = vld [vmem:[#allocation37_spill] sm:$0xff] }
 0xf13   :  { %7847 = vrot.lane.b32.xlu1 %v7689_v14, %s8886_s7  ;;  %v7467_v36 = vpop.permute.xlu0 %7466 }
 0xf14   :  { %v7622_v34 = vadd.f32 %v7467_v36, %v17057_v62  ;;  %v7696_v37 = vadd.f32 %v15706_v60, %v7623_v33  ;;  %v17074_v33 = vld [vmem:[#allocation65_spill] sm:$0xff] }
 0xf15   :  { %v7473_v7 = vpop.permute.xlu1 %7472  ;;  %7849 = vrot.lane.b32.xlu0 %v7690_v2, %s8886_s7 }
 0xf16   :  { %v7695_v17 = vadd.f32 %v15706_v60, %v7622_v34  ;;  %v7625_v45 = vadd.f32 %v7473_v7, %v17060_v6  ;;  %v17073_v34 = vld [vmem:[#allocation125_spill] sm:$0xff] }
 0xf17   :  { %7851 = vrot.lane.b32.xlu1 %v7691_v43, %s8886_s7  ;;  %v7471_v3 = vpop.permute.xlu0 %7470 }
 0xf18   :  { %v7624_v15 = vadd.f32 %v7471_v3, %v17059_v11  ;;  %v7698_v13 = vadd.f32 %v15706_v60, %v7625_v45  ;;  %v17076_v45 = vld [vmem:[#allocation94_spill] sm:$0xff] }
 0xf19   :  { %v7477_v21 = vpop.permute.xlu1 %7476  ;;  %7853 = vrot.lane.b32.xlu0 %v7692_v18, %s8886_s7 }
 0xf1a   :  { %v7697_v5 = vadd.f32 %v15706_v60, %v7624_v15  ;;  %v7627_v46 = vadd.f32 %v7477_v21, %v17062_v4  ;;  %v17075_v15 = vld [vmem:[#allocation146_spill] sm:$0xff] }
 0xf1b   :  { %7855 = vrot.lane.b32.xlu1 %v7693_v28, %s8886_s7  ;;  %v7475_v40 = vpop.permute.xlu0 %7474 }
 0xf1c   :  { %v7626_v51 = vadd.f32 %v7475_v40, %v17061_v63  ;;  %v7700_v41 = vadd.f32 %v15706_v60, %v7627_v46  ;;  %v17078_v46 = vld [vmem:[#allocation18_spill] sm:$0xff] }
 0xf1d   :  { %v7481_v22 = vpop.permute.xlu1 %7480  ;;  %7857 = vrot.lane.b32.xlu0 %v7694_v58, %s8886_s7 }
 0xf1e   :  { %v7699_v50 = vadd.f32 %v15706_v60, %v7626_v51  ;;  %v7629_v12 = vadd.f32 %v7481_v22, %v17064_v8  ;;  %v17077_v51 = vld [vmem:[#allocation17_spill] sm:$0xff] }
 0xf1f   :  { %7859 = vrot.lane.b32.xlu1 %v7695_v17, %s8886_s7  ;;  %v7479_v27 = vpop.permute.xlu0 %7478 }
 0xf20   :  { %v7628_v35 = vadd.f32 %v7479_v27, %v17063_v44  ;;  %v7702_v20 = vadd.f32 %v15706_v60, %v7629_v12  ;;  %v17080_v12 = vld [vmem:[#allocation123_spill] sm:$0xff] }
 0xf21   :  { %v7485_v55 = vpop.permute.xlu1 %7484  ;;  %7861 = vrot.lane.b32.xlu0 %v7696_v37, %s8886_s7 }
 0xf22   :  { %v7701_v56 = vadd.f32 %v15706_v60, %v7628_v35  ;;  %v7631_v10 = vadd.f32 %v7485_v55, %v17066_v30  ;;  %v17079_v35 = vld [vmem:[#allocation167_spill] sm:$0xff] }
 0xf23   :  { %7863 = vrot.lane.b32.xlu1 %v7697_v5, %s8886_s7  ;;  %v7483_v49 = vpop.permute.xlu0 %7482 }
 0xf24   :  { %v7630_v29 = vadd.f32 %v7483_v49, %v17065_v42  ;;  %v7704_v23 = vadd.f32 %v15706_v60, %v7631_v10  ;;  %v17082_v10 = vld [vmem:[#allocation64_spill] sm:$0xff] }
 0xf25   :  { %v7489_v47 = vpop.permute.xlu1 %7488  ;;  %7865 = vrot.lane.b32.xlu0 %v7698_v13, %s8886_s7 }
 0xf26   :  { %v7703_v57 = vadd.f32 %v15706_v60, %v7630_v29  ;;  %v7633_v32 = vadd.f32 %v7489_v47, %v17068_v19  ;;  %v17081_v29 = vld [vmem:[#allocation60_spill] sm:$0xff] }
 0xf27   :  { %7867 = vrot.lane.b32.xlu1 %v7699_v50, %s8886_s7  ;;  %v7487_v26 = vpop.permute.xlu0 %7486 }
 0xf28   :  { %v7632_v53 = vadd.f32 %v7487_v26, %v17067_v54  ;;  %v7706_v52 = vadd.f32 %v15706_v60, %v7633_v32 }
 0xf29   :  { %v7493_v61 = vpop.permute.xlu1 %7492  ;;  %7869 = vrot.lane.b32.xlu0 %v7700_v41, %s8886_s7 }
 0xf2a   :  { %v7705_v38 = vadd.f32 %v15706_v60, %v7632_v53  ;;  %v7635_v36 = vadd.f32 %v7493_v61, %v17070_v39 }
 0xf2b   :  { %7871 = vrot.lane.b32.xlu1 %v7701_v56, %s8886_s7  ;;  %v7491_v16 = vpop.permute.xlu0 %7490 }
 0xf2c   :  { %v7634_v24 = vadd.f32 %v7491_v16, %v17069_v48  ;;  %v7708_v1 = vadd.f32 %v15706_v60, %v7635_v36 }
 0xf2d   :  { %v7497_v59 = vpop.permute.xlu1 %7496  ;;  %7873 = vrot.lane.b32.xlu0 %v7702_v20, %s8886_s7 }
 0xf2e   :  { %v7707_v9 = vadd.f32 %v15706_v60, %v7634_v24  ;;  %v7637_v3 = vadd.f32 %v7497_v59, %v17072_v0 }
 0xf2f   :  { %7875 = vrot.lane.b32.xlu1 %v7703_v57, %s8886_s7  ;;  %v7495_v14 = vpop.permute.xlu0 %7494 }
 0xf30   :  { %v7636_v7 = vadd.f32 %v7495_v14, %v17071_v25  ;;  %v7710_v31 = vadd.f32 %v15706_v60, %v7637_v3  ;;  %v17084_v14 = vld [vmem:[#allocation174_spill] sm:$0xff] }
 0xf31   :  { %v7501_v2 = vpop.permute.xlu1 %7500  ;;  %7877 = vrot.lane.b32.xlu0 %v7704_v23, %s8886_s7  ;;  %v17083_v23 = vld [vmem:[#allocation127_spill] sm:$0xff] }
 0xf32   :  { %v7709_v62 = vadd.f32 %v15706_v60, %v7636_v7  ;;  %v7639_v40 = vadd.f32 %v7501_v2, %v17074_v33 }
 0xf33   :  { %7879 = vrot.lane.b32.xlu1 %v7705_v38, %s8886_s7  ;;  %v7499_v43 = vpop.permute.xlu0 %7498 }
 0xf34   :  { %v7638_v21 = vadd.f32 %v7499_v43, %v17073_v34  ;;  %v7712_v6 = vadd.f32 %v15706_v60, %v7639_v40 }
 0xf35   :  { %v7505_v18 = vpop.permute.xlu1 %7504  ;;  %7881 = vrot.lane.b32.xlu0 %v7706_v52, %s8886_s7 }
 0xf36   :  { %v7711_v11 = vadd.f32 %v15706_v60, %v7638_v21  ;;  %v7641_v27 = vadd.f32 %v7505_v18, %v17076_v45 }
 0xf37   :  { %7883 = vrot.lane.b32.xlu1 %v7707_v9, %s8886_s7  ;;  %v7503_v28 = vpop.permute.xlu0 %7502 }
 0xf38   :  { %v7640_v22 = vadd.f32 %v7503_v28, %v17075_v15  ;;  %v7714_v4 = vadd.f32 %v15706_v60, %v7641_v27 }
 0xf39   :  { %v7509_v58 = vpop.permute.xlu1 %7508  ;;  %7885 = vrot.lane.b32.xlu0 %v7708_v1, %s8886_s7 }
 0xf3a   :  { %v7713_v63 = vadd.f32 %v15706_v60, %v7640_v22  ;;  %v7643_v49 = vadd.f32 %v7509_v58, %v17078_v46 }
 0xf3b   :  { %7887 = vrot.lane.b32.xlu1 %v7709_v62, %s8886_s7  ;;  %v7507_v17 = vpop.permute.xlu0 %7506 }
 0xf3c   :  { %v7642_v55 = vadd.f32 %v7507_v17, %v17077_v51  ;;  %v7716_v8 = vadd.f32 %v15706_v60, %v7643_v49 }
 0xf3d   :  { %v7513_v37 = vpop.permute.xlu1 %7512  ;;  %7889 = vrot.lane.b32.xlu0 %v7710_v31, %s8886_s7 }
 0xf3e   :  { %v7715_v44 = vadd.f32 %v15706_v60, %v7642_v55  ;;  %v7645_v26 = vadd.f32 %v7513_v37, %v17080_v12 }
 0xf3f   :  { %7891 = vrot.lane.b32.xlu1 %v7711_v11, %s8886_s7  ;;  %v7511_v5 = vpop.permute.xlu0 %7510 }
 0xf40   :  { %v7644_v47 = vadd.f32 %v7511_v5, %v17079_v35  ;;  %v7718_v30 = vadd.f32 %v15706_v60, %v7645_v26 }
 0xf41   :  { %v7517_v13 = vpop.permute.xlu1 %7516  ;;  %7893 = vrot.lane.b32.xlu0 %v7712_v6, %s8886_s7 }
 0xf42   :  { %v7717_v42 = vadd.f32 %v15706_v60, %v7644_v47  ;;  %v7647_v16 = vadd.f32 %v7517_v13, %v17082_v10 }
 0xf43   :  { %7895 = vrot.lane.b32.xlu1 %v7713_v63, %s8886_s7  ;;  %v7790_v50 = vpop.permute.xlu0 %7789 }
 0xf44   :  { %v7720_v59 = vadd.f32 %v15706_v60, %v7647_v16 }
 0xf45   :  { %v7788_v41 = vpop.permute.xlu1 %7787  ;;  %7897 = vrot.lane.b32.xlu0 %v7714_v4, %s8886_s7 }
 0xf47   :  { %7899 = vrot.lane.b32.xlu1 %v7715_v44, %s8886_s7  ;;  %v7515_v56 = vpop.permute.xlu0 %7514 }
 0xf48   :  { %v7646_v61 = vadd.f32 %v7515_v56, %v17081_v29 }
 0xf49   :  { %v7521_v20 = vpop.permute.xlu1 %7520  ;;  %7901 = vrot.lane.b32.xlu0 %v7716_v8, %s8886_s7 }
 0xf4a   :  { %v7719_v54 = vadd.f32 %v15706_v60, %v7646_v61  ;;  %v7649_v19 = vadd.f32 %v7521_v20, %v17083_v23 }
 0xf4b   :  { %7903 = vrot.lane.b32.xlu1 %v7717_v42, %s8886_s7  ;;  %v7794_v57 = vpop.permute.xlu0 %7793 }
 0xf4c   :  { %v7722_v2 = vadd.f32 %v15706_v60, %v7649_v19 }
 0xf4d   :  { %v7792_v53 = vpop.permute.xlu1 %7791  ;;  %7905 = vrot.lane.b32.xlu0 %v7718_v30, %s8886_s7 }
 0xf4f   :  { %7907 = vrot.lane.b32.xlu1 %v7719_v54, %s8886_s7  ;;  %v7519_v32 = vpop.permute.xlu0 %7518 }
 0xf50   :  { %v7648_v38 = vadd.f32 %v7519_v32, %v17084_v14 }
 0xf51   :  { %v7796_v48 = vpop.permute.xlu1 %7795  ;;  %7909 = vrot.lane.b32.xlu0 %v7720_v59, %s8886_s7 }
 0xf52   :  { %v7721_v24 = vadd.f32 %v15706_v60, %v7648_v38 }
 0xf53   :  { %v7798_v52 = vpop.permute.xlu0 %7797 }
 0xf54   :  { %7911 = vrot.lane.b32.xlu1 %v7721_v24, %s8886_s7 }
 0xf55   :  { %v7800_v39 = vpop.permute.xlu1 %7799  ;;  %7913 = vrot.lane.b32.xlu0 %v7722_v2, %s8886_s7 }
 0xf57   :  { %v7802_v36 = vpop.permute.xlu0 %7801 }
 0xf59   :  { %v7804_v43 = vpop.permute.xlu1 %7803 }
 0xf5b   :  { %v7806_v9 = vpop.permute.xlu0 %7805 }
 0xf5d   :  { %v7808_v25 = vpop.permute.xlu1 %7807 }
 0xf5f   :  { %v7810_v7 = vpop.permute.xlu0 %7809 }
 0xf61   :  { %v7812_v18 = vpop.permute.xlu1 %7811 }
 0xf63   :  { %v7814_v1 = vpop.permute.xlu0 %7813 }
 0xf65   :  { %v7816_v0 = vpop.permute.xlu1 %7815 }
 0xf67   :  { %v15908_v3 = vpop.permute.xlu0 %7817 }
 0xf69   :  { %v7820_v28 = vpop.permute.xlu1 %7819 }
 0xf6b   :  { %v7822_v62 = vpop.permute.xlu0 %7821 }
 0xf6d   :  { %v7824_v34 = vpop.permute.xlu1 %7823 }
 0xf6f   :  { %v7826_v60 = vpop.permute.xlu0 %7825 }
 0xf71   :  { %v7828_v21 = vpop.permute.xlu1 %7827 }
 0xf73   :  { %8011 = vxpose.xlu0.b32.start [1/16] (narrow) %v7820_v28, 8  ;;  %v7830_v58 = vpop.permute.xlu0 %7829 }
 0xf75   :  { %v7832_v31 = vpop.permute.xlu1 %7831 }
 0xf77   :  { %8012 = vxpose.xlu0.b32.cont [2/16] (narrow) %v7822_v62, 8  ;;  %v7834_v33 = vpop.permute.xlu0 %7833 }
 0xf79   :  { %v7836_v40 = vpop.permute.xlu1 %7835 }
 0xf7b   :  { %8013 = vxpose.xlu0.b32.cont [3/16] (narrow) %v7824_v34, 8  ;;  %v7838_v17 = vpop.permute.xlu0 %7837 }
 0xf7d   :  { %v7840_v11 = vpop.permute.xlu1 %7839  ;;  %7979 = vxpose.xlu1.b32.start [1/16] (narrow) %v7788_v41, 8 }
 0xf7f   :  { %8014 = vxpose.xlu0.b32.cont [4/16] (narrow) %v7826_v60, 8  ;;  %v7842_v15 = vpop.permute.xlu0 %7841 }
 0xf81   :  { %v7844_v22 = vpop.permute.xlu1 %7843  ;;  %7980 = vxpose.xlu1.b32.cont [2/16] (narrow) %v7790_v50, 8 }
 0xf83   :  { %8015 = vxpose.xlu0.b32.cont [5/16] (narrow) %v7828_v21, 8  ;;  %v7846_v37 = vpop.permute.xlu0 %7845 }
 0xf85   :  { %7981 = vxpose.xlu1.b32.cont [3/16] (narrow) %v7792_v53, 8  ;;  %v7848_v6 = vpop.permute.xlu1 %7847 }
 0xf87   :  { %8016 = vxpose.xlu0.b32.cont [6/16] (narrow) %v7830_v58, 8  ;;  %v7850_v45 = vpop.permute.xlu0 %7849 }
 0xf89   :  { %7982 = vxpose.xlu1.b32.cont [4/16] (narrow) %v7794_v57, 8  ;;  %v7852_v27 = vpop.permute.xlu1 %7851 }
 0xf8b   :  { %8017 = vxpose.xlu0.b32.cont [7/16] (narrow) %v7832_v31, 8  ;;  %v7854_v5 = vpop.permute.xlu0 %7853 }
 0xf8d   :  { %7983 = vxpose.xlu1.b32.cont [5/16] (narrow) %v7796_v48, 8  ;;  %v7856_v63 = vpop.permute.xlu1 %7855 }
 0xf8f   :  { %8018 = vxpose.xlu0.b32.cont [8/16] (narrow) %v7834_v33, 8  ;;  %v7858_v51 = vpop.permute.xlu0 %7857 }
 0xf91   :  { %7984 = vxpose.xlu1.b32.cont [6/16] (narrow) %v7798_v52, 8  ;;  %v7860_v55 = vpop.permute.xlu1 %7859 }
 0xf93   :  { %8019 = vxpose.xlu0.b32.cont [9/16] (narrow) %v7836_v40, 8  ;;  %v7862_v13 = vpop.permute.xlu0 %7861 }
 0xf95   :  { %7985 = vxpose.xlu1.b32.cont [7/16] (narrow) %v7800_v39, 8  ;;  %v7864_v4 = vpop.permute.xlu1 %7863 }
 0xf97   :  { %8020 = vxpose.xlu0.b32.cont [10/16] (narrow) %v7838_v17, 8  ;;  %v7866_v46 = vpop.permute.xlu0 %7865 }
 0xf99   :  { %7986 = vxpose.xlu1.b32.cont [8/16] (narrow) %v7802_v36, 8  ;;  %v7868_v49 = vpop.permute.xlu1 %7867 }
 0xf9b   :  { %8021 = vxpose.xlu0.b32.cont [11/16] (narrow) %v7840_v11, 8  ;;  %v7870_v50 = vpop.permute.xlu0 %7869 }
 0xf9d   :  { %7987 = vxpose.xlu1.b32.cont [9/16] (narrow) %v7804_v43, 8  ;;  %v7872_v44 = vpop.permute.xlu1 %7871 }
 0xf9f   :  { %8022 = vxpose.xlu0.b32.cont [12/16] (narrow) %v7842_v15, 8  ;;  %v7874_v35 = vpop.permute.xlu0 %7873 }
 0xfa1   :  { %7988 = vxpose.xlu1.b32.cont [10/16] (narrow) %v7806_v9, 8  ;;  %v7876_v47 = vpop.permute.xlu1 %7875 }
 0xfa3   :  { %8023 = vxpose.xlu0.b32.cont [13/16] (narrow) %v7844_v22, 8  ;;  %v7878_v41 = vpop.permute.xlu0 %7877 }
 0xfa5   :  { %7989 = vxpose.xlu1.b32.cont [11/16] (narrow) %v7808_v25, 8  ;;  %v7880_v8 = vpop.permute.xlu1 %7879 }
 0xfa7   :  { %8024 = vxpose.xlu0.b32.cont [14/16] (narrow) %v7846_v37, 8  ;;  %v7882_v12 = vpop.permute.xlu0 %7881 }
 0xfa9   :  { %7990 = vxpose.xlu1.b32.cont [12/16] (narrow) %v7810_v7, 8  ;;  %v7884_v26 = vpop.permute.xlu1 %7883 }
 0xfab   :  { %8025 = vxpose.xlu0.b32.cont [15/16] (narrow) %v7848_v6, 8  ;;  %v7886_v56 = vpop.permute.xlu0 %7885 }
 0xfad   :  { %7991 = vxpose.xlu1.b32.cont [13/16] (narrow) %v7812_v18, 8  ;;  %v7888_v42 = vpop.permute.xlu1 %7887 }
 0xfaf   :  { %8026 = vxpose.xlu0.b32.end [16/16] (narrow) %v7850_v45, 8  ;;  %v7890_v29 = vpop.permute.xlu0 %7889 }
 0xfb1   :  { %7992 = vxpose.xlu1.b32.cont [14/16] (narrow) %v7814_v1, 8  ;;  %v7892_v61 = vpop.permute.xlu1 %7891 }
 0xfb3   :  { %8043 = vxpose.xlu0.b32.start [1/16] (narrow) %v7852_v27, 8  ;;  %v7894_v20 = vpop.permute.xlu0 %7893 }
 0xfb5   :  { %7993 = vxpose.xlu1.b32.cont [15/16] (narrow) %v7816_v0, 8  ;;  %v7896_v10 = vpop.permute.xlu1 %7895 }
 0xfb7   :  { %8044 = vxpose.xlu0.b32.cont [2/16] (narrow) %v7854_v5, 8  ;;  %v7898_v30 = vpop.permute.xlu0 %7897 }
 0xfb9   :  { %7994 = vxpose.xlu1.b32.end [16/16] (narrow) %v15908_v3, 8  ;;  %v7900_v57 = vpop.permute.xlu1 %7899 }
 0xfbb   :  { %8045 = vxpose.xlu0.b32.cont [3/16] (narrow) %v7856_v63, 8  ;;  %v7902_v16 = vpop.permute.xlu0 %7901 }
 0xfbd   :  { %8075 = vxpose.xlu1.b32.start [1/16] (narrow) %v7884_v26, 8  ;;  %v7904_v53 = vpop.permute.xlu1 %7903 }
 0xfbf   :  { %8046 = vxpose.xlu0.b32.cont [4/16] (narrow) %v7858_v51, 8  ;;  %v7906_v54 = vpop.permute.xlu0 %7905 }
 0xfc1   :  { %8076 = vxpose.xlu1.b32.cont [2/16] (narrow) %v7886_v56, 8  ;;  %v7908_v19 = vpop.permute.xlu1 %7907 }
 0xfc3   :  { %8047 = vxpose.xlu0.b32.cont [5/16] (narrow) %v7860_v55, 8  ;;  %v7910_v59 = vpop.permute.xlu0 %7909 }
 0xfc5   :  { %8077 = vxpose.xlu1.b32.cont [3/16] (narrow) %v7888_v42, 8 }
 0xfc6   :  { %v7912_v14 = vpop.permute.xlu1 %7911 }
 0xfc7   :  { %8048 = vxpose.xlu0.b32.cont [6/16] (narrow) %v7862_v13, 8  ;;  %v7914_v23 = vpop.permute.xlu0 %7913 }
 0xfc9   :  { %8078 = vxpose.xlu1.b32.cont [4/16] (narrow) %v7890_v29, 8 }
 0xfcb   :  { %8049 = vxpose.xlu0.b32.cont [7/16] (narrow) %v7864_v4, 8 }
 0xfcd   :  { %8079 = vxpose.xlu1.b32.cont [5/16] (narrow) %v7892_v61, 8 }
 0xfcf   :  { %8050 = vxpose.xlu0.b32.cont [8/16] (narrow) %v7866_v46, 8 }
 0xfd1   :  { %8080 = vxpose.xlu1.b32.cont [6/16] (narrow) %v7894_v20, 8 }
 0xfd3   :  { %8051 = vxpose.xlu0.b32.cont [9/16] (narrow) %v7868_v49, 8 }
 0xfd5   :  { %8081 = vxpose.xlu1.b32.cont [7/16] (narrow) %v7896_v10, 8 }
 0xfd7   :  { %8052 = vxpose.xlu0.b32.cont [10/16] (narrow) %v7870_v50, 8 }
 0xfd9   :  { %8082 = vxpose.xlu1.b32.cont [8/16] (narrow) %v7898_v30, 8 }
 0xfdb   :  { %8053 = vxpose.xlu0.b32.cont [11/16] (narrow) %v7872_v44, 8 }
 0xfdd   :  { %8083 = vxpose.xlu1.b32.cont [9/16] (narrow) %v7900_v57, 8 }
 0xfdf   :  { %8054 = vxpose.xlu0.b32.cont [12/16] (narrow) %v7874_v35, 8 }
 0xfe1   :  { %8084 = vxpose.xlu1.b32.cont [10/16] (narrow) %v7902_v16, 8 }
 0xfe3   :  { %8055 = vxpose.xlu0.b32.cont [13/16] (narrow) %v7876_v47, 8 }
 0xfe5   :  { %8085 = vxpose.xlu1.b32.cont [11/16] (narrow) %v7904_v53, 8 }
 0xfe7   :  { %8056 = vxpose.xlu0.b32.cont [14/16] (narrow) %v7878_v41, 8 }
 0xfe9   :  { %8086 = vxpose.xlu1.b32.cont [12/16] (narrow) %v7906_v54, 8 }
 0xfeb   :  { %8057 = vxpose.xlu0.b32.cont [15/16] (narrow) %v7880_v8, 8 }
 0xfed   :  { %8087 = vxpose.xlu1.b32.cont [13/16] (narrow) %v7908_v19, 8 }
 0xfef   :  { %8058 = vxpose.xlu0.b32.end [16/16] (narrow) %v7882_v12, 8  ;;  %v8027_v32 = vpop.trf.xlu0 }
 0xff0   :  { %8108 = vst [vmem:[%s15932_s9 + $0x8] sm:$0xff] %v8027_v32 }
 0xff1   :  { %8088 = vxpose.xlu1.b32.cont [14/16] (narrow) %v7910_v59, 8 }
 0xff5   :  { %8089 = vxpose.xlu1.b32.cont [15/16] (narrow) %v7912_v14, 8 }
 0xff9   :  { %8090 = vxpose.xlu1.b32.end [16/16] (narrow) %v7914_v23, 8  ;;  %v7995_v38 = vpop.trf.xlu1 }
 0xffa   :  { %8107 = vst [vmem:[%s15932_s9] sm:$0xff] %v7995_v38 }
0x102f   :  { %v8059_v48 = vpop.trf.xlu0 }
0x1030   :  { %8312 = vst [vmem:[%s15932_s9 + $0x10] sm:$0xff] %v8059_v48 }
0x1039   :  { %v8091_v24 = vpop.trf.xlu1 }
0x103a   :  { %8313 = vst [vmem:[%s15932_s9 + $0x18] sm:$0xff] %v8091_v24 }

</bundles_post_ra>
